<compile_context>
chip_gen: v7x
topology: tpu7x:2x2x1
jax: 0.10.0
libtpu: 0.0.40
codegen_flags: <defaults>
</compile_context>

<pallas_src>
import math
from functools import partial

import jax
import jax.numpy as jnp
from jax.experimental import pallas as pl
from jax.experimental.pallas import tpu as pltpu


_VMEM_LIMIT = 48 * 1024 * 1024        # scoped-VMEM budget (<= v7x's 64 MiB physical)
_CONV_VMEM_BUDGET = 36 * 1024 * 1024  # planning budget when picking conv row tiles
_MAX_M = 4096                         # max matmul-M per conv block
_RED_TILE_ROWS = 1024                 # (1024,128) f32 reduction blocks (~85% HBM roofline)


# ----------------------------------------------------------------------------------
# Pallas kernels
# ----------------------------------------------------------------------------------
def _conv_mm_kernel(x_ref, w_ref, b_ref, o_ref, *scratch, shifts):
    """3x3 conv (or plain matmul) + bias + ReLU with a single deep-K MXU dot.

    x_ref  : (1, P2, Cin) bf16   flattened padded row-window held in VMEM
    w_ref  : (taps*Cin, Cout) bf16  resident weights (taps = len(shifts))
    b_ref  : (1, Cout) f32          resident bias
    o_ref  : (1, M, Cout)           M output positions
    scratch: optional (M, taps*Cin) bf16 VMEM operand buffer (only when taps > 1)
    """
    m = o_ref.shape[1]
    if len(shifts) == 1:                       # pre-im2col'd input (first VGG layer)
        op = x_ref[0, shifts[0]:shifts[0] + m, :]
    else:                                      # in-kernel im2col: 9 taps -> one operand
        op_ref = scratch[0]
        cin = x_ref.shape[2]
        for k, s in enumerate(shifts):
            op_ref[:, k * cin:(k + 1) * cin] = x_ref[0, s:s + m, :]
        op = op_ref[...]
    acc = jnp.dot(op, w_ref[...], preferred_element_type=jnp.float32)   # single deep-K dot
    o_ref[0] = jnp.maximum(acc + b_ref[...], 0.0).astype(o_ref.dtype)   # single store


def _sq_diff_sum_kernel(a_ref, b_ref, o_ref):
    """Accumulate sum((a-b)^2) of this (tile,128) block into a resident (1,8,128) block."""
    @pl.when(pl.program_id(1) == 0)
    def _():
        o_ref[...] = jnp.zeros_like(o_ref)
    d = a_ref[...].astype(jnp.float32) - b_ref[...].astype(jnp.float32)
    o_ref[0, 0:1, :] += jnp.sum(d * d, axis=0, keepdims=True)


def _log_sum_kernel(x_ref, o_ref):
    """Accumulate sum(log(x)) of this (tile,128) block into a resident (1,8,128) block."""
    @pl.when(pl.program_id(1) == 0)
    def _():
        o_ref[...] = jnp.zeros_like(o_ref)
    o_ref[0, 0:1, :] += jnp.sum(jnp.log(x_ref[...].astype(jnp.float32)),
                                axis=0, keepdims=True)


# ----------------------------------------------------------------------------------
# Conv wrapper (Pallas-backed)
# ----------------------------------------------------------------------------------
def _pick_row_tile(H, row_w, cin, cout, taps):
    """Largest divisor th of H whose per-block VMEM footprint fits the planning budget."""
    # TODO(synk): if even th=1 violates the budget (very wide images), fall back to
    # column tiling instead of silently returning 1.
    best = 1
    halo = 3 if taps == 9 else 0
    for th in range(1, H + 1):
        if H % th:
            continue
        M = th * row_w
        if M > _MAX_M:
            continue
        P2 = (th + halo) * row_w
        est = (2 * P2 * cin * 2            # input window, double-buffered, bf16
               + 2 * taps * cin * cout * 2 # weights, double-buffered, bf16
               + 2 * M * cout * 2          # output block, double-buffered, bf16
               + M * taps * cin * 2        # im2col operand scratch, bf16
               + M * cout * 4)             # f32 matmul result before cast
        if est <= _CONV_VMEM_BUDGET:
            best = th
    return best


def _conv_call(xflat, wmat, bmat, shifts, M, out_dtype):
    G, P2, Cin = xflat.shape
    K, Cout = wmat.shape
    scratch = [pltpu.VMEM((M, K), jnp.bfloat16)] if len(shifts) > 1 else []
    return pl.pallas_call(
        partial(_conv_mm_kernel, shifts=shifts),
        out_shape=jax.ShapeDtypeStruct((G, M, Cout), out_dtype),
        grid_spec=pltpu.PrefetchScalarGridSpec(
            num_scalar_prefetch=0,
            grid=(G,),
            in_specs=[
                pl.BlockSpec((1, P2, Cin), lambda g: (g, 0, 0)),
                # TODO(synk): pipeline_mode=pl.Buffered(1) on the two resident blocks
                # below would halve their VMEM footprint (constant index_map).
                pl.BlockSpec((K, Cout), lambda g: (0, 0)),
                pl.BlockSpec((1, Cout), lambda g: (0, 0)),
            ],
            out_specs=pl.BlockSpec((1, M, Cout), lambda g: (g, 0, 0)),
            scratch_shapes=scratch,
        ),
        compiler_params=pltpu.CompilerParams(
            dimension_semantics=("parallel",),
            vmem_limit_bytes=_VMEM_LIMIT,
        ),
    )(xflat, wmat, bmat)


def conv3x3_relu(x, w, b, out_dtype=jnp.bfloat16):
    """3x3 conv, stride 1, padding 1, + ReLU.  x:(NB,H,W,Cin) NHWC, w:(3,3,Cin,Cout)."""
    NB, H, W, Cin = x.shape
    Cout = w.shape[-1]
    Wp = W + 2
    th = _pick_row_tile(H, Wp, Cin, Cout, taps=9)
    nt = H // th
    P2 = (th + 3) * Wp                 # window: th rows + 2 halo rows + 1 slack row
    M = th * Wp                        # output positions (2 garbage cols per row)

    xb = x.astype(jnp.bfloat16)
    xp = jnp.pad(xb, ((0, 0), (1, 2), (1, 1), (0, 0)))   # top halo; bottom halo+slack; W halo
    # TODO(synk): the overlapping row windows below could be expressed with element-
    # offset BlockSpecs over a flattened padded slab to remove this glue copy.
    if nt == 1:
        xwin = xp[:, None]
    else:
        xwin = jnp.stack([xp[:, t * th: t * th + th + 3] for t in range(nt)], axis=1)
    xflat = xwin.reshape(NB * nt, P2, Cin)

    wmat = w.reshape(9 * Cin, Cout).astype(jnp.bfloat16)  # tap order (dy, dx, cin)
    bmat = b.reshape(1, Cout).astype(jnp.float32)
    shifts = tuple(dy * Wp + dx for dy in range(3) for dx in range(3))

    out = _conv_call(xflat, wmat, bmat, shifts, M, out_dtype)
    # drop the 2 garbage columns per output row, restore (NB, H, W, Cout)
    # TODO(synk): a lane-dense packed output + writing directly into the next layer's
    # padded layout would remove this slice and the next layer's jnp.pad.
    out = out.reshape(NB, nt, th, Wp, Cout)[:, :, :, :W, :]
    return out.reshape(NB, H, W, Cout)


def conv3x3_relu_small_cin(x, w, b, out_dtype=jnp.bfloat16):
    """First-layer special case (Cin=3): cheap glue im2col -> K=27 matmul kernel."""
    NB, H, W, Cin = x.shape
    Cout = w.shape[-1]
    K = 9 * Cin
    xb = x.astype(jnp.bfloat16)
    xp = jnp.pad(xb, ((0, 0), (1, 1), (1, 1), (0, 0)))
    patches = jnp.concatenate(
        [xp[:, dy:dy + H, dx:dx + W, :] for dy in range(3) for dx in range(3)],
        axis=-1)                                          # (NB, H, W, 27) — tiny copy
    th = _pick_row_tile(H, W, K, Cout, taps=1)
    nt = H // th
    M = th * W
    xflat = patches.reshape(NB * nt, M, K)
    wmat = w.reshape(K, Cout).astype(jnp.bfloat16)        # same (dy, dx, cin) order
    bmat = b.reshape(1, Cout).astype(jnp.float32)
    out = _conv_call(xflat, wmat, bmat, (0,), M, out_dtype)
    return out.reshape(NB, H, W, Cout)


def maxpool2(x):
    # TODO(synk): fuse this 2x2/2 pool into the preceding conv kernel's epilogue to
    # save a full read+write of the full-resolution activation (HBM-bound glue).
    NB, H, W, C = x.shape
    return x.reshape(NB, H // 2, 2, W // 2, 2, C).max(axis=(2, 4))


# ----------------------------------------------------------------------------------
# Streaming reductions (Pallas-backed)
# ----------------------------------------------------------------------------------
def _to_slab(x, pad_value):
    """Lane-dense (rows,128) slab in the original dtype; pads only the ragged tail."""
    flat = x.reshape(-1)
    n = flat.shape[0]
    rows = max(pl.cdiv(n, 128), 1)
    rows = pl.cdiv(rows, 8) * 8                 # 8-align the sublane dim
    if rows <= _RED_TILE_ROWS:
        tile, chunks = rows, 1
    else:
        tile, chunks = _RED_TILE_ROWS, 2        # 2 chunks -> both v7x TCs participate
    rows_p = pl.cdiv(rows, chunks * tile) * chunks * tile
    total = rows_p * 128
    if total != n:
        flat = jnp.pad(flat, (0, total - n), constant_values=pad_value)
    return flat.reshape(rows_p, 128), tile, chunks


def _reduce_call(kernel, slabs, tile, chunks):
    """Gridded, pipelined reduction; per-chunk (8,128) partials, final add in JAX."""
    rows_p = slabs[0].shape[0]
    nblk = rows_p // (chunks * tile)
    out = pl.pallas_call(
        kernel,
        out_shape=jax.ShapeDtypeStruct((chunks, 8, 128), jnp.float32),
        grid_spec=pltpu.PrefetchScalarGridSpec(
            num_scalar_prefetch=0,
            grid=(chunks, nblk),
            in_specs=[pl.BlockSpec((tile, 128), lambda c, i: (c * nblk + i, 0))
                      for _ in slabs],
            out_specs=pl.BlockSpec((1, 8, 128), lambda c, i: (c, 0, 0)),
        ),
        compiler_params=pltpu.CompilerParams(
            dimension_semantics=("parallel", "arbitrary"),
            vmem_limit_bytes=_VMEM_LIMIT,
        ),
    )(*slabs)
    return jnp.sum(out)


def mse_loss(a, b):
    """mean((a-b)^2); block-wise f32 accumulation in a Pallas kernel."""
    sa, tile, chunks = _to_slab(a, 0.0)
    sb, _, _ = _to_slab(b, 0.0)
    return _reduce_call(_sq_diff_sum_kernel, (sa, sb), tile, chunks) / a.size


def sum_log(x):
    """sum(log(x)); pad value 1.0 so log(pad)=0.  (No eps clamp — matches reference.)"""
    s, tile, chunks = _to_slab(x, 1.0)
    return _reduce_call(_log_sum_kernel, (s,), tile, chunks)


# ----------------------------------------------------------------------------------
# VGG16 features[:16]  (conv/relu x2, pool, conv/relu x2, pool, conv/relu x3)
# ----------------------------------------------------------------------------------
VGG_CFG = [(3, 64), (64, 64), "M",
           (64, 128), (128, 128), "M",
           (128, 256), (256, 256), (256, 256)]


def init_vgg_params(key):
    # TODO(synk): reference uses ImageNet-pretrained VGG16 weights; deterministic
    # He-normal init of the same shapes is used here (no checkpoint in-script).
    params = []
    for item in VGG_CFG:
        if item == "M":
            continue
        cin, cout = item
        key, kw = jax.random.split(key)
        w = jax.random.normal(kw, (3, 3, cin, cout), jnp.float32) * jnp.sqrt(2.0 / (9 * cin))
        b = jnp.zeros((cout,), jnp.float32)
        params.append((w, b))
    return params


def vgg_features(x_nhwc, params):
    it = iter(params)
    x = x_nhwc.astype(jnp.bfloat16)
    first = True
    for item in VGG_CFG:
        if item == "M":
            x = maxpool2(x)
        else:
            w, b = next(it)
            if first:
                x = conv3x3_relu_small_cin(x, w, b)
                first = False
            else:
                x = conv3x3_relu(x, w, b)
    return x


# ----------------------------------------------------------------------------------
# CombinedLoss forward
# ----------------------------------------------------------------------------------
def combined_loss(output, target_nchw, vgg_params,
                  lambda_feature=0.01, lambda_rd=0.01):
    x_hat_nchw = output["x_hat"]
    N, _, H, W = target_nchw.shape
    num_pixels = N * H * W

    # NCHW -> NHWC for the feature extractor
    target_nhwc = jnp.transpose(target_nchw, (0, 2, 3, 1))
    x_hat_nhwc = jnp.transpose(x_hat_nchw, (0, 2, 3, 1))

    # single stacked-batch VGG pass (halves launches and per-layer weight DMAs)
    stacked = jnp.concatenate([target_nhwc, x_hat_nhwc], axis=0)
    feats = vgg_features(stacked, vgg_params)
    target_feats, output_feats = feats[:N], feats[N:]
    feature_loss = mse_loss(target_feats, output_feats)

    # RateDistortionLoss (metric='mse')
    img_mse = mse_loss(x_hat_nchw, target_nchw)
    bpp_loss = jnp.float32(0.0)
    for lik in output["likelihoods"].values():
        bpp_loss = bpp_loss + sum_log(lik) / (-math.log(2) * num_pixels)
    rd_total = lambda_rd * (255.0 ** 2) * img_mse + bpp_loss

    total_loss = rd_total + lambda_feature * feature_loss
    return {
        "loss": total_loss,
        "mse_loss": img_mse,
        "bpp_loss": bpp_loss,
        "feature_loss": feature_loss,
    }


# ----------------------------------------------------------------------------------
if __name__ == "__main__":
    key = jax.random.PRNGKey(0)
    k_t, k_n, k_y, k_z, k_p = jax.random.split(key, 5)

    N, C, H, W = 2, 3, 16, 16
    target = jax.random.uniform(k_t, (N, C, H, W), jnp.float32)
    x_hat = jnp.clip(target + 0.05 * jax.random.normal(k_n, (N, C, H, W), jnp.float32),
                     0.0, 1.0)
    likelihoods = {
        "y": jax.random.uniform(k_y, (N, 8, 4, 4), jnp.float32, minval=0.01, maxval=1.0),
        "z": jax.random.uniform(k_z, (N, 4, 2, 2), jnp.float32, minval=0.01, maxval=1.0),
    }
    output = {"x_hat": x_hat, "likelihoods": likelihoods}

    vgg_params = init_vgg_params(k_p)

    loss_fn = jax.jit(partial(combined_loss, lambda_feature=0.01, lambda_rd=0.01))
    result = jax.block_until_ready(loss_fn(output, target, vgg_params))

    # sanity: all finite scalars
    for k, v in result.items():
        assert jnp.isfinite(v), (k, v)

    print("KERNEL_OK")
</pallas_src>

<mosaic_0001>
module attributes {stable_mosaic.version = 11 : i64} {
  func.func @_conv_mm_kernel(%arg0: i32, %arg1: memref<1x256x27xbf16, #tpu.memory_space<vmem>>, %arg2: memref<27x64xbf16, #tpu.memory_space<vmem>>, %arg3: memref<1x64xf32, #tpu.memory_space<vmem>>, %arg4: memref<1x256x64xbf16, #tpu.memory_space<vmem>>) attributes {dimension_semantics = [#tpu.dimension_semantics<parallel>], iteration_bounds = array<i64: 4>, scalar_prefetch = 0 : i64, scratch_operands = 0 : i64, tpu.core_type = #tpu.core_type<tc>, window_params = [{transform_indices = @transform_0, window_bounds = array<i64: 1, 256, 27>}, {pipeline_mode = #tpu.pipeline_mode<synchronous>, transform_indices = @transform_1, window_bounds = array<i64: 27, 64>}, {pipeline_mode = #tpu.pipeline_mode<synchronous>, transform_indices = @transform_2, window_bounds = array<i64: 1, 64>}, {transform_indices = @transform_3, window_bounds = array<i64: 1, 256, 64>}]} {
    %c0 = arith.constant 0 : index
    %c0_0 = arith.constant 0 : index
    %c0_1 = arith.constant 0 : index
    %0 = vector.load %arg1[%c0, %c0_0, %c0_1] : memref<1x256x27xbf16, #tpu.memory_space<vmem>>, vector<1x256x27xbf16>
    %1 = vector.shape_cast %0 : vector<1x256x27xbf16> to vector<256x27xbf16>
    %c0_2 = arith.constant 0 : index
    %c0_3 = arith.constant 0 : index
    %2 = vector.load %arg2[%c0_2, %c0_3] : memref<27x64xbf16, #tpu.memory_space<vmem>>, vector<27x64xbf16>
    %cst = arith.constant dense<0.000000e+00> : vector<256x64xf32>
    %3 = tpu.matmul %1, %2, %cst {dimension_numbers = #tpu.dot_dimension_numbers<[1], [0], [0], [1], [0, 0, 1, 1], [], []>} : vector<256x27xbf16>, vector<27x64xbf16>, vector<256x64xf32> -> vector<256x64xf32>
    %c0_4 = arith.constant 0 : index
    %c0_5 = arith.constant 0 : index
    %4 = vector.load %arg3[%c0_4, %c0_5] : memref<1x64xf32, #tpu.memory_space<vmem>>, vector<1x64xf32>
    %5 = vector.broadcast %4 : vector<1x64xf32> to vector<256x64xf32>
    %6 = arith.addf %3, %5 : vector<256x64xf32>
    %cst_6 = arith.constant 0.000000e+00 : f32
    %7 = vector.broadcast %cst_6 : f32 to vector<256x64xf32>
    %8 = arith.maximumf %6, %7 : vector<256x64xf32>
    %9 = arith.truncf %8 : vector<256x64xf32> to vector<256x64xbf16>
    %c0_7 = arith.constant 0 : index
    %c0_8 = arith.constant 0 : index
    %c0_9 = arith.constant 0 : index
    %10 = vector.load %arg4[%c0_7, %c0_8, %c0_9] : memref<1x256x64xbf16, #tpu.memory_space<vmem>>, vector<1x256x64xbf16>
    %11 = vector.shape_cast %10 : vector<1x256x64xbf16> to vector<256x64xbf16>
    %12 = vector.shape_cast %9 : vector<256x64xbf16> to vector<1x256x64xbf16>
    tpu.vector_store %arg4[%c0_7, %c0_8, %c0_9], %12 {strides = array<i32>} : memref<1x256x64xbf16, #tpu.memory_space<vmem>>, vector<1x256x64xbf16>,
    return
  }
  func.func @transform_0(%arg0: i32) -> (i32, i32, i32) {
    %c0_i32 = arith.constant 0 : i32
    %c0_i32_0 = arith.constant 0 : i32
    %c0_i32_1 = arith.constant 0 : i32
    return %arg0, %c0_i32, %c0_i32_0 : i32, i32, i32
  }
  func.func @transform_1(%arg0: i32) -> (i32, i32) {
    %c0_i32 = arith.constant 0 : i32
    %c0_i32_0 = arith.constant 0 : i32
    %c0_i32_1 = arith.constant 0 : i32
    return %c0_i32, %c0_i32_0 : i32, i32
  }
  func.func @transform_2(%arg0: i32) -> (i32, i32) {
    %c0_i32 = arith.constant 0 : i32
    %c0_i32_0 = arith.constant 0 : i32
    %c0_i32_1 = arith.constant 0 : i32
    return %c0_i32, %c0_i32_0 : i32, i32
  }
  func.func @transform_3(%arg0: i32) -> (i32, i32, i32) {
    %c0_i32 = arith.constant 0 : i32
    %c0_i32_0 = arith.constant 0 : i32
    %c0_i32_1 = arith.constant 0 : i32
    return %arg0, %c0_i32, %c0_i32_0 : i32, i32, i32
  }
}

module attributes {stable_mosaic.version = 11 : i64} {
  func.func @_conv_mm_kernel(%arg0: i32, %arg1: memref<1x342x64xbf16, #tpu.memory_space<vmem>>, %arg2: memref<576x64xbf16, #tpu.memory_space<vmem>>, %arg3: memref<1x64xf32, #tpu.memory_space<vmem>>, %arg4: memref<1x288x64xbf16, #tpu.memory_space<vmem>>, %arg5: memref<288x576xbf16, #tpu.memory_space<vmem>>) attributes {dimension_semantics = [#tpu.dimension_semantics<parallel>], iteration_bounds = array<i64: 4>, scalar_prefetch = 0 : i64, scratch_operands = 1 : i64, tpu.core_type = #tpu.core_type<tc>, window_params = [{transform_indices = @transform_0, window_bounds = array<i64: 1, 342, 64>}, {pipeline_mode = #tpu.pipeline_mode<synchronous>, transform_indices = @transform_1, window_bounds = array<i64: 576, 64>}, {pipeline_mode = #tpu.pipeline_mode<synchronous>, transform_indices = @transform_2, window_bounds = array<i64: 1, 64>}, {transform_indices = @transform_3, window_bounds = array<i64: 1, 288, 64>}]} {
    %c0 = arith.constant 0 : index
    %c0_0 = arith.constant 0 : index
    %c0_1 = arith.constant 0 : index
    %0 = vector.load %arg1[%c0, %c0_0, %c0_1] : memref<1x342x64xbf16, #tpu.memory_space<vmem>>, vector<1x288x64xbf16>
    %1 = vector.shape_cast %0 : vector<1x288x64xbf16> to vector<288x64xbf16>
    %c0_2 = arith.constant 0 : index
    %c0_3 = arith.constant 0 : index
    %2 = vector.load %arg5[%c0_2, %c0_3] : memref<288x576xbf16, #tpu.memory_space<vmem>>, vector<288x64xbf16>
    tpu.vector_store %arg5[%c0_2, %c0_3], %1 {strides = array<i32>} : memref<288x576xbf16, #tpu.memory_space<vmem>>, vector<288x64xbf16>,
    %c0_4 = arith.constant 0 : index
    %c1 = arith.constant 1 : index
    %c0_5 = arith.constant 0 : index
    %3 = vector.load %arg1[%c0_4, %c1, %c0_5] : memref<1x342x64xbf16, #tpu.memory_space<vmem>>, vector<1x288x64xbf16>
    %4 = vector.shape_cast %3 : vector<1x288x64xbf16> to vector<288x64xbf16>
    %c0_6 = arith.constant 0 : index
    %c64 = arith.constant 64 : index
    %5 = vector.load %arg5[%c0_6, %c64] : memref<288x576xbf16, #tpu.memory_space<vmem>>, vector<288x64xbf16>
    tpu.vector_store %arg5[%c0_6, %c64], %4 {strides = array<i32>} : memref<288x576xbf16, #tpu.memory_space<vmem>>, vector<288x64xbf16>,
    %c0_7 = arith.constant 0 : index
    %c2 = arith.constant 2 : index
    %c0_8 = arith.constant 0 : index
    %6 = vector.load %arg1[%c0_7, %c2, %c0_8] : memref<1x342x64xbf16, #tpu.memory_space<vmem>>, vector<1x288x64xbf16>
    %7 = vector.shape_cast %6 : vector<1x288x64xbf16> to vector<288x64xbf16>
    %c0_9 = arith.constant 0 : index
    %c128 = arith.constant 128 : index
    %8 = vector.load %arg5[%c0_9, %c128] : memref<288x576xbf16, #tpu.memory_space<vmem>>, vector<288x64xbf16>
    tpu.vector_store %arg5[%c0_9, %c128], %7 {strides = array<i32>} : memref<288x576xbf16, #tpu.memory_space<vmem>>, vector<288x64xbf16>,
    %c0_10 = arith.constant 0 : index
    %c18 = arith.constant 18 : index
    %c0_11 = arith.constant 0 : index
    %9 = vector.load %arg1[%c0_10, %c18, %c0_11] : memref<1x342x64xbf16, #tpu.memory_space<vmem>>, vector<1x288x64xbf16>
    %10 = vector.shape_cast %9 : vector<1x288x64xbf16> to vector<288x64xbf16>
    %c0_12 = arith.constant 0 : index
    %c192 = arith.constant 192 : index
    %11 = vector.load %arg5[%c0_12, %c192] : memref<288x576xbf16, #tpu.memory_space<vmem>>, vector<288x64xbf16>
    tpu.vector_store %arg5[%c0_12, %c192], %10 {strides = array<i32>} : memref<288x576xbf16, #tpu.memory_space<vmem>>, vector<288x64xbf16>,
    %c0_13 = arith.constant 0 : index
    %c19 = arith.constant 19 : index
    %c0_14 = arith.constant 0 : index
    %12 = vector.load %arg1[%c0_13, %c19, %c0_14] : memref<1x342x64xbf16, #tpu.memory_space<vmem>>, vector<1x288x64xbf16>
    %13 = vector.shape_cast %12 : vector<1x288x64xbf16> to vector<288x64xbf16>
    %c0_15 = arith.constant 0 : index
    %c256 = arith.constant 256 : index
    %14 = vector.load %arg5[%c0_15, %c256] : memref<288x576xbf16, #tpu.memory_space<vmem>>, vector<288x64xbf16>
    tpu.vector_store %arg5[%c0_15, %c256], %13 {strides = array<i32>} : memref<288x576xbf16, #tpu.memory_space<vmem>>, vector<288x64xbf16>,
    %c0_16 = arith.constant 0 : index
    %c20 = arith.constant 20 : index
    %c0_17 = arith.constant 0 : index
    %15 = vector.load %arg1[%c0_16, %c20, %c0_17] : memref<1x342x64xbf16, #tpu.memory_space<vmem>>, vector<1x288x64xbf16>
    %16 = vector.shape_cast %15 : vector<1x288x64xbf16> to vector<288x64xbf16>
    %c0_18 = arith.constant 0 : index
    %c320 = arith.constant 320 : index
    %17 = vector.load %arg5[%c0_18, %c320] : memref<288x576xbf16, #tpu.memory_space<vmem>>, vector<288x64xbf16>
    tpu.vector_store %arg5[%c0_18, %c320], %16 {strides = array<i32>} : memref<288x576xbf16, #tpu.memory_space<vmem>>, vector<288x64xbf16>,
    %c0_19 = arith.constant 0 : index
    %c36 = arith.constant 36 : index
    %c0_20 = arith.constant 0 : index
    %18 = vector.load %arg1[%c0_19, %c36, %c0_20] : memref<1x342x64xbf16, #tpu.memory_space<vmem>>, vector<1x288x64xbf16>
    %19 = vector.shape_cast %18 : vector<1x288x64xbf16> to vector<288x64xbf16>
    %c0_21 = arith.constant 0 : index
    %c384 = arith.constant 384 : index
    %20 = vector.load %arg5[%c0_21, %c384] : memref<288x576xbf16, #tpu.memory_space<vmem>>, vector<288x64xbf16>
    tpu.vector_store %arg5[%c0_21, %c384], %19 {strides = array<i32>} : memref<288x576xbf16, #tpu.memory_space<vmem>>, vector<288x64xbf16>,
    %c0_22 = arith.constant 0 : index
    %c37 = arith.constant 37 : index
    %c0_23 = arith.constant 0 : index
    %21 = vector.load %arg1[%c0_22, %c37, %c0_23] : memref<1x342x64xbf16, #tpu.memory_space<vmem>>, vector<1x288x64xbf16>
    %22 = vector.shape_cast %21 : vector<1x288x64xbf16> to vector<288x64xbf16>
    %c0_24 = arith.constant 0 : index
    %c448 = arith.constant 448 : index
    %23 = vector.load %arg5[%c0_24, %c448] : memref<288x576xbf16, #tpu.memory_space<vmem>>, vector<288x64xbf16>
    tpu.vector_store %arg5[%c0_24, %c448], %22 {strides = array<i32>} : memref<288x576xbf16, #tpu.memory_space<vmem>>, vector<288x64xbf16>,
    %c0_25 = arith.constant 0 : index
    %c38 = arith.constant 38 : index
    %c0_26 = arith.constant 0 : index
    %24 = vector.load %arg1[%c0_25, %c38, %c0_26] : memref<1x342x64xbf16, #tpu.memory_space<vmem>>, vector<1x288x64xbf16>
    %25 = vector.shape_cast %24 : vector<1x288x64xbf16> to vector<288x64xbf16>
    %c0_27 = arith.constant 0 : index
    %c512 = arith.constant 512 : index
    %26 = vector.load %arg5[%c0_27, %c512] : memref<288x576xbf16, #tpu.memory_space<vmem>>, vector<288x64xbf16>
    tpu.vector_store %arg5[%c0_27, %c512], %25 {strides = array<i32>} : memref<288x576xbf16, #tpu.memory_space<vmem>>, vector<288x64xbf16>,
    %c0_28 = arith.constant 0 : index
    %c0_29 = arith.constant 0 : index
    %27 = vector.load %arg5[%c0_28, %c0_29] : memref<288x576xbf16, #tpu.memory_space<vmem>>, vector<288x576xbf16>
    %c0_30 = arith.constant 0 : index
    %c0_31 = arith.constant 0 : index
    %28 = vector.load %arg2[%c0_30, %c0_31] : memref<576x64xbf16, #tpu.memory_space<vmem>>, vector<576x64xbf16>
    %cst = arith.constant dense<0.000000e+00> : vector<288x64xf32>
    %29 = tpu.matmul %27, %28, %cst {dimension_numbers = #tpu.dot_dimension_numbers<[1], [0], [0], [1], [0, 0, 1, 1], [], []>} : vector<288x576xbf16>, vector<576x64xbf16>, vector<288x64xf32> -> vector<288x64xf32>
    %c0_32 = arith.constant 0 : index
    %c0_33 = arith.constant 0 : index
    %30 = vector.load %arg3[%c0_32, %c0_33] : memref<1x64xf32, #tpu.memory_space<vmem>>, vector<1x64xf32>
    %31 = vector.broadcast %30 : vector<1x64xf32> to vector<288x64xf32>
    %32 = arith.addf %29, %31 : vector<288x64xf32>
    %cst_34 = arith.constant 0.000000e+00 : f32
    %33 = vector.broadcast %cst_34 : f32 to vector<288x64xf32>
    %34 = arith.maximumf %32, %33 : vector<288x64xf32>
    %35 = arith.truncf %34 : vector<288x64xf32> to vector<288x64xbf16>
    %c0_35 = arith.constant 0 : index
    %c0_36 = arith.constant 0 : index
    %c0_37 = arith.constant 0 : index
    %36 = vector.load %arg4[%c0_35, %c0_36, %c0_37] : memref<1x288x64xbf16, #tpu.memory_space<vmem>>, vector<1x288x64xbf16>
    %37 = vector.shape_cast %36 : vector<1x288x64xbf16> to vector<288x64xbf16>
    %38 = vector.shape_cast %35 : vector<288x64xbf16> to vector<1x288x64xbf16>
    tpu.vector_store %arg4[%c0_35, %c0_36, %c0_37], %38 {strides = array<i32>} : memref<1x288x64xbf16, #tpu.memory_space<vmem>>, vector<1x288x64xbf16>,
    return
  }
  func.func @transform_0(%arg0: i32) -> (i32, i32, i32) {
    %c0_i32 = arith.constant 0 : i32
    %c0_i32_0 = arith.constant 0 : i32
    %c0_i32_1 = arith.constant 0 : i32
    return %arg0, %c0_i32, %c0_i32_0 : i32, i32, i32
  }
  func.func @transform_1(%arg0: i32) -> (i32, i32) {
    %c0_i32 = arith.constant 0 : i32
    %c0_i32_0 = arith.constant 0 : i32
    %c0_i32_1 = arith.constant 0 : i32
    return %c0_i32, %c0_i32_0 : i32, i32
  }
  func.func @transform_2(%arg0: i32) -> (i32, i32) {
    %c0_i32 = arith.constant 0 : i32
    %c0_i32_0 = arith.constant 0 : i32
    %c0_i32_1 = arith.constant 0 : i32
    return %c0_i32, %c0_i32_0 : i32, i32
  }
  func.func @transform_3(%arg0: i32) -> (i32, i32, i32) {
    %c0_i32 = arith.constant 0 : i32
    %c0_i32_0 = arith.constant 0 : i32
    %c0_i32_1 = arith.constant 0 : i32
    return %arg0, %c0_i32, %c0_i32_0 : i32, i32, i32
  }
}

module attributes {stable_mosaic.version = 11 : i64} {
  func.func @_conv_mm_kernel(%arg0: i32, %arg1: memref<1x110x64xbf16, #tpu.memory_space<vmem>>, %arg2: memref<576x128xbf16, #tpu.memory_space<vmem>>, %arg3: memref<1x128xf32, #tpu.memory_space<vmem>>, %arg4: memref<1x80x128xbf16, #tpu.memory_space<vmem>>, %arg5: memref<80x576xbf16, #tpu.memory_space<vmem>>) attributes {dimension_semantics = [#tpu.dimension_semantics<parallel>], iteration_bounds = array<i64: 4>, scalar_prefetch = 0 : i64, scratch_operands = 1 : i64, tpu.core_type = #tpu.core_type<tc>, window_params = [{transform_indices = @transform_0, window_bounds = array<i64: 1, 110, 64>}, {pipeline_mode = #tpu.pipeline_mode<synchronous>, transform_indices = @transform_1, window_bounds = array<i64: 576, 128>}, {pipeline_mode = #tpu.pipeline_mode<synchronous>, transform_indices = @transform_2, window_bounds = array<i64: 1, 128>}, {transform_indices = @transform_3, window_bounds = array<i64: 1, 80, 128>}]} {
    %c0 = arith.constant 0 : index
    %c0_0 = arith.constant 0 : index
    %c0_1 = arith.constant 0 : index
    %0 = vector.load %arg1[%c0, %c0_0, %c0_1] : memref<1x110x64xbf16, #tpu.memory_space<vmem>>, vector<1x80x64xbf16>
    %1 = vector.shape_cast %0 : vector<1x80x64xbf16> to vector<80x64xbf16>
    %c0_2 = arith.constant 0 : index
    %c0_3 = arith.constant 0 : index
    %2 = vector.load %arg5[%c0_2, %c0_3] : memref<80x576xbf16, #tpu.memory_space<vmem>>, vector<80x64xbf16>
    tpu.vector_store %arg5[%c0_2, %c0_3], %1 {strides = array<i32>} : memref<80x576xbf16, #tpu.memory_space<vmem>>, vector<80x64xbf16>,
    %c0_4 = arith.constant 0 : index
    %c1 = arith.constant 1 : index
    %c0_5 = arith.constant 0 : index
    %3 = vector.load %arg1[%c0_4, %c1, %c0_5] : memref<1x110x64xbf16, #tpu.memory_space<vmem>>, vector<1x80x64xbf16>
    %4 = vector.shape_cast %3 : vector<1x80x64xbf16> to vector<80x64xbf16>
    %c0_6 = arith.constant 0 : index
    %c64 = arith.constant 64 : index
    %5 = vector.load %arg5[%c0_6, %c64] : memref<80x576xbf16, #tpu.memory_space<vmem>>, vector<80x64xbf16>
    tpu.vector_store %arg5[%c0_6, %c64], %4 {strides = array<i32>} : memref<80x576xbf16, #tpu.memory_space<vmem>>, vector<80x64xbf16>,
    %c0_7 = arith.constant 0 : index
    %c2 = arith.constant 2 : index
    %c0_8 = arith.constant 0 : index
    %6 = vector.load %arg1[%c0_7, %c2, %c0_8] : memref<1x110x64xbf16, #tpu.memory_space<vmem>>, vector<1x80x64xbf16>
    %7 = vector.shape_cast %6 : vector<1x80x64xbf16> to vector<80x64xbf16>
    %c0_9 = arith.constant 0 : index
    %c128 = arith.constant 128 : index
    %8 = vector.load %arg5[%c0_9, %c128] : memref<80x576xbf16, #tpu.memory_space<vmem>>, vector<80x64xbf16>
    tpu.vector_store %arg5[%c0_9, %c128], %7 {strides = array<i32>} : memref<80x576xbf16, #tpu.memory_space<vmem>>, vector<80x64xbf16>,
    %c0_10 = arith.constant 0 : index
    %c10 = arith.constant 10 : index
    %c0_11 = arith.constant 0 : index
    %9 = vector.load %arg1[%c0_10, %c10, %c0_11] : memref<1x110x64xbf16, #tpu.memory_space<vmem>>, vector<1x80x64xbf16>
    %10 = vector.shape_cast %9 : vector<1x80x64xbf16> to vector<80x64xbf16>
    %c0_12 = arith.constant 0 : index
    %c192 = arith.constant 192 : index
    %11 = vector.load %arg5[%c0_12, %c192] : memref<80x576xbf16, #tpu.memory_space<vmem>>, vector<80x64xbf16>
    tpu.vector_store %arg5[%c0_12, %c192], %10 {strides = array<i32>} : memref<80x576xbf16, #tpu.memory_space<vmem>>, vector<80x64xbf16>,
    %c0_13 = arith.constant 0 : index
    %c11 = arith.constant 11 : index
    %c0_14 = arith.constant 0 : index
    %12 = vector.load %arg1[%c0_13, %c11, %c0_14] : memref<1x110x64xbf16, #tpu.memory_space<vmem>>, vector<1x80x64xbf16>
    %13 = vector.shape_cast %12 : vector<1x80x64xbf16> to vector<80x64xbf16>
    %c0_15 = arith.constant 0 : index
    %c256 = arith.constant 256 : index
    %14 = vector.load %arg5[%c0_15, %c256] : memref<80x576xbf16, #tpu.memory_space<vmem>>, vector<80x64xbf16>
    tpu.vector_store %arg5[%c0_15, %c256], %13 {strides = array<i32>} : memref<80x576xbf16, #tpu.memory_space<vmem>>, vector<80x64xbf16>,
    %c0_16 = arith.constant 0 : index
    %c12 = arith.constant 12 : index
    %c0_17 = arith.constant 0 : index
    %15 = vector.load %arg1[%c0_16, %c12, %c0_17] : memref<1x110x64xbf16, #tpu.memory_space<vmem>>, vector<1x80x64xbf16>
    %16 = vector.shape_cast %15 : vector<1x80x64xbf16> to vector<80x64xbf16>
    %c0_18 = arith.constant 0 : index
    %c320 = arith.constant 320 : index
    %17 = vector.load %arg5[%c0_18, %c320] : memref<80x576xbf16, #tpu.memory_space<vmem>>, vector<80x64xbf16>
    tpu.vector_store %arg5[%c0_18, %c320], %16 {strides = array<i32>} : memref<80x576xbf16, #tpu.memory_space<vmem>>, vector<80x64xbf16>,
    %c0_19 = arith.constant 0 : index
    %c20 = arith.constant 20 : index
    %c0_20 = arith.constant 0 : index
    %18 = vector.load %arg1[%c0_19, %c20, %c0_20] : memref<1x110x64xbf16, #tpu.memory_space<vmem>>, vector<1x80x64xbf16>
    %19 = vector.shape_cast %18 : vector<1x80x64xbf16> to vector<80x64xbf16>
    %c0_21 = arith.constant 0 : index
    %c384 = arith.constant 384 : index
    %20 = vector.load %arg5[%c0_21, %c384] : memref<80x576xbf16, #tpu.memory_space<vmem>>, vector<80x64xbf16>
    tpu.vector_store %arg5[%c0_21, %c384], %19 {strides = array<i32>} : memref<80x576xbf16, #tpu.memory_space<vmem>>, vector<80x64xbf16>,
    %c0_22 = arith.constant 0 : index
    %c21 = arith.constant 21 : index
    %c0_23 = arith.constant 0 : index
    %21 = vector.load %arg1[%c0_22, %c21, %c0_23] : memref<1x110x64xbf16, #tpu.memory_space<vmem>>, vector<1x80x64xbf16>
    %22 = vector.shape_cast %21 : vector<1x80x64xbf16> to vector<80x64xbf16>
    %c0_24 = arith.constant 0 : index
    %c448 = arith.constant 448 : index
    %23 = vector.load %arg5[%c0_24, %c448] : memref<80x576xbf16, #tpu.memory_space<vmem>>, vector<80x64xbf16>
    tpu.vector_store %arg5[%c0_24, %c448], %22 {strides = array<i32>} : memref<80x576xbf16, #tpu.memory_space<vmem>>, vector<80x64xbf16>,
    %c0_25 = arith.constant 0 : index
    %c22 = arith.constant 22 : index
    %c0_26 = arith.constant 0 : index
    %24 = vector.load %arg1[%c0_25, %c22, %c0_26] : memref<1x110x64xbf16, #tpu.memory_space<vmem>>, vector<1x80x64xbf16>
    %25 = vector.shape_cast %24 : vector<1x80x64xbf16> to vector<80x64xbf16>
    %c0_27 = arith.constant 0 : index
    %c512 = arith.constant 512 : index
    %26 = vector.load %arg5[%c0_27, %c512] : memref<80x576xbf16, #tpu.memory_space<vmem>>, vector<80x64xbf16>
    tpu.vector_store %arg5[%c0_27, %c512], %25 {strides = array<i32>} : memref<80x576xbf16, #tpu.memory_space<vmem>>, vector<80x64xbf16>,
    %c0_28 = arith.constant 0 : index
    %c0_29 = arith.constant 0 : index
    %27 = vector.load %arg5[%c0_28, %c0_29] : memref<80x576xbf16, #tpu.memory_space<vmem>>, vector<80x576xbf16>
    %c0_30 = arith.constant 0 : index
    %c0_31 = arith.constant 0 : index
    %28 = vector.load %arg2[%c0_30, %c0_31] : memref<576x128xbf16, #tpu.memory_space<vmem>>, vector<576x128xbf16>
    %cst = arith.constant dense<0.000000e+00> : vector<80x128xf32>
    %29 = tpu.matmul %27, %28, %cst {dimension_numbers = #tpu.dot_dimension_numbers<[1], [0], [0], [1], [0, 0, 1, 1], [], []>} : vector<80x576xbf16>, vector<576x128xbf16>, vector<80x128xf32> -> vector<80x128xf32>
    %c0_32 = arith.constant 0 : index
    %c0_33 = arith.constant 0 : index
    %30 = vector.load %arg3[%c0_32, %c0_33] : memref<1x128xf32, #tpu.memory_space<vmem>>, vector<1x128xf32>
    %31 = vector.broadcast %30 : vector<1x128xf32> to vector<80x128xf32>
    %32 = arith.addf %29, %31 : vector<80x128xf32>
    %cst_34 = arith.constant 0.000000e+00 : f32
    %33 = vector.broadcast %cst_34 : f32 to vector<80x128xf32>
    %34 = arith.maximumf %32, %33 : vector<80x128xf32>
    %35 = arith.truncf %34 : vector<80x128xf32> to vector<80x128xbf16>
    %c0_35 = arith.constant 0 : index
    %c0_36 = arith.constant 0 : index
    %c0_37 = arith.constant 0 : index
    %36 = vector.load %arg4[%c0_35, %c0_36, %c0_37] : memref<1x80x128xbf16, #tpu.memory_space<vmem>>, vector<1x80x128xbf16>
    %37 = vector.shape_cast %36 : vector<1x80x128xbf16> to vector<80x128xbf16>
    %38 = vector.shape_cast %35 : vector<80x128xbf16> to vector<1x80x128xbf16>
    tpu.vector_store %arg4[%c0_35, %c0_36, %c0_37], %38 {strides = array<i32>} : memref<1x80x128xbf16, #tpu.memory_space<vmem>>, vector<1x80x128xbf16>,
    return
  }
  func.func @transform_0(%arg0: i32) -> (i32, i32, i32) {
    %c0_i32 = arith.constant 0 : i32
    %c0_i32_0 = arith.constant 0 : i32
    %c0_i32_1 = arith.constant 0 : i32
    return %arg0, %c0_i32, %c0_i32_0 : i32, i32, i32
  }
  func.func @transform_1(%arg0: i32) -> (i32, i32) {
    %c0_i32 = arith.constant 0 : i32
    %c0_i32_0 = arith.constant 0 : i32
    %c0_i32_1 = arith.constant 0 : i32
    return %c0_i32, %c0_i32_0 : i32, i32
  }
  func.func @transform_2(%arg0: i32) -> (i32, i32) {
    %c0_i32 = arith.constant 0 : i32
    %c0_i32_0 = arith.constant 0 : i32
    %c0_i32_1 = arith.constant 0 : i32
    return %c0_i32, %c0_i32_0 : i32, i32
  }
  func.func @transform_3(%arg0: i32) -> (i32, i32, i32) {
    %c0_i32 = arith.constant 0 : i32
    %c0_i32_0 = arith.constant 0 : i32
    %c0_i32_1 = arith.constant 0 : i32
    return %arg0, %c0_i32, %c0_i32_0 : i32, i32, i32
  }
}

module attributes {stable_mosaic.version = 11 : i64} {
  func.func @_conv_mm_kernel(%arg0: i32, %arg1: memref<1x110x128xbf16, #tpu.memory_space<vmem>>, %arg2: memref<1152x128xbf16, #tpu.memory_space<vmem>>, %arg3: memref<1x128xf32, #tpu.memory_space<vmem>>, %arg4: memref<1x80x128xbf16, #tpu.memory_space<vmem>>, %arg5: memref<80x1152xbf16, #tpu.memory_space<vmem>>) attributes {dimension_semantics = [#tpu.dimension_semantics<parallel>], iteration_bounds = array<i64: 4>, scalar_prefetch = 0 : i64, scratch_operands = 1 : i64, tpu.core_type = #tpu.core_type<tc>, window_params = [{transform_indices = @transform_0, window_bounds = array<i64: 1, 110, 128>}, {pipeline_mode = #tpu.pipeline_mode<synchronous>, transform_indices = @transform_1, window_bounds = array<i64: 1152, 128>}, {pipeline_mode = #tpu.pipeline_mode<synchronous>, transform_indices = @transform_2, window_bounds = array<i64: 1, 128>}, {transform_indices = @transform_3, window_bounds = array<i64: 1, 80, 128>}]} {
    %c0 = arith.constant 0 : index
    %c0_0 = arith.constant 0 : index
    %c0_1 = arith.constant 0 : index
    %0 = vector.load %arg1[%c0, %c0_0, %c0_1] : memref<1x110x128xbf16, #tpu.memory_space<vmem>>, vector<1x80x128xbf16>
    %1 = vector.shape_cast %0 : vector<1x80x128xbf16> to vector<80x128xbf16>
    %c0_2 = arith.constant 0 : index
    %c0_3 = arith.constant 0 : index
    %2 = vector.load %arg5[%c0_2, %c0_3] : memref<80x1152xbf16, #tpu.memory_space<vmem>>, vector<80x128xbf16>
    tpu.vector_store %arg5[%c0_2, %c0_3], %1 {strides = array<i32>} : memref<80x1152xbf16, #tpu.memory_space<vmem>>, vector<80x128xbf16>,
    %c0_4 = arith.constant 0 : index
    %c1 = arith.constant 1 : index
    %c0_5 = arith.constant 0 : index
    %3 = vector.load %arg1[%c0_4, %c1, %c0_5] : memref<1x110x128xbf16, #tpu.memory_space<vmem>>, vector<1x80x128xbf16>
    %4 = vector.shape_cast %3 : vector<1x80x128xbf16> to vector<80x128xbf16>
    %c0_6 = arith.constant 0 : index
    %c128 = arith.constant 128 : index
    %5 = vector.load %arg5[%c0_6, %c128] : memref<80x1152xbf16, #tpu.memory_space<vmem>>, vector<80x128xbf16>
    tpu.vector_store %arg5[%c0_6, %c128], %4 {strides = array<i32>} : memref<80x1152xbf16, #tpu.memory_space<vmem>>, vector<80x128xbf16>,
    %c0_7 = arith.constant 0 : index
    %c2 = arith.constant 2 : index
    %c0_8 = arith.constant 0 : index
    %6 = vector.load %arg1[%c0_7, %c2, %c0_8] : memref<1x110x128xbf16, #tpu.memory_space<vmem>>, vector<1x80x128xbf16>
    %7 = vector.shape_cast %6 : vector<1x80x128xbf16> to vector<80x128xbf16>
    %c0_9 = arith.constant 0 : index
    %c256 = arith.constant 256 : index
    %8 = vector.load %arg5[%c0_9, %c256] : memref<80x1152xbf16, #tpu.memory_space<vmem>>, vector<80x128xbf16>
    tpu.vector_store %arg5[%c0_9, %c256], %7 {strides = array<i32>} : memref<80x1152xbf16, #tpu.memory_space<vmem>>, vector<80x128xbf16>,
    %c0_10 = arith.constant 0 : index
    %c10 = arith.constant 10 : index
    %c0_11 = arith.constant 0 : index
    %9 = vector.load %arg1[%c0_10, %c10, %c0_11] : memref<1x110x128xbf16, #tpu.memory_space<vmem>>, vector<1x80x128xbf16>
    %10 = vector.shape_cast %9 : vector<1x80x128xbf16> to vector<80x128xbf16>
    %c0_12 = arith.constant 0 : index
    %c384 = arith.constant 384 : index
    %11 = vector.load %arg5[%c0_12, %c384] : memref<80x1152xbf16, #tpu.memory_space<vmem>>, vector<80x128xbf16>
    tpu.vector_store %arg5[%c0_12, %c384], %10 {strides = array<i32>} : memref<80x1152xbf16, #tpu.memory_space<vmem>>, vector<80x128xbf16>,
    %c0_13 = arith.constant 0 : index
    %c11 = arith.constant 11 : index
    %c0_14 = arith.constant 0 : index
    %12 = vector.load %arg1[%c0_13, %c11, %c0_14] : memref<1x110x128xbf16, #tpu.memory_space<vmem>>, vector<1x80x128xbf16>
    %13 = vector.shape_cast %12 : vector<1x80x128xbf16> to vector<80x128xbf16>
    %c0_15 = arith.constant 0 : index
    %c512 = arith.constant 512 : index
    %14 = vector.load %arg5[%c0_15, %c512] : memref<80x1152xbf16, #tpu.memory_space<vmem>>, vector<80x128xbf16>
    tpu.vector_store %arg5[%c0_15, %c512], %13 {strides = array<i32>} : memref<80x1152xbf16, #tpu.memory_space<vmem>>, vector<80x128xbf16>,
    %c0_16 = arith.constant 0 : index
    %c12 = arith.constant 12 : index
    %c0_17 = arith.constant 0 : index
    %15 = vector.load %arg1[%c0_16, %c12, %c0_17] : memref<1x110x128xbf16, #tpu.memory_space<vmem>>, vector<1x80x128xbf16>
    %16 = vector.shape_cast %15 : vector<1x80x128xbf16> to vector<80x128xbf16>
    %c0_18 = arith.constant 0 : index
    %c640 = arith.constant 640 : index
    %17 = vector.load %arg5[%c0_18, %c640] : memref<80x1152xbf16, #tpu.memory_space<vmem>>, vector<80x128xbf16>
    tpu.vector_store %arg5[%c0_18, %c640], %16 {strides = array<i32>} : memref<80x1152xbf16, #tpu.memory_space<vmem>>, vector<80x128xbf16>,
    %c0_19 = arith.constant 0 : index
    %c20 = arith.constant 20 : index
    %c0_20 = arith.constant 0 : index
    %18 = vector.load %arg1[%c0_19, %c20, %c0_20] : memref<1x110x128xbf16, #tpu.memory_space<vmem>>, vector<1x80x128xbf16>
    %19 = vector.shape_cast %18 : vector<1x80x128xbf16> to vector<80x128xbf16>
    %c0_21 = arith.constant 0 : index
    %c768 = arith.constant 768 : index
    %20 = vector.load %arg5[%c0_21, %c768] : memref<80x1152xbf16, #tpu.memory_space<vmem>>, vector<80x128xbf16>
    tpu.vector_store %arg5[%c0_21, %c768], %19 {strides = array<i32>} : memref<80x1152xbf16, #tpu.memory_space<vmem>>, vector<80x128xbf16>,
    %c0_22 = arith.constant 0 : index
    %c21 = arith.constant 21 : index
    %c0_23 = arith.constant 0 : index
    %21 = vector.load %arg1[%c0_22, %c21, %c0_23] : memref<1x110x128xbf16, #tpu.memory_space<vmem>>, vector<1x80x128xbf16>
    %22 = vector.shape_cast %21 : vector<1x80x128xbf16> to vector<80x128xbf16>
    %c0_24 = arith.constant 0 : index
    %c896 = arith.constant 896 : index
    %23 = vector.load %arg5[%c0_24, %c896] : memref<80x1152xbf16, #tpu.memory_space<vmem>>, vector<80x128xbf16>
    tpu.vector_store %arg5[%c0_24, %c896], %22 {strides = array<i32>} : memref<80x1152xbf16, #tpu.memory_space<vmem>>, vector<80x128xbf16>,
    %c0_25 = arith.constant 0 : index
    %c22 = arith.constant 22 : index
    %c0_26 = arith.constant 0 : index
    %24 = vector.load %arg1[%c0_25, %c22, %c0_26] : memref<1x110x128xbf16, #tpu.memory_space<vmem>>, vector<1x80x128xbf16>
    %25 = vector.shape_cast %24 : vector<1x80x128xbf16> to vector<80x128xbf16>
    %c0_27 = arith.constant 0 : index
    %c1024 = arith.constant 1024 : index
    %26 = vector.load %arg5[%c0_27, %c1024] : memref<80x1152xbf16, #tpu.memory_space<vmem>>, vector<80x128xbf16>
    tpu.vector_store %arg5[%c0_27, %c1024], %25 {strides = array<i32>} : memref<80x1152xbf16, #tpu.memory_space<vmem>>, vector<80x128xbf16>,
    %c0_28 = arith.constant 0 : index
    %c0_29 = arith.constant 0 : index
    %27 = vector.load %arg5[%c0_28, %c0_29] : memref<80x1152xbf16, #tpu.memory_space<vmem>>, vector<80x1152xbf16>
    %c0_30 = arith.constant 0 : index
    %c0_31 = arith.constant 0 : index
    %28 = vector.load %arg2[%c0_30, %c0_31] : memref<1152x128xbf16, #tpu.memory_space<vmem>>, vector<1152x128xbf16>
    %cst = arith.constant dense<0.000000e+00> : vector<80x128xf32>
    %29 = tpu.matmul %27, %28, %cst {dimension_numbers = #tpu.dot_dimension_numbers<[1], [0], [0], [1], [0, 0, 1, 1], [], []>} : vector<80x1152xbf16>, vector<1152x128xbf16>, vector<80x128xf32> -> vector<80x128xf32>
    %c0_32 = arith.constant 0 : index
    %c0_33 = arith.constant 0 : index
    %30 = vector.load %arg3[%c0_32, %c0_33] : memref<1x128xf32, #tpu.memory_space<vmem>>, vector<1x128xf32>
    %31 = vector.broadcast %30 : vector<1x128xf32> to vector<80x128xf32>
    %32 = arith.addf %29, %31 : vector<80x128xf32>
    %cst_34 = arith.constant 0.000000e+00 : f32
    %33 = vector.broadcast %cst_34 : f32 to vector<80x128xf32>
    %34 = arith.maximumf %32, %33 : vector<80x128xf32>
    %35 = arith.truncf %34 : vector<80x128xf32> to vector<80x128xbf16>
    %c0_35 = arith.constant 0 : index
    %c0_36 = arith.constant 0 : index
    %c0_37 = arith.constant 0 : index
    %36 = vector.load %arg4[%c0_35, %c0_36, %c0_37] : memref<1x80x128xbf16, #tpu.memory_space<vmem>>, vector<1x80x128xbf16>
    %37 = vector.shape_cast %36 : vector<1x80x128xbf16> to vector<80x128xbf16>
    %38 = vector.shape_cast %35 : vector<80x128xbf16> to vector<1x80x128xbf16>
    tpu.vector_store %arg4[%c0_35, %c0_36, %c0_37], %38 {strides = array<i32>} : memref<1x80x128xbf16, #tpu.memory_space<vmem>>, vector<1x80x128xbf16>,
    return
  }
  func.func @transform_0(%arg0: i32) -> (i32, i32, i32) {
    %c0_i32 = arith.constant 0 : i32
    %c0_i32_0 = arith.constant 0 : i32
    %c0_i32_1 = arith.constant 0 : i32
    return %arg0, %c0_i32, %c0_i32_0 : i32, i32, i32
  }
  func.func @transform_1(%arg0: i32) -> (i32, i32) {
    %c0_i32 = arith.constant 0 : i32
    %c0_i32_0 = arith.constant 0 : i32
    %c0_i32_1 = arith.constant 0 : i32
    return %c0_i32, %c0_i32_0 : i32, i32
  }
  func.func @transform_2(%arg0: i32) -> (i32, i32) {
    %c0_i32 = arith.constant 0 : i32
    %c0_i32_0 = arith.constant 0 : i32
    %c0_i32_1 = arith.constant 0 : i32
    return %c0_i32, %c0_i32_0 : i32, i32
  }
  func.func @transform_3(%arg0: i32) -> (i32, i32, i32) {
    %c0_i32 = arith.constant 0 : i32
    %c0_i32_0 = arith.constant 0 : i32
    %c0_i32_1 = arith.constant 0 : i32
    return %arg0, %c0_i32, %c0_i32_0 : i32, i32, i32
  }
}

module attributes {stable_mosaic.version = 11 : i64} {
  func.func @_conv_mm_kernel(%arg0: i32, %arg1: memref<1x42x128xbf16, #tpu.memory_space<vmem>>, %arg2: memref<1152x256xbf16, #tpu.memory_space<vmem>>, %arg3: memref<1x256xf32, #tpu.memory_space<vmem>>, %arg4: memref<1x24x256xbf16, #tpu.memory_space<vmem>>, %arg5: memref<24x1152xbf16, #tpu.memory_space<vmem>>) attributes {dimension_semantics = [#tpu.dimension_semantics<parallel>], iteration_bounds = array<i64: 4>, scalar_prefetch = 0 : i64, scratch_operands = 1 : i64, tpu.core_type = #tpu.core_type<tc>, window_params = [{transform_indices = @transform_0, window_bounds = array<i64: 1, 42, 128>}, {pipeline_mode = #tpu.pipeline_mode<synchronous>, transform_indices = @transform_1, window_bounds = array<i64: 1152, 256>}, {pipeline_mode = #tpu.pipeline_mode<synchronous>, transform_indices = @transform_2, window_bounds = array<i64: 1, 256>}, {transform_indices = @transform_3, window_bounds = array<i64: 1, 24, 256>}]} {
    %c0 = arith.constant 0 : index
    %c0_0 = arith.constant 0 : index
    %c0_1 = arith.constant 0 : index
    %0 = vector.load %arg1[%c0, %c0_0, %c0_1] : memref<1x42x128xbf16, #tpu.memory_space<vmem>>, vector<1x24x128xbf16>
    %1 = vector.shape_cast %0 : vector<1x24x128xbf16> to vector<24x128xbf16>
    %c0_2 = arith.constant 0 : index
    %c0_3 = arith.constant 0 : index
    %2 = vector.load %arg5[%c0_2, %c0_3] : memref<24x1152xbf16, #tpu.memory_space<vmem>>, vector<24x128xbf16>
    tpu.vector_store %arg5[%c0_2, %c0_3], %1 {strides = array<i32>} : memref<24x1152xbf16, #tpu.memory_space<vmem>>, vector<24x128xbf16>,
    %c0_4 = arith.constant 0 : index
    %c1 = arith.constant 1 : index
    %c0_5 = arith.constant 0 : index
    %3 = vector.load %arg1[%c0_4, %c1, %c0_5] : memref<1x42x128xbf16, #tpu.memory_space<vmem>>, vector<1x24x128xbf16>
    %4 = vector.shape_cast %3 : vector<1x24x128xbf16> to vector<24x128xbf16>
    %c0_6 = arith.constant 0 : index
    %c128 = arith.constant 128 : index
    %5 = vector.load %arg5[%c0_6, %c128] : memref<24x1152xbf16, #tpu.memory_space<vmem>>, vector<24x128xbf16>
    tpu.vector_store %arg5[%c0_6, %c128], %4 {strides = array<i32>} : memref<24x1152xbf16, #tpu.memory_space<vmem>>, vector<24x128xbf16>,
    %c0_7 = arith.constant 0 : index
    %c2 = arith.constant 2 : index
    %c0_8 = arith.constant 0 : index
    %6 = vector.load %arg1[%c0_7, %c2, %c0_8] : memref<1x42x128xbf16, #tpu.memory_space<vmem>>, vector<1x24x128xbf16>
    %7 = vector.shape_cast %6 : vector<1x24x128xbf16> to vector<24x128xbf16>
    %c0_9 = arith.constant 0 : index
    %c256 = arith.constant 256 : index
    %8 = vector.load %arg5[%c0_9, %c256] : memref<24x1152xbf16, #tpu.memory_space<vmem>>, vector<24x128xbf16>
    tpu.vector_store %arg5[%c0_9, %c256], %7 {strides = array<i32>} : memref<24x1152xbf16, #tpu.memory_space<vmem>>, vector<24x128xbf16>,
    %c0_10 = arith.constant 0 : index
    %c6 = arith.constant 6 : index
    %c0_11 = arith.constant 0 : index
    %9 = vector.load %arg1[%c0_10, %c6, %c0_11] : memref<1x42x128xbf16, #tpu.memory_space<vmem>>, vector<1x24x128xbf16>
    %10 = vector.shape_cast %9 : vector<1x24x128xbf16> to vector<24x128xbf16>
    %c0_12 = arith.constant 0 : index
    %c384 = arith.constant 384 : index
    %11 = vector.load %arg5[%c0_12, %c384] : memref<24x1152xbf16, #tpu.memory_space<vmem>>, vector<24x128xbf16>
    tpu.vector_store %arg5[%c0_12, %c384], %10 {strides = array<i32>} : memref<24x1152xbf16, #tpu.memory_space<vmem>>, vector<24x128xbf16>,
    %c0_13 = arith.constant 0 : index
    %c7 = arith.constant 7 : index
    %c0_14 = arith.constant 0 : index
    %12 = vector.load %arg1[%c0_13, %c7, %c0_14] : memref<1x42x128xbf16, #tpu.memory_space<vmem>>, vector<1x24x128xbf16>
    %13 = vector.shape_cast %12 : vector<1x24x128xbf16> to vector<24x128xbf16>
    %c0_15 = arith.constant 0 : index
    %c512 = arith.constant 512 : index
    %14 = vector.load %arg5[%c0_15, %c512] : memref<24x1152xbf16, #tpu.memory_space<vmem>>, vector<24x128xbf16>
    tpu.vector_store %arg5[%c0_15, %c512], %13 {strides = array<i32>} : memref<24x1152xbf16, #tpu.memory_space<vmem>>, vector<24x128xbf16>,
    %c0_16 = arith.constant 0 : index
    %c8 = arith.constant 8 : index
    %c0_17 = arith.constant 0 : index
    %15 = vector.load %arg1[%c0_16, %c8, %c0_17] : memref<1x42x128xbf16, #tpu.memory_space<vmem>>, vector<1x24x128xbf16>
    %16 = vector.shape_cast %15 : vector<1x24x128xbf16> to vector<24x128xbf16>
    %c0_18 = arith.constant 0 : index
    %c640 = arith.constant 640 : index
    %17 = vector.load %arg5[%c0_18, %c640] : memref<24x1152xbf16, #tpu.memory_space<vmem>>, vector<24x128xbf16>
    tpu.vector_store %arg5[%c0_18, %c640], %16 {strides = array<i32>} : memref<24x1152xbf16, #tpu.memory_space<vmem>>, vector<24x128xbf16>,
    %c0_19 = arith.constant 0 : index
    %c12 = arith.constant 12 : index
    %c0_20 = arith.constant 0 : index
    %18 = vector.load %arg1[%c0_19, %c12, %c0_20] : memref<1x42x128xbf16, #tpu.memory_space<vmem>>, vector<1x24x128xbf16>
    %19 = vector.shape_cast %18 : vector<1x24x128xbf16> to vector<24x128xbf16>
    %c0_21 = arith.constant 0 : index
    %c768 = arith.constant 768 : index
    %20 = vector.load %arg5[%c0_21, %c768] : memref<24x1152xbf16, #tpu.memory_space<vmem>>, vector<24x128xbf16>
    tpu.vector_store %arg5[%c0_21, %c768], %19 {strides = array<i32>} : memref<24x1152xbf16, #tpu.memory_space<vmem>>, vector<24x128xbf16>,
    %c0_22 = arith.constant 0 : index
    %c13 = arith.constant 13 : index
    %c0_23 = arith.constant 0 : index
    %21 = vector.load %arg1[%c0_22, %c13, %c0_23] : memref<1x42x128xbf16, #tpu.memory_space<vmem>>, vector<1x24x128xbf16>
    %22 = vector.shape_cast %21 : vector<1x24x128xbf16> to vector<24x128xbf16>
    %c0_24 = arith.constant 0 : index
    %c896 = arith.constant 896 : index
    %23 = vector.load %arg5[%c0_24, %c896] : memref<24x1152xbf16, #tpu.memory_space<vmem>>, vector<24x128xbf16>
    tpu.vector_store %arg5[%c0_24, %c896], %22 {strides = array<i32>} : memref<24x1152xbf16, #tpu.memory_space<vmem>>, vector<24x128xbf16>,
    %c0_25 = arith.constant 0 : index
    %c14 = arith.constant 14 : index
    %c0_26 = arith.constant 0 : index
    %24 = vector.load %arg1[%c0_25, %c14, %c0_26] : memref<1x42x128xbf16, #tpu.memory_space<vmem>>, vector<1x24x128xbf16>
    %25 = vector.shape_cast %24 : vector<1x24x128xbf16> to vector<24x128xbf16>
    %c0_27 = arith.constant 0 : index
    %c1024 = arith.constant 1024 : index
    %26 = vector.load %arg5[%c0_27, %c1024] : memref<24x1152xbf16, #tpu.memory_space<vmem>>, vector<24x128xbf16>
    tpu.vector_store %arg5[%c0_27, %c1024], %25 {strides = array<i32>} : memref<24x1152xbf16, #tpu.memory_space<vmem>>, vector<24x128xbf16>,
    %c0_28 = arith.constant 0 : index
    %c0_29 = arith.constant 0 : index
    %27 = vector.load %arg5[%c0_28, %c0_29] : memref<24x1152xbf16, #tpu.memory_space<vmem>>, vector<24x1152xbf16>
    %c0_30 = arith.constant 0 : index
    %c0_31 = arith.constant 0 : index
    %28 = vector.load %arg2[%c0_30, %c0_31] : memref<1152x256xbf16, #tpu.memory_space<vmem>>, vector<1152x256xbf16>
    %cst = arith.constant dense<0.000000e+00> : vector<24x256xf32>
    %29 = tpu.matmul %27, %28, %cst {dimension_numbers = #tpu.dot_dimension_numbers<[1], [0], [0], [1], [0, 0, 1, 1], [], []>} : vector<24x1152xbf16>, vector<1152x256xbf16>, vector<24x256xf32> -> vector<24x256xf32>
    %c0_32 = arith.constant 0 : index
    %c0_33 = arith.constant 0 : index
    %30 = vector.load %arg3[%c0_32, %c0_33] : memref<1x256xf32, #tpu.memory_space<vmem>>, vector<1x256xf32>
    %31 = vector.broadcast %30 : vector<1x256xf32> to vector<24x256xf32>
    %32 = arith.addf %29, %31 : vector<24x256xf32>
    %cst_34 = arith.constant 0.000000e+00 : f32
    %33 = vector.broadcast %cst_34 : f32 to vector<24x256xf32>
    %34 = arith.maximumf %32, %33 : vector<24x256xf32>
    %35 = arith.truncf %34 : vector<24x256xf32> to vector<24x256xbf16>
    %c0_35 = arith.constant 0 : index
    %c0_36 = arith.constant 0 : index
    %c0_37 = arith.constant 0 : index
    %36 = vector.load %arg4[%c0_35, %c0_36, %c0_37] : memref<1x24x256xbf16, #tpu.memory_space<vmem>>, vector<1x24x256xbf16>
    %37 = vector.shape_cast %36 : vector<1x24x256xbf16> to vector<24x256xbf16>
    %38 = vector.shape_cast %35 : vector<24x256xbf16> to vector<1x24x256xbf16>
    tpu.vector_store %arg4[%c0_35, %c0_36, %c0_37], %38 {strides = array<i32>} : memref<1x24x256xbf16, #tpu.memory_space<vmem>>, vector<1x24x256xbf16>,
    return
  }
  func.func @transform_0(%arg0: i32) -> (i32, i32, i32) {
    %c0_i32 = arith.constant 0 : i32
    %c0_i32_0 = arith.constant 0 : i32
    %c0_i32_1 = arith.constant 0 : i32
    return %arg0, %c0_i32, %c0_i32_0 : i32, i32, i32
  }
  func.func @transform_1(%arg0: i32) -> (i32, i32) {
    %c0_i32 = arith.constant 0 : i32
    %c0_i32_0 = arith.constant 0 : i32
    %c0_i32_1 = arith.constant 0 : i32
    return %c0_i32, %c0_i32_0 : i32, i32
  }
  func.func @transform_2(%arg0: i32) -> (i32, i32) {
    %c0_i32 = arith.constant 0 : i32
    %c0_i32_0 = arith.constant 0 : i32
    %c0_i32_1 = arith.constant 0 : i32
    return %c0_i32, %c0_i32_0 : i32, i32
  }
  func.func @transform_3(%arg0: i32) -> (i32, i32, i32) {
    %c0_i32 = arith.constant 0 : i32
    %c0_i32_0 = arith.constant 0 : i32
    %c0_i32_1 = arith.constant 0 : i32
    return %arg0, %c0_i32, %c0_i32_0 : i32, i32, i32
  }
}

module attributes {stable_mosaic.version = 11 : i64} {
  func.func @_conv_mm_kernel(%arg0: i32, %arg1: memref<1x42x256xbf16, #tpu.memory_space<vmem>>, %arg2: memref<2304x256xbf16, #tpu.memory_space<vmem>>, %arg3: memref<1x256xf32, #tpu.memory_space<vmem>>, %arg4: memref<1x24x256xbf16, #tpu.memory_space<vmem>>, %arg5: memref<24x2304xbf16, #tpu.memory_space<vmem>>) attributes {dimension_semantics = [#tpu.dimension_semantics<parallel>], iteration_bounds = array<i64: 4>, scalar_prefetch = 0 : i64, scratch_operands = 1 : i64, tpu.core_type = #tpu.core_type<tc>, window_params = [{transform_indices = @transform_0, window_bounds = array<i64: 1, 42, 256>}, {pipeline_mode = #tpu.pipeline_mode<synchronous>, transform_indices = @transform_1, window_bounds = array<i64: 2304, 256>}, {pipeline_mode = #tpu.pipeline_mode<synchronous>, transform_indices = @transform_2, window_bounds = array<i64: 1, 256>}, {transform_indices = @transform_3, window_bounds = array<i64: 1, 24, 256>}]} {
    %c0 = arith.constant 0 : index
    %c0_0 = arith.constant 0 : index
    %c0_1 = arith.constant 0 : index
    %0 = vector.load %arg1[%c0, %c0_0, %c0_1] : memref<1x42x256xbf16, #tpu.memory_space<vmem>>, vector<1x24x256xbf16>
    %1 = vector.shape_cast %0 : vector<1x24x256xbf16> to vector<24x256xbf16>
    %c0_2 = arith.constant 0 : index
    %c0_3 = arith.constant 0 : index
    %2 = vector.load %arg5[%c0_2, %c0_3] : memref<24x2304xbf16, #tpu.memory_space<vmem>>, vector<24x256xbf16>
    tpu.vector_store %arg5[%c0_2, %c0_3], %1 {strides = array<i32>} : memref<24x2304xbf16, #tpu.memory_space<vmem>>, vector<24x256xbf16>,
    %c0_4 = arith.constant 0 : index
    %c1 = arith.constant 1 : index
    %c0_5 = arith.constant 0 : index
    %3 = vector.load %arg1[%c0_4, %c1, %c0_5] : memref<1x42x256xbf16, #tpu.memory_space<vmem>>, vector<1x24x256xbf16>
    %4 = vector.shape_cast %3 : vector<1x24x256xbf16> to vector<24x256xbf16>
    %c0_6 = arith.constant 0 : index
    %c256 = arith.constant 256 : index
    %5 = vector.load %arg5[%c0_6, %c256] : memref<24x2304xbf16, #tpu.memory_space<vmem>>, vector<24x256xbf16>
    tpu.vector_store %arg5[%c0_6, %c256], %4 {strides = array<i32>} : memref<24x2304xbf16, #tpu.memory_space<vmem>>, vector<24x256xbf16>,
    %c0_7 = arith.constant 0 : index
    %c2 = arith.constant 2 : index
    %c0_8 = arith.constant 0 : index
    %6 = vector.load %arg1[%c0_7, %c2, %c0_8] : memref<1x42x256xbf16, #tpu.memory_space<vmem>>, vector<1x24x256xbf16>
    %7 = vector.shape_cast %6 : vector<1x24x256xbf16> to vector<24x256xbf16>
    %c0_9 = arith.constant 0 : index
    %c512 = arith.constant 512 : index
    %8 = vector.load %arg5[%c0_9, %c512] : memref<24x2304xbf16, #tpu.memory_space<vmem>>, vector<24x256xbf16>
    tpu.vector_store %arg5[%c0_9, %c512], %7 {strides = array<i32>} : memref<24x2304xbf16, #tpu.memory_space<vmem>>, vector<24x256xbf16>,
    %c0_10 = arith.constant 0 : index
    %c6 = arith.constant 6 : index
    %c0_11 = arith.constant 0 : index
    %9 = vector.load %arg1[%c0_10, %c6, %c0_11] : memref<1x42x256xbf16, #tpu.memory_space<vmem>>, vector<1x24x256xbf16>
    %10 = vector.shape_cast %9 : vector<1x24x256xbf16> to vector<24x256xbf16>
    %c0_12 = arith.constant 0 : index
    %c768 = arith.constant 768 : index
    %11 = vector.load %arg5[%c0_12, %c768] : memref<24x2304xbf16, #tpu.memory_space<vmem>>, vector<24x256xbf16>
    tpu.vector_store %arg5[%c0_12, %c768], %10 {strides = array<i32>} : memref<24x2304xbf16, #tpu.memory_space<vmem>>, vector<24x256xbf16>,
    %c0_13 = arith.constant 0 : index
    %c7 = arith.constant 7 : index
    %c0_14 = arith.constant 0 : index
    %12 = vector.load %arg1[%c0_13, %c7, %c0_14] : memref<1x42x256xbf16, #tpu.memory_space<vmem>>, vector<1x24x256xbf16>
    %13 = vector.shape_cast %12 : vector<1x24x256xbf16> to vector<24x256xbf16>
    %c0_15 = arith.constant 0 : index
    %c1024 = arith.constant 1024 : index
    %14 = vector.load %arg5[%c0_15, %c1024] : memref<24x2304xbf16, #tpu.memory_space<vmem>>, vector<24x256xbf16>
    tpu.vector_store %arg5[%c0_15, %c1024], %13 {strides = array<i32>} : memref<24x2304xbf16, #tpu.memory_space<vmem>>, vector<24x256xbf16>,
    %c0_16 = arith.constant 0 : index
    %c8 = arith.constant 8 : index
    %c0_17 = arith.constant 0 : index
    %15 = vector.load %arg1[%c0_16, %c8, %c0_17] : memref<1x42x256xbf16, #tpu.memory_space<vmem>>, vector<1x24x256xbf16>
    %16 = vector.shape_cast %15 : vector<1x24x256xbf16> to vector<24x256xbf16>
    %c0_18 = arith.constant 0 : index
    %c1280 = arith.constant 1280 : index
    %17 = vector.load %arg5[%c0_18, %c1280] : memref<24x2304xbf16, #tpu.memory_space<vmem>>, vector<24x256xbf16>
    tpu.vector_store %arg5[%c0_18, %c1280], %16 {strides = array<i32>} : memref<24x2304xbf16, #tpu.memory_space<vmem>>, vector<24x256xbf16>,
    %c0_19 = arith.constant 0 : index
    %c12 = arith.constant 12 : index
    %c0_20 = arith.constant 0 : index
    %18 = vector.load %arg1[%c0_19, %c12, %c0_20] : memref<1x42x256xbf16, #tpu.memory_space<vmem>>, vector<1x24x256xbf16>
    %19 = vector.shape_cast %18 : vector<1x24x256xbf16> to vector<24x256xbf16>
    %c0_21 = arith.constant 0 : index
    %c1536 = arith.constant 1536 : index
    %20 = vector.load %arg5[%c0_21, %c1536] : memref<24x2304xbf16, #tpu.memory_space<vmem>>, vector<24x256xbf16>
    tpu.vector_store %arg5[%c0_21, %c1536], %19 {strides = array<i32>} : memref<24x2304xbf16, #tpu.memory_space<vmem>>, vector<24x256xbf16>,
    %c0_22 = arith.constant 0 : index
    %c13 = arith.constant 13 : index
    %c0_23 = arith.constant 0 : index
    %21 = vector.load %arg1[%c0_22, %c13, %c0_23] : memref<1x42x256xbf16, #tpu.memory_space<vmem>>, vector<1x24x256xbf16>
    %22 = vector.shape_cast %21 : vector<1x24x256xbf16> to vector<24x256xbf16>
    %c0_24 = arith.constant 0 : index
    %c1792 = arith.constant 1792 : index
    %23 = vector.load %arg5[%c0_24, %c1792] : memref<24x2304xbf16, #tpu.memory_space<vmem>>, vector<24x256xbf16>
    tpu.vector_store %arg5[%c0_24, %c1792], %22 {strides = array<i32>} : memref<24x2304xbf16, #tpu.memory_space<vmem>>, vector<24x256xbf16>,
    %c0_25 = arith.constant 0 : index
    %c14 = arith.constant 14 : index
    %c0_26 = arith.constant 0 : index
    %24 = vector.load %arg1[%c0_25, %c14, %c0_26] : memref<1x42x256xbf16, #tpu.memory_space<vmem>>, vector<1x24x256xbf16>
    %25 = vector.shape_cast %24 : vector<1x24x256xbf16> to vector<24x256xbf16>
    %c0_27 = arith.constant 0 : index
    %c2048 = arith.constant 2048 : index
    %26 = vector.load %arg5[%c0_27, %c2048] : memref<24x2304xbf16, #tpu.memory_space<vmem>>, vector<24x256xbf16>
    tpu.vector_store %arg5[%c0_27, %c2048], %25 {strides = array<i32>} : memref<24x2304xbf16, #tpu.memory_space<vmem>>, vector<24x256xbf16>,
    %c0_28 = arith.constant 0 : index
    %c0_29 = arith.constant 0 : index
    %27 = vector.load %arg5[%c0_28, %c0_29] : memref<24x2304xbf16, #tpu.memory_space<vmem>>, vector<24x2304xbf16>
    %c0_30 = arith.constant 0 : index
    %c0_31 = arith.constant 0 : index
    %28 = vector.load %arg2[%c0_30, %c0_31] : memref<2304x256xbf16, #tpu.memory_space<vmem>>, vector<2304x256xbf16>
    %cst = arith.constant dense<0.000000e+00> : vector<24x256xf32>
    %29 = tpu.matmul %27, %28, %cst {dimension_numbers = #tpu.dot_dimension_numbers<[1], [0], [0], [1], [0, 0, 1, 1], [], []>} : vector<24x2304xbf16>, vector<2304x256xbf16>, vector<24x256xf32> -> vector<24x256xf32>
    %c0_32 = arith.constant 0 : index
    %c0_33 = arith.constant 0 : index
    %30 = vector.load %arg3[%c0_32, %c0_33] : memref<1x256xf32, #tpu.memory_space<vmem>>, vector<1x256xf32>
    %31 = vector.broadcast %30 : vector<1x256xf32> to vector<24x256xf32>
    %32 = arith.addf %29, %31 : vector<24x256xf32>
    %cst_34 = arith.constant 0.000000e+00 : f32
    %33 = vector.broadcast %cst_34 : f32 to vector<24x256xf32>
    %34 = arith.maximumf %32, %33 : vector<24x256xf32>
    %35 = arith.truncf %34 : vector<24x256xf32> to vector<24x256xbf16>
    %c0_35 = arith.constant 0 : index
    %c0_36 = arith.constant 0 : index
    %c0_37 = arith.constant 0 : index
    %36 = vector.load %arg4[%c0_35, %c0_36, %c0_37] : memref<1x24x256xbf16, #tpu.memory_space<vmem>>, vector<1x24x256xbf16>
    %37 = vector.shape_cast %36 : vector<1x24x256xbf16> to vector<24x256xbf16>
    %38 = vector.shape_cast %35 : vector<24x256xbf16> to vector<1x24x256xbf16>
    tpu.vector_store %arg4[%c0_35, %c0_36, %c0_37], %38 {strides = array<i32>} : memref<1x24x256xbf16, #tpu.memory_space<vmem>>, vector<1x24x256xbf16>,
    return
  }
  func.func @transform_0(%arg0: i32) -> (i32, i32, i32) {
    %c0_i32 = arith.constant 0 : i32
    %c0_i32_0 = arith.constant 0 : i32
    %c0_i32_1 = arith.constant 0 : i32
    return %arg0, %c0_i32, %c0_i32_0 : i32, i32, i32
  }
  func.func @transform_1(%arg0: i32) -> (i32, i32) {
    %c0_i32 = arith.constant 0 : i32
    %c0_i32_0 = arith.constant 0 : i32
    %c0_i32_1 = arith.constant 0 : i32
    return %c0_i32, %c0_i32_0 : i32, i32
  }
  func.func @transform_2(%arg0: i32) -> (i32, i32) {
    %c0_i32 = arith.constant 0 : i32
    %c0_i32_0 = arith.constant 0 : i32
    %c0_i32_1 = arith.constant 0 : i32
    return %c0_i32, %c0_i32_0 : i32, i32
  }
  func.func @transform_3(%arg0: i32) -> (i32, i32, i32) {
    %c0_i32 = arith.constant 0 : i32
    %c0_i32_0 = arith.constant 0 : i32
    %c0_i32_1 = arith.constant 0 : i32
    return %arg0, %c0_i32, %c0_i32_0 : i32, i32, i32
  }
}

module attributes {stable_mosaic.version = 11 : i64} {
  func.func @_sq_diff_sum_kernel(%arg0: i32, %arg1: i32, %arg2: memref<64x128xbf16, #tpu.memory_space<vmem>>, %arg3: memref<64x128xbf16, #tpu.memory_space<vmem>>, %arg4: memref<1x8x128xf32, #tpu.memory_space<vmem>>) attributes {dimension_semantics = [#tpu.dimension_semantics<parallel>, #tpu.dimension_semantics<arbitrary>], iteration_bounds = array<i64: 1, 1>, scalar_prefetch = 0 : i64, scratch_operands = 0 : i64, tpu.core_type = #tpu.core_type<tc>, window_params = [{transform_indices = @transform_0, window_bounds = array<i64: 64, 128>}, {transform_indices = @transform_1, window_bounds = array<i64: 64, 128>}, {transform_indices = @transform_2, window_bounds = array<i64: 1, 8, 128>}]} {
    %c0_i32 = arith.constant 0 : i32
    %0 = arith.cmpi eq, %arg1, %c0_i32 : i32
    %1 = arith.extui %0 : i1 to i32
    %c0_i32_0 = arith.constant 0 : i32
    %2 = arith.cmpi ne, %1, %c0_i32_0 : i32
    scf.if %2 {
      %cst_10 = arith.constant 0.000000e+00 : f32
      %17 = vector.broadcast %cst_10 : f32 to vector<1x8x128xf32>
      %c0_11 = arith.constant 0 : index
      %c0_12 = arith.constant 0 : index
      %c0_13 = arith.constant 0 : index
      %18 = vector.load %arg4[%c0_11, %c0_12, %c0_13] : memref<1x8x128xf32, #tpu.memory_space<vmem>>, vector<1x8x128xf32>
      tpu.vector_store %arg4[%c0_11, %c0_12, %c0_13], %17 {strides = array<i32>} : memref<1x8x128xf32, #tpu.memory_space<vmem>>, vector<1x8x128xf32>,
    } else {
    }
    %c0 = arith.constant 0 : index
    %c0_1 = arith.constant 0 : index
    %3 = vector.load %arg2[%c0, %c0_1] : memref<64x128xbf16, #tpu.memory_space<vmem>>, vector<64x128xbf16>
    %4 = arith.extf %3 : vector<64x128xbf16> to vector<64x128xf32>
    %c0_2 = arith.constant 0 : index
    %c0_3 = arith.constant 0 : index
    %5 = vector.load %arg3[%c0_2, %c0_3] : memref<64x128xbf16, #tpu.memory_space<vmem>>, vector<64x128xbf16>
    %6 = arith.extf %5 : vector<64x128xbf16> to vector<64x128xf32>
    %7 = arith.subf %4, %6 : vector<64x128xf32>
    %c0_4 = arith.constant 0 : index
    %c0_5 = arith.constant 0 : index
    %c0_6 = arith.constant 0 : index
    %8 = vector.load %arg4[%c0_4, %c0_5, %c0_6] : memref<1x8x128xf32, #tpu.memory_space<vmem>>, vector<1x1x128xf32>
    %9 = vector.shape_cast %8 : vector<1x1x128xf32> to vector<1x128xf32>
    %10 = arith.mulf %7, %7 : vector<64x128xf32>
    %cst = arith.constant dense<0.000000e+00> : vector<128xf32>
    %11 = vector.multi_reduction <add>, %10, %cst [0] : vector<64x128xf32> to vector<128xf32>
    %12 = vector.shape_cast %11 : vector<128xf32> to vector<1x128xf32>
    %13 = arith.addf %9, %12 : vector<1x128xf32>
    %c0_7 = arith.constant 0 : index
    %c0_8 = arith.constant 0 : index
    %c0_9 = arith.constant 0 : index
    %14 = vector.load %arg4[%c0_7, %c0_8, %c0_9] : memref<1x8x128xf32, #tpu.memory_space<vmem>>, vector<1x1x128xf32>
    %15 = vector.shape_cast %14 : vector<1x1x128xf32> to vector<1x128xf32>
    %16 = vector.shape_cast %13 : vector<1x128xf32> to vector<1x1x128xf32>
    tpu.vector_store %arg4[%c0_7, %c0_8, %c0_9], %16 {strides = array<i32>} : memref<1x8x128xf32, #tpu.memory_space<vmem>>, vector<1x1x128xf32>,
    return
  }
  func.func @transform_0(%arg0: i32, %arg1: i32) -> (i32, i32) {
    %c1_i32 = arith.constant 1 : i32
    %0 = arith.muli %arg0, %c1_i32 : i32
    %1 = arith.addi %0, %arg1 : i32
    %c0_i32 = arith.constant 0 : i32
    %c0_i32_0 = arith.constant 0 : i32
    return %1, %c0_i32 : i32, i32
  }
  func.func @transform_1(%arg0: i32, %arg1: i32) -> (i32, i32) {
    %c1_i32 = arith.constant 1 : i32
    %0 = arith.muli %arg0, %c1_i32 : i32
    %1 = arith.addi %0, %arg1 : i32
    %c0_i32 = arith.constant 0 : i32
    %c0_i32_0 = arith.constant 0 : i32
    return %1, %c0_i32 : i32, i32
  }
  func.func @transform_2(%arg0: i32, %arg1: i32) -> (i32, i32, i32) {
    %c0_i32 = arith.constant 0 : i32
    %c0_i32_0 = arith.constant 0 : i32
    %c0_i32_1 = arith.constant 0 : i32
    return %arg0, %c0_i32, %c0_i32_0 : i32, i32, i32
  }
}

module attributes {stable_mosaic.version = 11 : i64} {
  func.func @_sq_diff_sum_kernel(%arg0: i32, %arg1: i32, %arg2: memref<16x128xf32, #tpu.memory_space<vmem>>, %arg3: memref<16x128xf32, #tpu.memory_space<vmem>>, %arg4: memref<1x8x128xf32, #tpu.memory_space<vmem>>) attributes {dimension_semantics = [#tpu.dimension_semantics<parallel>, #tpu.dimension_semantics<arbitrary>], iteration_bounds = array<i64: 1, 1>, scalar_prefetch = 0 : i64, scratch_operands = 0 : i64, tpu.core_type = #tpu.core_type<tc>, window_params = [{transform_indices = @transform_0, window_bounds = array<i64: 16, 128>}, {transform_indices = @transform_1, window_bounds = array<i64: 16, 128>}, {transform_indices = @transform_2, window_bounds = array<i64: 1, 8, 128>}]} {
    %c0_i32 = arith.constant 0 : i32
    %0 = arith.cmpi eq, %arg1, %c0_i32 : i32
    %1 = arith.extui %0 : i1 to i32
    %c0_i32_0 = arith.constant 0 : i32
    %2 = arith.cmpi ne, %1, %c0_i32_0 : i32
    scf.if %2 {
      %cst_10 = arith.constant 0.000000e+00 : f32
      %15 = vector.broadcast %cst_10 : f32 to vector<1x8x128xf32>
      %c0_11 = arith.constant 0 : index
      %c0_12 = arith.constant 0 : index
      %c0_13 = arith.constant 0 : index
      %16 = vector.load %arg4[%c0_11, %c0_12, %c0_13] : memref<1x8x128xf32, #tpu.memory_space<vmem>>, vector<1x8x128xf32>
      tpu.vector_store %arg4[%c0_11, %c0_12, %c0_13], %15 {strides = array<i32>} : memref<1x8x128xf32, #tpu.memory_space<vmem>>, vector<1x8x128xf32>,
    } else {
    }
    %c0 = arith.constant 0 : index
    %c0_1 = arith.constant 0 : index
    %3 = vector.load %arg2[%c0, %c0_1] : memref<16x128xf32, #tpu.memory_space<vmem>>, vector<16x128xf32>
    %c0_2 = arith.constant 0 : index
    %c0_3 = arith.constant 0 : index
    %4 = vector.load %arg3[%c0_2, %c0_3] : memref<16x128xf32, #tpu.memory_space<vmem>>, vector<16x128xf32>
    %5 = arith.subf %3, %4 : vector<16x128xf32>
    %c0_4 = arith.constant 0 : index
    %c0_5 = arith.constant 0 : index
    %c0_6 = arith.constant 0 : index
    %6 = vector.load %arg4[%c0_4, %c0_5, %c0_6] : memref<1x8x128xf32, #tpu.memory_space<vmem>>, vector<1x1x128xf32>
    %7 = vector.shape_cast %6 : vector<1x1x128xf32> to vector<1x128xf32>
    %8 = arith.mulf %5, %5 : vector<16x128xf32>
    %cst = arith.constant dense<0.000000e+00> : vector<128xf32>
    %9 = vector.multi_reduction <add>, %8, %cst [0] : vector<16x128xf32> to vector<128xf32>
    %10 = vector.shape_cast %9 : vector<128xf32> to vector<1x128xf32>
    %11 = arith.addf %7, %10 : vector<1x128xf32>
    %c0_7 = arith.constant 0 : index
    %c0_8 = arith.constant 0 : index
    %c0_9 = arith.constant 0 : index
    %12 = vector.load %arg4[%c0_7, %c0_8, %c0_9] : memref<1x8x128xf32, #tpu.memory_space<vmem>>, vector<1x1x128xf32>
    %13 = vector.shape_cast %12 : vector<1x1x128xf32> to vector<1x128xf32>
    %14 = vector.shape_cast %11 : vector<1x128xf32> to vector<1x1x128xf32>
    tpu.vector_store %arg4[%c0_7, %c0_8, %c0_9], %14 {strides = array<i32>} : memref<1x8x128xf32, #tpu.memory_space<vmem>>, vector<1x1x128xf32>,
    return
  }
  func.func @transform_0(%arg0: i32, %arg1: i32) -> (i32, i32) {
    %c1_i32 = arith.constant 1 : i32
    %0 = arith.muli %arg0, %c1_i32 : i32
    %1 = arith.addi %0, %arg1 : i32
    %c0_i32 = arith.constant 0 : i32
    %c0_i32_0 = arith.constant 0 : i32
    return %1, %c0_i32 : i32, i32
  }
  func.func @transform_1(%arg0: i32, %arg1: i32) -> (i32, i32) {
    %c1_i32 = arith.constant 1 : i32
    %0 = arith.muli %arg0, %c1_i32 : i32
    %1 = arith.addi %0, %arg1 : i32
    %c0_i32 = arith.constant 0 : i32
    %c0_i32_0 = arith.constant 0 : i32
    return %1, %c0_i32 : i32, i32
  }
  func.func @transform_2(%arg0: i32, %arg1: i32) -> (i32, i32, i32) {
    %c0_i32 = arith.constant 0 : i32
    %c0_i32_0 = arith.constant 0 : i32
    %c0_i32_1 = arith.constant 0 : i32
    return %arg0, %c0_i32, %c0_i32_0 : i32, i32, i32
  }
}

module attributes {stable_mosaic.version = 11 : i64} {
  func.func @_log_sum_kernel(%arg0: i32, %arg1: i32, %arg2: memref<8x128xf32, #tpu.memory_space<vmem>>, %arg3: memref<1x8x128xf32, #tpu.memory_space<vmem>>) attributes {dimension_semantics = [#tpu.dimension_semantics<parallel>, #tpu.dimension_semantics<arbitrary>], iteration_bounds = array<i64: 1, 1>, scalar_prefetch = 0 : i64, scratch_operands = 0 : i64, tpu.core_type = #tpu.core_type<tc>, window_params = [{transform_indices = @transform_0, window_bounds = array<i64: 8, 128>}, {transform_indices = @transform_1, window_bounds = array<i64: 1, 8, 128>}]} {
    %c0_i32 = arith.constant 0 : i32
    %0 = arith.cmpi eq, %arg1, %c0_i32 : i32
    %1 = arith.extui %0 : i1 to i32
    %c0_i32_0 = arith.constant 0 : i32
    %2 = arith.cmpi ne, %1, %c0_i32_0 : i32
    scf.if %2 {
      %cst_8 = arith.constant 0.000000e+00 : f32
      %13 = vector.broadcast %cst_8 : f32 to vector<1x8x128xf32>
      %c0_9 = arith.constant 0 : index
      %c0_10 = arith.constant 0 : index
      %c0_11 = arith.constant 0 : index
      %14 = vector.load %arg3[%c0_9, %c0_10, %c0_11] : memref<1x8x128xf32, #tpu.memory_space<vmem>>, vector<1x8x128xf32>
      tpu.vector_store %arg3[%c0_9, %c0_10, %c0_11], %13 {strides = array<i32>} : memref<1x8x128xf32, #tpu.memory_space<vmem>>, vector<1x8x128xf32>,
    } else {
    }
    %c0 = arith.constant 0 : index
    %c0_1 = arith.constant 0 : index
    %c0_2 = arith.constant 0 : index
    %3 = vector.load %arg3[%c0, %c0_1, %c0_2] : memref<1x8x128xf32, #tpu.memory_space<vmem>>, vector<1x1x128xf32>
    %4 = vector.shape_cast %3 : vector<1x1x128xf32> to vector<1x128xf32>
    %c0_3 = arith.constant 0 : index
    %c0_4 = arith.constant 0 : index
    %5 = vector.load %arg2[%c0_3, %c0_4] : memref<8x128xf32, #tpu.memory_space<vmem>>, vector<8x128xf32>
    %6 = math.log %5 : vector<8x128xf32>
    %cst = arith.constant dense<0.000000e+00> : vector<128xf32>
    %7 = vector.multi_reduction <add>, %6, %cst [0] : vector<8x128xf32> to vector<128xf32>
    %8 = vector.shape_cast %7 : vector<128xf32> to vector<1x128xf32>
    %9 = arith.addf %4, %8 : vector<1x128xf32>
    %c0_5 = arith.constant 0 : index
    %c0_6 = arith.constant 0 : index
    %c0_7 = arith.constant 0 : index
    %10 = vector.load %arg3[%c0_5, %c0_6, %c0_7] : memref<1x8x128xf32, #tpu.memory_space<vmem>>, vector<1x1x128xf32>
    %11 = vector.shape_cast %10 : vector<1x1x128xf32> to vector<1x128xf32>
    %12 = vector.shape_cast %9 : vector<1x128xf32> to vector<1x1x128xf32>
    tpu.vector_store %arg3[%c0_5, %c0_6, %c0_7], %12 {strides = array<i32>} : memref<1x8x128xf32, #tpu.memory_space<vmem>>, vector<1x1x128xf32>,
    return
  }
  func.func @transform_0(%arg0: i32, %arg1: i32) -> (i32, i32) {
    %c1_i32 = arith.constant 1 : i32
    %0 = arith.muli %arg0, %c1_i32 : i32
    %1 = arith.addi %0, %arg1 : i32
    %c0_i32 = arith.constant 0 : i32
    %c0_i32_0 = arith.constant 0 : i32
    return %1, %c0_i32 : i32, i32
  }
  func.func @transform_1(%arg0: i32, %arg1: i32) -> (i32, i32, i32) {
    %c0_i32 = arith.constant 0 : i32
    %c0_i32_0 = arith.constant 0 : i32
    %c0_i32_1 = arith.constant 0 : i32
    return %arg0, %c0_i32, %c0_i32_0 : i32, i32, i32
  }
}

</mosaic_0001>

<bundles_post_ra>
// kernel: combined_loss.11
= control target key start
LH: loop header
LB: loop body
LE: loop exit
PB: predicated region body
PF: predicated region fallthrough
CT: control target
= control target key end

     0   :  { %s997_s12 = smov 0   ;;  %s1164_s0 = inlined_call_operand.vmem [shape: bf16[4,256,27], index: 0, kind: input, shape index: {}]   ;;  %s1165_s1 = inlined_call_operand.vmem [shape: bf16[27,64], index: 1, kind: input, shape index: {}]   ;;  %s1166_s2 = inlined_call_operand.vmem [shape: f32[1,64], index: 2, kind: input, shape index: {}]   ;;  %s1167_s3 = inlined_call_operand.vmem [shape: bf16[4,256,64], index: 3, kind: output, shape index: {}]  }
   0x1 LB: > { %s771_s13 = sadd.s32 4294967295, %s974_s12   ;;  %p775_p0 = scmp.ge.s32.totalorder %s974_s12, 1  ;;  %s974_s12 = sphi %s997_s12, %s13_s12  }
   0x2   : > { %p137_p1 = scmp.lt.s32.totalorder %s974_s12, 5 }
   0x4   : > { %p138_p2 = pnand %p775_p0, %p137_p1 }
   0x5   : > { %v950_v0 = vld [vmem:[%s1165_s1] sm:$0xff] (!%p138_p2)   ;;  %vm355_vm0 = vcmask (!%p138_p2), 1044480   ;;  %v951_v1 = vld [vmem:[%s1165_s1 + $0x8] sm:$0x3f] (!%p138_p2)   ;;  %vm356_vm1 = vcmask (!%p138_p2), 1045504   ;;  %p161_p3 = scmp.lt.s32.totalorder (!%p138_p2), %s771_s13, 3 }
   0x6   : > { %141 = sbr.rel (%p138_p2) target bundleno = 265 (0x109), region = 32  ;;  %901 = vmatprep.subr.bf16.mxu0 (!%p138_p2), %v950_v0  ;;  %937 = vmatprep.subr.bf16.mxu1 (!%p138_p2), %v950_v0  ;;  %v976_v2 = vmov (!%p138_p2), 65535   ;;  %vm306_vm2 = vcmask (!%p138_p2), 220160   ;;  %v1056_v22 = vld [vmem:[%s1166_s2] ss:$0 sm:$0xff] (!%p138_p2)  ;;  %vm683_vm3 = vcmask (!%p138_p2), 519168  }
   0x7   : > { %902 = vmatpush3.bf16.msra.mxu0 (!%p138_p2), %v950_v0  ;;  %939 = vmatpush3.bf16.msra.mxu1 (!%p138_p2), %v950_v0  ;;  %v357_v3 = vsel (!%p138_p2), %vm355_vm0, 4294967295, %v976_v2 }
   0x8   : > { %v358_v4 = vsel (!%p138_p2), %vm356_vm1, %v357_v3, 0 }
   0x9   : > { %v360_v5 = vand.u32 (!%p138_p2), %v951_v1, %v358_v4 }
   0xb   : > { %903 = vmatprep.subr.bf16.mxu0 (!%p138_p2), %v360_v5  ;;  %938 = vmatprep.subr.bf16.mxu1 (!%p138_p2), %v360_v5 }
   0xc   : > { %904 = vmatpush3.bf16.msra.mxu0 (!%p138_p2), %v360_v5  ;;  %940 = vmatpush3.bf16.msra.mxu1 (!%p138_p2), %v360_v5 }
   0xd   : > { %s1169_s13 = smov (!%p161_p3, %s771_s13), 3 }
   0xe   : > { %s849_s18 = sshll.u32 %s1169_s13, 7 }
   0xf   : > { %s1019_s21 = scalar_lea.vmem %s1164_s0, %s849_s18  ;;  %s1068_s26 = scalar_lea.vmem %s1167_s3, %s849_s18 }
  0x10   : > { %v952_v6 = vld [vmem:[%s1019_s21] sm:$0xff]   ;;  %v954_v8 = vld [vmem:[%s1019_s21 + $0x8] sm:$0xff]   ;;  %v956_v10 = vld [vmem:[%s1019_s21 + $0x10] sm:$0xff]  }
  0x11   : > { %v953_v7 = vld [vmem:[%s1019_s21 + $0x40] sm:$0xff]   ;;  %905 = vmatprep.mubr.msk.bf16.mxu0 %vm306_vm2, %v952_v6  ;;  %v955_v9 = vld [vmem:[%s1019_s21 + $0x48] sm:$0xff]   ;;  %v957_v11 = vld [vmem:[%s1019_s21 + $0x50] sm:$0xff]  }
  0x12   : > { %921 = vmatprep.mubr.msk.bf16.mxu1 %vm306_vm2, %v953_v7  ;;  %906 = vmatmul.mubr.msk.bf16.vlgmr.msra.gmra.mrb[0].mxu0 %vm306_vm2, %v954_v8  ;;  %v958_v12 = vld [vmem:[%s1019_s21 + $0x18] sm:$0xff]   ;;  %v960_v14 = vld [vmem:[%s1019_s21 + $0x20] sm:$0xff]   ;;  %v962_v16 = vld [vmem:[%s1019_s21 + $0x28] sm:$0xff]  }
  0x13   : > { %922 = vmatmul.mubr.msk.bf16.vlgmr.msra.gmra.mrb[0].mxu1 %vm306_vm2, %v955_v9  ;;  %909 = vmatprep.mubr.msk.bf16.mxu0 %vm306_vm2, %v956_v10  ;;  %v959_v13 = vld [vmem:[%s1019_s21 + $0x58] sm:$0xff]   ;;  %v961_v15 = vld [vmem:[%s1019_s21 + $0x60] sm:$0xff]   ;;  %v963_v17 = vld [vmem:[%s1019_s21 + $0x68] sm:$0xff]  }
  0x14   : > { %925 = vmatprep.mubr.msk.bf16.mxu1 %vm306_vm2, %v957_v11  ;;  %v964_v18 = vld [vmem:[%s1019_s21 + $0x30] sm:$0xff]   ;;  %v966_v20 = vld [vmem:[%s1019_s21 + $0x38] sm:$0xff]  }
  0x15   : > { %v965_v19 = vld [vmem:[%s1019_s21 + $0x70] sm:$0xff]   ;;  %v967_v21 = vld [vmem:[%s1019_s21 + $0x78] sm:$0xff]  }
  0x1a   : > { %910 = vmatmul.mubr.msk.bf16.gmra.mrb[4].mxu0 %vm306_vm2, %v958_v12 }
  0x1b   : > { %926 = vmatmul.mubr.msk.bf16.gmra.mrb[4].mxu1 %vm306_vm2, %v959_v13  ;;  %913 = vmatprep.mubr.msk.bf16.mxu0 %vm306_vm2, %v960_v14 }
  0x1c   : > { %929 = vmatprep.mubr.msk.bf16.mxu1 %vm306_vm2, %v961_v15 }
  0x22   : > { %914 = vmatmul.mubr.msk.bf16.gmra.mrb[8].mxu0 %vm306_vm2, %v962_v16 }
  0x23   : > { %930 = vmatmul.mubr.msk.bf16.gmra.mrb[8].mxu1 %vm306_vm2, %v963_v17  ;;  %917 = vmatprep.mubr.msk.bf16.mxu0 %vm306_vm2, %v964_v18 }
  0x24   : > { %933 = vmatprep.mubr.msk.bf16.mxu1 %vm306_vm2, %v965_v19 }
  0x2a   : > { %918 = vmatmul.mubr.msk.bf16.gmra.mrb[12].mxu0 %vm306_vm2, %v966_v20 }
  0x2b   : > { %934 = vmatmul.mubr.msk.bf16.gmra.mrb[12].mxu1 %vm306_vm2, %v967_v21 }
  0xe5   : > { %v907_v23 = vpop.f32.mrb[0].mxu0 }
  0xe6   : > { %v405_v24 = vadd.f32 %v907_v23, %v1056_v22  ;;  %v923_v25 = vpop.f32.mrb[0].mxu1  ;;  %v396_v26 = vpop.f32.mrb[1].mxu0 }
  0xe7   : > { %v469_v27 = vadd.f32 %v923_v25, %v1056_v22  ;;  %v397_v28 = vadd.f32 %v1056_v22, %v396_v26  ;;  %v460_v29 = vpop.f32.mrb[1].mxu1  ;;  %v908_v30 = vpop.f32.mrb[2].mxu0 }
  0xe8   : > { %v525_v31 = vmax.f32 %v405_v24, 0.0  ;;  %v461_v32 = vadd.f32 %v1056_v22, %v460_v29  ;;  %v408_v33 = vadd.f32 %v908_v30, %v1056_v22  ;;  %v924_v34 = vpop.f32.mrb[2].mxu1  ;;  %v399_v35 = vpop.f32.mrb[3].mxu0 }
  0xe9   : > { %v541_v36 = vmax.f32 %v469_v27, 0.0  ;;  %v523_v37 = vmax.f32 %v397_v28, 0.0  ;;  %v472_v38 = vadd.f32 %v924_v34, %v1056_v22  ;;  %v400_v39 = vadd.f32 %v1056_v22, %v399_v35  ;;  %v463_v40 = vpop.f32.mrb[3].mxu1 }
  0xea   : > { %v853_v41 = vpack.c.bf16 %v525_v31, %v525_v31  ;;  %v539_v42 = vmax.f32 %v461_v32, 0.0  ;;  %v526_v43 = vmax.f32 %v408_v33, 0.0  ;;  %v464_v44 = vadd.f32 %v1056_v22, %v463_v40 }
  0xeb   : > { %v869_v45 = vpack.c.bf16 %v541_v36, %v541_v36  ;;  %v851_v46 = vpack.c.bf16 %v523_v37, %v523_v37  ;;  %v542_v47 = vmax.f32 %v472_v38, 0.0  ;;  %v524_v48 = vmax.f32 %v400_v39, 0.0 }
  0xec   : > { %686 = vst.msk [vmem:[%s1068_s26 + $0x8] sm:$0xf] %vm683_vm3, %v853_v41  ;;  %v867_v49 = vpack.c.bf16 %v539_v42, %v539_v42  ;;  %v854_v50 = vpack.c.bf16 %v526_v43, %v526_v43  ;;  %v540_v51 = vmax.f32 %v464_v44, 0.0 }
  0xed   : > { %702 = vst.msk [vmem:[%s1068_s26 + $0x48] sm:$0xf] %vm683_vm3, %v869_v45  ;;  %684 = vst.msk [vmem:[%s1068_s26] sm:$0xf] %vm683_vm3, %v851_v46  ;;  %v870_v52 = vpack.c.bf16 %v542_v47, %v542_v47  ;;  %v852_v53 = vpack.c.bf16 %v524_v48, %v524_v48  ;;  %v911_v54 = vpop.f32.mrb[4].mxu0 }
  0xee   : > { %700 = vst.msk [vmem:[%s1068_s26 + $0x40] sm:$0xf] %vm683_vm3, %v867_v49  ;;  %687 = vst.msk [vmem:[%s1068_s26 + $0xc] sm:$0xf] %vm683_vm3, %v854_v50  ;;  %v868_v55 = vpack.c.bf16 %v540_v51, %v540_v51  ;;  %v421_v56 = vadd.f32 %v911_v54, %v1056_v22  ;;  %v927_v57 = vpop.f32.mrb[4].mxu1  ;;  %v412_v58 = vpop.f32.mrb[5].mxu0 }
  0xef   : > { %703 = vst.msk [vmem:[%s1068_s26 + $0x4c] sm:$0xf] %vm683_vm3, %v870_v52  ;;  %685 = vst.msk [vmem:[%s1068_s26 + $0x4] sm:$0xf] %vm683_vm3, %v852_v53  ;;  %v485_v59 = vadd.f32 %v927_v57, %v1056_v22  ;;  %v413_v60 = vadd.f32 %v1056_v22, %v412_v58  ;;  %v476_v61 = vpop.f32.mrb[5].mxu1  ;;  %v912_v62 = vpop.f32.mrb[6].mxu0 }
  0xf0   : > { %701 = vst.msk [vmem:[%s1068_s26 + $0x44] sm:$0xf] %vm683_vm3, %v868_v55  ;;  %v529_v63 = vmax.f32 %v421_v56, 0.0  ;;  %v477_v0 = vadd.f32 %v1056_v22, %v476_v61  ;;  %v424_v1 = vadd.f32 %v912_v62, %v1056_v22  ;;  %v928_v2 = vpop.f32.mrb[6].mxu1  ;;  %v415_v3 = vpop.f32.mrb[7].mxu0 }
  0xf1   : > { %v545_v4 = vmax.f32 %v485_v59, 0.0  ;;  %v527_v5 = vmax.f32 %v413_v60, 0.0  ;;  %v488_v6 = vadd.f32 %v928_v2, %v1056_v22  ;;  %v416_v7 = vadd.f32 %v1056_v22, %v415_v3  ;;  %v479_v8 = vpop.f32.mrb[7].mxu1 }
  0xf2   : > { %v857_v9 = vpack.c.bf16 %v529_v63, %v529_v63  ;;  %v543_v10 = vmax.f32 %v477_v0, 0.0  ;;  %v530_v11 = vmax.f32 %v424_v1, 0.0  ;;  %v480_v12 = vadd.f32 %v1056_v22, %v479_v8 }
  0xf3   : > { %v873_v13 = vpack.c.bf16 %v545_v4, %v545_v4  ;;  %v855_v14 = vpack.c.bf16 %v527_v5, %v527_v5  ;;  %v546_v15 = vmax.f32 %v488_v6, 0.0  ;;  %v528_v16 = vmax.f32 %v416_v7, 0.0 }
  0xf4   : > { %690 = vst.msk [vmem:[%s1068_s26 + $0x18] sm:$0xf] %vm683_vm3, %v857_v9  ;;  %v871_v17 = vpack.c.bf16 %v543_v10, %v543_v10  ;;  %v858_v18 = vpack.c.bf16 %v530_v11, %v530_v11  ;;  %v544_v19 = vmax.f32 %v480_v12, 0.0 }
  0xf5   : > { %706 = vst.msk [vmem:[%s1068_s26 + $0x58] sm:$0xf] %vm683_vm3, %v873_v13  ;;  %688 = vst.msk [vmem:[%s1068_s26 + $0x10] sm:$0xf] %vm683_vm3, %v855_v14  ;;  %v874_v20 = vpack.c.bf16 %v546_v15, %v546_v15  ;;  %v856_v21 = vpack.c.bf16 %v528_v16, %v528_v16  ;;  %v915_v23 = vpop.f32.mrb[8].mxu0 }
  0xf6   : > { %704 = vst.msk [vmem:[%s1068_s26 + $0x50] sm:$0xf] %vm683_vm3, %v871_v17  ;;  %691 = vst.msk [vmem:[%s1068_s26 + $0x1c] sm:$0xf] %vm683_vm3, %v858_v18  ;;  %v872_v24 = vpack.c.bf16 %v544_v19, %v544_v19  ;;  %v437_v25 = vadd.f32 %v915_v23, %v1056_v22  ;;  %v931_v26 = vpop.f32.mrb[8].mxu1  ;;  %v428_v27 = vpop.f32.mrb[9].mxu0 }
  0xf7   : > { %707 = vst.msk [vmem:[%s1068_s26 + $0x5c] sm:$0xf] %vm683_vm3, %v874_v20  ;;  %689 = vst.msk [vmem:[%s1068_s26 + $0x14] sm:$0xf] %vm683_vm3, %v856_v21  ;;  %v501_v28 = vadd.f32 %v931_v26, %v1056_v22  ;;  %v429_v29 = vadd.f32 %v1056_v22, %v428_v27  ;;  %v492_v30 = vpop.f32.mrb[9].mxu1  ;;  %v916_v31 = vpop.f32.mrb[10].mxu0 }
  0xf8   : > { %705 = vst.msk [vmem:[%s1068_s26 + $0x54] sm:$0xf] %vm683_vm3, %v872_v24  ;;  %v533_v32 = vmax.f32 %v437_v25, 0.0  ;;  %v493_v33 = vadd.f32 %v1056_v22, %v492_v30  ;;  %v440_v34 = vadd.f32 %v916_v31, %v1056_v22  ;;  %v932_v35 = vpop.f32.mrb[10].mxu1  ;;  %v431_v36 = vpop.f32.mrb[11].mxu0 }
  0xf9   : > { %v549_v37 = vmax.f32 %v501_v28, 0.0  ;;  %v531_v38 = vmax.f32 %v429_v29, 0.0  ;;  %v504_v39 = vadd.f32 %v932_v35, %v1056_v22  ;;  %v432_v40 = vadd.f32 %v1056_v22, %v431_v36  ;;  %v495_v41 = vpop.f32.mrb[11].mxu1 }
  0xfa   : > { %v861_v42 = vpack.c.bf16 %v533_v32, %v533_v32  ;;  %v547_v43 = vmax.f32 %v493_v33, 0.0  ;;  %v534_v44 = vmax.f32 %v440_v34, 0.0  ;;  %v496_v45 = vadd.f32 %v1056_v22, %v495_v41 }
  0xfb   : > { %v877_v46 = vpack.c.bf16 %v549_v37, %v549_v37  ;;  %v859_v47 = vpack.c.bf16 %v531_v38, %v531_v38  ;;  %v550_v48 = vmax.f32 %v504_v39, 0.0  ;;  %v532_v49 = vmax.f32 %v432_v40, 0.0 }
  0xfc   : > { %694 = vst.msk [vmem:[%s1068_s26 + $0x28] sm:$0xf] %vm683_vm3, %v861_v42  ;;  %v875_v50 = vpack.c.bf16 %v547_v43, %v547_v43  ;;  %v862_v51 = vpack.c.bf16 %v534_v44, %v534_v44  ;;  %v548_v52 = vmax.f32 %v496_v45, 0.0 }
  0xfd   : > { %710 = vst.msk [vmem:[%s1068_s26 + $0x68] sm:$0xf] %vm683_vm3, %v877_v46  ;;  %692 = vst.msk [vmem:[%s1068_s26 + $0x20] sm:$0xf] %vm683_vm3, %v859_v47  ;;  %v878_v53 = vpack.c.bf16 %v550_v48, %v550_v48  ;;  %v860_v54 = vpack.c.bf16 %v532_v49, %v532_v49  ;;  %v919_v55 = vpop.f32.mrb[12].mxu0 }
  0xfe   : > { %708 = vst.msk [vmem:[%s1068_s26 + $0x60] sm:$0xf] %vm683_vm3, %v875_v50  ;;  %695 = vst.msk [vmem:[%s1068_s26 + $0x2c] sm:$0xf] %vm683_vm3, %v862_v51  ;;  %v876_v56 = vpack.c.bf16 %v548_v52, %v548_v52  ;;  %v453_v57 = vadd.f32 %v919_v55, %v1056_v22  ;;  %v935_v58 = vpop.f32.mrb[12].mxu1  ;;  %v444_v59 = vpop.f32.mrb[13].mxu0 }
  0xff   : > { %711 = vst.msk [vmem:[%s1068_s26 + $0x6c] sm:$0xf] %vm683_vm3, %v878_v53  ;;  %693 = vst.msk [vmem:[%s1068_s26 + $0x24] sm:$0xf] %vm683_vm3, %v860_v54  ;;  %v517_v60 = vadd.f32 %v935_v58, %v1056_v22  ;;  %v445_v61 = vadd.f32 %v1056_v22, %v444_v59  ;;  %v508_v62 = vpop.f32.mrb[13].mxu1  ;;  %v920_v63 = vpop.f32.mrb[14].mxu0 }
 0x100   : > { %709 = vst.msk [vmem:[%s1068_s26 + $0x64] sm:$0xf] %vm683_vm3, %v876_v56  ;;  %v537_v0 = vmax.f32 %v453_v57, 0.0  ;;  %v509_v1 = vadd.f32 %v1056_v22, %v508_v62  ;;  %v456_v2 = vadd.f32 %v920_v63, %v1056_v22  ;;  %v936_v3 = vpop.f32.mrb[14].mxu1  ;;  %v447_v4 = vpop.f32.mrb[15].mxu0 }
 0x101   : > { %v553_v5 = vmax.f32 %v517_v60, 0.0  ;;  %v535_v6 = vmax.f32 %v445_v61, 0.0  ;;  %v520_v7 = vadd.f32 %v936_v3, %v1056_v22  ;;  %v448_v8 = vadd.f32 %v1056_v22, %v447_v4  ;;  %v511_v9 = vpop.f32.mrb[15].mxu1 }
 0x102   : > { %v865_v10 = vpack.c.bf16 %v537_v0, %v537_v0  ;;  %v551_v11 = vmax.f32 %v509_v1, 0.0  ;;  %v538_v12 = vmax.f32 %v456_v2, 0.0  ;;  %v512_v13 = vadd.f32 %v1056_v22, %v511_v9 }
 0x103   : > { %v881_v14 = vpack.c.bf16 %v553_v5, %v553_v5  ;;  %v863_v15 = vpack.c.bf16 %v535_v6, %v535_v6  ;;  %v554_v16 = vmax.f32 %v520_v7, 0.0  ;;  %v536_v17 = vmax.f32 %v448_v8, 0.0 }
 0x104   : > { %698 = vst.msk [vmem:[%s1068_s26 + $0x38] sm:$0xf] %vm683_vm3, %v865_v10  ;;  %v879_v18 = vpack.c.bf16 %v551_v11, %v551_v11  ;;  %v866_v19 = vpack.c.bf16 %v538_v12, %v538_v12  ;;  %v552_v20 = vmax.f32 %v512_v13, 0.0 }
 0x105   : > { %714 = vst.msk [vmem:[%s1068_s26 + $0x78] sm:$0xf] %vm683_vm3, %v881_v14  ;;  %696 = vst.msk [vmem:[%s1068_s26 + $0x30] sm:$0xf] %vm683_vm3, %v863_v15  ;;  %v882_v21 = vpack.c.bf16 %v554_v16, %v554_v16  ;;  %v864_v23 = vpack.c.bf16 %v536_v17, %v536_v17 }
 0x106   : > { %712 = vst.msk [vmem:[%s1068_s26 + $0x70] sm:$0xf] %vm683_vm3, %v879_v18  ;;  %699 = vst.msk [vmem:[%s1068_s26 + $0x3c] sm:$0xf] %vm683_vm3, %v866_v19  ;;  %v880_v22 = vpack.c.bf16 %v552_v20, %v552_v20 }
 0x107   : > { %715 = vst.msk [vmem:[%s1068_s26 + $0x7c] sm:$0xf] %vm683_vm3, %v882_v21  ;;  %697 = vst.msk [vmem:[%s1068_s26 + $0x34] sm:$0xf] %vm683_vm3, %v864_v23 }
 0x108   : > { %713 = vst.msk [vmem:[%s1068_s26 + $0x74] sm:$0xf] %vm683_vm3, %v880_v22 }
 0x109 PF: > { %s13_s12 = sadd.s32 1, %s974_s12  }
 0x10a   : > { %p10_p4 = scmp.ge.s32.totalorder %s13_s12, 6  }
 0x10c   :  { %12 = sbr.rel (!%p10_p4) target bundleno = 1 (0x1), region = 62 }

// kernel: combined_loss.12
= control target key start
LH: loop header
LB: loop body
LE: loop exit
PB: predicated region body
PF: predicated region fallthrough
CT: control target
= control target key end

     0   :  { %s4479_s12 = smov 0   ;;  %s5746_s0 = inlined_call_operand.vmem [shape: bf16[4,342,64], index: 0, kind: input, shape index: {}]   ;;  %s5747_s1 = inlined_call_operand.vmem [shape: bf16[576,64], index: 1, kind: input, shape index: {}]   ;;  %s5748_s2 = inlined_call_operand.vmem [shape: f32[1,64], index: 2, kind: input, shape index: {}]   ;;  %s5749_s3 = inlined_call_operand.vmem [shape: bf16[4,288,64], index: 3, kind: output, shape index: {}]  }
   0x1 LB: > { %s3729_s13 = sadd.s32 4294967295, %s4455_s12   ;;  %p3733_p0 = scmp.ge.s32.totalorder %s4455_s12, 1  ;;  %s4455_s12 = sphi %s4479_s12, %s13_s12  }
   0x2   : > { %p137_p1 = scmp.lt.s32.totalorder %s4455_s12, 5 }
   0x4   : > { %p138_p2 = pnand %p3733_p0, %p137_p1 }
   0x5   : > { %p161_p3 = scmp.lt.s32.totalorder (!%p138_p2), %s3729_s13, 3  ;;  %v4263_v0 = vld [vmem:[%s5747_s1] sm:$0xff] (!%p138_p2)   ;;  %v4457_v1 = vmov (!%p138_p2), 0   ;;  %v4266_v2 = vld [vmem:[%s5747_s1 + $0x8] sm:$0xff] (!%p138_p2)   ;;  %v4270_v4 = vld [vmem:[%s5747_s1 + $0x10] sm:$0xff] (!%p138_p2)   ;;  %vm817_vm1 = vcmask (!%p138_p2), 1046528  }
   0x6   : > { %141 = sbr.rel (%p138_p2) target bundleno = 548 (0x224), region = 32  ;;  %2926 = vmatprep.subr.bf16.mxu0 (!%p138_p2), %v4457_v1  ;;  %4101 = vmatprep.subr.bf16.mxu1 (!%p138_p2), %v4457_v1  ;;  %v4268_v3 = vld [vmem:[%s5747_s1 + $0x80] sm:$0xff] (!%p138_p2)   ;;  %v4272_v5 = vld [vmem:[%s5747_s1 + $0x88] sm:$0xff] (!%p138_p2)   ;;  %vm465_vm0 = vsmask.f32 (!%p138_p2), 7424  ;;  %vm1597_vm2 = vcmask (!%p138_p2), 1045504  }
   0x7   : > { %2927 = vmatpush1.bf16.msra.mxu0 (!%p138_p2), %v4263_v0  ;;  %4117 = vmatpush1.bf16.msra.mxu1 (!%p138_p2), %v4268_v3  ;;  %s4458_s28 = smov (!%p138_p2), 64   ;;  %vm2040_vm3 = vsmask.f32 (!%p138_p2), 5376  ;;  %vm316_vm4 = vcmask (!%p138_p2), 523264   ;;  %vm1260_vm5 = vsmask.f32 (!%p138_p2), 6400 }
   0x8   : > { %2928 = vmatprep.subr.bf16.mxu0 (!%p138_p2), %v4457_v1  ;;  %4102 = vmatprep.subr.bf16.mxu1 (!%p138_p2), %v4457_v1  ;;  %vm668_vm6 = vcmask (!%p138_p2), 1048064   ;;  %vm2413_vm7 = vcmask (!%p138_p2), 1044480   ;;  %vm3637_vm8 = vcmask (!%p138_p2), 519168  }
   0xb   : > { %2929 = vmatpush1.bf16.msra.mxu0 (!%p138_p2), %v4266_v2  ;;  %4118 = vmatpush1.bf16.msra.mxu1 (!%p138_p2), %v4272_v5 }
   0xc   : > { %2930 = vmatprep.subr.bf16.mxu0 (!%p138_p2), %v4457_v1  ;;  %4103 = vmatprep.subr.bf16.mxu1 (!%p138_p2), %v4457_v1 }
   0xd   : > { %s5751_s13 = smov (!%p161_p3, %s3729_s13), 3 }
   0xe   : > { %s4215_s18 = smul.u32 172, %s5751_s13 }
   0xf   : > { %2931 = vmatpush1.bf16.msra.mxu0 %v4270_v4  ;;  %s4216_s4 = smul.u32 144, %s5751_s13 }
  0x10   : > { %s4508_s25 = scalar_lea.vmem %s5746_s0, %s4215_s18  ;;  %2932 = vmatprep.subr.bf16.mxu0 %v4457_v1 }
  0x11   : > { %v4227_v6 = vld [vmem:[%s4508_s25 + $0x8] sm:$0xfe]   ;;  %v4228_v7 = vld [vmem:[%s4508_s25 + $0x10] sm:$0xff]   ;;  %v4518_v8 = vld [vmem:[%s4508_s25 + $0x18] sm:$0xff]   ;;  %s5610_s7 = scalar_lea.vmem %s5749_s3, %s4216_s4 }
  0x12   : > { %v1021_v9 = vrot.slane %v4227_v6, 1  ;;  %v1022_v10 = vrot.slane %v4228_v7, 1  ;;  %v1024_v11 = vrot.slane %v4518_v8, 1  ;;  %v4230_v12 = vld [vmem:[%s4508_s25] sm:$0xff]   ;;  %v4231_v14 = vld [vmem:[%s4508_s25 + $0x8] sm:$0xff]   ;;  %v4232_v18 = vld [vmem:[%s4508_s25 + $0x10] sm:$0xff]  }
  0x13   : > { %v467_v16 = vshrl.u32 %v4230_v12, 16  ;;  %v469_v17 = vshll.u32 %v4230_v12, 16  ;;  %v4233_v19 = vld [vmem:[%s4508_s25 + $0x38] sm:$0xff]   ;;  %v474_v20 = vshll.u32 %v4231_v14, 16  ;;  %v478_v21 = vshrl.u32 %v4231_v14, 16  ;;  %v4234_v24 = vld [vmem:[%s4508_s25 + $0x40] sm:$0xff]  }
  0x14   : > { %v1023_v13 = vsel %vm817_vm1, %v1021_v9, %v1022_v10  ;;  %v1025_v15 = vsel %vm817_vm1, %v1022_v10, %v1024_v11  ;;  %v482_v23 = vshll.u32 %v4232_v18, 16  ;;  %v2086_v25 = vshrl.u32 %v4233_v19, 16  ;;  %v4535_v32 = vld [vmem:[%s4508_s25 + $0x30] sm:$0xff]   ;;  %v4236_v36 = vld [vmem:[%s4508_s25 + $0x38] sm:$0xff]   ;;  %v4237_v37 = vld [vmem:[%s4508_s25 + $0x20] sm:$0xff]  }
  0x15   : > { %1058 = vrot.lane.b32.xlu0 %v1023_v13, %s4458_s28  ;;  %1060 = vrot.lane.b32.xlu1 %v1025_v15, %s4458_s28  ;;  %v471_v22 = vrot.slane %v469_v17, 1  ;;  %v476_v26 = vrot.slane %v474_v20, 1  ;;  %v2089_v27 = vshll.u32 %v4233_v19, 16  ;;  %v2095_v31 = vshrl.u32 %v4234_v24, 16  ;;  %v4238_v46 = vld [vmem:[%s4508_s25 + $0x18] sm:$0xff]   ;;  %v4239_v48 = vld [vmem:[%s4508_s25 + $0x48] sm:$0xff]  }
  0x16   : > { %v484_v29 = vrot.slane %v482_v23, 1  ;;  %v2088_v30 = vrot.slane %v2086_v25, 2  ;;  %v2098_v35 = vshll.u32 %v4234_v24, 16  ;;  %v1607_v40 = vrot.slane %v4535_v32, 2  ;;  %v4240_v54 = vld [vmem:[%s4508_s25 + $0x40] sm:$0xff]   ;;  %v4241_v61 = vld [vmem:[%s4508_s25 + $0x28] sm:$0xff]  }
  0x17   : > { %v472_v28 = vor.u32 %v471_v22, %v467_v16  ;;  %v480_v33 = vor.u32 %v478_v21, %v476_v26  ;;  %v2091_v34 = vrot.slane %v2089_v27, 3  ;;  %v2097_v39 = vrot.slane %v2095_v31, 2  ;;  %v4242_v57 = vld [vmem:[%s4508_s25 + $0x20] sm:$0xff]   ;;  %v4243_v3 = vld [vmem:[%s4508_s25 + $0x50] sm:$0xff]   ;;  %v4244_v7 = vld [vmem:[%s4508_s25 + $0x48] sm:$0xff]  }
  0x18   : > { %v2100_v43 = vrot.slane %v2098_v35, 3  ;;  %v1609_v44 = vrot.slane %v4236_v36, 2  ;;  %v1026_v45 = vrot.slane %v4237_v37, 1  ;;  %v486_v47 = vshrl.u32 %v4232_v18, 16  ;;  %v4246_v15 = vld [vmem:[%s4508_s25 + $0x28] sm:$0xff]   ;;  %v4247_v16 = vld [vmem:[%s4508_s25 + $0x58] sm:$0xff]  }
  0x19   : > { %v477_v38 = vsel %vm465_vm0, %v472_v28, %v476_v26  ;;  %v485_v41 = vsel %vm465_vm0, %v480_v33, %v484_v29  ;;  %v4543_v42 = vor.u32 %v2091_v34, %v2088_v30  ;;  %v490_v52 = vshll.u32 %v4238_v46, 16  ;;  %v4245_v18 = vld [vmem:[%s4508_s25 + $0x30] sm:$0xff]   ;;  %v4251_v37 = vld [vmem:[%s4508_s25 + $0x60] sm:$0xff]  }
  0x1a   : > { %614 = vrot.lane.b32.xlu0 %v477_v38, %s4458_s28  ;;  %616 = vrot.lane.b32.xlu1 %v485_v41, %s4458_s28  ;;  %v2101_v49 = vor.u32 %v2100_v43, %v2097_v39  ;;  %v1610_v50 = vsel %vm1597_vm2, %v1607_v40, %v1609_v44  ;;  %v488_v51 = vor.u32 %v486_v47, %v484_v29  ;;  %v2104_v53 = vshrl.u32 %v4239_v48, 16  ;;  %v4248_v27 = vld [vmem:[%s4508_s25 + $0x50] sm:$0xff]   ;;  %v4249_v41 = vld [vmem:[%s4508_s25 + $0x38] sm:$0xff]  }
  0x1b   : > { %v2107_v56 = vshll.u32 %v4239_v48, 16  ;;  %v492_v58 = vrot.slane %v490_v52, 1  ;;  %v1611_v60 = vrot.slane %v4240_v54, 2  ;;  %v1027_v62 = vsel %vm817_vm1, %v1024_v11, %v1026_v45  ;;  %v4250_v31 = vld [vmem:[%s4508_s25 + $0x30] sm:$0xff]  }
  0x1c   : > { %v2102_v55 = vsel %vm2040_vm3, %v4543_v42, %v2101_v49  ;;  %v2106_v59 = vrot.slane %v2104_v53, 2  ;;  %v494_v0 = vshrl.u32 %v4238_v46, 16  ;;  %v498_v2 = vshll.u32 %v4242_v57, 16 }
  0x1d   : > { %v2109_v63 = vrot.slane %v2107_v56, 3  ;;  %v493_v4 = vsel %vm465_vm0, %v488_v51, %v492_v58  ;;  %v2113_v6 = vshrl.u32 %v4243_v3, 16  ;;  %v1612_v8 = vsel %vm1597_vm2, %v1609_v44, %v1611_v60  ;;  %v4255_v51 = vld [vmem:[%s4508_s25 + $0x68] sm:$0xff]  }
  0x1e   : > { %2221 = vrot.lane.b32.xlu0 %v2102_v55, %s4458_s28  ;;  %1645 = vrot.lane.b32.xlu1 %v1610_v50, %s4458_s28  ;;  %v1028_v9 = vrot.slane %v4241_v61, 1  ;;  %v2116_v10 = vshll.u32 %v4243_v3, 16  ;;  %v496_v12 = vor.u32 %v494_v0, %v492_v58  ;;  %v500_v13 = vrot.slane %v498_v2, 1  ;;  %v4254_v50 = vld [vmem:[%s4508_s25 + $0x38] sm:$0xff]   ;;  %v4253_v61 = vld [vmem:[%s4508_s25 + $0x40] sm:$0xff]  }
  0x1f   : > { %v2110_v5 = vor.u32 %v2109_v63, %v2106_v59  ;;  %v2115_v14 = vrot.slane %v2113_v6, 2  ;;  %v502_v19 = vshrl.u32 %v4242_v57, 16  ;;  %v506_v21 = vshll.u32 %v4246_v15, 16 }
  0x20   : > { %v2118_v17 = vrot.slane %v2116_v10, 3  ;;  %v1029_v20 = vsel %vm817_vm1, %v1026_v45, %v1028_v9  ;;  %v2122_v22 = vshrl.u32 %v4247_v16, 16  ;;  %v501_v23 = vsel %vm465_vm0, %v496_v12, %v500_v13 }
  0x21   : > { %v2111_v11 = vsel %vm2040_vm3, %v2101_v49, %v2110_v5  ;;  %v1613_v25 = vrot.slane %v4244_v7, 2  ;;  %v2125_v26 = vshll.u32 %v4247_v16, 16  ;;  %v1030_v28 = vrot.slane %v4245_v18, 1  ;;  %v4252_v49 = vld [vmem:[%s4508_s25 + $0x58] sm:$0xff]  }
  0x22   : > { %1062 = vrot.lane.b32.xlu0 %v1027_v62, %s4458_s28  ;;  %618 = vrot.lane.b32.xlu1 %v493_v4, %s4458_s28  ;;  %v2119_v24 = vor.u32 %v2118_v17, %v2115_v14  ;;  %v508_v29 = vrot.slane %v506_v21, 1  ;;  %v2124_v30 = vrot.slane %v2122_v22, 2  ;;  %v504_v35 = vor.u32 %v502_v19, %v500_v13  ;;  %v4259_v14 = vld [vmem:[%s4508_s25 + $0x70] sm:$0xff]   ;;  %v4615_v17 = vld [vmem:[%s4508_s25 + $0x48] sm:$0xff]  }
  0x23   : > { %v1614_v34 = vsel %vm1597_vm2, %v1611_v60, %v1613_v25  ;;  %v2127_v36 = vrot.slane %v2125_v26, 3  ;;  %v1031_v38 = vsel %vm817_vm1, %v1028_v9, %v1030_v28  ;;  %v1615_v39 = vrot.slane %v4248_v27, 2  ;;  %v4605_v9 = vld [vmem:[%s4508_s25 + $0x40] sm:$0xff]   ;;  %v4626_v26 = vld [vmem:[%s4508_s25 + $0x68] sm:$0xff]   ;;  %v4264_v27 = vld [vmem:[%s4508_s25 + $0x78] sm:$0xff]  }
  0x24   : > { %v2120_v33 = vsel %vm2040_vm3, %v2110_v5, %v2119_v24  ;;  %v510_v43 = vshrl.u32 %v4246_v15, 16  ;;  %v514_v44 = vshll.u32 %v4250_v31, 16  ;;  %v509_v45 = vsel %vm465_vm0, %v504_v35, %v508_v29  ;;  %v4600_v5 = vld [vmem:[%s4508_s25 + $0x60] sm:$0xff]  }
  0x25   : > { %v2128_v46 = vor.u32 %v2127_v36, %v2124_v30  ;;  %v2131_v47 = vshrl.u32 %v4251_v37, 16  ;;  %v2134_v48 = vshll.u32 %v4251_v37, 16  ;;  %v1616_v52 = vsel %vm1597_vm2, %v1613_v25, %v1615_v39  ;;  %v4274_v25 = vld [vmem:[%s5747_s1 + $0x18] sm:$0xff]   ;;  %v4278_v37 = vld [vmem:[%s5747_s1 + $0x20] sm:$0xff]  }
  0x26   : > { %2223 = vrot.lane.b32.xlu0 %v2111_v11, %s4458_s28  ;;  %1647 = vrot.lane.b32.xlu1 %v1612_v8, %s4458_s28  ;;  %v1032_v53 = vrot.slane %v4249_v41, 1  ;;  %v512_v54 = vor.u32 %v510_v43, %v508_v29  ;;  %v516_v56 = vrot.slane %v514_v44, 1  ;;  %v1617_v60 = vrot.slane %v4252_v49, 2  ;;  %v4280_v49 = vld [vmem:[%s5747_s1 + $0x98] sm:$0xff]  }
  0x27   : > { %v2129_v55 = vsel %vm2040_vm3, %v2119_v24, %v2128_v46  ;;  %v2133_v57 = vrot.slane %v2131_v47, 2  ;;  %v2136_v58 = vrot.slane %v2134_v48, 3  ;;  %v522_v62 = vshll.u32 %v4254_v50, 16  ;;  %v4620_v24 = vld [vmem:[%s4508_s25 + $0x48] sm:$0xff]   ;;  %2933 = vmatpush1.bf16.msra.mxu0 %v4274_v25 }
  0x28   : > { %v1033_v59 = vsel %vm817_vm1, %v1030_v28, %v1032_v53  ;;  %v2140_v63 = vshrl.u32 %v4255_v51, 16  ;;  %v517_v0 = vsel %vm465_vm0, %v512_v54, %v516_v56  ;;  %v518_v3 = vshrl.u32 %v4250_v31, 16  ;;  %v4276_v31 = vld [vmem:[%s5747_s1 + $0x90] sm:$0xff]   ;;  %2934 = vmatprep.subr.bf16.mxu0 %v4457_v1  ;;  %v4282_v54 = vld [vmem:[%s5747_s1 + $0x28] sm:$0xff]  }
  0x29   : > { %v2137_v2 = vor.u32 %v2136_v58, %v2133_v57  ;;  %v2143_v4 = vshll.u32 %v4255_v51, 16  ;;  %v1034_v6 = vrot.slane %v4253_v61, 1  ;;  %v524_v7 = vrot.slane %v522_v62, 1  ;;  %4119 = vmatpush1.bf16.msra.mxu1 %v4276_v31  ;;  %v4659_v51 = vld [vmem:[%s4508_s25 + $0x50] sm:$0xff]   ;;  %v4284_v61 = vld [vmem:[%s5747_s1 + $0xa0] sm:$0xff]   ;;  %v4676_v62 = vld [vmem:[%s4508_s25 + $0x58] sm:$0xff]  }
  0x2a   : > { %1064 = vrot.lane.b32.xlu0 %v1029_v20, %s4458_s28  ;;  %620 = vrot.lane.b32.xlu1 %v501_v23, %s4458_s28  ;;  %v2142_v8 = vrot.slane %v2140_v63, 2  ;;  %v1618_v11 = vsel %vm1597_vm2, %v1615_v39, %v1617_v60  ;;  %v520_v12 = vor.u32 %v518_v3, %v516_v56  ;;  %v1619_v16 = vrot.slane %v4600_v5, 2  ;;  %v4725_v31 = vld [vmem:[%s4508_s25 + $0x80] sm:$0xff]  }
  0x2b   : > { %v2138_v10 = vsel %vm2040_vm3, %v2128_v46, %v2137_v2  ;;  %v2145_v13 = vrot.slane %v2143_v4, 3  ;;  %v1035_v15 = vsel %vm817_vm1, %v1032_v53, %v1034_v6  ;;  %v526_v18 = vshrl.u32 %v4254_v50, 16  ;;  %4104 = vmatprep.subr.bf16.mxu1 %v4457_v1  ;;  %2935 = vmatpush1.bf16.msra.mxu0 %v4278_v37  ;;  %v4656_v50 = vld [vmem:[%s4508_s25 + $0x70] sm:$0xff]   ;;  %v4271_v53 = vld [vmem:[%s4508_s25 + $0x80] sm:$0xff]  }
  0x2c   : > { %v530_v19 = vshll.u32 %v4605_v9, 16  ;;  %v525_v20 = vsel %vm465_vm0, %v520_v12, %v524_v7  ;;  %v2149_v22 = vshrl.u32 %v4259_v14, 16  ;;  %v2152_v23 = vshll.u32 %v4259_v14, 16  ;;  %2936 = vmatprep.subr.bf16.mxu0 %v4457_v1  ;;  %v4279_v12 = vld [vmem:[%s4508_s25 + $0x88] sm:$0xff]  }
  0x2d   : > { %v2146_v21 = vor.u32 %v2145_v13, %v2142_v8  ;;  %v1620_v28 = vsel %vm1597_vm2, %v1617_v60, %v1619_v16  ;;  %v1036_v29 = vrot.slane %v4615_v17, 1  ;;  %v534_v39 = vshrl.u32 %v4605_v9, 16  ;;  %4120 = vmatpush1.bf16.msra.mxu1 %v4280_v49  ;;  %v4690_v9 = vld [vmem:[%s4508_s25 + $0x78] sm:$0xff]  }
  0x2e   : > { %2225 = vrot.lane.b32.xlu0 %v2120_v33, %s4458_s28  ;;  %1649 = vrot.lane.b32.xlu1 %v1614_v34, %s4458_s28  ;;  %v532_v30 = vrot.slane %v530_v19, 1  ;;  %v528_v34 = vor.u32 %v526_v18, %v524_v7  ;;  %v2151_v35 = vrot.slane %v2149_v22, 2  ;;  %v2154_v36 = vrot.slane %v2152_v23, 3  ;;  %v4290_v13 = vld [vmem:[%s5747_s1 + $0x38] sm:$0xff]   ;;  %v4292_v22 = vld [vmem:[%s5747_s1 + $0xb0] sm:$0xff]  }
  0x2f   : > { %v2147_v33 = vsel %vm2040_vm3, %v2137_v2, %v2146_v21  ;;  %v1037_v41 = vsel %vm817_vm1, %v1034_v6, %v1036_v29  ;;  %v538_v43 = vshll.u32 %v4620_v24, 16  ;;  %v2158_v44 = vshrl.u32 %v4264_v27, 16  ;;  %2937 = vmatpush1.bf16.msra.mxu0 %v4282_v54  ;;  %4105 = vmatprep.subr.bf16.mxu1 %v4457_v1 }
  0x30   : > { %v2155_v46 = vor.u32 %v2154_v36, %v2151_v35  ;;  %v1621_v47 = vrot.slane %v4626_v26, 2  ;;  %v2161_v48 = vshll.u32 %v4264_v27, 16  ;;  %2938 = vmatprep.subr.bf16.mxu0 %v4457_v1  ;;  %v542_v63 = vshrl.u32 %v4620_v24, 16  ;;  %v4296_v35 = vld [vmem:[%s5747_s1 + $0xb8] sm:$0xff]  }
  0x31   : > { %v2160_v56 = vrot.slane %v2158_v44, 2  ;;  %4121 = vmatpush1.bf16.msra.mxu1 %v4284_v61  ;;  %v1623_v3 = vrot.slane %v4656_v50, 2  ;;  %v546_v4 = vshll.u32 %v4659_v51, 16  ;;  %v2167_v7 = vshrl.u32 %v4271_v53, 16  ;;  %v4300_v50 = vld [vmem:[%s5747_s1 + $0xc0] sm:$0xff]  }
  0x32   : > { %1066 = vrot.lane.b32.xlu0 %v1031_v38, %s4458_s28  ;;  %622 = vrot.lane.b32.xlu1 %v509_v45, %s4458_s28  ;;  %v4642_v38 = vld [vmem:[%s4508_s25 + $0x50] sm:$0xff]   ;;  %v533_v45 = vsel %vm465_vm0, %v528_v34, %v532_v30  ;;  %v2156_v57 = vsel %vm2040_vm3, %v2146_v21, %v2155_v46  ;;  %v1622_v58 = vsel %vm1597_vm2, %v1619_v16, %v1621_v47  ;;  %v2163_v60 = vrot.slane %v2161_v48, 3  ;;  %v4710_v21 = vld [vmem:[%s4508_s25 + $0x60] sm:$0xff]  }
  0x33   : > { %v2170_v8 = vshll.u32 %v4271_v53, 16  ;;  %4106 = vmatprep.subr.bf16.mxu1 %v4457_v1  ;;  %v1624_v14 = vsel %vm1597_vm2, %v1621_v47, %v1623_v3  ;;  %v548_v18 = vrot.slane %v546_v4, 1  ;;  %v2169_v19 = vrot.slane %v2167_v7, 2  ;;  %v4731_v34 = vld [vmem:[%s4508_s25 + $0x60] sm:$0xff]   ;;  %v4748_v47 = vld [vmem:[%s4508_s25 + $0x68] sm:$0xff]  }
  0x34   : > { %v2164_v6 = vor.u32 %v2163_v60, %v2160_v56  ;;  %v1625_v23 = vrot.slane %v4690_v9, 2  ;;  %v550_v24 = vshrl.u32 %v4659_v51, 16  ;;  %v2176_v26 = vshrl.u32 %v4279_v12, 16  ;;  %v4304_v60 = vld [vmem:[%s5747_s1 + $0xc8] sm:$0xff]   ;;  %v4307_v9 = vld [vmem:[%s5747_s1 + $0xd0] sm:$0xff]  }
  0x35   : > { %v1042_v36 = vrot.slane %v4710_v21, 1  ;;  %v1627_v49 = vrot.slane %v4725_v31, 2  ;;  %v562_v51 = vshll.u32 %v4731_v34, 16  ;;  %v1044_v61 = vrot.slane %v4748_v47, 1  ;;  %v4841_v31 = vld [vmem:[%s4508_s25 + $0x78] sm:$0xff]  }
  0x36   : > { %2227 = vrot.lane.b32.xlu0 %v2129_v55, %s4458_s28  ;;  %1651 = vrot.lane.b32.xlu1 %v1616_v52, %s4458_s28  ;;  %v1038_v52 = vrot.slane %v4642_v38, 1  ;;  %v540_v55 = vrot.slane %v538_v43, 1  ;;  %v2165_v17 = vsel %vm2040_vm3, %v2155_v46, %v2164_v6  ;;  %v2178_v38 = vrot.slane %v2176_v26, 2  ;;  %v4298_v46 = vld [vmem:[%s5747_s1 + $0x48] sm:$0xff]   ;;  %v4863_v47 = vld [vmem:[%s4508_s25 + $0x78] sm:$0xff]  }
  0x37   : > { %v1626_v43 = vsel %vm1597_vm2, %v1623_v3, %v1625_v23  ;;  %v552_v44 = vor.u32 %v550_v24, %v548_v18  ;;  %v566_v7 = vshrl.u32 %v4731_v34, 16  ;;  %v4311_v24 = vld [vmem:[%s4508_s25 + $0x8] sm:$0xff]  }
  0x38   : > { %v1039_v2 = vsel %vm817_vm1, %v1036_v29, %v1038_v52  ;;  %v544_v16 = vor.u32 %v542_v63, %v540_v55  ;;  %v564_v63 = vrot.slane %v562_v51, 1  ;;  %v4316_v51 = vld [vmem:[%s5747_s1 + $0xe0] sm:$0xff]  }
  0x3a   : > { %1068 = vrot.lane.b32.xlu0 %v1033_v59, %s4458_s28  ;;  %624 = vrot.lane.b32.xlu1 %v517_v0, %s4458_s28  ;;  %v536_v59 = vor.u32 %v534_v39, %v532_v30  ;;  %v4286_v0 = vld [vmem:[%s5747_s1 + $0x30] sm:$0xff]   ;;  %v2179_v30 = vshll.u32 %v4279_v12, 16 }
  0x3b   : > { %2939 = vmatpush1.bf16.msra.mxu0 %v4286_v0  ;;  %v4287_v39 = vld [vmem:[%s4508_s25 + $0x90] sm:$0xff]  }
  0x3c   : > { %v541_v5 = vsel %vm465_vm0, %v536_v59, %v540_v55  ;;  %2940 = vmatprep.subr.bf16.mxu0 %v4457_v1  ;;  %v2188_v56 = vshll.u32 %v4287_v39, 16  ;;  %v4302_v59 = vld [vmem:[%s5747_s1 + $0x50] sm:$0xff]  }
  0x3e   : > { %2229 = vrot.lane.b32.xlu0 %v2138_v10, %s4458_s28  ;;  %1653 = vrot.lane.b32.xlu1 %v1618_v11, %s4458_s28  ;;  %v4694_v10 = vld [vmem:[%s4508_s25 + $0x58] sm:$0xff]   ;;  %v4288_v11 = vld [vmem:[%s5747_s1 + $0xa8] sm:$0xff]   ;;  %v2190_v4 = vrot.slane %v2188_v56, 3  ;;  %v1048_v56 = vrot.slane %v4841_v31, 1 }
  0x3f   : > { %4122 = vmatpush1.bf16.msra.mxu1 %v4288_v11  ;;  %2941 = vmatpush1.bf16.msra.mxu0 %v4290_v13  ;;  %v554_v25 = vshll.u32 %v4694_v10, 16  ;;  %v558_v48 = vshrl.u32 %v4694_v10, 16  ;;  %v4308_v11 = vld [vmem:[%s5747_s1 + $0x60] sm:$0xff]  }
  0x40   : > { %4107 = vmatprep.subr.bf16.mxu1 %v4457_v1  ;;  %2942 = vmatprep.subr.bf16.mxu0 %v4457_v1 }
  0x41   : > { %v556_v37 = vrot.slane %v554_v25, 1  ;;  %v568_v25 = vor.u32 %v566_v7, %v564_v63 }
  0x42   : > { %1070 = vrot.lane.b32.xlu0 %v1035_v15, %s4458_s28  ;;  %626 = vrot.lane.b32.xlu1 %v525_v20, %s4458_s28  ;;  %v1040_v15 = vrot.slane %v4676_v62, 1  ;;  %v2172_v20 = vrot.slane %v2170_v8, 3  ;;  %v4306_v8 = vld [vmem:[%s5747_s1 + $0x58] sm:$0xff]  }
  0x43   : > { %4123 = vmatpush1.bf16.msra.mxu1 %v4292_v22  ;;  %v557_v54 = vsel %vm465_vm0, %v552_v44, %v556_v37  ;;  %v560_v62 = vor.u32 %v558_v48, %v556_v37  ;;  %v4817_v22 = vld [vmem:[%s4508_s25 + $0x70] sm:$0xff]  }
  0x44   : > { %v1041_v27 = vsel %vm817_vm1, %v1038_v52, %v1040_v15  ;;  %v2173_v29 = vor.u32 %v2172_v20, %v2169_v19  ;;  %4108 = vmatprep.subr.bf16.mxu1 %v4457_v1  ;;  %v2185_v52 = vshrl.u32 %v4287_v39, 16  ;;  %v1043_v53 = vsel %vm817_vm1, %v1040_v15, %v1042_v36  ;;  %v4309_v19 = vld [vmem:[%s5747_s1 + $0xd8] sm:$0xff]   ;;  %v4303_v20 = vld [vmem:[%s4508_s25 + $0xa0] ss:$0 sps:$4 sm:$0x77]  }
  0x45   : > { %v565_v15 = vsel %vm465_vm0, %v560_v62, %v564_v63 }
  0x46   : > { %2231 = vrot.lane.b32.xlu0 %v2147_v33, %s4458_s28  ;;  %1655 = vrot.lane.b32.xlu1 %v1620_v28, %s4458_s28  ;;  %v549_v28 = vsel %vm465_vm0, %v544_v16, %v548_v18  ;;  %v4294_v33 = vld [vmem:[%s5747_s1 + $0x40] sm:$0xff]   ;;  %v2187_v3 = vrot.slane %v2185_v52, 2  ;;  %v4807_v18 = vld [vmem:[%s4508_s25 + $0x90] sm:$0xff]  }
  0x47   : > { %2943 = vmatpush1.bf16.msra.mxu0 %v4294_v33  ;;  %4124 = vmatpush1.bf16.msra.mxu1 %v4296_v35  ;;  %v819_v35 = vrot.slane %v4311_v24, 1  ;;  %v1631_v37 = vrot.slane %v4807_v18, 2  ;;  %v590_v24 = vshrl.u32 %v4863_v47, 16 }
  0x48   : > { %2944 = vmatprep.subr.bf16.mxu0 %v4457_v1  ;;  %4109 = vmatprep.subr.bf16.mxu1 %v4457_v1  ;;  %v2191_v16 = vor.u32 %v2190_v4, %v2187_v3  ;;  %v582_v3 = vshrl.u32 %v4817_v22, 16  ;;  %v4886_v4 = vld [vmem:[%s4508_s25 + $0x38] sm:$0xff]  }
  0x4a   : > { %1072 = vrot.lane.b32.xlu0 %v1037_v41, %s4458_s28  ;;  %628 = vrot.lane.b32.xlu1 %v533_v45, %s4458_s28  ;;  %v2174_v41 = vsel %vm2040_vm3, %v2164_v6, %v2173_v29  ;;  %v2181_v45 = vrot.slane %v2179_v30, 3  ;;  %v4784_v6 = vld [vmem:[%s4508_s25 + $0x70] sm:$0xff]  }
  0x4b   : > { %2945 = vmatpush1.bf16.msra.mxu0 %v4298_v46  ;;  %4125 = vmatpush1.bf16.msra.mxu1 %v4300_v50  ;;  %v1046_v21 = vrot.slane %v4784_v6, 1  ;;  %v4305_v50 = vld [vmem:[%s4508_s25 + $0x98] ss:$0 sps:$4 sm:$0x33]  }
  0x4c   : > { %v2182_v55 = vor.u32 %v2181_v45, %v2178_v38  ;;  %2946 = vmatprep.subr.bf16.mxu0 %v4457_v1  ;;  %4110 = vmatprep.subr.bf16.mxu1 %v4457_v1 }
  0x4d   : > { %v1047_v45 = vsel %vm817_vm1, %v1044_v61, %v1046_v21 }
  0x4e   : > { %2233 = vrot.lane.b32.xlu0 %v2156_v57, %s4458_s28  ;;  %1657 = vrot.lane.b32.xlu1 %v1622_v58, %s4458_s28  ;;  %v4762_v57 = vld [vmem:[%s4508_s25 + $0x68] sm:$0xff]   ;;  %v4295_v58 = vld [vmem:[%s4508_s25 + $0x98] sm:$0xff]   ;;  %v2183_v0 = vsel %vm2040_vm3, %v2173_v29, %v2182_v55  ;;  %v2192_v30 = vsel %vm2040_vm3, %v2182_v55, %v2191_v16 }
  0x4f   : > { %2947 = vmatpush1.bf16.msra.mxu0 %v4302_v59  ;;  %4126 = vmatpush1.bf16.msra.mxu1 %v4304_v60  ;;  %v570_v10 = vshll.u32 %v4762_v57, 16  ;;  %v2194_v12 = vshrl.u32 %v4295_v58, 16  ;;  %v2197_v13 = vshll.u32 %v4295_v58, 16  ;;  %v4312_v29 = vld [vmem:[%s5747_s1 + $0x68] sm:$0xff]   ;;  %v574_v38 = vshrl.u32 %v4762_v57, 16  ;;  %v4318_v55 = vld [vmem:[%s5747_s1 + $0x70] sm:$0xff]  }
  0x50   : > { %2948 = vmatprep.subr.bf16.mxu0 %v4457_v1  ;;  %4111 = vmatprep.subr.bf16.mxu1 %v4457_v1  ;;  %v4319_v59 = vld [vmem:[%s4508_s25 + $0x8] sm:$0xff]  }
  0x51   : > { %v572_v26 = vrot.slane %v570_v10, 1  ;;  %318 = vst.msk [vmem:[#allocation2 + $0x28] sm:$0xff] %vm316_vm4, %v4319_v59  ;;  %v1049_v10 = vsel %vm817_vm1, %v1046_v21, %v1048_v56 }
  0x52   : > { %1074 = vrot.lane.b32.xlu0 %v1039_v2, %s4458_s28  ;;  %630 = vrot.lane.b32.xlu1 %v541_v5, %s4458_s28  ;;  %v1628_v2 = vsel %vm1597_vm2, %v1625_v23, %v1627_v49  ;;  %v4781_v5 = vld [vmem:[%s4508_s25 + $0x88] sm:$0xff]   ;;  %v4310_v23 = vld [vmem:[%s4508_s25] sm:$0xfe]  }
  0x53   : > { %2949 = vmatpush1.bf16.msra.mxu0 %v4306_v8  ;;  %4127 = vmatpush1.bf16.msra.mxu1 %v4307_v9  ;;  %v818_v34 = vrot.slane %v4310_v23, 1  ;;  %v573_v46 = vsel %vm465_vm0, %v568_v25, %v572_v26  ;;  %v576_v62 = vor.u32 %v574_v38, %v572_v26  ;;  %v586_v9 = vshll.u32 %v4863_v47, 16  ;;  %v4333_v47 = vld [vmem:[%s4508_s25 + $0x40] sm:$0xff]  }
  0x54   : > { %2950 = vmatprep.subr.bf16.mxu0 %v4457_v1  ;;  %4112 = vmatprep.subr.bf16.mxu1 %v4457_v1  ;;  %v1327_v59 = vshll.u32 %v4333_v47, 16 }
  0x55   : > { %v820_v39 = vsel %vm817_vm1, %v818_v34, %v819_v35  ;;  %v588_v23 = vrot.slane %v586_v9, 1  ;;  %v4968_v9 = vld [vmem:[%s5747_s1 + $0x100] sm:$0xff]  }
  0x56   : > { %2235 = vrot.lane.b32.xlu0 %v2165_v17, %s4458_s28  ;;  %1659 = vrot.lane.b32.xlu1 %v1624_v14, %s4458_s28  ;;  %v1045_v14 = vsel %vm817_vm1, %v1042_v36, %v1044_v61  ;;  %v1629_v17 = vrot.slane %v4781_v5, 2  ;;  %v4832_v36 = vld [vmem:[%s4508_s25 + $0x10] sm:$0xff]   ;;  %873 = vst.msk [vmem:[#allocation2 + $0x8] sm:$0xff] %vm316_vm4, %v820_v39  ;;  %v4889_v5 = vld [vmem:[%s4508_s25 + $0x40] sm:$0xff]  }
  0x57   : > { %2951 = vmatpush1.bf16.msra.mxu0 %v4308_v11  ;;  %4128 = vmatpush1.bf16.msra.mxu1 %v4309_v19  ;;  %v821_v44 = vrot.slane %v4832_v36, 1 }
  0x58   : > { %v1630_v33 = vsel %vm1597_vm2, %v1627_v49, %v1629_v17  ;;  %2952 = vmatprep.subr.bf16.mxu0 %v4457_v1  ;;  %4113 = vmatprep.subr.bf16.mxu1 %v4457_v1  ;;  %v578_v49 = vshll.u32 %v4817_v22, 16  ;;  %v1632_v61 = vsel %vm1597_vm2, %v1629_v17, %v1631_v37  ;;  %v4325_v17 = vld [vmem:[%s4508_s25 + $0x38] sm:$0xff]  }
  0x59   : > { %v822_v52 = vsel %vm817_vm1, %v819_v35, %v821_v44  ;;  %v4328_v35 = vld [vmem:[%s5747_s1 + $0xf0] sm:$0xff]  }
  0x5a   : > { %1076 = vrot.lane.b32.xlu0 %v1041_v27, %s4458_s28  ;;  %632 = vrot.lane.b32.xlu1 %v549_v28, %s4458_s28  ;;  %v2196_v27 = vrot.slane %v2194_v12, 2  ;;  %v2199_v28 = vrot.slane %v2197_v13, 3  ;;  %874 = vst.msk [vmem:[#allocation2 + $0x30] sm:$0xff] %vm316_vm4, %v822_v52  ;;  %v580_v63 = vrot.slane %v578_v49, 1  ;;  %v1846_v12 = vrot.slane %v4886_v4, 2 }
  0x5b   : > { %2953 = vmatpush1.bf16.msra.mxu0 %v4312_v29  ;;  %4129 = vmatpush1.bf16.msra.mxu1 %v4316_v51  ;;  %v1848_v13 = vrot.slane %v4889_v5, 2  ;;  %v4327_v29 = vld [vmem:[%s4508_s25 + $0x80] sm:$0xff]  }
  0x5c   : > { %v2200_v48 = vor.u32 %v2199_v28, %v2196_v27  ;;  %2954 = vmatprep.subr.bf16.mxu0 %v4457_v1  ;;  %4114 = vmatprep.subr.bf16.mxu1 %v4457_v1  ;;  %v581_v11 = vsel %vm465_vm0, %v576_v62, %v580_v63  ;;  %v584_v22 = vor.u32 %v582_v3, %v580_v63  ;;  %v1315_v27 = vshrl.u32 %v4325_v17, 16  ;;  %v4335_v63 = vld [vmem:[%s4508_s25 + $0x88] sm:$0xff]   ;;  %v4336_v3 = vld [vmem:[%s4508_s25 + $0x20] sm:$0xff]  }
  0x5d   : > { %v1849_v6 = vsel %vm1597_vm2, %v1846_v12, %v1848_v13  ;;  %v1318_v28 = vshll.u32 %v4325_v17, 16  ;;  %v594_v31 = vshll.u32 %v4327_v29, 16  ;;  %v4340_v17 = vld [vmem:[%s4508_s25 + $0x48] sm:$0xff]  }
  0x5e   : > { %2237 = vrot.lane.b32.xlu0 %v2174_v41, %s4458_s28  ;;  %1661 = vrot.lane.b32.xlu1 %v1626_v43, %s4458_s28  ;;  %v2203_v41 = vshrl.u32 %v4303_v20, 16  ;;  %v2206_v43 = vshll.u32 %v4303_v20, 16  ;;  %v2201_v60 = vsel %vm2040_vm3, %v2191_v16, %v2200_v48  ;;  %v4914_v20 = vld [vmem:[%s4508_s25 + $0x88] sm:$0xff]   ;;  %1897 = vst.msk [vmem:[#allocation2 + $0xe0] sm:$0xff] %vm316_vm4, %v1849_v6 }
  0x5f   : > { %2955 = vmatpush1.bf16.msra.mxu0 %v4318_v55  ;;  %v1320_v34 = vrot.slane %v1318_v28, 2  ;;  %v1052_v39 = vrot.slane %v4914_v20, 1  ;;  %v596_v49 = vrot.slane %v594_v31, 1  ;;  %v4344_v31 = vld [vmem:[%s4508_s25 + $0x20] sm:$0xff]  }
  0x60   : > { %v2205_v57 = vrot.slane %v2203_v41, 2  ;;  %v2208_v58 = vrot.slane %v2206_v43, 3  ;;  %2956 = vmatprep.subr.bf16.mxu0 %v4457_v1  ;;  %v589_v41 = vsel %vm465_vm0, %v584_v22, %v588_v23  ;;  %v4341_v22 = vld [vmem:[%s4508_s25 + $0x98] ss:$0 sps:$4 sm:$0x11]   ;;  %321 = vst.msk [vmem:[#allocation2 + $0xa0] sm:$0xff] %vm316_vm4, %v4344_v31 }
  0x61   : > { %v4435_v31 = vld [vmem:[%s5747_s1 + $0x90] sm:$0xff]  }
  0x62   : > { %1078 = vrot.lane.b32.xlu0 %v1043_v53, %s4458_s28  ;;  %634 = vrot.lane.b32.xlu1 %v557_v54, %s4458_s28  ;;  %v4860_v53 = vld [vmem:[%s4508_s25 + $0x80] sm:$0xff]   ;;  %v2209_v7 = vor.u32 %v2208_v58, %v2205_v57  ;;  %v1324_v58 = vshrl.u32 %v4333_v47, 16 }
  0x63   : > { %v4317_v54 = vld [vmem:[%s4508_s25] sm:$0xff]   ;;  %v1050_v8 = vrot.slane %v4860_v53, 1  ;;  %v4332_v53 = vld [vmem:[%s4508_s25 + $0x48] sm:$0xff]  }
  0x64   : > { %317 = vst.msk [vmem:[#allocation2] sm:$0xff] %vm316_vm4, %v4317_v54  ;;  %v2210_v21 = vsel %vm2040_vm3, %v2200_v48, %v2209_v7  ;;  %v4330_v48 = vld [vmem:[%s4508_s25 + $0x10] sm:$0xff]   ;;  %v598_v54 = vshrl.u32 %v4327_v29, 16  ;;  %v1056_v29 = vrot.slane %v4341_v22, 1 }
  0x65   : > { %v1051_v38 = vsel %vm817_vm1, %v1048_v56, %v1050_v8  ;;  %319 = vst.msk [vmem:[#allocation2 + $0x50] sm:$0xff] %vm316_vm4, %v4330_v48  ;;  %v1053_v55 = vsel %vm817_vm1, %v1050_v8, %v1052_v39  ;;  %v4334_v56 = vld [vmem:[%s4508_s25 + $0x90] sm:$0xff]   ;;  %v602_v8 = vshll.u32 %v4335_v63, 16 }
  0x66   : > { %2239 = vrot.lane.b32.xlu0 %v2183_v0, %s4458_s28  ;;  %1663 = vrot.lane.b32.xlu1 %v1628_v2, %s4458_s28  ;;  %v4320_v0 = vld [vmem:[%s5747_s1 + $0xe8] sm:$0xff]   ;;  %v1633_v2 = vrot.slane %v4305_v50, 2  ;;  %v4331_v50 = vld [vmem:[%s5747_s1 + $0xf8] sm:$0xff]   ;;  %v1054_v62 = vrot.slane %v4334_v56, 1  ;;  %v600_v7 = vor.u32 %v598_v54, %v596_v49 }
  0x67   : > { %4130 = vmatpush1.bf16.msra.mxu1 %v4320_v0  ;;  %v1326_v0 = vrot.slane %v1324_v58, 1 }
  0x68   : > { %4115 = vmatprep.subr.bf16.mxu1 %v4457_v1  ;;  %v1634_v16 = vsel %vm1597_vm2, %v1631_v37, %v1633_v2  ;;  %v4329_v37 = vld [vmem:[%s4508_s25 + $0x18] sm:$0xff]   ;;  %v1329_v2 = vrot.slane %v1327_v59, 2  ;;  %v1055_v5 = vsel %vm817_vm1, %v1052_v39, %v1054_v62  ;;  %v1057_v39 = vsel %vm817_vm1, %v1054_v62, %v1056_v29 }
  0x6a   : > { %1080 = vrot.lane.b32.xlu0 %v1045_v14, %s4458_s28  ;;  %636 = vrot.lane.b32.xlu1 %v565_v15, %s4458_s28  ;;  %v4323_v14 = vld [vmem:[%s5747_s1 + $0x78] sm:$0xff]   ;;  %v4324_v15 = vld [vmem:[%s4508_s25 + $0x30] sm:$0xff]  }
  0x6b   : > { %2957 = vmatpush1.bf16.msra.mxu0 %v4323_v14  ;;  %v1306_v18 = vshrl.u32 %v4324_v15, 16  ;;  %v1309_v19 = vshll.u32 %v4324_v15, 16  ;;  %4131 = vmatpush1.bf16.msra.mxu1 %v4328_v35  ;;  %v604_v14 = vrot.slane %v602_v8, 1  ;;  %v4339_v15 = vld [vmem:[%s4508_s25 + $0x50] sm:$0xff]  }
  0x6c   : > { %3103 = vmatprep.subr.bf16.mxu0 %v4457_v1  ;;  %4116 = vmatprep.subr.bf16.mxu1 %v4457_v1 }
  0x6d   : > { %v1308_v25 = vrot.slane %v1306_v18, 1  ;;  %v1311_v26 = vrot.slane %v1309_v19, 2  ;;  %v606_v18 = vshrl.u32 %v4335_v63, 16  ;;  %v605_v20 = vsel %vm465_vm0, %v600_v7, %v604_v14 }
  0x6e   : > { %2241 = vrot.lane.b32.xlu0 %v2192_v30, %s4458_s28  ;;  %1665 = vrot.lane.b32.xlu1 %v1630_v33, %s4458_s28  ;;  %v1317_v33 = vrot.slane %v1315_v27, 1  ;;  %v4342_v27 = vld [vmem:[%s4508_s25 + $0x90] ss:$0 sps:$4 sm:$0x11]  }
  0x6f   : > { %v4923_v30 = vor.u32 %v1311_v26, %v1308_v25  ;;  %4132 = vmatpush1.bf16.msra.mxu1 %v4331_v50  ;;  %v1333_v25 = vshrl.u32 %v4340_v17, 16  ;;  %v1336_v26 = vshll.u32 %v4340_v17, 16  ;;  %v608_v35 = vor.u32 %v606_v18, %v604_v14  ;;  %v4996_v50 = vld [vmem:[%s4508_s25 + $0x58] sm:$0xff]   ;;  %v4349_v14 = vld [vmem:[%s4508_s25 + $0x8] sm:$0xfc]  }
  0x70   : > { %v1321_v43 = vor.u32 %v1320_v34, %v1317_v33  ;;  %4057 = vmatprep.subr.bf16.mxu1 %v4968_v9  ;;  %v1854_v54 = vrot.slane %v4996_v50, 2 }
  0x71   : > { %v1335_v33 = vrot.slane %v1333_v25, 1  ;;  %v1338_v34 = vrot.slane %v1336_v26, 2  ;;  %v1598_v26 = vrot.slane %v4349_v14, 2 }
  0x72   : > { %1082 = vrot.lane.b32.xlu0 %v1047_v45, %s4458_s28  ;;  %638 = vrot.lane.b32.xlu1 %v573_v46, %s4458_s28  ;;  %v592_v45 = vor.u32 %v590_v24, %v588_v23  ;;  %v823_v46 = vrot.slane %v4329_v37, 1  ;;  %v1322_v51 = vsel %vm1260_vm5, %v4923_v30, %v1321_v43  ;;  %v610_v37 = vshll.u32 %v4342_v27, 16 }
  0x73   : > { %1454 = vst.msk [vmem:[#allocation2 + $0xd8] sm:$0xff] %vm316_vm4, %v1322_v51  ;;  %v4346_v51 = vld [vmem:[%s4508_s25 + $0x50] sm:$0xff]  }
  0x74   : > { %v824_v52 = vsel %vm817_vm1, %v821_v44, %v823_v46  ;;  %v597_v36 = vsel %vm465_vm0, %v592_v45, %v596_v49  ;;  %v1850_v44 = vrot.slane %v4332_v53, 2  ;;  %v612_v48 = vrot.slane %v610_v37, 1 }
  0x75   : > { %875 = vst.msk [vmem:[#allocation2 + $0x58] sm:$0xff] %vm316_vm4, %v824_v52  ;;  %v1345_v56 = vshll.u32 %v4346_v51, 16 }
  0x76   : > { %2243 = vrot.lane.b32.xlu0 %v2201_v60, %s4458_s28  ;;  %1667 = vrot.lane.b32.xlu1 %v1632_v61, %s4458_s28  ;;  %v1851_v61 = vsel %vm1597_vm2, %v1848_v13, %v1850_v44  ;;  %v4338_v13 = vld [vmem:[%s4508_s25 + $0x18] sm:$0xff]   ;;  %v613_v53 = vsel %vm465_vm0, %v608_v35, %v612_v48 }
  0x77   : > { %1898 = vst.msk [vmem:[#allocation2 + $0x108] sm:$0xff] %vm316_vm4, %v1851_v61  ;;  %320 = vst.msk [vmem:[#allocation2 + $0x78] sm:$0xff] %vm316_vm4, %v4338_v13  ;;  %v4347_v61 = vld [vmem:[%s4508_s25 + $0x10] sm:$0xfc]  }
  0x78   : > { %v2042_v7 = vshrl.u32 %v4347_v61, 16  ;;  %v2045_v8 = vshll.u32 %v4347_v61, 16 }
  0x7a   : > { %1084 = vrot.lane.b32.xlu0 %v1049_v10, %s4458_s28  ;;  %640 = vrot.lane.b32.xlu1 %v581_v11, %s4458_s28  ;;  %v1330_v10 = vor.u32 %v1329_v2, %v1326_v0  ;;  %v825_v11 = vrot.slane %v4336_v3, 1  ;;  %v5018_v0 = vld [vmem:[%s4508_s25 + $0x30] sm:$0xff]   ;;  %v4433_v2 = vld [vmem:[%s5747_s1 + $0x80] sm:$0xff]  }
  0x7c   : > { %v826_v6 = vsel %vm817_vm1, %v823_v46, %v825_v11  ;;  %v1339_v46 = vor.u32 %v1338_v34, %v1335_v33  ;;  %v5054_v34 = vld [vmem:[%s4508_s25 + $0x60] sm:$0xff]  }
  0x7d   : > { %876 = vst.msk [vmem:[#allocation2 + $0x80] sm:$0xff] %vm316_vm4, %v826_v6 }
  0x7e   : > { %2245 = vrot.lane.b32.xlu0 %v2210_v21, %s4458_s28  ;;  %1669 = vrot.lane.b32.xlu1 %v1634_v16, %s4458_s28  ;;  %v1331_v16 = vsel %vm1260_vm5, %v1321_v43, %v1330_v10  ;;  %v1852_v21 = vrot.slane %v4339_v15, 2  ;;  %v1340_v52 = vsel %vm1260_vm5, %v1330_v10, %v1339_v46 }
  0x7f   : > { %1455 = vst.msk [vmem:[#allocation2 + $0x100] sm:$0xff] %vm316_vm4, %v1331_v16  ;;  %1456 = vst.msk [vmem:[#allocation2 + $0x128] sm:$0xff] %vm316_vm4, %v1340_v52  ;;  %v829_v16 = vrot.slane %v5018_v0, 1  ;;  %v5075_v52 = vld [vmem:[%s4508_s25 + $0x18] sm:$0xff]  }
  0x80   : > { %v1853_v28 = vsel %vm1597_vm2, %v1850_v44, %v1852_v21  ;;  %v1342_v44 = vshrl.u32 %v4346_v51, 16  ;;  %v1601_v61 = vrot.slane %v5075_v52, 2 }
  0x81   : > { %1899 = vst.msk [vmem:[#allocation2 + $0x130] sm:$0xff] %vm316_vm4, %v1853_v28  ;;  %v4352_v28 = vld [vmem:[%s4508_s25 + $0x28] sm:$0xff]  }
  0x82   : > { %1086 = vrot.lane.b32.xlu0 %v1051_v38, %s4458_s28  ;;  %642 = vrot.lane.b32.xlu1 %v589_v41, %s4458_s28  ;;  %v4989_v38 = vld [vmem:[%s4508_s25 + $0x28] sm:$0xff]   ;;  %v1344_v3 = vrot.slane %v1342_v44, 1  ;;  %322 = vst.msk [vmem:[#allocation2 + $0xc8] sm:$0xff] %vm316_vm4, %v4352_v28 }
  0x83   : > { %v827_v49 = vrot.slane %v4989_v38, 1 }
  0x85   : > { %v828_v47 = vsel %vm817_vm1, %v825_v11, %v827_v49  ;;  %v830_v27 = vsel %vm817_vm1, %v827_v49, %v829_v16 }
  0x86   : > { %1088 = vrot.lane.b32.xlu0 %v1053_v55, %s4458_s28  ;;  %644 = vrot.lane.b32.xlu1 %v597_v36, %s4458_s28  ;;  %v4348_v55 = vld [vmem:[%s4508_s25 + $0x18] sm:$0xff]   ;;  %877 = vst.msk [vmem:[#allocation2 + $0xa8] sm:$0xff] %vm316_vm4, %v828_v47  ;;  %878 = vst.msk [vmem:[#allocation2 + $0xd0] sm:$0xff] %vm316_vm4, %v830_v27 }
  0x87   : > { %v1059_v57 = vpop.permute.xlu0 %1058  ;;  %v1061_v60 = vpop.permute.xlu1 %1060  ;;  %v2050_v62 = vshrl.u32 %v4348_v55, 16  ;;  %v2053_v63 = vshll.u32 %v4348_v55, 16 }
  0x88   : > { %1112 = vst.msk [vmem:[#allocation2 + $0x8] sm:$0xff] %vm668_vm6, %v1059_v57  ;;  %1113 = vst.msk [vmem:[#allocation2 + $0x30] sm:$0xff] %vm668_vm6, %v1061_v60  ;;  %v5011_v57 = vld [vmem:[%s4508_s25 + $0x10] sm:$0xff]   ;;  %v1855_v60 = vsel %vm1597_vm2, %v1852_v21, %v1854_v54  ;;  %v2047_v21 = vrot.slane %v2045_v8, 3  ;;  %v4359_v8 = vld [vmem:[%s5747_s1 + $0x108] sm:$0xff]  }
  0x89   : > { %1900 = vst.msk [vmem:[#allocation2 + $0x158] sm:$0xff] %vm316_vm4, %v1855_v60  ;;  %v2052_v10 = vrot.slane %v2050_v62, 2  ;;  %v2055_v11 = vrot.slane %v2053_v63, 3  ;;  %v1599_v15 = vrot.slane %v5011_v57, 2 }
  0x8a   : > { %1090 = vrot.lane.b32.xlu0 %v1055_v5, %s4458_s28  ;;  %646 = vrot.lane.b32.xlu1 %v605_v20, %s4458_s28  ;;  %v1347_v5 = vrot.slane %v1345_v56, 2  ;;  %v2044_v20 = vrot.slane %v2042_v7, 2 }
  0x8b   : > { %v5032_v22 = vor.u32 %v2055_v11, %v2052_v10  ;;  %v1600_v33 = vsel %vm1597_vm2, %v1598_v26, %v1599_v15 }
  0x8c   : > { %v615_v19 = vpop.permute.xlu0 %614  ;;  %v617_v23 = vpop.permute.xlu1 %616  ;;  %v5027_v13 = vor.u32 %v1347_v5, %v1344_v3  ;;  %v2048_v29 = vor.u32 %v2047_v21, %v2044_v20  ;;  %v1602_v5 = vsel %vm1597_vm2, %v1599_v15, %v1601_v61  ;;  %v4361_v15 = vld [vmem:[%s4508_s25 + $0x60] sm:$0xff]  }
  0x8d   : > { %669 = vst.msk [vmem:[#allocation2] sm:$0xff] %vm668_vm6, %v615_v19  ;;  %670 = vst.msk [vmem:[#allocation2 + $0x28] sm:$0xff] %vm668_vm6, %v617_v23 }
  0x8e   : > { %1092 = vrot.lane.b32.xlu0 %v1057_v39, %s4458_s28  ;;  %648 = vrot.lane.b32.xlu1 %v613_v53, %s4458_s28  ;;  %v1349_v25 = vsel %vm1260_vm5, %v1339_v46, %v5027_v13  ;;  %v2057_v39 = vsel %vm2040_vm3, %v2048_v29, %v5032_v22  ;;  %v5078_v53 = vld [vmem:[%s4508_s25 + $0x38] sm:$0xff]  }
  0x8f   : > { %v2488_v24 = vld [vmem:[#allocation2 + $0x8] sm:$0xff]  ;;  %v2493_v45 = vld [vmem:[#allocation2 + $0x30] sm:$0xff]  ;;  %1457 = vst.msk [vmem:[#allocation2 + $0x150] sm:$0xff] %vm316_vm4, %v1349_v25  ;;  %v831_v62 = vrot.slane %v5078_v53, 1 }
  0x90   : > { %2958 = vmatprep.mubr.bf16.mxu0 %v2488_v24  ;;  %v2222_v41 = vpop.permute.xlu0 %2221  ;;  %v1646_v43 = vpop.permute.xlu1 %1645  ;;  %v4434_v24 = vld [vmem:[%s5747_s1 + $0x88] sm:$0xff]  }
  0x91   : > { %2270 = vst.msk [vmem:[#allocation2 + $0xe0] sm:$0xff] %vm668_vm6, %v2222_v41  ;;  %1694 = vst.msk [vmem:[#allocation2 + $0xd8] sm:$0xff] %vm668_vm6, %v1646_v43  ;;  %v1856_v41 = vrot.slane %v5054_v34, 2  ;;  %v4355_v43 = vld [vmem:[%s4508_s25 + $0x20] sm:$0xff]   ;;  %v832_v7 = vsel %vm817_vm1, %v829_v16, %v831_v62  ;;  %v4438_v34 = vld [vmem:[%s5747_s1 + $0xa8] sm:$0xff]  }
  0x92   : > { %1635 = vrot.lane.b32.xlu1 %v1600_v33, %s4458_s28  ;;  %2211 = vrot.lane.b32.xlu0 %v2057_v39, %s4458_s28  ;;  %v2059_v49 = vshrl.u32 %v4355_v43, 16  ;;  %v2062_v51 = vshll.u32 %v4355_v43, 16  ;;  %879 = vst.msk [vmem:[#allocation2 + $0xf8] sm:$0xff] %vm316_vm4, %v832_v7 }
  0x93   : > { %v1857_v48 = vsel %vm1597_vm2, %v1854_v54, %v1856_v41  ;;  %v4436_v54 = vld [vmem:[%s5747_s1 + $0x98] sm:$0xff]  }
  0x94   : > { %v2487_v36 = vld [vmem:[#allocation2] sm:$0xff]  ;;  %v1063_v58 = vpop.permute.xlu0 %1062  ;;  %v619_v59 = vpop.permute.xlu1 %618  ;;  %v2492_v23 = vld [vmem:[#allocation2 + $0x28] sm:$0xff]  ;;  %1901 = vst.msk [vmem:[#allocation2 + $0x180] sm:$0xff] %vm316_vm4, %v1857_v48  ;;  %v2064_v60 = vrot.slane %v2062_v51, 3 }
  0x95   : > { %2959 = vmatmul.mubr.bf16.vlgmr.msra.gmra.mrb[0].mxu0 %v2487_v36  ;;  %1114 = vst.msk [vmem:[#allocation2 + $0x58] sm:$0xff] %vm668_vm6, %v1063_v58  ;;  %671 = vst.msk [vmem:[#allocation2 + $0x50] sm:$0xff] %vm668_vm6, %v619_v59  ;;  %v2061_v59 = vrot.slane %v2059_v49, 2 }
  0x96   : > { %3104 = vmatpush1.bf16.msra.mxu0 %v4433_v2  ;;  %2966 = vmatprep.mubr.bf16.mxu0 %v2493_v45  ;;  %v4358_v2 = vld [vmem:[%s4508_s25 + $0x30] sm:$0xff]  }
  0x97   : > { %3105 = vmatprep.subr.bf16.mxu0 %v4457_v1  ;;  %v5092_v3 = vor.u32 %v2064_v60, %v2061_v59  ;;  %1637 = vrot.lane.b32.xlu1 %v1602_v5, %s4458_s28  ;;  %323 = vst.msk [vmem:[#allocation2 + $0xf0] sm:$0xff] %vm316_vm4, %v4358_v2  ;;  %v4369_v59 = vld [vmem:[%s4508_s25 + $0x28] sm:$0xff]   ;;  %v4439_v60 = vld [vmem:[%s5747_s1 + $0xb0] sm:$0xff]  }
  0x98   : > { %v2224_v6 = vpop.permute.xlu0 %2223  ;;  %v1648_v17 = vpop.permute.xlu1 %1647  ;;  %v2515_v18 = vld [vmem:[#allocation2 + $0xe0] sm:$0xff]  ;;  %v2514_v19 = vld [vmem:[#allocation2 + $0xd8] sm:$0xff] }
  0x99   : > { %2271 = vst.msk [vmem:[#allocation2 + $0x108] sm:$0xff] %vm668_vm6, %v2224_v6  ;;  %1695 = vst.msk [vmem:[#allocation2 + $0x100] sm:$0xff] %vm668_vm6, %v1648_v17  ;;  %3175 = vmatprep.mubr.bf16.mxu1 %v2515_v18  ;;  %v2066_v0 = vsel %vm2040_vm3, %v5032_v22, %v5092_v3  ;;  %v4362_v6 = vld [vmem:[%s4508_s25 + $0x28] sm:$0xff]   ;;  %v4437_v17 = vld [vmem:[%s5747_s1 + $0xa0] sm:$0xff]   ;;  %v1363_v22 = vshll.u32 %v4361_v15, 16 }
  0x9a   : > { %3106 = vmatpush1.bf16.msra.mxu0 %v4434_v24  ;;  %3176 = vmatmul.mubr.bf16.vlgmr.msra.gmra.mrb[0].mxu1 %v2514_v19  ;;  %v5127_v24 = vld [vmem:[%s4508_s25 + $0x20] sm:$0xff]   ;;  %v2068_v27 = vshrl.u32 %v4362_v6, 16  ;;  %v2071_v28 = vshll.u32 %v4362_v6, 16 }
  0x9b   : > { %3107 = vmatprep.subr.bf16.mxu0 %v4457_v1  ;;  %4058 = vmatpush3.bf16.msra.mxu1 %v4968_v9  ;;  %v4354_v9 = vld [vmem:[%s4508_s25 + $0x58] sm:$0xff]   ;;  %v1365_v33 = vrot.slane %v1363_v22, 2 }
  0x9c   : > { %v1065_v35 = vpop.permute.xlu0 %1064  ;;  %v621_v37 = vpop.permute.xlu1 %620  ;;  %v2498_v38 = vld [vmem:[#allocation2 + $0x58] sm:$0xff]  ;;  %v1351_v45 = vshrl.u32 %v4354_v9, 16  ;;  %v1354_v46 = vshll.u32 %v4354_v9, 16  ;;  %v2497_v50 = vld [vmem:[#allocation2 + $0x50] sm:$0xff]  ;;  %4059 = vmatprep.subr.bf16.mxu1 %v4359_v8  ;;  %2213 = vrot.lane.b32.xlu0 %v2066_v0, %s4458_s28  ;;  %v2073_v39 = vrot.slane %v2071_v28, 3 }
  0x9d   : > { %2967 = vmatmul.mubr.bf16.gmra.mrb[4].mxu0 %v2492_v23  ;;  %1115 = vst.msk [vmem:[#allocation2 + $0x80] sm:$0xff] %vm668_vm6, %v1065_v35  ;;  %672 = vst.msk [vmem:[#allocation2 + $0x78] sm:$0xff] %vm668_vm6, %v621_v37  ;;  %v1360_v23 = vshrl.u32 %v4361_v15, 16  ;;  %v1603_v35 = vrot.slane %v5127_v24, 2  ;;  %v5138_v37 = vld [vmem:[%s4508_s25 + $0x40] sm:$0xff]   ;;  %v4365_v9 = vld [vmem:[%s4508_s25 + $0x38] sm:$0xff]  }
  0x9e   : > { %2974 = vmatprep.mubr.bf16.mxu0 %v2498_v38  ;;  %3108 = vmatpush1.bf16.msra.mxu0 %v4435_v31  ;;  %v1353_v56 = vrot.slane %v1351_v45, 1  ;;  %v1356_v58 = vrot.slane %v1354_v46, 2  ;;  %v2070_v38 = vrot.slane %v2068_v27, 2  ;;  %v5142_v31 = vld [vmem:[%s4508_s25 + $0x70] sm:$0xff]   ;;  %v833_v49 = vrot.slane %v5138_v37, 1  ;;  %324 = vst.msk [vmem:[#allocation2 + $0x118] sm:$0xff] %vm316_vm4, %v4365_v9 }
  0x9f   : > { %3109 = vmatprep.subr.bf16.mxu0 %v4457_v1  ;;  %4060 = vmatpush3.bf16.msra.mxu1 %v4359_v8  ;;  %v1362_v29 = vrot.slane %v1360_v23, 1  ;;  %v1604_v48 = vsel %vm1597_vm2, %v1601_v61, %v1603_v35  ;;  %v1860_v52 = vrot.slane %v5142_v31, 2  ;;  %v5187_v15 = vld [vmem:[%s4508_s25 + $0x78] sm:$0xff]   ;;  %v4373_v24 = vld [vmem:[%s4508_s25 + $0x70] sm:$0xff]   ;;  %v4441_v37 = vld [vmem:[%s5747_s1 + $0xc0] sm:$0xff]  }
  0xa0   : > { %v2226_v47 = vpop.permute.xlu0 %2225  ;;  %v1650_v55 = vpop.permute.xlu1 %1649  ;;  %v2520_v36 = vld [vmem:[#allocation2 + $0x108] sm:$0xff]  ;;  %v2519_v44 = vld [vmem:[#allocation2 + $0x100] sm:$0xff]  ;;  %v5088_v63 = vor.u32 %v1356_v58, %v1353_v56  ;;  %v2074_v51 = vor.u32 %v2073_v39, %v2070_v38  ;;  %1639 = vrot.lane.b32.xlu1 %v1604_v48, %s4458_s28  ;;  %v1862_v22 = vrot.slane %v5187_v15, 2 }
  0xa1   : > { %2272 = vst.msk [vmem:[#allocation2 + $0x130] sm:$0xff] %vm668_vm6, %v2226_v47  ;;  %1696 = vst.msk [vmem:[#allocation2 + $0x128] sm:$0xff] %vm668_vm6, %v1650_v55  ;;  %3183 = vmatprep.mubr.bf16.mxu1 %v2520_v36  ;;  %v1366_v46 = vor.u32 %v1365_v33, %v1362_v29  ;;  %v4367_v47 = vld [vmem:[%s4508_s25 + $0x68] sm:$0xff]   ;;  %v834_v36 = vsel %vm817_vm1, %v831_v62, %v833_v49  ;;  %v1378_v29 = vshrl.u32 %v4373_v24, 16  ;;  %v1381_v33 = vshll.u32 %v4373_v24, 16 }
  0xa2   : > { %3110 = vmatpush1.bf16.msra.mxu0 %v4436_v54  ;;  %3184 = vmatmul.mubr.bf16.gmra.mrb[4].mxu1 %v2519_v44  ;;  %v1358_v57 = vsel %vm1260_vm5, %v5027_v13, %v5088_v63  ;;  %v4360_v13 = vld [vmem:[%s4508_s25 + $0x68] sm:$0xff]   ;;  %v2075_v44 = vsel %vm2040_vm3, %v5092_v3, %v2074_v51  ;;  %880 = vst.msk [vmem:[#allocation2 + $0x120] sm:$0xff] %vm316_vm4, %v834_v36  ;;  %v1369_v58 = vshrl.u32 %v4367_v47, 16  ;;  %v4368_v54 = vld [vmem:[%s4508_s25 + $0x30] sm:$0xff]  }
  0xa3   : > { %3111 = vmatprep.subr.bf16.mxu0 %v4457_v1  ;;  %1458 = vst.msk [vmem:[#allocation2 + $0x178] sm:$0xff] %vm316_vm4, %v1358_v57  ;;  %v1858_v16 = vrot.slane %v4360_v13, 2  ;;  %v1367_v55 = vsel %vm1260_vm5, %v5088_v63, %v1366_v46  ;;  %2215 = vrot.lane.b32.xlu0 %v2075_v44, %s4458_s28  ;;  %v2077_v7 = vshrl.u32 %v4368_v54, 16  ;;  %v2080_v8 = vshll.u32 %v4368_v54, 16  ;;  %v4371_v13 = vld [vmem:[%s4508_s25 + $0x40] sm:$0xff]   ;;  %v4375_v38 = vld [vmem:[%s4508_s25 + $0x48] sm:$0xff]  }
  0xa4   : > { %v1067_v10 = vpop.permute.xlu0 %1066  ;;  %v623_v11 = vpop.permute.xlu1 %622  ;;  %v2503_v14 = vld [vmem:[#allocation2 + $0x80] sm:$0xff]  ;;  %v2502_v25 = vld [vmem:[#allocation2 + $0x78] sm:$0xff]  ;;  %1459 = vst.msk [vmem:[#allocation2 + $0x1a0] sm:$0xff] %vm316_vm4, %v1367_v55  ;;  %v1371_v3 = vrot.slane %v1369_v58, 1  ;;  %325 = vst.msk [vmem:[#allocation2 + $0x140] sm:$0xff] %vm316_vm4, %v4371_v13  ;;  %v1863_v28 = vsel %vm1597_vm2, %v1860_v52, %v1862_v22 }
  0xa5   : > { %2975 = vmatmul.mubr.bf16.gmra.mrb[8].mxu0 %v2497_v50  ;;  %1116 = vst.msk [vmem:[#allocation2 + $0xa8] sm:$0xff] %vm668_vm6, %v1067_v10  ;;  %673 = vst.msk [vmem:[#allocation2 + $0xa0] sm:$0xff] %vm668_vm6, %v623_v11  ;;  %v1859_v26 = vsel %vm1597_vm2, %v1856_v41, %v1858_v16  ;;  %v1861_v56 = vsel %vm1597_vm2, %v1858_v16, %v1860_v52  ;;  %v1372_v50 = vshll.u32 %v4367_v47, 16  ;;  %v1605_v10 = vrot.slane %v4369_v59, 2  ;;  %v4370_v11 = vld [vmem:[%s4508_s25 + $0x48] sm:$0xff]   ;;  %v4440_v16 = vld [vmem:[%s5747_s1 + $0xb8] sm:$0xff]  }
  0xa6   : > { %2982 = vmatprep.mubr.bf16.mxu0 %v2503_v14  ;;  %3112 = vmatpush1.bf16.msra.mxu0 %v4437_v17  ;;  %1902 = vst.msk [vmem:[#allocation2 + $0x1a8] sm:$0xff] %vm316_vm4, %v1859_v26  ;;  %1903 = vst.msk [vmem:[#allocation2 + $0x1d0] sm:$0xff] %vm316_vm4, %v1861_v56  ;;  %v2079_v57 = vrot.slane %v2077_v7, 2  ;;  %v2082_v0 = vrot.slane %v2080_v8, 3  ;;  %v4377_v52 = vld [vmem:[%s4508_s25 + $0x78] sm:$0xff]   ;;  %v4442_v47 = vld [vmem:[%s5747_s1 + $0xc8] sm:$0xff]  }
  0xa7   : > { %3113 = vmatprep.subr.bf16.mxu0 %v4457_v1  ;;  %v1374_v5 = vrot.slane %v1372_v50, 2  ;;  %v1608_v26 = vsel %vm1597_vm2, %v1605_v10, %v1607_v40  ;;  %1904 = vst.msk [vmem:[#allocation2 + $0x1f8] sm:$0xff] %vm316_vm4, %v1863_v28  ;;  %326 = vst.msk [vmem:[#allocation2 + $0x168] sm:$0xff] %vm316_vm4, %v4375_v38  ;;  %v4378_v44 = vld [vmem:[%s5747_s1 + $0x110] sm:$0xff]   ;;  %v1387_v50 = vshrl.u32 %v4377_v52, 16  ;;  %v1390_v54 = vshll.u32 %v4377_v52, 16 }
  0xa8   : > { %v2228_v18 = vpop.permute.xlu0 %2227  ;;  %v1652_v19 = vpop.permute.xlu1 %1651  ;;  %v2525_v20 = vld [vmem:[#allocation2 + $0x130] sm:$0xff]  ;;  %v2524_v21 = vld [vmem:[#allocation2 + $0x128] sm:$0xff]  ;;  %v2083_v23 = vor.u32 %v2082_v0, %v2079_v57  ;;  %4061 = vmatprep.subr.bf16.mxu1 %v4378_v44  ;;  %v4379_v59 = vld [vmem:[%s4508_s25 + $0x58] sm:$0xff]  }
  0xa9   : > { %2273 = vst.msk [vmem:[#allocation2 + $0x158] sm:$0xff] %vm668_vm6, %v2228_v18  ;;  %1697 = vst.msk [vmem:[#allocation2 + $0x150] sm:$0xff] %vm668_vm6, %v1652_v19  ;;  %3191 = vmatprep.mubr.bf16.mxu1 %v2525_v20  ;;  %v5183_v14 = vor.u32 %v1374_v5, %v1371_v3  ;;  %v1606_v19 = vsel %vm1597_vm2, %v1603_v35, %v1605_v10  ;;  %v835_v20 = vrot.slane %v4370_v11, 1  ;;  %v5215_v35 = vld [vmem:[%s4508_s25 + $0x50] sm:$0xff]   ;;  %4062 = vmatpush3.bf16.msra.mxu1 %v4378_v44  ;;  %v4382_v57 = vld [vmem:[%s4508_s25 + $0x80] sm:$0xff]  }
  0xaa   : > { %3192 = vmatmul.mubr.bf16.gmra.mrb[8].mxu1 %v2524_v21  ;;  %3114 = vmatpush1.bf16.msra.mxu0 %v4438_v34  ;;  %v2084_v27 = vsel %vm2040_vm3, %v2074_v51, %v2083_v23  ;;  %v1380_v34 = vrot.slane %v1378_v29, 1  ;;  %v839_v8 = vrot.slane %v4379_v59, 1  ;;  %v4383_v13 = vld [vmem:[%s4508_s25 + $0x60] sm:$0xff]   ;;  %v4386_v29 = vld [vmem:[%s4508_s25 + $0x88] sm:$0xff]   ;;  %v4390_v52 = vld [vmem:[%s4508_s25 + $0x90] sm:$0xff]  }
  0xab   : > { %3115 = vmatprep.subr.bf16.mxu0 %v4457_v1  ;;  %v1376_v21 = vsel %vm1260_vm5, %v1366_v46, %v5183_v14  ;;  %1641 = vrot.lane.b32.xlu1 %v1606_v19, %s4458_s28  ;;  %v4376_v46 = vld [vmem:[%s4508_s25 + $0x80] sm:$0xff]   ;;  %v4391_v59 = vld [vmem:[%s5747_s1 + $0x118] sm:$0xff]  }
  0xac   : > { %v1069_v41 = vpop.permute.xlu0 %1068  ;;  %v625_v43 = vpop.permute.xlu1 %624  ;;  %v2508_v45 = vld [vmem:[#allocation2 + $0xa8] sm:$0xff]  ;;  %v2507_v2 = vld [vmem:[#allocation2 + $0xa0] sm:$0xff]  ;;  %1460 = vst.msk [vmem:[#allocation2 + $0x1c8] sm:$0xff] %vm316_vm4, %v1376_v21  ;;  %2217 = vrot.lane.b32.xlu0 %v2084_v27, %s4458_s28  ;;  %v1864_v51 = vrot.slane %v4376_v46, 2  ;;  %v4385_v27 = vld [vmem:[%s4508_s25 + $0x90] sm:$0xff]   ;;  %4063 = vmatprep.subr.bf16.mxu1 %v4391_v59 }
  0xad   : > { %2983 = vmatmul.mubr.bf16.gmra.mrb[12].mxu0 %v2502_v25  ;;  %1117 = vst.msk [vmem:[#allocation2 + $0xd0] sm:$0xff] %vm668_vm6, %v1069_v41  ;;  %674 = vst.msk [vmem:[#allocation2 + $0xc8] sm:$0xff] %vm668_vm6, %v625_v43  ;;  %v836_v25 = vsel %vm817_vm1, %v833_v49, %v835_v20  ;;  %v1383_v41 = vrot.slane %v1381_v33, 2  ;;  %v2093_v43 = vsel %vm2040_vm3, %v2083_v23, %v4543_v42  ;;  %v841_v23 = vrot.slane %v4383_v13, 1  ;;  %v4445_v33 = vld [vmem:[%s5747_s1 + $0xe0] sm:$0xff]  }
  0xae   : > { %2990 = vmatprep.mubr.bf16.mxu0 %v2508_v45  ;;  %3116 = vmatpush1.bf16.msra.mxu0 %v4439_v60  ;;  %881 = vst.msk [vmem:[#allocation2 + $0x148] sm:$0xff] %vm316_vm4, %v836_v25  ;;  %v837_v45 = vrot.slane %v5215_v35, 1  ;;  %v1865_v58 = vsel %vm1597_vm2, %v1862_v22, %v1864_v51  ;;  %v1389_v60 = vrot.slane %v1387_v50, 1  ;;  %v4384_v22 = vld [vmem:[%s4508_s25 + $0x58] sm:$0xff]   ;;  %v4388_v46 = vld [vmem:[%s4508_s25 + $0x60] sm:$0xff]   ;;  %v1414_v50 = vshrl.u32 %v4390_v52, 16 }
  0xaf   : > { %3117 = vmatprep.subr.bf16.mxu0 %v4457_v1  ;;  %1643 = vrot.lane.b32.xlu1 %v1608_v26, %s4458_s28  ;;  %v1384_v48 = vor.u32 %v1383_v41, %v1380_v34  ;;  %1905 = vst.msk [vmem:[#allocation2 + $0x220] sm:$0xff] %vm316_vm4, %v1865_v58  ;;  %v842_v26 = vsel %vm817_vm1, %v839_v8, %v841_v23  ;;  %328 = vst.msk [vmem:[#allocation2 + $0x1b8] sm:$0xff] %vm316_vm4, %v4384_v22  ;;  %v1405_v34 = vshrl.u32 %v4386_v29, 16  ;;  %v4395_v13 = vld [vmem:[%s4508_s25 + $0x98] ss:$0 sps:$4 sm:$0x33]  }
  0xb0   : > { %v2230_v53 = vpop.permute.xlu0 %2229  ;;  %v1654_v61 = vpop.permute.xlu1 %1653  ;;  %v2530_v62 = vld [vmem:[#allocation2 + $0x158] sm:$0xff]  ;;  %v2529_v63 = vld [vmem:[#allocation2 + $0x150] sm:$0xff]  ;;  %v838_v49 = vsel %vm817_vm1, %v835_v20, %v837_v45  ;;  %2219 = vrot.lane.b32.xlu0 %v2093_v43, %s4458_s28  ;;  %v840_v0 = vsel %vm817_vm1, %v837_v45, %v839_v8  ;;  %884 = vst.msk [vmem:[#allocation2 + $0x1c0] sm:$0xff] %vm316_vm4, %v842_v26  ;;  %v1408_v41 = vshll.u32 %v4386_v29, 16  ;;  %329 = vst.msk [vmem:[#allocation2 + $0x1e0] sm:$0xff] %vm316_vm4, %v4388_v46  ;;  %4064 = vmatpush3.bf16.msra.mxu1 %v4391_v59 }
  0xb1   : > { %2274 = vst.msk [vmem:[#allocation2 + $0x180] sm:$0xff] %vm668_vm6, %v2230_v53  ;;  %1698 = vst.msk [vmem:[#allocation2 + $0x178] sm:$0xff] %vm668_vm6, %v1654_v61  ;;  %3199 = vmatprep.mubr.bf16.mxu1 %v2530_v62  ;;  %v1385_v56 = vsel %vm1260_vm5, %v5183_v14, %v1384_v48  ;;  %v1392_v53 = vrot.slane %v1390_v54, 2  ;;  %v4380_v61 = vld [vmem:[%s4508_s25 + $0x50] sm:$0xff]   ;;  %v5253_v62 = vld [vmem:[%s4508_s25 + $0x88] sm:$0xff]   ;;  %v1417_v54 = vshll.u32 %v4390_v52, 16 }
  0xb2   : > { %3200 = vmatmul.mubr.bf16.gmra.mrb[12].mxu1 %v2529_v63  ;;  %3118 = vmatpush1.bf16.msra.mxu0 %v4440_v16  ;;  %882 = vst.msk [vmem:[#allocation2 + $0x170] sm:$0xff] %vm316_vm4, %v838_v49  ;;  %1461 = vst.msk [vmem:[#allocation2 + $0x1f0] sm:$0xff] %vm316_vm4, %v1385_v56  ;;  %v4443_v63 = vld [vmem:[%s5747_s1 + $0xd0] sm:$0xff]   ;;  %v1866_v14 = vrot.slane %v5253_v62, 2  ;;  %v1410_v49 = vrot.slane %v1408_v41, 2  ;;  %v1426_v22 = vshll.u32 %v4395_v13, 16 }
  0xb3   : > { %3119 = vmatprep.subr.bf16.mxu0 %v4457_v1  ;;  %v1393_v11 = vor.u32 %v1392_v53, %v1389_v60  ;;  %327 = vst.msk [vmem:[#allocation2 + $0x190] sm:$0xff] %vm316_vm4, %v4380_v61  ;;  %883 = vst.msk [vmem:[#allocation2 + $0x198] sm:$0xff] %vm316_vm4, %v840_v0  ;;  %v1416_v61 = vrot.slane %v1414_v50, 1  ;;  %v1419_v62 = vrot.slane %v1417_v54, 2 }
  0xb4   : > { %v1071_v6 = vpop.permute.xlu0 %1070  ;;  %v627_v17 = vpop.permute.xlu1 %626  ;;  %v2513_v18 = vld [vmem:[#allocation2 + $0xd0] sm:$0xff]  ;;  %v2512_v31 = vld [vmem:[#allocation2 + $0xc8] sm:$0xff]  ;;  %v1867_v16 = vsel %vm1597_vm2, %v1864_v51, %v1866_v14  ;;  %v5299_v51 = vld [vmem:[%s4508_s25 + $0x98] sm:$0xff]  }
  0xb5   : > { %2991 = vmatmul.mubr.bf16.gmra.mrb[16].mxu0 %v2507_v2  ;;  %1118 = vst.msk [vmem:[#allocation2 + $0xf8] sm:$0xff] %vm668_vm6, %v1071_v6  ;;  %675 = vst.msk [vmem:[#allocation2 + $0xf0] sm:$0xff] %vm668_vm6, %v627_v17  ;;  %v1394_v15 = vsel %vm1260_vm5, %v1384_v48, %v1393_v11  ;;  %v1396_v6 = vshrl.u32 %v4382_v57, 16  ;;  %v1399_v17 = vshll.u32 %v4382_v57, 16  ;;  %v1407_v48 = vrot.slane %v1405_v34, 1 }
  0xb6   : > { %2998 = vmatprep.mubr.bf16.mxu0 %v2513_v18  ;;  %3120 = vmatpush1.bf16.msra.mxu0 %v4441_v37  ;;  %v4444_v18 = vld [vmem:[%s5747_s1 + $0xd8] sm:$0xff]   ;;  %1462 = vst.msk [vmem:[#allocation2 + $0x218] sm:$0xff] %vm316_vm4, %v1394_v15  ;;  %1906 = vst.msk [vmem:[#allocation2 + $0x248] sm:$0xff] %vm316_vm4, %v1867_v16  ;;  %v1870_v58 = vrot.slane %v5299_v51, 2 }
  0xb7   : > { %3121 = vmatprep.subr.bf16.mxu0 %v4457_v1  ;;  %v1398_v24 = vrot.slane %v1396_v6, 1  ;;  %v1401_v25 = vrot.slane %v1399_v17, 2  ;;  %v1411_v56 = vor.u32 %v1410_v49, %v1407_v48  ;;  %v4394_v0 = vld [vmem:[%s4508_s25 + $0xa0] ss:$0 sps:$4 sm:$0x33]   ;;  %v5331_v15 = vld [vmem:[%s4508_s25 + $0x78] sm:$0xff]  }
  0xb8   : > { %v2232_v39 = vpop.permute.xlu0 %2231  ;;  %v1656_v32 = vpop.permute.xlu1 %1655  ;;  %v2535_v40 = vld [vmem:[#allocation2 + $0x180] sm:$0xff]  ;;  %v2534_v9 = vld [vmem:[#allocation2 + $0x178] sm:$0xff]  ;;  %v1872_v6 = vrot.slane %v4394_v0, 2  ;;  %v4397_v17 = vld [vmem:[%s4508_s25 + $0x70] sm:$0xff]  }
  0xb9   : > { %2275 = vst.msk [vmem:[#allocation2 + $0x1a8] sm:$0xff] %vm668_vm6, %v2232_v39  ;;  %1699 = vst.msk [vmem:[#allocation2 + $0x1a0] sm:$0xff] %vm668_vm6, %v1656_v32  ;;  %3207 = vmatprep.mubr.bf16.mxu1 %v2535_v40  ;;  %v1402_v28 = vor.u32 %v1401_v25, %v1398_v24  ;;  %v1868_v32 = vrot.slane %v4385_v27, 2  ;;  %v5287_v40 = vld [vmem:[%s4508_s25 + $0x68] sm:$0xff]   ;;  %v847_v24 = vrot.slane %v5331_v15, 1  ;;  %v4399_v25 = vld [vmem:[%s4508_s25 + $0x18] sm:$0xff]  }
  0xba   : > { %3208 = vmatmul.mubr.bf16.gmra.mrb[16].mxu1 %v2534_v9  ;;  %3122 = vmatpush1.bf16.msra.mxu0 %v4442_v47  ;;  %v843_v45 = vrot.slane %v5287_v40, 1  ;;  %v4446_v47 = vld [vmem:[%s5747_s1 + $0xe8] sm:$0xff]   ;;  %v1873_v26 = vsel %vm1597_vm2, %v1870_v58, %v1872_v6  ;;  %331 = vst.msk [vmem:[#allocation2 + $0x230] sm:$0xff] %vm316_vm4, %v4397_v17  ;;  %v4402_v49 = vld [vmem:[%s4508_s25 + $0x78] sm:$0xff]  }
  0xbb   : > { %3123 = vmatprep.subr.bf16.mxu0 %v4457_v1  ;;  %v1869_v43 = vsel %vm1597_vm2, %v1866_v14, %v1868_v32  ;;  %v1412_v60 = vsel %vm1260_vm5, %v1402_v28, %v1411_v56  ;;  %v1871_v53 = vsel %vm1597_vm2, %v1868_v32, %v1870_v58  ;;  %v1420_v14 = vor.u32 %v1419_v62, %v1416_v61  ;;  %v4405_v58 = vld [vmem:[%s4508_s25 + $0x88] sm:$0xff]   ;;  %v4406_v61 = vld [vmem:[%s4508_s25 + $0x80] sm:$0xff]  }
  0xbc   : > { %v1073_v55 = vpop.permute.xlu0 %1072  ;;  %v629_v42 = vpop.permute.xlu1 %628  ;;  %v2518_v36 = vld [vmem:[#allocation2 + $0xf8] sm:$0xff]  ;;  %v2517_v10 = vld [vmem:[#allocation2 + $0xf0] sm:$0xff]  ;;  %1907 = vst.msk [vmem:[#allocation2 + $0x270] sm:$0xff] %vm316_vm4, %v1869_v43  ;;  %v844_v44 = vsel %vm817_vm1, %v841_v23, %v843_v45  ;;  %1464 = vst.msk [vmem:[#allocation2 + $0x268] sm:$0xff] %vm316_vm4, %v1412_v60  ;;  %v1423_v23 = vshrl.u32 %v4395_v13, 16 }
  0xbd   : > { %2999 = vmatmul.mubr.bf16.gmra.mrb[20].mxu0 %v2512_v31  ;;  %1119 = vst.msk [vmem:[#allocation2 + $0x120] sm:$0xff] %vm668_vm6, %v1073_v55  ;;  %676 = vst.msk [vmem:[#allocation2 + $0x118] sm:$0xff] %vm668_vm6, %v629_v42  ;;  %v1403_v31 = vsel %vm1260_vm5, %v1393_v11, %v1402_v28  ;;  %v1421_v16 = vsel %vm1260_vm5, %v1411_v56, %v1420_v14  ;;  %v1428_v28 = vrot.slane %v1426_v22, 2  ;;  %v4409_v13 = vld [vmem:[%s4508_s25 + $0x90] ss:$0 sps:$4 sm:$0x11]  }
  0xbe   : > { %3006 = vmatprep.mubr.bf16.mxu0 %v2518_v36  ;;  %3124 = vmatpush1.bf16.msra.mxu0 %v4443_v63  ;;  %1463 = vst.msk [vmem:[#allocation2 + $0x240] sm:$0xff] %vm316_vm4, %v1403_v31  ;;  %885 = vst.msk [vmem:[#allocation2 + $0x1e8] sm:$0xff] %vm316_vm4, %v844_v44  ;;  %v4392_v63 = vld [vmem:[%s4508_s25 + $0x70] sm:$0xff]   ;;  %v1425_v27 = vrot.slane %v1423_v23, 1  ;;  %v853_v6 = vrot.slane %v4409_v13, 1  ;;  %v4411_v17 = vld [vmem:[%s4508_s25 + $0x48] sm:$0xff]  }
  0xbf   : > { %3125 = vmatprep.subr.bf16.mxu0 %v4457_v1  ;;  %1908 = vst.msk [vmem:[#allocation2 + $0x298] sm:$0xff] %vm316_vm4, %v1871_v53  ;;  %v845_v57 = vrot.slane %v4392_v63, 1  ;;  %1465 = vst.msk [vmem:[#allocation2 + $0x290] sm:$0xff] %vm316_vm4, %v1421_v16  ;;  %v4404_v44 = vld [vmem:[%s4508_s25 + $0x30] sm:$0xff]   ;;  %v851_v63 = vrot.slane %v4405_v58, 1  ;;  %v4410_v16 = vld [vmem:[%s4508_s25 + $0x88] sm:$0xff]  }
  0xc0   : > { %v2234_v2 = vpop.permute.xlu0 %2233  ;;  %v1658_v3 = vpop.permute.xlu1 %1657  ;;  %v2540_v5 = vld [vmem:[#allocation2 + $0x1a8] sm:$0xff]  ;;  %v2539_v7 = vld [vmem:[#allocation2 + $0x1a0] sm:$0xff]  ;;  %1909 = vst.msk [vmem:[#allocation2 + $0x2c0] sm:$0xff] %vm316_vm4, %v1873_v26  ;;  %332 = vst.msk [vmem:[#allocation2 + $0x258] sm:$0xff] %vm316_vm4, %v4402_v49  ;;  %v2421_v53 = vrot.slane %v4404_v44, 3 }
  0xc1   : > { %2276 = vst.msk [vmem:[#allocation2 + $0x1d0] sm:$0xff] %vm668_vm6, %v2234_v2  ;;  %1700 = vst.msk [vmem:[#allocation2 + $0x1c8] sm:$0xff] %vm668_vm6, %v1658_v3  ;;  %3215 = vmatprep.mubr.bf16.mxu1 %v2540_v5  ;;  %v4393_v2 = vld [vmem:[%s4508_s25 + $0x68] sm:$0xff]   ;;  %v4447_v3 = vld [vmem:[%s5747_s1 + $0xf0] sm:$0xff]   ;;  %v848_v29 = vsel %vm817_vm1, %v845_v57, %v847_v24  ;;  %v854_v22 = vsel %vm817_vm1, %v851_v63, %v853_v6 }
  0xc2   : > { %3216 = vmatmul.mubr.bf16.gmra.mrb[20].mxu1 %v2539_v7  ;;  %3126 = vmatpush1.bf16.msra.mxu0 %v4444_v18  ;;  %330 = vst.msk [vmem:[#allocation2 + $0x208] sm:$0xff] %vm316_vm4, %v4393_v2  ;;  %v4448_v18 = vld [vmem:[%s5747_s1 + $0xf8] sm:$0xff]   ;;  %887 = vst.msk [vmem:[#allocation2 + $0x238] sm:$0xff] %vm316_vm4, %v848_v29  ;;  %v4423_v13 = vld [vmem:[%s4508_s25 + $0x28] sm:$0xff]  }
  0xc3   : > { %3127 = vmatprep.subr.bf16.mxu0 %v4457_v1  ;;  %v4407_v2 = vld [vmem:[%s4508_s25 + $0x38] sm:$0xff]   ;;  %333 = vst.msk [vmem:[#allocation2 + $0x280] sm:$0xff] %vm316_vm4, %v4406_v61  ;;  %334 = vst.msk [vmem:[#allocation2 + $0x2a8] sm:$0xff] %vm316_vm4, %v4410_v16 }
  0xc4   : > { %v1075_v19 = vpop.permute.xlu0 %1074  ;;  %v631_v20 = vpop.permute.xlu1 %630  ;;  %v2523_v21 = vld [vmem:[#allocation2 + $0x120] sm:$0xff]  ;;  %v2522_v9 = vld [vmem:[#allocation2 + $0x118] sm:$0xff]  ;;  %890 = vst.msk [vmem:[#allocation2 + $0x2b0] sm:$0xff] %vm316_vm4, %v854_v22 }
  0xc5   : > { %3007 = vmatmul.mubr.bf16.gmra.mrb[24].mxu0 %v2517_v10  ;;  %1120 = vst.msk [vmem:[#allocation2 + $0x148] sm:$0xff] %vm668_vm6, %v1075_v19  ;;  %677 = vst.msk [vmem:[#allocation2 + $0x140] sm:$0xff] %vm668_vm6, %v631_v20  ;;  %v4424_v22 = vld [vmem:[%s4508_s25 + $0x20] sm:$0xff]  }
  0xc6   : > { %3014 = vmatprep.mubr.bf16.mxu0 %v2523_v21  ;;  %3128 = vmatpush1.bf16.msra.mxu0 %v4445_v33  ;;  %v4398_v33 = vld [vmem:[%s4508_s25 + $0x10] sm:$0xf8]  }
  0xc7   : > { %3129 = vmatprep.subr.bf16.mxu0 %v4457_v1  ;;  %v2414_v34 = vrot.slane %v4398_v33, 3  ;;  %v4414_v33 = vld [vmem:[%s4508_s25 + $0x18] sm:$0xff]  }
  0xc8   : > { %v2236_v35 = vpop.permute.xlu0 %2235  ;;  %v1660_v38 = vpop.permute.xlu1 %1659  ;;  %v2545_v37 = vld [vmem:[#allocation2 + $0x1d0] sm:$0xff]  ;;  %v2544_v39 = vld [vmem:[#allocation2 + $0x1c8] sm:$0xff] }
  0xc9   : > { %2277 = vst.msk [vmem:[#allocation2 + $0x1f8] sm:$0xff] %vm668_vm6, %v2236_v35  ;;  %1701 = vst.msk [vmem:[#allocation2 + $0x1f0] sm:$0xff] %vm668_vm6, %v1660_v38  ;;  %3223 = vmatprep.mubr.bf16.mxu1 %v2545_v37  ;;  %v2415_v35 = vrot.slane %v4399_v25, 3  ;;  %v4400_v38 = vld [vmem:[%s4508_s25 + $0x20] sm:$0xff]  }
  0xca   : > { %3224 = vmatmul.mubr.bf16.gmra.mrb[24].mxu1 %v2544_v39  ;;  %3130 = vmatpush1.bf16.msra.mxu0 %v4446_v47  ;;  %v2417_v41 = vrot.slane %v4400_v38, 3 }
  0xcb   : > { %3131 = vmatprep.subr.bf16.mxu0 %v4457_v1  ;;  %v2416_v46 = vsel %vm2413_vm7, %v2414_v34, %v2415_v35 }
  0xcc   : > { %v1077_v55 = vpop.permute.xlu0 %1076  ;;  %v633_v42 = vpop.permute.xlu1 %632  ;;  %v2528_v36 = vld [vmem:[#allocation2 + $0x148] sm:$0xff]  ;;  %v2527_v11 = vld [vmem:[#allocation2 + $0x140] sm:$0xff]  ;;  %v2418_v48 = vsel %vm2413_vm7, %v2415_v35, %v2417_v41  ;;  %2469 = vst.msk [vmem:[#allocation2 + $0x20] sm:$0xff] %vm316_vm4, %v2416_v46 }
  0xcd   : > { %3015 = vmatmul.mubr.bf16.gmra.mrb[28].mxu0 %v2522_v9  ;;  %1121 = vst.msk [vmem:[#allocation2 + $0x170] sm:$0xff] %vm668_vm6, %v1077_v55  ;;  %678 = vst.msk [vmem:[#allocation2 + $0x168] sm:$0xff] %vm668_vm6, %v633_v42  ;;  %v1429_v9 = vor.u32 %v1428_v28, %v1425_v27  ;;  %v4403_v42 = vld [vmem:[%s4508_s25 + $0x28] sm:$0xff]   ;;  %v4413_v28 = vld [vmem:[%s4508_s25 + $0x10] sm:$0xfc]  }
  0xce   : > { %3022 = vmatprep.mubr.bf16.mxu0 %v2528_v36  ;;  %3132 = vmatpush1.bf16.msra.mxu0 %v4447_v3  ;;  %2470 = vst.msk [vmem:[#allocation2 + $0x48] sm:$0xff] %vm316_vm4, %v2418_v48  ;;  %v2419_v56 = vrot.slane %v4403_v42, 3 }
  0xcf   : > { %3133 = vmatprep.subr.bf16.mxu0 %v4457_v1  ;;  %v846_v1 = vsel %vm817_vm1, %v843_v45, %v845_v57  ;;  %v1430_v43 = vsel %vm1260_vm5, %v1420_v14, %v1429_v9  ;;  %v4401_v45 = vld [vmem:[%s4508_s25 + $0x80] sm:$0xff]   ;;  %v4416_v9 = vld [vmem:[%s4508_s25 + $0x10] sm:$0xff]  }
  0xd0   : > { %v2238_v5 = vpop.permute.xlu0 %2237  ;;  %v1662_v7 = vpop.permute.xlu1 %1661  ;;  %v2550_v8 = vld [vmem:[#allocation2 + $0x1f8] sm:$0xff]  ;;  %v2549_v10 = vld [vmem:[#allocation2 + $0x1f0] sm:$0xff]  ;;  %886 = vst.msk [vmem:[#allocation2 + $0x210] sm:$0xff] %vm316_vm4, %v846_v1  ;;  %1466 = vst.msk [vmem:[#allocation2 + $0x2b8] sm:$0xff] %vm316_vm4, %v1430_v43  ;;  %v849_v55 = vrot.slane %v4401_v45, 1  ;;  %v2420_v62 = vsel %vm2413_vm7, %v2417_v41, %v2419_v56  ;;  %v2422_v3 = vsel %vm2413_vm7, %v2419_v56, %v2421_v53 }
  0xd1   : > { %2278 = vst.msk [vmem:[#allocation2 + $0x220] sm:$0xff] %vm668_vm6, %v2238_v5  ;;  %1702 = vst.msk [vmem:[#allocation2 + $0x218] sm:$0xff] %vm668_vm6, %v1662_v7  ;;  %3231 = vmatprep.mubr.bf16.mxu1 %v2550_v8  ;;  %v4408_v5 = vld [vmem:[%s4508_s25 + $0x40] sm:$0xff]   ;;  %v4417_v43 = vld [vmem:[%s4508_s25 + $0x58] sm:$0xff]  }
  0xd2   : > { %3232 = vmatmul.mubr.bf16.gmra.mrb[28].mxu1 %v2549_v10  ;;  %3134 = vmatpush1.bf16.msra.mxu0 %v4448_v18  ;;  %v850_v36 = vsel %vm817_vm1, %v847_v24, %v849_v55  ;;  %2471 = vst.msk [vmem:[#allocation2 + $0x70] sm:$0xff] %vm316_vm4, %v2420_v62  ;;  %2472 = vst.msk [vmem:[#allocation2 + $0x98] sm:$0xff] %vm316_vm4, %v2422_v3  ;;  %v852_v8 = vsel %vm817_vm1, %v849_v55, %v851_v63  ;;  %v2423_v10 = vrot.slane %v4407_v2, 3  ;;  %v4412_v18 = vld [vmem:[%s4508_s25 + $0x50] sm:$0xff]   ;;  %v4418_v45 = vld [vmem:[%s4508_s25 + $0x60] sm:$0xff]  }
  0xd3   : > { %888 = vst.msk [vmem:[#allocation2 + $0x260] sm:$0xff] %vm316_vm4, %v850_v36  ;;  %889 = vst.msk [vmem:[#allocation2 + $0x288] sm:$0xff] %vm316_vm4, %v852_v8  ;;  %v2425_v0 = vrot.slane %v4408_v5, 3  ;;  %v2427_v24 = vrot.slane %v4411_v17, 3  ;;  %v2429_v25 = vrot.slane %v4412_v18, 3  ;;  %v2431_v36 = vrot.slane %v4417_v43, 3 }
  0xd4   : > { %v1079_v19 = vpop.permute.xlu0 %1078  ;;  %v635_v20 = vpop.permute.xlu1 %634  ;;  %v2533_v21 = vld [vmem:[#allocation2 + $0x170] sm:$0xff]  ;;  %v2532_v31 = vld [vmem:[#allocation2 + $0x168] sm:$0xff]  ;;  %v2424_v15 = vsel %vm2413_vm7, %v2421_v53, %v2423_v10  ;;  %v2433_v44 = vrot.slane %v4418_v45, 3  ;;  %v4420_v5 = vld [vmem:[%s4508_s25 + $0x18] sm:$0xff]  }
  0xd5   : > { %3023 = vmatmul.mubr.bf16.gmra.mrb[32].mxu0 %v2527_v11  ;;  %1122 = vst.msk [vmem:[#allocation2 + $0x198] sm:$0xff] %vm668_vm6, %v1079_v19  ;;  %679 = vst.msk [vmem:[#allocation2 + $0x190] sm:$0xff] %vm668_vm6, %v635_v20  ;;  %v2426_v1 = vsel %vm2413_vm7, %v2423_v10, %v2425_v0  ;;  %v2428_v27 = vsel %vm2413_vm7, %v2425_v0, %v2427_v24  ;;  %v2430_v29 = vsel %vm2413_vm7, %v2427_v24, %v2429_v25  ;;  %v4422_v0 = vld [vmem:[%s4508_s25 + $0x70] sm:$0xff]   ;;  %v4428_v45 = vld [vmem:[%s4508_s25 + $0x28] sm:$0xff]  }
  0xd6   : > { %3030 = vmatprep.mubr.bf16.mxu0 %v2533_v21  ;;  %2473 = vst.msk [vmem:[#allocation2 + $0xc0] sm:$0xff] %vm316_vm4, %v2424_v15  ;;  %2474 = vst.msk [vmem:[#allocation2 + $0xe8] sm:$0xff] %vm316_vm4, %v2426_v1  ;;  %v2434_v53 = vsel %vm2413_vm7, %v2431_v36, %v2433_v44 }
  0xd7   : > { %2475 = vst.msk [vmem:[#allocation2 + $0x110] sm:$0xff] %vm316_vm4, %v2428_v27  ;;  %2476 = vst.msk [vmem:[#allocation2 + $0x138] sm:$0xff] %vm316_vm4, %v2430_v29 }
  0xd8   : > { %v2240_v37 = vpop.permute.xlu0 %2239  ;;  %v1664_v39 = vpop.permute.xlu1 %1663  ;;  %v2555_v32 = vld [vmem:[#allocation2 + $0x220] sm:$0xff]  ;;  %v2554_v40 = vld [vmem:[#allocation2 + $0x218] sm:$0xff]  ;;  %2478 = vst.msk [vmem:[#allocation2 + $0x188] sm:$0xff] %vm316_vm4, %v2434_v53  ;;  %v4430_v53 = vld [vmem:[%s4508_s25 + $0x90] sm:$0xff]  }
  0xd9   : > { %2279 = vst.msk [vmem:[#allocation2 + $0x248] sm:$0xff] %vm668_vm6, %v2240_v37  ;;  %1703 = vst.msk [vmem:[#allocation2 + $0x240] sm:$0xff] %vm668_vm6, %v1664_v39  ;;  %3239 = vmatprep.mubr.bf16.mxu1 %v2555_v32  ;;  %v1837_v39 = vrot.slane %v4413_v28, 2  ;;  %v1838_v32 = vrot.slane %v4414_v33, 2  ;;  %v1288_v33 = vshrl.u32 %v4424_v22, 16 }
  0xda   : > { %3240 = vmatmul.mubr.bf16.gmra.mrb[32].mxu1 %v2554_v40  ;;  %v4415_v40 = vld [vmem:[%s4508_s25 + $0x8] sm:$0xfe]  }
  0xdb   : > { %v1262_v34 = vshrl.u32 %v4415_v40, 16  ;;  %v1265_v41 = vshll.u32 %v4415_v40, 16 }
  0xdc   : > { %v1081_v51 = vpop.permute.xlu0 %1080  ;;  %v637_v52 = vpop.permute.xlu1 %636  ;;  %v2538_v47 = vld [vmem:[#allocation2 + $0x198] sm:$0xff]  ;;  %v2537_v7 = vld [vmem:[#allocation2 + $0x190] sm:$0xff] }
  0xdd   : > { %3031 = vmatmul.mubr.bf16.gmra.mrb[36].mxu0 %v2532_v31  ;;  %1123 = vst.msk [vmem:[#allocation2 + $0x1c0] sm:$0xff] %vm668_vm6, %v1081_v51  ;;  %680 = vst.msk [vmem:[#allocation2 + $0x1b8] sm:$0xff] %vm668_vm6, %v637_v52  ;;  %v1839_v31 = vsel %vm1597_vm2, %v1837_v39, %v1838_v32  ;;  %v1270_v52 = vshrl.u32 %v4416_v9, 16  ;;  %v1264_v55 = vrot.slane %v1262_v34, 1  ;;  %v1267_v42 = vrot.slane %v1265_v41, 2  ;;  %v4427_v41 = vld [vmem:[%s4508_s25 + $0x30] sm:$0xff]  }
  0xde   : > { %3038 = vmatprep.mubr.bf16.mxu0 %v2538_v47  ;;  %1892 = vst.msk [vmem:[#allocation2 + $0x18] sm:$0xff] %vm316_vm4, %v1839_v31  ;;  %v1273_v47 = vshll.u32 %v4416_v9, 16  ;;  %v1290_v9 = vrot.slane %v1288_v33, 1 }
  0xdf   : > { %v1272_v56 = vrot.slane %v1270_v52, 1  ;;  %v1844_v52 = vrot.slane %v4427_v41, 2 }
  0xe0   : > { %v2242_v50 = vpop.permute.xlu0 %2241  ;;  %v1666_v54 = vpop.permute.xlu1 %1665  ;;  %v2560_v59 = vld [vmem:[#allocation2 + $0x248] sm:$0xff]  ;;  %v2559_v60 = vld [vmem:[#allocation2 + $0x240] sm:$0xff]  ;;  %v1275_v58 = vrot.slane %v1273_v47, 2 }
  0xe1   : > { %2280 = vst.msk [vmem:[#allocation2 + $0x270] sm:$0xff] %vm668_vm6, %v2242_v50  ;;  %1704 = vst.msk [vmem:[#allocation2 + $0x268] sm:$0xff] %vm668_vm6, %v1666_v54  ;;  %3247 = vmatprep.mubr.bf16.mxu1 %v2560_v59  ;;  %v4419_v50 = vld [vmem:[%s4508_s25 + $0x20] sm:$0xff]   ;;  %v1268_v59 = vor.u32 %v1267_v42, %v1264_v55  ;;  %v1297_v55 = vshrl.u32 %v4428_v45, 16  ;;  %v1300_v42 = vshll.u32 %v4428_v45, 16 }
  0xe2   : > { %3248 = vmatmul.mubr.bf16.gmra.mrb[36].mxu1 %v2559_v60  ;;  %v2432_v60 = vsel %vm2413_vm7, %v2429_v25, %v2431_v36  ;;  %v1276_v2 = vor.u32 %v1275_v58, %v1272_v56  ;;  %v1840_v3 = vrot.slane %v4419_v50, 2  ;;  %v4429_v50 = vld [vmem:[%s4508_s25 + $0x88] sm:$0xff]  }
  0xe3   : > { %2477 = vst.msk [vmem:[#allocation2 + $0x160] sm:$0xff] %vm316_vm4, %v2432_v60  ;;  %v1302_v60 = vrot.slane %v1300_v42, 2 }
  0xe4   : > { %v1083_v11 = vpop.permute.xlu0 %1082  ;;  %v639_v14 = vpop.permute.xlu1 %638  ;;  %v2543_v57 = vld [vmem:[#allocation2 + $0x1c0] sm:$0xff]  ;;  %v2542_v26 = vld [vmem:[#allocation2 + $0x1b8] sm:$0xff]  ;;  %v1277_v8 = vsel %vm1260_vm5, %v1268_v59, %v1276_v2  ;;  %v1841_v10 = vsel %vm1597_vm2, %v1838_v32, %v1840_v3  ;;  %v1299_v59 = vrot.slane %v1297_v55, 1 }
  0xe5   : > { %3039 = vmatmul.mubr.bf16.gmra.mrb[40].mxu0 %v2537_v7  ;;  %1124 = vst.msk [vmem:[#allocation2 + $0x1e8] sm:$0xff] %vm668_vm6, %v1083_v11  ;;  %681 = vst.msk [vmem:[#allocation2 + $0x1e0] sm:$0xff] %vm668_vm6, %v639_v14  ;;  %v2491_v7 = vld [vmem:[#allocation2 + $0x20] sm:$0xff]  ;;  %v4421_v11 = vld [vmem:[%s4508_s25 + $0x68] sm:$0xff]   ;;  %v1279_v14 = vshrl.u32 %v4420_v5, 16 }
  0xe6   : > { %3046 = vmatprep.mubr.bf16.mxu0 %v2543_v57  ;;  %1449 = vst.msk [vmem:[#allocation2 + $0x10] sm:$0xff] %vm316_vm4, %v1277_v8  ;;  %1893 = vst.msk [vmem:[#allocation2 + $0x40] sm:$0xff] %vm316_vm4, %v1841_v10  ;;  %v1282_v57 = vshll.u32 %v4420_v5, 16  ;;  %v2435_v17 = vrot.slane %v4421_v11, 3  ;;  %v4426_v32 = vld [vmem:[%s4508_s25 + $0x80] sm:$0xff]   ;;  %v2506_v5 = vld [vmem:[#allocation2 + $0x98] sm:$0xff] }
  0xe7   : > { %v1281_v18 = vrot.slane %v1279_v14, 1  ;;  %v2441_v43 = vrot.slane %v4426_v32, 3  ;;  %v2511_v14 = vld [vmem:[#allocation2 + $0xc0] sm:$0xff] }
  0xe8   : > { %v2244_v19 = vpop.permute.xlu0 %2243  ;;  %v1668_v20 = vpop.permute.xlu1 %1667  ;;  %v2565_v21 = vld [vmem:[#allocation2 + $0x270] sm:$0xff]  ;;  %v2564_v23 = vld [vmem:[#allocation2 + $0x268] sm:$0xff] }
  0xe9   : > { %2281 = vst.msk [vmem:[#allocation2 + $0x298] sm:$0xff] %vm668_vm6, %v2244_v19  ;;  %1705 = vst.msk [vmem:[#allocation2 + $0x290] sm:$0xff] %vm668_vm6, %v1668_v20  ;;  %3255 = vmatprep.mubr.bf16.mxu1 %v2565_v21  ;;  %v1284_v19 = vrot.slane %v1282_v57, 2  ;;  %v2437_v20 = vrot.slane %v4422_v0, 3  ;;  %v1842_v21 = vrot.slane %v4423_v13, 2 }
  0xea   : > { %3256 = vmatmul.mubr.bf16.gmra.mrb[40].mxu1 %v2564_v23  ;;  %v2436_v23 = vsel %vm2413_vm7, %v2433_v44, %v2435_v17 }
  0xeb   : > { %v1285_v25 = vor.u32 %v1284_v19, %v1281_v18  ;;  %2479 = vst.msk [vmem:[#allocation2 + $0x1b0] sm:$0xff] %vm316_vm4, %v2436_v23  ;;  %v1843_v27 = vsel %vm1597_vm2, %v1840_v3, %v1842_v21  ;;  %v1845_v58 = vsel %vm1597_vm2, %v1842_v21, %v1844_v52  ;;  %v4432_v3 = vld [vmem:[%s4508_s25 + $0xa0] ss:$0 sps:$4 sm:$0x77]   ;;  %v2526_v21 = vld [vmem:[#allocation2 + $0x138] sm:$0xff] }
  0xec   : > { %v1085_v35 = vpop.permute.xlu0 %1084  ;;  %v641_v38 = vpop.permute.xlu1 %640  ;;  %v2548_v37 = vld [vmem:[#allocation2 + $0x1e8] sm:$0xff]  ;;  %v2547_v54 = vld [vmem:[#allocation2 + $0x1e0] sm:$0xff]  ;;  %1894 = vst.msk [vmem:[#allocation2 + $0x68] sm:$0xff] %vm316_vm4, %v1843_v27  ;;  %1895 = vst.msk [vmem:[#allocation2 + $0x90] sm:$0xff] %vm316_vm4, %v1845_v58  ;;  %v2449_v57 = vrot.slane %v4432_v3, 3 }
  0xed   : > { %3047 = vmatmul.mubr.bf16.gmra.mrb[44].mxu0 %v2542_v26  ;;  %1125 = vst.msk [vmem:[#allocation2 + $0x210] sm:$0xff] %vm668_vm6, %v1085_v35  ;;  %682 = vst.msk [vmem:[#allocation2 + $0x208] sm:$0xff] %vm668_vm6, %v641_v38  ;;  %v2438_v26 = vsel %vm2413_vm7, %v2435_v17, %v2437_v20  ;;  %v1291_v35 = vshll.u32 %v4424_v22, 16  ;;  %v4425_v38 = vld [vmem:[%s4508_s25 + $0x78] sm:$0xff]   ;;  %v1286_v39 = vsel %vm1260_vm5, %v1276_v2, %v1285_v25  ;;  %v2531_v23 = vld [vmem:[#allocation2 + $0x160] sm:$0xff] }
  0xee   : > { %3054 = vmatprep.mubr.bf16.mxu0 %v2548_v37  ;;  %2480 = vst.msk [vmem:[#allocation2 + $0x1d8] sm:$0xff] %vm316_vm4, %v2438_v26  ;;  %v2496_v37 = vld [vmem:[#allocation2 + $0x48] sm:$0xff]  ;;  %1450 = vst.msk [vmem:[#allocation2 + $0x38] sm:$0xff] %vm316_vm4, %v1286_v39  ;;  %v2439_v34 = vrot.slane %v4425_v38, 3 }
  0xef   : > { %v1293_v31 = vrot.slane %v1291_v35, 2  ;;  %v2536_v26 = vld [vmem:[#allocation2 + $0x188] sm:$0xff] }
  0xf0   : > { %v2246_v46 = vpop.permute.xlu0 %2245  ;;  %v1670_v48 = vpop.permute.xlu1 %1669  ;;  %v2570_v49 = vld [vmem:[#allocation2 + $0x298] sm:$0xff]  ;;  %v2569_v51 = vld [vmem:[#allocation2 + $0x290] sm:$0xff]  ;;  %v2442_v47 = vsel %vm2413_vm7, %v2439_v34, %v2441_v43 }
  0xf1   : > { %2282 = vst.msk [vmem:[#allocation2 + $0x2c0] sm:$0xff] %vm668_vm6, %v2246_v46  ;;  %1706 = vst.msk [vmem:[#allocation2 + $0x2b8] sm:$0xff] %vm668_vm6, %v1670_v48  ;;  %3263 = vmatprep.mubr.bf16.mxu1 %v2570_v49  ;;  %v2501_v48 = vld [vmem:[#allocation2 + $0x70] sm:$0xff]  ;;  %v1294_v49 = vor.u32 %v1293_v31, %v1290_v9 }
  0xf2   : > { %3264 = vmatmul.mubr.bf16.gmra.mrb[44].mxu1 %v2569_v51  ;;  %v2440_v51 = vsel %vm2413_vm7, %v2437_v20, %v2439_v34  ;;  %2482 = vst.msk [vmem:[#allocation2 + $0x228] sm:$0xff] %vm316_vm4, %v2442_v47 }
  0xf3   : > { %2481 = vst.msk [vmem:[#allocation2 + $0x200] sm:$0xff] %vm316_vm4, %v2440_v51  ;;  %v1295_v56 = vsel %vm1260_vm5, %v1285_v25, %v1294_v49 }
  0xf4   : > { %v2553_v61 = vld [vmem:[#allocation2 + $0x210] sm:$0xff]  ;;  %v1087_v62 = vpop.permute.xlu0 %1086  ;;  %v643_v63 = vpop.permute.xlu1 %642  ;;  %v2552_v24 = vld [vmem:[#allocation2 + $0x208] sm:$0xff]  ;;  %1451 = vst.msk [vmem:[#allocation2 + $0x60] sm:$0xff] %vm316_vm4, %v1295_v56 }
  0xf5   : > { %3055 = vmatmul.mubr.bf16.gmra.mrb[48].mxu0 %v2547_v54  ;;  %1126 = vst.msk [vmem:[#allocation2 + $0x238] sm:$0xff] %vm668_vm6, %v1087_v62  ;;  %683 = vst.msk [vmem:[#allocation2 + $0x230] sm:$0xff] %vm668_vm6, %v643_v63  ;;  %v1847_v54 = vsel %vm1597_vm2, %v1844_v52, %v1846_v12  ;;  %v1303_v62 = vor.u32 %v1302_v60, %v1299_v59  ;;  %v2445_v12 = vrot.slane %v4430_v53, 3  ;;  %v4431_v63 = vld [vmem:[%s4508_s25 + $0x98] sm:$0xff]  }
  0xf6   : > { %3062 = vmatprep.mubr.bf16.mxu0 %v2553_v61  ;;  %1896 = vst.msk [vmem:[#allocation2 + $0xb8] sm:$0xff] %vm316_vm4, %v1847_v54  ;;  %v2443_v61 = vrot.slane %v4429_v50, 3  ;;  %v2447_v11 = vrot.slane %v4431_v63, 3  ;;  %v2546_v38 = vld [vmem:[#allocation2 + $0x1d8] sm:$0xff] }
  0xf7   : > { %v1313_v10 = vsel %vm1260_vm5, %v1303_v62, %v4923_v30 }
  0xf8   : > { %v2575_v15 = vld [vmem:[#allocation2 + $0x2c0] sm:$0xff]  ;;  %v2574_v16 = vld [vmem:[#allocation2 + $0x2b8] sm:$0xff]  ;;  %v1089_v1 = vpop.permute.xlu0 %1088  ;;  %v645_v6 = vpop.permute.xlu1 %644  ;;  %v2444_v2 = vsel %vm2413_vm7, %v2441_v43, %v2443_v61  ;;  %v2446_v8 = vsel %vm2413_vm7, %v2443_v61, %v2445_v12  ;;  %1453 = vst.msk [vmem:[#allocation2 + $0xb0] sm:$0xff] %vm316_vm4, %v1313_v10  ;;  %v2448_v13 = vsel %vm2413_vm7, %v2445_v12, %v2447_v11 }
  0xf9   : > { %3271 = vmatprep.mubr.bf16.mxu1 %v2575_v15  ;;  %1127 = vst.msk [vmem:[#allocation2 + $0x260] sm:$0xff] %vm668_vm6, %v1089_v1  ;;  %684 = vst.msk [vmem:[#allocation2 + $0x258] sm:$0xff] %vm668_vm6, %v645_v6  ;;  %v2516_v1 = vld [vmem:[#allocation2 + $0xe8] sm:$0xff]  ;;  %v2521_v6 = vld [vmem:[#allocation2 + $0x110] sm:$0xff] }
  0xfa   : > { %3272 = vmatmul.mubr.bf16.gmra.mrb[48].mxu1 %v2574_v16  ;;  %2483 = vst.msk [vmem:[#allocation2 + $0x250] sm:$0xff] %vm316_vm4, %v2444_v2  ;;  %2484 = vst.msk [vmem:[#allocation2 + $0x278] sm:$0xff] %vm316_vm4, %v2446_v8  ;;  %v2450_v16 = vsel %vm2413_vm7, %v2447_v11, %v2449_v57  ;;  %v2551_v39 = vld [vmem:[#allocation2 + $0x200] sm:$0xff]  ;;  %v2556_v41 = vld [vmem:[#allocation2 + $0x228] sm:$0xff] }
  0xfb   : > { %4065 = vmatprep.mubr.msk.bf16.mxu1 %vm316_vm4, %v2491_v7  ;;  %v1304_v7 = vsel %vm1260_vm5, %v1294_v49, %v1303_v62  ;;  %2485 = vst.msk [vmem:[#allocation2 + $0x2a0] sm:$0xff] %vm316_vm4, %v2448_v13  ;;  %2486 = vst.msk [vmem:[#allocation2 + $0x2c8] sm:$0xff] %vm316_vm4, %v2450_v16 }
  0xfc   : > { %v2558_v28 = vld [vmem:[#allocation2 + $0x238] sm:$0xff]  ;;  %v1091_v29 = vpop.permute.xlu0 %1090  ;;  %v647_v40 = vpop.permute.xlu1 %646  ;;  %v2557_v46 = vld [vmem:[#allocation2 + $0x230] sm:$0xff]  ;;  %1452 = vst.msk [vmem:[#allocation2 + $0x88] sm:$0xff] %vm316_vm4, %v1304_v7 }
  0xfd   : > { %3063 = vmatmul.mubr.bf16.gmra.mrb[52].mxu0 %v2552_v24  ;;  %1128 = vst.msk [vmem:[#allocation2 + $0x288] sm:$0xff] %vm668_vm6, %v1091_v29  ;;  %685 = vst.msk [vmem:[#allocation2 + $0x280] sm:$0xff] %vm668_vm6, %v647_v40 }
  0xfe   : > { %3070 = vmatprep.mubr.bf16.mxu0 %v2558_v28  ;;  %v2541_v28 = vld [vmem:[#allocation2 + $0x1b0] sm:$0xff] }
 0x100   : > { %v2563_v36 = vld [vmem:[#allocation2 + $0x260] sm:$0xff]  ;;  %v1093_v44 = vpop.permute.xlu0 %1092  ;;  %v649_v4 = vpop.permute.xlu1 %648  ;;  %v2562_v0 = vld [vmem:[#allocation2 + $0x258] sm:$0xff] }
 0x101   : > { %1129 = vst.msk [vmem:[#allocation2 + $0x2b0] sm:$0xff] %vm668_vm6, %v1093_v44  ;;  %686 = vst.msk [vmem:[#allocation2 + $0x2a8] sm:$0xff] %vm668_vm6, %v649_v4  ;;  %v2561_v43 = vld [vmem:[#allocation2 + $0x250] sm:$0xff] }
 0x102   : > { %4066 = vmatmul.mubr.msk.bf16.vlgmr.msra.gmra.mrb[52].mxu1 %vm316_vm4, %v2496_v37  ;;  %v2571_v49 = vld [vmem:[#allocation2 + $0x2a0] sm:$0xff]  ;;  %v2576_v47 = vld [vmem:[#allocation2 + $0x2c8] sm:$0xff] }
 0x103   : > { %4069 = vmatprep.mubr.msk.bf16.mxu1 %vm316_vm4, %v2501_v48  ;;  %v2566_v48 = vld [vmem:[#allocation2 + $0x278] sm:$0xff] }
 0x104   : > { %v2568_v15 = vld [vmem:[#allocation2 + $0x288] sm:$0xff]  ;;  %v1636_v30 = vpop.permute.xlu1 %1635  ;;  %v2212_v17 = vpop.permute.xlu0 %2211  ;;  %v2567_v18 = vld [vmem:[#allocation2 + $0x280] sm:$0xff] }
 0x105   : > { %3071 = vmatmul.mubr.bf16.gmra.mrb[56].mxu0 %v2557_v46  ;;  %1689 = vst.msk [vmem:[#allocation2 + $0x10] sm:$0xff] %vm668_vm6, %v1636_v30  ;;  %2265 = vst.msk [vmem:[#allocation2 + $0x18] sm:$0xff] %vm668_vm6, %v2212_v17 }
 0x106   : > { %3078 = vmatprep.mubr.bf16.mxu0 %v2563_v36 }
 0x108   : > { %v2573_v19 = vld [vmem:[#allocation2 + $0x2b0] sm:$0xff]  ;;  %v2572_v24 = vld [vmem:[#allocation2 + $0x2a8] sm:$0xff] }
 0x109   : > { %v1638_v20 = vpop.permute.xlu1 %1637 }
 0x10a   : > { %4070 = vmatmul.mubr.msk.bf16.gmra.mrb[56].mxu1 %vm316_vm4, %v2506_v5  ;;  %1690 = vst.msk [vmem:[#allocation2 + $0x38] sm:$0xff] %vm668_vm6, %v1638_v20  ;;  %v5507_v5 = vld [vmem:[%s5748_s2] ss:$0 sm:$0xff] }
 0x10b   : > { %4073 = vmatprep.mubr.msk.bf16.mxu1 %vm316_vm4, %v2511_v14 }
 0x10c   : > { %v2490_v25 = vld [vmem:[#allocation2 + $0x18] sm:$0xff]  ;;  %v2489_v29 = vld [vmem:[#allocation2 + $0x10] sm:$0xff] }
 0x10d   : > { %3079 = vmatmul.mubr.bf16.gmra.mrb[60].mxu0 %v2562_v0 }
 0x10e   : > { %3086 = vmatprep.mubr.bf16.mxu0 %v2568_v15  ;;  %v2214_v22 = vpop.permute.xlu0 %2213 }
 0x10f   : > { %2266 = vst.msk [vmem:[#allocation2 + $0x40] sm:$0xff] %vm668_vm6, %v2214_v22 }
 0x111   : > { %v2494_v32 = vld [vmem:[#allocation2 + $0x38] sm:$0xff] }
 0x112   : > { %4074 = vmatmul.mubr.msk.bf16.gmra.mrb[60].mxu1 %vm316_vm4, %v2516_v1  ;;  %v1640_v27 = vpop.permute.xlu1 %1639 }
 0x113   : > { %4077 = vmatprep.mubr.msk.bf16.mxu1 %vm316_vm4, %v2521_v6  ;;  %1691 = vst.msk [vmem:[#allocation2 + $0x60] sm:$0xff] %vm668_vm6, %v1640_v27 }
 0x115   : > { %3087 = vmatmul.mubr.bf16.gmra.mrb[64].mxu0 %v2567_v18  ;;  %v2216_v33 = vpop.permute.xlu0 %2215 }
 0x116   : > { %3094 = vmatprep.mubr.bf16.mxu0 %v2573_v19  ;;  %v2495_v35 = vld [vmem:[#allocation2 + $0x40] sm:$0xff]  ;;  %2267 = vst.msk [vmem:[#allocation2 + $0x68] sm:$0xff] %vm668_vm6, %v2216_v33 }
 0x11a   : > { %4078 = vmatmul.mubr.msk.bf16.gmra.mrb[64].mxu1 %vm316_vm4, %v2526_v21  ;;  %v2499_v45 = vld [vmem:[#allocation2 + $0x60] sm:$0xff] }
 0x11b   : > { %4081 = vmatprep.mubr.msk.bf16.mxu1 %vm316_vm4, %v2531_v23 }
 0x11d   : > { %3095 = vmatmul.mubr.bf16.gmra.mrb[68].mxu0 %v2572_v24  ;;  %v1642_v37 = vpop.permute.xlu1 %1641  ;;  %v2500_v9 = vld [vmem:[#allocation2 + $0x68] sm:$0xff] }
 0x11e   : > { %3135 = vmatprep.mubr.bf16.mxu0 %v2490_v25  ;;  %1692 = vst.msk [vmem:[#allocation2 + $0x88] sm:$0xff] %vm668_vm6, %v1642_v37  ;;  %v2218_v40 = vpop.permute.xlu0 %2217 }
 0x11f   : > { %2268 = vst.msk [vmem:[#allocation2 + $0x90] sm:$0xff] %vm668_vm6, %v2218_v40 }
 0x121   : > { %v1644_v31 = vpop.permute.xlu1 %1643 }
 0x122   : > { %4082 = vmatmul.mubr.msk.bf16.gmra.mrb[68].mxu1 %vm316_vm4, %v2536_v26  ;;  %1693 = vst.msk [vmem:[#allocation2 + $0xb0] sm:$0xff] %vm668_vm6, %v1644_v31  ;;  %v2220_v34 = vpop.permute.xlu0 %2219 }
 0x123   : > { %4085 = vmatprep.mubr.msk.bf16.mxu1 %vm316_vm4, %v2541_v28  ;;  %2269 = vst.msk [vmem:[#allocation2 + $0xb8] sm:$0xff] %vm668_vm6, %v2220_v34 }
 0x125   : > { %3136 = vmatmul.mubr.bf16.vlgmr.msra.gmra.mrb[0].mxu0 %v2489_v29  ;;  %v2504_v51 = vld [vmem:[#allocation2 + $0x88] sm:$0xff] }
 0x126   : > { %3143 = vmatprep.mubr.bf16.mxu0 %v2495_v35  ;;  %v2505_v46 = vld [vmem:[#allocation2 + $0x90] sm:$0xff] }
 0x129   : > { %v2509_v55 = vld [vmem:[#allocation2 + $0xb0] sm:$0xff] }
 0x12a   : > { %4086 = vmatmul.mubr.msk.bf16.gmra.mrb[72].mxu1 %vm316_vm4, %v2546_v38  ;;  %v2510_v52 = vld [vmem:[#allocation2 + $0xb8] sm:$0xff] }
 0x12b   : > { %4089 = vmatprep.mubr.msk.bf16.mxu1 %vm316_vm4, %v2551_v39 }
 0x12d   : > { %3144 = vmatmul.mubr.bf16.gmra.mrb[4].mxu0 %v2494_v32 }
 0x12e   : > { %3151 = vmatprep.mubr.bf16.mxu0 %v2500_v9 }
 0x132   : > { %4090 = vmatmul.mubr.msk.bf16.gmra.mrb[76].mxu1 %vm316_vm4, %v2556_v41 }
 0x133   : > { %4093 = vmatprep.mubr.msk.bf16.mxu1 %vm316_vm4, %v2561_v43 }
 0x135   : > { %3152 = vmatmul.mubr.bf16.gmra.mrb[8].mxu0 %v2499_v45 }
 0x136   : > { %3159 = vmatprep.mubr.bf16.mxu0 %v2505_v46 }
 0x13a   : > { %4094 = vmatmul.mubr.msk.bf16.gmra.mrb[80].mxu1 %vm316_vm4, %v2566_v48 }
 0x13b   : > { %4097 = vmatprep.mubr.msk.bf16.mxu1 %vm316_vm4, %v2571_v49 }
 0x13d   : > { %3160 = vmatmul.mubr.bf16.gmra.mrb[12].mxu0 %v2504_v51 }
 0x13e   : > { %3167 = vmatprep.mubr.bf16.mxu0 %v2510_v52 }
 0x142   : > { %4098 = vmatmul.mubr.msk.bf16.gmra.mrb[84].mxu1 %vm316_vm4, %v2576_v47 }
 0x145   : > { %3168 = vmatmul.mubr.bf16.gmra.mrb[16].mxu0 %v2509_v55 }
 0x16d   : > { %v3177_v42 = vpop.f32.mrb[0].mxu1 }
 0x16e   : > { %v3179_v36 = vpop.f32.mrb[1].mxu1 }
 0x16f   : > { %v3180_v44 = vpop.f32.mrb[2].mxu1 }
 0x170   : > { %v3182_v56 = vpop.f32.mrb[3].mxu1 }
 0x175   : > { %v3185_v58 = vpop.f32.mrb[4].mxu1 }
 0x176   : > { %v3187_v50 = vpop.f32.mrb[5].mxu1 }
 0x177   : > { %v3188_v54 = vpop.f32.mrb[6].mxu1 }
 0x178   : > { %v3190_v59 = vpop.f32.mrb[7].mxu1 }
 0x17d   : > { %v3193_v60 = vpop.f32.mrb[8].mxu1 }
 0x17e   : > { %v3195_v53 = vpop.f32.mrb[9].mxu1 }
 0x17f   : > { %v3196_v61 = vpop.f32.mrb[10].mxu1 }
 0x180   : > { %v3198_v4 = vpop.f32.mrb[11].mxu1 }
 0x185   : > { %v3201_v62 = vpop.f32.mrb[12].mxu1 }
 0x186   : > { %v3203_v12 = vpop.f32.mrb[13].mxu1 }
 0x187   : > { %v3204_v63 = vpop.f32.mrb[14].mxu1 }
 0x188   : > { %v3206_v2 = vpop.f32.mrb[15].mxu1 }
 0x18d   : > { %v3209_v3 = vpop.f32.mrb[16].mxu1 }
 0x18e   : > { %v3211_v7 = vpop.f32.mrb[17].mxu1 }
 0x18f   : > { %v3212_v10 = vpop.f32.mrb[18].mxu1 }
 0x190   : > { %v3000_v8 = vpop.f32.mrb[20].mxu0  ;;  %v3214_v57 = vpop.f32.mrb[19].mxu1 }
 0x191   : > { %v3001_v11 = vadd.f32 %v5507_v5, %v3000_v8  ;;  %v3002_v14 = vpop.f32.mrb[21].mxu0 }
 0x192   : > { %v3003_v0 = vpop.f32.mrb[22].mxu0 }
 0x193   : > { %v3004_v13 = vadd.f32 %v5507_v5, %v3003_v0  ;;  %v3005_v15 = vpop.f32.mrb[23].mxu0  ;;  %v5511_v16 = vadd.f32 %v3177_v42, %v3001_v11 }
 0x195   : > { %v5513_v30 = vadd.f32 %v3180_v44, %v3004_v13  ;;  %v3217_v1 = vpop.f32.mrb[20].mxu1 }
 0x196   : > { %v3219_v6 = vpop.f32.mrb[21].mxu1 }
 0x197   : > { %v3220_v18 = vpop.f32.mrb[22].mxu1 }
 0x198   : > { %v3008_v17 = vpop.f32.mrb[24].mxu0  ;;  %v3222_v21 = vpop.f32.mrb[23].mxu1 }
 0x199   : > { %v3009_v19 = vadd.f32 %v5507_v5, %v3008_v17  ;;  %v3010_v20 = vpop.f32.mrb[25].mxu0 }
 0x19a   : > { %v3011_v23 = vpop.f32.mrb[26].mxu0 }
 0x19b   : > { %v3012_v22 = vadd.f32 %v5507_v5, %v3011_v23  ;;  %v3013_v24 = vpop.f32.mrb[27].mxu0  ;;  %v5517_v25 = vadd.f32 %v3185_v58, %v3009_v19 }
 0x19d   : > { %v5519_v26 = vadd.f32 %v3188_v54, %v3012_v22  ;;  %v3225_v27 = vpop.f32.mrb[24].mxu1 }
 0x19e   : > { %v3227_v28 = vpop.f32.mrb[25].mxu1 }
 0x19f   : > { %v3228_v33 = vpop.f32.mrb[26].mxu1 }
 0x1a0   : > { %v3016_v29 = vpop.f32.mrb[28].mxu0  ;;  %v3230_v37 = vpop.f32.mrb[27].mxu1 }
 0x1a1   : > { %v3017_v35 = vadd.f32 %v5507_v5, %v3016_v29  ;;  %v3018_v38 = vpop.f32.mrb[29].mxu0 }
 0x1a2   : > { %v3019_v39 = vpop.f32.mrb[30].mxu0 }
 0x1a3   : > { %v3020_v32 = vadd.f32 %v5507_v5, %v3019_v39  ;;  %v3021_v40 = vpop.f32.mrb[31].mxu0  ;;  %v5523_v9 = vadd.f32 %v3193_v60, %v3017_v35 }
 0x1a5   : > { %v5525_v31 = vadd.f32 %v3196_v61, %v3020_v32  ;;  %v3233_v34 = vpop.f32.mrb[28].mxu1 }
 0x1a6   : > { %v3235_v41 = vpop.f32.mrb[29].mxu1 }
 0x1a7   : > { %v3236_v45 = vpop.f32.mrb[30].mxu1 }
 0x1a8   : > { %v3024_v43 = vpop.f32.mrb[32].mxu0  ;;  %v3238_v49 = vpop.f32.mrb[31].mxu1 }
 0x1a9   : > { %v3025_v46 = vadd.f32 %v5507_v5, %v3024_v43  ;;  %v3026_v48 = vpop.f32.mrb[33].mxu0 }
 0x1aa   : > { %v3027_v51 = vpop.f32.mrb[34].mxu0 }
 0x1ab   : > { %v3028_v52 = vadd.f32 %v5507_v5, %v3027_v51  ;;  %v3029_v47 = vpop.f32.mrb[35].mxu0  ;;  %v5529_v55 = vadd.f32 %v3201_v62, %v3025_v46 }
 0x1ad   : > { %v5531_v42 = vadd.f32 %v3204_v63, %v3028_v52  ;;  %v3241_v36 = vpop.f32.mrb[32].mxu1 }
 0x1ae   : > { %v3243_v44 = vpop.f32.mrb[33].mxu1 }
 0x1af   : > { %v3244_v58 = vpop.f32.mrb[34].mxu1 }
 0x1b0   : > { %v3032_v56 = vpop.f32.mrb[36].mxu0  ;;  %v3246_v59 = vpop.f32.mrb[35].mxu1 }
 0x1b1   : > { %v3033_v50 = vadd.f32 %v5507_v5, %v3032_v56  ;;  %v3034_v54 = vpop.f32.mrb[37].mxu0 }
 0x1b2   : > { %v3035_v60 = vpop.f32.mrb[38].mxu0 }
 0x1b3   : > { %v3036_v53 = vadd.f32 %v5507_v5, %v3035_v60  ;;  %v3037_v61 = vpop.f32.mrb[39].mxu0  ;;  %v5535_v4 = vadd.f32 %v3209_v3, %v3033_v50 }
 0x1b5   : > { %v5537_v12 = vadd.f32 %v3212_v10, %v3036_v53  ;;  %v3249_v62 = vpop.f32.mrb[36].mxu1 }
 0x1b6   : > { %v3251_v2 = vpop.f32.mrb[37].mxu1 }
 0x1b7   : > { %v3252_v7 = vpop.f32.mrb[38].mxu1 }
 0x1b8   : > { %v3040_v63 = vpop.f32.mrb[40].mxu0  ;;  %v3254_v14 = vpop.f32.mrb[39].mxu1 }
 0x1b9   : > { %v3041_v8 = vadd.f32 %v5507_v5, %v3040_v63  ;;  %v3042_v11 = vpop.f32.mrb[41].mxu0 }
 0x1ba   : > { %v3043_v57 = vpop.f32.mrb[42].mxu0 }
 0x1bb   : > { %v3044_v0 = vadd.f32 %v5507_v5, %v3043_v57  ;;  %v3045_v13 = vpop.f32.mrb[43].mxu0  ;;  %v5541_v15 = vadd.f32 %v3217_v1, %v3041_v8 }
 0x1bd   : > { %v5543_v6 = vadd.f32 %v3220_v18, %v3044_v0  ;;  %v3257_v3 = vpop.f32.mrb[40].mxu1 }
 0x1be   : > { %v3259_v17 = vpop.f32.mrb[41].mxu1 }
 0x1bf   : > { %v3260_v19 = vpop.f32.mrb[42].mxu1 }
 0x1c0   : > { %v3048_v10 = vpop.f32.mrb[44].mxu0  ;;  %v3262_v23 = vpop.f32.mrb[43].mxu1 }
 0x1c1   : > { %v3049_v20 = vadd.f32 %v5507_v5, %v3048_v10  ;;  %v3050_v21 = vpop.f32.mrb[45].mxu0 }
 0x1c2   : > { %v3051_v22 = vpop.f32.mrb[46].mxu0 }
 0x1c3   : > { %v3052_v24 = vadd.f32 %v5507_v5, %v3051_v22  ;;  %v3053_v28 = vpop.f32.mrb[47].mxu0  ;;  %v5547_v29 = vadd.f32 %v3225_v27, %v3049_v20 }
 0x1c5   : > { %v5549_v35 = vadd.f32 %v3228_v33, %v3052_v24  ;;  %v5551_v1 = vpop.f32.mrb[44].mxu1 }
 0x1c6   : > { %v3267_v18 = vpop.f32.mrb[45].mxu1 }
 0x1c7   : > { %v5553_v37 = vpop.f32.mrb[46].mxu1 }
 0x1c8   : > { %v3056_v38 = vpop.f32.mrb[48].mxu0  ;;  %v3270_v40 = vpop.f32.mrb[47].mxu1 }
 0x1c9   : > { %v3057_v39 = vadd.f32 %v5507_v5, %v3056_v38  ;;  %v3058_v32 = vpop.f32.mrb[49].mxu0 }
 0x1ca   : > { %v3059_v41 = vpop.f32.mrb[50].mxu0 }
 0x1cb   : > { %v3060_v43 = vadd.f32 %v5507_v5, %v3059_v41  ;;  %v3061_v46 = vpop.f32.mrb[51].mxu0  ;;  %v5557_v48 = vadd.f32 %v3233_v34, %v3057_v39 }
 0x1cd   : > { %v5559_v27 = vadd.f32 %v3236_v45, %v3060_v43  ;;  %v5561_v33 = vpop.f32.mrb[48].mxu1 }
 0x1ce   : > { %v3275_v49 = vpop.f32.mrb[49].mxu1 }
 0x1cf   : > { %v5563_v52 = vpop.f32.mrb[50].mxu1 }
 0x1d0   : > { %v3064_v51 = vpop.f32.mrb[52].mxu0  ;;  %v3278_v56 = vpop.f32.mrb[51].mxu1 }
 0x1d1   : > { %v3065_v47 = vadd.f32 %v5507_v5, %v3064_v51  ;;  %v3066_v44 = vpop.f32.mrb[53].mxu0 }
 0x1d2   : > { %v3067_v50 = vpop.f32.mrb[54].mxu0 }
 0x1d3   : > { %v3068_v54 = vadd.f32 %v5507_v5, %v3067_v50  ;;  %v3069_v59 = vpop.f32.mrb[55].mxu0  ;;  %v5567_v60 = vadd.f32 %v3241_v36, %v3065_v47 }
 0x1d5   : > { %v5569_v34 = vadd.f32 %v3244_v58, %v3068_v54  ;;  %v5571_v45 = vpop.f32.mrb[52].mxu1 }
 0x1d6   : > { %v5573_v53 = vpop.f32.mrb[53].mxu1 }
 0x1d7   : > { %v5575_v2 = vpop.f32.mrb[54].mxu1 }
 0x1d8   : > { %v3072_v61 = vpop.f32.mrb[56].mxu0  ;;  %v5578_v11 = vpop.f32.mrb[55].mxu1 }
 0x1d9   : > { %v3073_v63 = vadd.f32 %v5507_v5, %v3072_v61  ;;  %v3074_v8 = vpop.f32.mrb[57].mxu0 }
 0x1da   : > { %v3075_v14 = vpop.f32.mrb[58].mxu0 }
 0x1db   : > { %v3076_v57 = vadd.f32 %v5507_v5, %v3075_v14  ;;  %v3077_v36 = vpop.f32.mrb[59].mxu0  ;;  %v5581_v0 = vadd.f32 %v3249_v62, %v3073_v63 }
 0x1dd   : > { %v5583_v58 = vadd.f32 %v3252_v7, %v3076_v57  ;;  %v5585_v13 = vpop.f32.mrb[56].mxu1 }
 0x1de   : > { %v5587_v17 = vpop.f32.mrb[57].mxu1 }
 0x1df   : > { %v5589_v20 = vpop.f32.mrb[58].mxu1 }
 0x1e0   : > { %v3080_v10 = vpop.f32.mrb[60].mxu0  ;;  %v5592_v22 = vpop.f32.mrb[59].mxu1 }
 0x1e1   : > { %v3081_v21 = vadd.f32 %v5507_v5, %v3080_v10  ;;  %v3082_v23 = vpop.f32.mrb[61].mxu0 }
 0x1e2   : > { %v3083_v24 = vpop.f32.mrb[62].mxu0 }
 0x1e3   : > { %v3084_v28 = vadd.f32 %v5507_v5, %v3083_v24  ;;  %v3085_v18 = vpop.f32.mrb[63].mxu0  ;;  %v5595_v62 = vadd.f32 %v3257_v3, %v3081_v21 }
 0x1e5   : > { %v5597_v7 = vadd.f32 %v3260_v19, %v3084_v28  ;;  %v4075_v38 = vpop.f32.mrb[60].mxu1 }
 0x1e6   : > { %v3355_v39 = vadd.f32 %v4075_v38, %v5511_v16  ;;  %v5601_v32 = vpop.f32.mrb[61].mxu1 }
 0x1e7   : > { %v4076_v40 = vpop.f32.mrb[62].mxu1 }
 0x1e8   : > { %v3088_v41 = vpop.f32.mrb[64].mxu0  ;;  %v3467_v43 = vmax.f32 %v3355_v39, 0.0  ;;  %v3358_v46 = vadd.f32 %v4076_v40, %v5513_v30  ;;  %v5605_v47 = vpop.f32.mrb[63].mxu1 }
 0x1e9   : > { %v3089_v49 = vadd.f32 %v5507_v5, %v3088_v41  ;;  %v3090_v51 = vpop.f32.mrb[65].mxu0 }
 0x1ea   : > { %v3091_v16 = vpop.f32.mrb[66].mxu0  ;;  %v4009_v3 = vpack.c.bf16 %v3467_v43, %v3467_v43  ;;  %v3468_v19 = vmax.f32 %v3358_v46, 0.0 }
 0x1eb   : > { %v3092_v44 = vadd.f32 %v5507_v5, %v3091_v16  ;;  %v3093_v56 = vpop.f32.mrb[67].mxu0  ;;  %v5614_v30 = vadd.f32 %v5551_v1, %v3089_v49 }
 0x1ec   : > { %3648 = vst.msk [vmem:[%s5610_s7 + $0x28] sm:$0xf] %vm3637_vm8, %v4009_v3  ;;  %v4010_v50 = vpack.c.bf16 %v3468_v19, %v3468_v19 }
 0x1ed   : > { %v5619_v54 = vadd.f32 %v5553_v37, %v3092_v44  ;;  %v4079_v59 = vpop.f32.mrb[64].mxu1 }
 0x1ee   : > { %3649 = vst.msk [vmem:[%s5610_s7 + $0x2c] sm:$0xf] %vm3637_vm8, %v4010_v50  ;;  %v3371_v61 = vadd.f32 %v4079_v59, %v5523_v9  ;;  %v3362_v63 = vpop.f32.mrb[65].mxu1 }
 0x1ef   : > { %v3363_v8 = vadd.f32 %v3362_v63, %v5517_v25  ;;  %v4080_v14 = vpop.f32.mrb[66].mxu1 }
 0x1f0   : > { %v3096_v57 = vpop.f32.mrb[68].mxu0  ;;  %v3471_v36 = vmax.f32 %v3371_v61, 0.0  ;;  %v3374_v1 = vadd.f32 %v4080_v14, %v5525_v31  ;;  %v3365_v21 = vpop.f32.mrb[67].mxu1 }
 0x1f1   : > { %v3097_v10 = vadd.f32 %v5507_v5, %v3096_v57  ;;  %v3098_v37 = vpop.f32.mrb[69].mxu0  ;;  %v3469_v23 = vmax.f32 %v3363_v8, 0.0  ;;  %v3366_v24 = vadd.f32 %v3365_v21, %v5519_v26 }
 0x1f2   : > { %v3099_v28 = vpop.f32.mrb[70].mxu0  ;;  %v4013_v9 = vpack.c.bf16 %v3471_v36, %v3471_v36  ;;  %v3472_v18 = vmax.f32 %v3374_v1, 0.0 }
 0x1f3   : > { %v3100_v25 = vadd.f32 %v5507_v5, %v3099_v28  ;;  %v3101_v38 = vpop.f32.mrb[71].mxu0  ;;  %v5630_v39 = vadd.f32 %v5561_v33, %v3097_v10  ;;  %v4011_v31 = vpack.c.bf16 %v3469_v23, %v3469_v23  ;;  %v3470_v40 = vmax.f32 %v3366_v24, 0.0 }
 0x1f4   : > { %3652 = vst.msk [vmem:[%s5610_s7 + $0x38] sm:$0xf] %vm3637_vm8, %v4013_v9  ;;  %v4014_v41 = vpack.c.bf16 %v3472_v18, %v3472_v18 }
 0x1f5   : > { %v5635_v43 = vadd.f32 %v5563_v52, %v3100_v25  ;;  %3650 = vst.msk [vmem:[%s5610_s7 + $0x30] sm:$0xf] %vm3637_vm8, %v4011_v31  ;;  %v4012_v26 = vpack.c.bf16 %v3470_v40, %v3470_v40  ;;  %v4083_v46 = vpop.f32.mrb[68].mxu1 }
 0x1f6   : > { %3653 = vst.msk [vmem:[%s5610_s7 + $0x3c] sm:$0xf] %vm3637_vm8, %v4014_v41  ;;  %v3387_v49 = vadd.f32 %v4083_v46, %v5535_v4  ;;  %v3378_v51 = vpop.f32.mrb[69].mxu1 }
 0x1f7   : > { %3651 = vst.msk [vmem:[%s5610_s7 + $0x34] sm:$0xf] %vm3637_vm8, %v4012_v26  ;;  %v3379_v33 = vadd.f32 %v3378_v51, %v5529_v55  ;;  %v4084_v16 = vpop.f32.mrb[70].mxu1 }
 0x1f8   : > { %v3137_v3 = vpop.f32.mrb[0].mxu0  ;;  %v3475_v19 = vmax.f32 %v3387_v49, 0.0  ;;  %v3390_v52 = vadd.f32 %v4084_v16, %v5537_v12  ;;  %v3381_v56 = vpop.f32.mrb[71].mxu1 }
 0x1f9   : > { %v4133_v44 = vadd.f32 %v5507_v5, %v3137_v3  ;;  %v3139_v50 = vpop.f32.mrb[1].mxu0  ;;  %v3473_v59 = vmax.f32 %v3379_v33, 0.0  ;;  %v3382_v61 = vadd.f32 %v3381_v56, %v5531_v42 }
 0x1fa   : > { %v3140_v4 = vpop.f32.mrb[2].mxu0  ;;  %v4017_v63 = vpack.c.bf16 %v3475_v19, %v3475_v19  ;;  %v3476_v8 = vmax.f32 %v3390_v52, 0.0 }
 0x1fb   : > { %v3315_v55 = vadd.f32 %v4133_v44, %v5573_v53  ;;  %v4134_v14 = vadd.f32 %v5507_v5, %v3140_v4  ;;  %v3142_v57 = vpop.f32.mrb[3].mxu0  ;;  %v4015_v36 = vpack.c.bf16 %v3473_v59, %v3473_v59  ;;  %v3474_v12 = vmax.f32 %v3382_v61, 0.0 }
 0x1fc   : > { %3656 = vst.msk [vmem:[%s5610_s7 + $0x48] sm:$0xf] %vm3637_vm8, %v4017_v63  ;;  %v4018_v1 = vpack.c.bf16 %v3476_v8, %v3476_v8 }
 0x1fd   : > { %v3457_v10 = vmax.f32 %v3315_v55, 0.0  ;;  %v3318_v21 = vadd.f32 %v4134_v14, %v5578_v11  ;;  %3654 = vst.msk [vmem:[%s5610_s7 + $0x40] sm:$0xf] %vm3637_vm8, %v4015_v36  ;;  %v4016_v42 = vpack.c.bf16 %v3474_v12, %v3474_v12  ;;  %v4087_v37 = vpop.f32.mrb[72].mxu1 }
 0x1fe   : > { %3657 = vst.msk [vmem:[%s5610_s7 + $0x4c] sm:$0xf] %vm3637_vm8, %v4018_v1  ;;  %v3403_v24 = vadd.f32 %v4087_v37, %v5547_v29  ;;  %v3394_v28 = vpop.f32.mrb[73].mxu1 }
 0x1ff   : > { %v3999_v53 = vpack.c.bf16 %v3457_v10, %v3457_v10  ;;  %v3458_v23 = vmax.f32 %v3318_v21, 0.0  ;;  %3655 = vst.msk [vmem:[%s5610_s7 + $0x44] sm:$0xf] %vm3637_vm8, %v4016_v42  ;;  %v3395_v9 = vadd.f32 %v3394_v28, %v5541_v15  ;;  %v4088_v18 = vpop.f32.mrb[74].mxu1 }
 0x200   : > { %v3145_v25 = vpop.f32.mrb[4].mxu0  ;;  %v3479_v38 = vmax.f32 %v3403_v24, 0.0  ;;  %v3406_v31 = vadd.f32 %v4088_v18, %v5549_v35  ;;  %v3397_v41 = vpop.f32.mrb[75].mxu1 }
 0x201   : > { %3638 = vst.msk [vmem:[%s5610_s7] sm:$0xf] %vm3637_vm8, %v3999_v53  ;;  %v4000_v11 = vpack.c.bf16 %v3458_v23, %v3458_v23  ;;  %v4135_v40 = vadd.f32 %v5507_v5, %v3145_v25  ;;  %v3147_v26 = vpop.f32.mrb[5].mxu0  ;;  %v3477_v29 = vmax.f32 %v3395_v9, 0.0  ;;  %v3398_v46 = vadd.f32 %v3397_v41, %v5543_v6 }
 0x202   : > { %v3148_v49 = vpop.f32.mrb[6].mxu0  ;;  %v4021_v15 = vpack.c.bf16 %v3479_v38, %v3479_v38  ;;  %v3480_v51 = vmax.f32 %v3406_v31, 0.0 }
 0x203   : > { %3639 = vst.msk [vmem:[%s5610_s7 + $0x4] sm:$0xf] %vm3637_vm8, %v4000_v11  ;;  %v3323_v33 = vadd.f32 %v4135_v40, %v5571_v45  ;;  %v4136_v16 = vadd.f32 %v5507_v5, %v3148_v49  ;;  %v3150_v35 = vpop.f32.mrb[7].mxu0  ;;  %v4019_v3 = vpack.c.bf16 %v3477_v29, %v3477_v29  ;;  %v3478_v19 = vmax.f32 %v3398_v46, 0.0 }
 0x204   : > { %3660 = vst.msk [vmem:[%s5610_s7 + $0x58] sm:$0xf] %vm3637_vm8, %v4021_v15  ;;  %v4022_v52 = vpack.c.bf16 %v3480_v51, %v3480_v51 }
 0x205   : > { %v3459_v44 = vmax.f32 %v3323_v33, 0.0  ;;  %v3326_v6 = vadd.f32 %v4136_v16, %v5575_v2  ;;  %3658 = vst.msk [vmem:[%s5610_s7 + $0x50] sm:$0xf] %vm3637_vm8, %v4019_v3  ;;  %v4020_v56 = vpack.c.bf16 %v3478_v19, %v3478_v19  ;;  %v4091_v50 = vpop.f32.mrb[76].mxu1 }
 0x206   : > { %3661 = vst.msk [vmem:[%s5610_s7 + $0x5c] sm:$0xf] %vm3637_vm8, %v4022_v52  ;;  %v3419_v61 = vadd.f32 %v4091_v50, %v5567_v60  ;;  %v3410_v4 = vpop.f32.mrb[77].mxu1 }
 0x207   : > { %v4001_v45 = vpack.c.bf16 %v3459_v44, %v3459_v44  ;;  %v3460_v59 = vmax.f32 %v3326_v6, 0.0  ;;  %3659 = vst.msk [vmem:[%s5610_s7 + $0x54] sm:$0xf] %vm3637_vm8, %v4020_v56  ;;  %v3411_v63 = vadd.f32 %v3410_v4, %v5557_v48  ;;  %v4092_v8 = vpop.f32.mrb[78].mxu1 }
 0x208   : > { %v3153_v55 = vpop.f32.mrb[8].mxu0  ;;  %v3483_v14 = vmax.f32 %v3419_v61, 0.0  ;;  %v3422_v57 = vadd.f32 %v4092_v8, %v5569_v34  ;;  %v3413_v12 = vpop.f32.mrb[79].mxu1 }
 0x209   : > { %3640 = vst.msk [vmem:[%s5610_s7 + $0x8] sm:$0xf] %vm3637_vm8, %v4001_v45  ;;  %v4002_v2 = vpack.c.bf16 %v3460_v59, %v3460_v59  ;;  %v4137_v36 = vadd.f32 %v5507_v5, %v3153_v55  ;;  %v3155_v1 = vpop.f32.mrb[9].mxu0  ;;  %v3481_v60 = vmax.f32 %v3411_v63, 0.0  ;;  %v3414_v10 = vadd.f32 %v3413_v12, %v5559_v27 }
 0x20a   : > { %v3156_v21 = vpop.f32.mrb[10].mxu0  ;;  %v4025_v48 = vpack.c.bf16 %v3483_v14, %v3483_v14  ;;  %v3484_v42 = vmax.f32 %v3422_v57, 0.0 }
 0x20b   : > { %3641 = vst.msk [vmem:[%s5610_s7 + $0xc] sm:$0xf] %vm3637_vm8, %v4002_v2  ;;  %v3331_v37 = vadd.f32 %v4137_v36, %v5587_v17  ;;  %v4138_v53 = vadd.f32 %v5507_v5, %v3156_v21  ;;  %v3158_v34 = vpop.f32.mrb[11].mxu0  ;;  %v4023_v23 = vpack.c.bf16 %v3481_v60, %v3481_v60  ;;  %v3482_v24 = vmax.f32 %v3414_v10, 0.0 }
 0x20c   : > { %3664 = vst.msk [vmem:[%s5610_s7 + $0x68] sm:$0xf] %vm3637_vm8, %v4025_v48  ;;  %v4026_v28 = vpack.c.bf16 %v3484_v42, %v3484_v42 }
 0x20d   : > { %v3461_v9 = vmax.f32 %v3331_v37, 0.0  ;;  %v3334_v27 = vadd.f32 %v4138_v53, %v5592_v22  ;;  %3662 = vst.msk [vmem:[%s5610_s7 + $0x60] sm:$0xf] %vm3637_vm8, %v4023_v23  ;;  %v4024_v18 = vpack.c.bf16 %v3482_v24, %v3482_v24  ;;  %v4095_v25 = vpop.f32.mrb[80].mxu1 }
 0x20e   : > { %3665 = vst.msk [vmem:[%s5610_s7 + $0x6c] sm:$0xf] %vm3637_vm8, %v4026_v28  ;;  %v3435_v38 = vadd.f32 %v4095_v25, %v5595_v62  ;;  %v3426_v31 = vpop.f32.mrb[81].mxu1 }
 0x20f   : > { %v4003_v17 = vpack.c.bf16 %v3461_v9, %v3461_v9  ;;  %v3462_v11 = vmax.f32 %v3334_v27, 0.0  ;;  %3663 = vst.msk [vmem:[%s5610_s7 + $0x64] sm:$0xf] %vm3637_vm8, %v4024_v18  ;;  %v3427_v40 = vadd.f32 %v3426_v31, %v5581_v0  ;;  %v4096_v41 = vpop.f32.mrb[82].mxu1 }
 0x210   : > { %v3161_v26 = vpop.f32.mrb[12].mxu0  ;;  %v3487_v29 = vmax.f32 %v3435_v38, 0.0  ;;  %v3438_v46 = vadd.f32 %v4096_v41, %v5597_v7  ;;  %v3429_v15 = vpop.f32.mrb[83].mxu1 }
 0x211   : > { %3642 = vst.msk [vmem:[%s5610_s7 + $0x10] sm:$0xf] %vm3637_vm8, %v4003_v17  ;;  %v4004_v22 = vpack.c.bf16 %v3462_v11, %v3462_v11  ;;  %v4139_v49 = vadd.f32 %v5507_v5, %v3161_v26  ;;  %v3163_v51 = vpop.f32.mrb[13].mxu0  ;;  %v3485_v62 = vmax.f32 %v3427_v40, 0.0  ;;  %v3430_v33 = vadd.f32 %v3429_v15, %v5583_v58 }
 0x212   : > { %v3164_v16 = vpop.f32.mrb[14].mxu0  ;;  %v4029_v0 = vpack.c.bf16 %v3487_v29, %v3487_v29  ;;  %v3488_v35 = vmax.f32 %v3438_v46, 0.0 }
 0x213   : > { %3643 = vst.msk [vmem:[%s5610_s7 + $0x14] sm:$0xf] %vm3637_vm8, %v4004_v22  ;;  %v3339_v3 = vadd.f32 %v4139_v49, %v5585_v13  ;;  %v4140_v19 = vadd.f32 %v5507_v5, %v3164_v16  ;;  %v3166_v7 = vpop.f32.mrb[15].mxu0  ;;  %v4027_v52 = vpack.c.bf16 %v3485_v62, %v3485_v62  ;;  %v3486_v44 = vmax.f32 %v3430_v33, 0.0 }
 0x214   : > { %3668 = vst.msk [vmem:[%s5610_s7 + $0x78] sm:$0xf] %vm3637_vm8, %v4029_v0  ;;  %v4030_v6 = vpack.c.bf16 %v3488_v35, %v3488_v35 }
 0x215   : > { %v3463_v56 = vmax.f32 %v3339_v3, 0.0  ;;  %v3342_v58 = vadd.f32 %v4140_v19, %v5589_v20  ;;  %3666 = vst.msk [vmem:[%s5610_s7 + $0x70] sm:$0xf] %vm3637_vm8, %v4027_v52  ;;  %v4028_v50 = vpack.c.bf16 %v3486_v44, %v3486_v44  ;;  %v4099_v45 = vpop.f32.mrb[84].mxu1 }
 0x216   : > { %3669 = vst.msk [vmem:[%s5610_s7 + $0x7c] sm:$0xf] %vm3637_vm8, %v4030_v6  ;;  %v3451_v61 = vadd.f32 %v4099_v45, %v5630_v39  ;;  %v3442_v4 = vpop.f32.mrb[85].mxu1 }
 0x217   : > { %v4005_v13 = vpack.c.bf16 %v3463_v56, %v3463_v56  ;;  %v3464_v59 = vmax.f32 %v3342_v58, 0.0  ;;  %3667 = vst.msk [vmem:[%s5610_s7 + $0x74] sm:$0xf] %vm3637_vm8, %v4028_v50  ;;  %v3443_v63 = vadd.f32 %v3442_v4, %v5614_v30  ;;  %v4100_v8 = vpop.f32.mrb[86].mxu1 }
 0x218   : > { %v3169_v55 = vpop.f32.mrb[16].mxu0  ;;  %v3491_v2 = vmax.f32 %v3451_v61, 0.0  ;;  %v3454_v14 = vadd.f32 %v4100_v8, %v5635_v43  ;;  %v3445_v36 = vpop.f32.mrb[87].mxu1 }
 0x219   : > { %3644 = vst.msk [vmem:[%s5610_s7 + $0x18] sm:$0xf] %vm3637_vm8, %v4005_v13  ;;  %v4006_v20 = vpack.c.bf16 %v3464_v59, %v3464_v59  ;;  %v4141_v57 = vadd.f32 %v5507_v5, %v3169_v55  ;;  %v3171_v12 = vpop.f32.mrb[17].mxu0  ;;  %v3489_v39 = vmax.f32 %v3443_v63, 0.0  ;;  %v3446_v1 = vadd.f32 %v3445_v36, %v5619_v54 }
 0x21a   : > { %v3172_v60 = vpop.f32.mrb[18].mxu0  ;;  %v4033_v30 = vpack.c.bf16 %v3491_v2, %v3491_v2  ;;  %v3492_v10 = vmax.f32 %v3454_v14, 0.0 }
 0x21b   : > { %3645 = vst.msk [vmem:[%s5610_s7 + $0x1c] sm:$0xf] %vm3637_vm8, %v4006_v20  ;;  %v3347_v21 = vadd.f32 %v4141_v57, %v5601_v32  ;;  %v4142_v43 = vadd.f32 %v5507_v5, %v3172_v60  ;;  %v3174_v48 = vpop.f32.mrb[19].mxu0  ;;  %v4031_v42 = vpack.c.bf16 %v3489_v39, %v3489_v39  ;;  %v3490_v37 = vmax.f32 %v3446_v1, 0.0 }
 0x21c   : > { %3672 = vst.msk [vmem:[%s5610_s7 + $0x88] sm:$0xf] %vm3637_vm8, %v4033_v30  ;;  %v4034_v53 = vpack.c.bf16 %v3492_v10, %v3492_v10 }
 0x21d   : > { %v3465_v54 = vmax.f32 %v3347_v21, 0.0  ;;  %v3350_v34 = vadd.f32 %v4142_v43, %v5605_v47  ;;  %3670 = vst.msk [vmem:[%s5610_s7 + $0x80] sm:$0xf] %vm3637_vm8, %v4031_v42  ;;  %v4032_v23 = vpack.c.bf16 %v3490_v37, %v3490_v37 }
 0x21e   : > { %3673 = vst.msk [vmem:[%s5610_s7 + $0x8c] sm:$0xf] %vm3637_vm8, %v4034_v53 }
 0x21f   : > { %v4007_v24 = vpack.c.bf16 %v3465_v54, %v3465_v54  ;;  %v3466_v28 = vmax.f32 %v3350_v34, 0.0  ;;  %3671 = vst.msk [vmem:[%s5610_s7 + $0x84] sm:$0xf] %vm3637_vm8, %v4032_v23 }
 0x221   : > { %3646 = vst.msk [vmem:[%s5610_s7 + $0x20] sm:$0xf] %vm3637_vm8, %v4007_v24  ;;  %v4008_v5 = vpack.c.bf16 %v3466_v28, %v3466_v28 }
 0x223   : > { %3647 = vst.msk [vmem:[%s5610_s7 + $0x24] sm:$0xf] %vm3637_vm8, %v4008_v5 }
 0x224 PF: > { %s13_s12 = sadd.s32 1, %s4455_s12  }
 0x225   : > { %p10_p4 = scmp.ge.s32.totalorder %s13_s12, 6  }
 0x227   :  { %12 = sbr.rel (!%p10_p4) target bundleno = 1 (0x1), region = 62 }

// kernel: combined_loss.13
= control target key start
LH: loop header
LB: loop body
LE: loop exit
PB: predicated region body
PF: predicated region fallthrough
CT: control target
= control target key end

     0   :  { %s1954_s12 = smov 0   ;;  %s2325_s0 = inlined_call_operand.vmem [shape: bf16[4,110,64], index: 0, kind: input, shape index: {}]   ;;  %s2326_s1 = inlined_call_operand.vmem [shape: bf16[576,128], index: 1, kind: input, shape index: {}]   ;;  %s2327_s2 = inlined_call_operand.vmem [shape: f32[1,128], index: 2, kind: input, shape index: {}]   ;;  %s2328_s3 = inlined_call_operand.vmem [shape: bf16[4,80,128], index: 3, kind: output, shape index: {}]  }
   0x1 LB: > { %s1531_s13 = sadd.s32 4294967295, %s1929_s12   ;;  %p1535_p0 = scmp.ge.s32.totalorder %s1929_s12, 1  ;;  %s1929_s12 = sphi %s1954_s12, %s13_s12  }
   0x2   : > { %p137_p1 = scmp.lt.s32.totalorder %s1929_s12, 5 }
   0x4   : > { %p138_p2 = pnand %p1535_p0, %p137_p1 }
   0x5   : > { %p161_p3 = scmp.lt.s32.totalorder (!%p138_p2), %s1531_s13, 3  ;;  %v1858_v0 = vld [vmem:[%s2326_s1 + $0x40] sm:$0xff] (!%p138_p2)   ;;  %v1860_v2 = vld [vmem:[%s2326_s1 + $0x48] sm:$0xff] (!%p138_p2)   ;;  %vm362_vm0 = vcmask (!%p138_p2), 1046528   ;;  %vm727_vm1 = vsmask.f32 (!%p138_p2), 5376 }
   0x6   : > { %141 = sbr.rel (%p138_p2) target bundleno = 427 (0x1ab), region = 32  ;;  %v1859_v1 = vld [vmem:[%s2326_s1] sm:$0xff] (!%p138_p2)   ;;  %1684 = vmatprep.subr.bf16.mxu0 (!%p138_p2), %v1858_v0  ;;  %v1861_v3 = vld [vmem:[%s2326_s1 + $0x8] sm:$0xff] (!%p138_p2)   ;;  %vm257_vm2 = vsmask.f32 (!%p138_p2), 7424  ;;  %vm596_vm3 = vcmask (!%p138_p2), 1045504  }
   0x7   : > { %1685 = vmatpush3.bf16.msra.mxu0 (!%p138_p2), %v1859_v1  ;;  %v1862_v4 = vld [vmem:[%s2326_s1 + $0xc0] sm:$0xff] (!%p138_p2)   ;;  %s1931_s28 = smov (!%p138_p2), 64   ;;  %vm212_vm4 = vcmask (!%p138_p2), 523264   ;;  %vm493_vm5 = vsmask.f32 (!%p138_p2), 6400  ;;  %vm840_vm6 = vcmask (!%p138_p2), 1044480  }
   0x8   : > { %1686 = vmatprep.subr.bf16.mxu0 (!%p138_p2), %v1860_v2  ;;  %1730 = vmatprep.subr.bf16.mxu1 (!%p138_p2), %v1862_v4  ;;  %vm317_vm7 = vcmask (!%p138_p2), 1048064   ;;  %vm1933_vm8 = vmmov (!%p138_p2), 0  }
   0xb   : > { %1687 = vmatpush3.bf16.msra.mxu0 (!%p138_p2), %v1861_v3 }
   0xd   : > { %s2330_s13 = smov (!%p161_p3, %s1531_s13), 3 }
   0xe   : > { %s1821_s18 = smul.u32 56, %s2330_s13 }
   0xf   : > { %s1822_s19 = smul.u32 40, %s2330_s13 }
  0x10   : > { %s1980_s25 = scalar_lea.vmem %s2325_s0, %s1821_s18 }
  0x11   : > { %v1834_v5 = vld [vmem:[%s1980_s25 + $0xc] sm:$0xff]   ;;  %v1987_v6 = vld [vmem:[%s1980_s25 + $0x14] sm:$0xff]   ;;  %v1836_v7 = vld [vmem:[%s1980_s25 + $0x4] sm:$0xfe]   ;;  %s2311_s22 = scalar_lea.vmem %s2328_s3, %s1822_s19 }
  0x12   : > { %v424_v8 = vrot.slane %v1834_v5, 1  ;;  %v426_v9 = vrot.slane %v1987_v6, 1  ;;  %v423_v10 = vrot.slane %v1836_v7, 1  ;;  %v1838_v11 = vld [vmem:[%s1980_s25 + $0x10] sm:$0xff]   ;;  %v1837_v13 = vld [vmem:[%s1980_s25 + $0x8] sm:$0xfc]  }
  0x13   : > { %v737_v15 = vshrl.u32 %v1838_v11, 16  ;;  %v740_v16 = vshll.u32 %v1838_v11, 16  ;;  %v729_v17 = vshrl.u32 %v1837_v13, 16  ;;  %v732_v18 = vshll.u32 %v1837_v13, 16  ;;  %v1839_v19 = vld [vmem:[%s1980_s25] sm:$0xff]   ;;  %v1840_v20 = vld [vmem:[%s1980_s25 + $0x8] sm:$0xff]  }
  0x14   : > { %v427_v12 = vsel %vm362_vm0, %v424_v8, %v426_v9  ;;  %v425_v14 = vsel %vm362_vm0, %v423_v10, %v424_v8  ;;  %v259_v25 = vshrl.u32 %v1839_v19, 16  ;;  %v261_v26 = vshll.u32 %v1839_v19, 16  ;;  %v1841_v29 = vld [vmem:[%s1980_s25 + $0x4] sm:$0xfc]   ;;  %v1842_v30 = vld [vmem:[%s1980_s25 + $0xc] sm:$0xff]   ;;  %v1844_v35 = vld [vmem:[%s1980_s25 + $0x18] sm:$0xff]  }
  0x15   : > { %436 = vrot.lane.b32.xlu1 %v427_v12, %s1931_s28  ;;  %434 = vrot.lane.b32.xlu0 %v425_v14, %s1931_s28  ;;  %v739_v21 = vrot.slane %v737_v15, 2  ;;  %v742_v22 = vrot.slane %v740_v16, 3  ;;  %v731_v23 = vrot.slane %v729_v17, 2  ;;  %v734_v24 = vrot.slane %v732_v18, 3  ;;  %v1843_v33 = vld [vmem:[%s1980_s25 + $0x10] sm:$0xff]   ;;  %v1845_v39 = vld [vmem:[%s1980_s25 + $0x1c] sm:$0xff]  }
  0x16   : > { %v266_v28 = vshll.u32 %v1840_v20, 16  ;;  %v263_v32 = vrot.slane %v261_v26, 1  ;;  %v270_v34 = vshrl.u32 %v1840_v20, 16  ;;  %v597_v37 = vrot.slane %v1841_v29, 2  ;;  %v1846_v50 = vld [vmem:[%s1980_s25 + $0x14] sm:$0xff]   ;;  %v1848_v58 = vld [vmem:[%s1980_s25 + $0x20] sm:$0xff]  }
  0x17   : > { %v743_v27 = vor.u32 %v742_v22, %v739_v21  ;;  %v735_v31 = vor.u32 %v734_v24, %v731_v23  ;;  %v598_v38 = vrot.slane %v1842_v30, 2  ;;  %v274_v42 = vshll.u32 %v1843_v33, 16  ;;  %v1847_v51 = vld [vmem:[%s1980_s25 + $0x18] sm:$0xff]   ;;  %v2017_v60 = vld [vmem:[%s1980_s25 + $0x24] sm:$0xff]   ;;  %v1864_v24 = vld [vmem:[%s2326_s1 + $0x50] sm:$0xff]  }
  0x18   : > { %v268_v36 = vrot.slane %v266_v28, 1  ;;  %v264_v41 = vor.u32 %v263_v32, %v259_v25  ;;  %v746_v43 = vshrl.u32 %v1844_v35, 16  ;;  %v749_v45 = vshll.u32 %v1844_v35, 16  ;;  %v2022_v0 = vld [vmem:[%s1980_s25 + $0x1c] sm:$0xff]   ;;  %v1852_v5 = vld [vmem:[%s1980_s25 + $0x28] sm:$0xff]   ;;  %1688 = vmatprep.subr.bf16.mxu0 %v1864_v24  ;;  %v1865_v35 = vld [vmem:[%s2326_s1 + $0x10] sm:$0xff]  }
  0x19   : > { %v744_v40 = vsel %vm727_vm1, %v735_v31, %v743_v27  ;;  %v599_v47 = vsel %vm596_vm3, %v597_v37, %v598_v38  ;;  %v276_v48 = vrot.slane %v274_v42, 1  ;;  %v428_v53 = vrot.slane %v1845_v39, 1  ;;  %v2025_v1 = vld [vmem:[%s1980_s25 + $0x20] sm:$0xff]   ;;  %v1853_v17 = vld [vmem:[%s1980_s25 + $0x2c] ss:$0 sps:$4 sm:$0x11]   ;;  %1689 = vmatpush3.bf16.msra.mxu0 %v1865_v35 }
  0x1a   : > { %781 = vrot.lane.b32.xlu1 %v744_v40, %s1931_s28  ;;  %v272_v44 = vor.u32 %v270_v34, %v268_v36  ;;  %v269_v46 = vsel %vm257_vm2, %v264_v41, %v268_v36  ;;  %v748_v49 = vrot.slane %v746_v43, 2  ;;  %v751_v52 = vrot.slane %v749_v45, 3  ;;  %v1855_v19 = vld [vmem:[%s1980_s25 + $0x28] ss:$0 sps:$4 sm:$0x11]   ;;  %v1863_v23 = vld [vmem:[%s2326_s1 + $0x80] sm:$0xff]  }
  0x1b   : > { %302 = vrot.lane.b32.xlu0 %v269_v46, %s1931_s28  ;;  %v278_v55 = vshrl.u32 %v1843_v33, 16  ;;  %v282_v56 = vshll.u32 %v1847_v51, 16  ;;  %v600_v59 = vrot.slane %v1846_v50, 2  ;;  %v755_v62 = vshrl.u32 %v1848_v58, 16  ;;  %v1854_v28 = vld [vmem:[%s1980_s25 + $0x24] sm:$0xff]   ;;  %1731 = vmatpush3.bf16.msra.mxu1 %v1863_v23  ;;  %v1868_v42 = vld [vmem:[%s2326_s1 + $0x58] sm:$0xff]  }
  0x1c   : > { %v277_v54 = vsel %vm257_vm2, %v272_v44, %v276_v48  ;;  %v752_v57 = vor.u32 %v751_v52, %v748_v49  ;;  %v758_v63 = vshll.u32 %v1848_v58, 16  ;;  %v429_v2 = vsel %vm362_vm0, %v426_v9, %v428_v53  ;;  %v1856_v22 = vld [vmem:[%s1980_s25 + $0x30] ss:$0 sps:$4 sm:$0x77]   ;;  %v1866_v36 = vld [vmem:[%s2326_s1 + $0xc8] sm:$0xff]   ;;  %v1869_v45 = vld [vmem:[%s2326_s1 + $0x18] sm:$0xff]   ;;  %1690 = vmatprep.subr.bf16.mxu0 %v1868_v42 }
  0x1d   : > { %v280_v3 = vor.u32 %v278_v55, %v276_v48  ;;  %v284_v4 = vrot.slane %v282_v56, 1  ;;  %v757_v7 = vrot.slane %v755_v62, 2  ;;  %v601_v10 = vsel %vm596_vm3, %v598_v38, %v600_v59  ;;  %v1857_v39 = vld [vmem:[%s1980_s25 + $0x2c] ss:$0 sps:$4 sm:$0x33]   ;;  %1732 = vmatprep.subr.bf16.mxu1 %v1866_v36  ;;  %1691 = vmatpush3.bf16.msra.mxu0 %v1869_v45  ;;  %v1872_v52 = vld [vmem:[%s2326_s1 + $0x60] sm:$0xff]  }
  0x1e   : > { %608 = vrot.lane.b32.xlu1 %v599_v47, %s1931_s28  ;;  %v753_v61 = vsel %vm727_vm1, %v743_v27, %v752_v57  ;;  %v760_v8 = vrot.slane %v758_v63, 3  ;;  %v764_v11 = vshrl.u32 %v1852_v5, 16  ;;  %v767_v12 = vshll.u32 %v1852_v5, 16  ;;  %v1867_v40 = vld [vmem:[%s2326_s1 + $0x88] sm:$0xff]   ;;  %v1870_v47 = vld [vmem:[%s2326_s1 + $0xd0] sm:$0xff]   ;;  %v1873_v55 = vld [vmem:[%s2326_s1 + $0x20] sm:$0xff]   ;;  %1692 = vmatprep.subr.bf16.mxu0 %v1872_v52 }
  0x1f   : > { %304 = vrot.lane.b32.xlu0 %v277_v54, %s1931_s28  ;;  %v430_v6 = vrot.slane %v2017_v60, 1  ;;  %v602_v9 = vrot.slane %v2022_v0, 2  ;;  %v286_v14 = vshrl.u32 %v1847_v51, 16  ;;  %v285_v15 = vsel %vm257_vm2, %v280_v3, %v284_v4  ;;  %1733 = vmatpush3.bf16.msra.mxu1 %v1867_v40  ;;  %v1871_v51 = vld [vmem:[%s2326_s1 + $0x90] sm:$0xff]   ;;  %v1874_v56 = vld [vmem:[%s2326_s1 + $0xd8] sm:$0xff]   ;;  %v1876_v60 = vld [vmem:[%s2326_s1 + $0x68] sm:$0xff]  }
  0x20   : > { %v761_v13 = vor.u32 %v760_v8, %v757_v7  ;;  %v290_v16 = vshll.u32 %v2025_v1, 16  ;;  %v766_v18 = vrot.slane %v764_v11, 2  ;;  %v769_v21 = vrot.slane %v767_v12, 3  ;;  %1734 = vmatprep.subr.bf16.mxu1 %v1870_v47  ;;  %v1877_v62 = vld [vmem:[%s1980_s25 + $0x8] sm:$0xff]   ;;  %v2107_v63 = vld [vmem:[%s1980_s25 + $0x10] sm:$0xff]   ;;  %v1881_v5 = vld [vmem:[%s2326_s1 + $0xe0] sm:$0xff]  }
  0x21   : > { %v431_v25 = vsel %vm362_vm0, %v428_v53, %v430_v6  ;;  %v288_v26 = vor.u32 %v286_v14, %v284_v4  ;;  %v432_v29 = vrot.slane %v1853_v17, 1  ;;  %v294_v30 = vshrl.u32 %v2025_v1, 16  ;;  %1693 = vmatpush3.bf16.msra.mxu0 %v1873_v55  ;;  %v1880_v3 = vld [vmem:[%s2326_s1 + $0x28] sm:$0xff]   ;;  %v1882_v8 = vld [vmem:[%s2326_s1 + $0xa0] sm:$0xff]   ;;  %v1883_v12 = vld [vmem:[%s2326_s1 + $0x70] sm:$0xff]  }
  0x22   : > { %783 = vrot.lane.b32.xlu1 %v753_v61, %s1931_s28  ;;  %v762_v20 = vsel %vm727_vm1, %v752_v57, %v761_v13  ;;  %v292_v27 = vrot.slane %v290_v16, 1  ;;  %v603_v31 = vsel %vm596_vm3, %v600_v59, %v602_v9  ;;  %v770_v32 = vor.u32 %v769_v21, %v766_v18  ;;  %v1875_v59 = vld [vmem:[%s2326_s1 + $0x98] sm:$0xff]   ;;  %1694 = vmatprep.subr.bf16.mxu0 %v1876_v60  ;;  %v1886_v14 = vld [vmem:[%s1980_s25] sm:$0xff]   ;;  %v1887_v16 = vld [vmem:[%s2326_s1 + $0x30] sm:$0xff]  }
  0x23   : > { %438 = vrot.lane.b32.xlu0 %v429_v2, %s1931_s28  ;;  %v298_v33 = vshll.u32 %v1855_v19, 16  ;;  %v773_v34 = vshrl.u32 %v1856_v22, 16  ;;  %v776_v38 = vshll.u32 %v1856_v22, 16  ;;  %v604_v41 = vrot.slane %v1854_v28, 2  ;;  %1735 = vmatpush3.bf16.msra.mxu1 %v1871_v51  ;;  %v1879_v2 = vld [vmem:[%s1980_s25] sm:$0xfe]  }
  0x24   : > { %v293_v37 = vsel %vm257_vm2, %v288_v26, %v292_v27  ;;  %v771_v43 = vsel %vm727_vm1, %v761_v13, %v770_v32  ;;  %v433_v48 = vsel %vm362_vm0, %v430_v6, %v432_v29  ;;  %v296_v49 = vor.u32 %v294_v30, %v292_v27  ;;  %1736 = vmatprep.subr.bf16.mxu1 %v1874_v56  ;;  %v1884_v13 = vld [vmem:[%s1980_s25 + $0x8] sm:$0xfc]   ;;  %v1885_v6 = vld [vmem:[%s1980_s25 + $0x10] sm:$0xff]   ;;  %v1893_v23 = vld [vmem:[%s2326_s1 + $0x38] sm:$0xff]  }
  0x25   : > { %v300_v44 = vrot.slane %v298_v33, 1  ;;  %v775_v46 = vrot.slane %v773_v34, 2  ;;  %v778_v50 = vrot.slane %v776_v38, 3  ;;  %v605_v53 = vsel %vm596_vm3, %v602_v9, %v604_v41  ;;  %1695 = vmatpush3.bf16.msra.mxu0 %v1880_v3  ;;  %213 = vst.msk [vmem:[#allocation2] sm:$0xff] %vm212_vm4, %v1886_v14  ;;  %v1888_v17 = vld [vmem:[%s2326_s1 + $0xe8] sm:$0xff]   ;;  %v1894_v28 = vld [vmem:[%s2326_s1 + $0xf0] sm:$0xff]  }
  0x26   : > { %610 = vrot.lane.b32.xlu1 %v601_v10, %s1931_s28  ;;  %v606_v54 = vrot.slane %v1857_v39, 2  ;;  %v364_v1 = vrot.slane %v1877_v62, 1  ;;  %v366_v4 = vrot.slane %v2107_v63, 1  ;;  %v363_v7 = vrot.slane %v1879_v2, 1  ;;  %1696 = vmatprep.subr.bf16.mxu0 %v1883_v12  ;;  %v1889_v19 = vld [vmem:[%s2326_s1 + $0xa8] sm:$0xff]   ;;  %v1895_v29 = vld [vmem:[%s2326_s1 + $0xb0] sm:$0xff]  }
  0x27   : > { %306 = vrot.lane.b32.xlu0 %v285_v15, %s1931_s28  ;;  %v301_v57 = vsel %vm257_vm2, %v296_v49, %v300_v44  ;;  %v779_v58 = vor.u32 %v778_v50, %v775_v46  ;;  %1737 = vmatpush3.bf16.msra.mxu1 %v1875_v59  ;;  %v667_v9 = vrot.slane %v1884_v13, 2  ;;  %v668_v15 = vrot.slane %v1885_v6, 2  ;;  %v1891_v21 = vld [vmem:[%s1980_s25 + $0x4] sm:$0xfe]   ;;  %v1892_v22 = vld [vmem:[%s1980_s25 + $0xc] sm:$0xff]   ;;  %v1897_v38 = vld [vmem:[%s1980_s25 + $0x18] sm:$0xff]  }
  0x28   : > { %v607_v61 = vsel %vm596_vm3, %v604_v41, %v606_v54  ;;  %v367_v10 = vsel %vm362_vm0, %v364_v1, %v366_v4  ;;  %1738 = vmatprep.subr.bf16.mxu1 %v1881_v5  ;;  %v365_v11 = vsel %vm362_vm0, %v363_v7, %v364_v1  ;;  %v495_v24 = vshrl.u32 %v1891_v21, 16  ;;  %v1896_v36 = vld [vmem:[%s1980_s25 + $0x8] sm:$0xff]   ;;  %v1898_v39 = vld [vmem:[%s2326_s1 + $0xf8] sm:$0xff]   ;;  %v1903_v47 = vld [vmem:[%s1980_s25 + $0x10] sm:$0xff]  }
  0x29   : > { %v780_v0 = vsel %vm727_vm1, %v770_v32, %v779_v58  ;;  %380 = vst.msk [vmem:[#allocation2 + $0x30] sm:$0xff] %vm212_vm4, %v367_v10  ;;  %379 = vst.msk [vmem:[#allocation2 + $0x8] sm:$0xff] %vm212_vm4, %v365_v11  ;;  %v669_v18 = vsel %vm596_vm3, %v667_v9, %v668_v15  ;;  %1697 = vmatpush3.bf16.msra.mxu0 %v1887_v16  ;;  %v503_v26 = vshrl.u32 %v1892_v22, 16  ;;  %v506_v27 = vshll.u32 %v1892_v22, 16  ;;  %v1900_v42 = vld [vmem:[%s2326_s1 + $0xb8] sm:$0xff]   ;;  %v1904_v50 = vld [vmem:[%s1980_s25 + $0x20] sm:$0xff]  }
  0x2a   : > { %785 = vrot.lane.b32.xlu1 %v762_v20, %s1931_s28  ;;  %683 = vst.msk [vmem:[#allocation2 + $0x18] sm:$0xff] %vm212_vm4, %v669_v18  ;;  %v1890_v20 = vld [vmem:[%s2326_s1 + $0x78] sm:$0xff]   ;;  %v497_v30 = vrot.slane %v495_v24, 1  ;;  %v1932_v32 = vmov 0.0   ;;  %214 = vst.msk [vmem:[#allocation2 + $0x28] sm:$0xff] %vm212_vm4, %v1896_v36  ;;  %v670_v41 = vrot.slane %v1897_v38, 2 }
  0x2b   : > { %440 = vrot.lane.b32.xlu0 %v431_v25, %s1931_s28  ;;  %1739 = vmatpush3.bf16.msra.mxu1 %v1882_v8  ;;  %v498_v25 = vshll.u32 %v1891_v21, 16  ;;  %v505_v33 = vrot.slane %v503_v26, 1  ;;  %v508_v34 = vrot.slane %v506_v27, 2  ;;  %v1901_v44 = vld [vmem:[%s1980_s25 + $0x18] sm:$0xff]   ;;  %v1905_v51 = vld [vmem:[%s1980_s25 + $0x20] sm:$0xff]   ;;  %215 = vst.msk [vmem:[#allocation2 + $0x50] sm:$0xff] %vm212_vm4, %v1903_v47 }
  0x2c   : > { %1740 = vmatprep.subr.bf16.mxu1 %v1888_v17  ;;  %1698 = vmatprep.subr.bf16.mxu0 %v1890_v20  ;;  %v1902_v45 = vld [vmem:[%s1980_s25 + $0x14] sm:$0xff]   ;;  %v368_v46 = vrot.slane %v1901_v44, 1  ;;  %v672_v55 = vrot.slane %v1904_v50, 2  ;;  %v370_v56 = vrot.slane %v1905_v51, 1  ;;  %v1911_v7 = vld [vmem:[%s1980_s25 + $0x24] sm:$0xff]  }
  0x2d   : > { %1699 = vmatpush3.bf16.msra.mxu0 %v1893_v23  ;;  %v515_v49 = vshll.u32 %v1902_v45, 16  ;;  %v1908_v62 = vld [vmem:[%s1980_s25 + $0x18] sm:$0xff]   ;;  %v1910_v3 = vld [vmem:[%s1980_s25 + $0x28] ss:$0 sps:$4 sm:$0x11]   ;;  %v1913_v10 = vld [vmem:[%s1980_s25 + $0x20] sm:$0xff]  }
  0x2e   : > { %612 = vrot.lane.b32.xlu1 %v603_v31, %s1931_s28  ;;  %v500_v31 = vrot.slane %v498_v25, 2  ;;  %1785 = vmatprep.subr.bf16.mxu0 %v1932_v32  ;;  %v369_v52 = vsel %vm362_vm0, %v366_v4, %v368_v46  ;;  %v673_v59 = vsel %vm596_vm3, %v670_v41, %v672_v55  ;;  %v371_v60 = vsel %vm362_vm0, %v368_v46, %v370_v56  ;;  %v1914_v14 = vld [vmem:[%s1980_s25 + $0x30] ss:$0 sps:$4 sm:$0x33]   ;;  %v1917_v24 = vld [vmem:[%s1980_s25 + $0x8] sm:$0xf8]  }
  0x2f   : > { %308 = vrot.lane.b32.xlu0 %v293_v37, %s1931_s28  ;;  %1741 = vmatpush3.bf16.msra.mxu1 %v1889_v19  ;;  %v509_v37 = vor.u32 %v508_v34, %v505_v33  ;;  %381 = vst.msk [vmem:[#allocation2 + $0x58] sm:$0xff] %vm212_vm4, %v369_v52  ;;  %v517_v54 = vrot.slane %v515_v49, 2  ;;  %685 = vst.msk [vmem:[#allocation2 + $0x68] sm:$0xff] %vm212_vm4, %v673_v59  ;;  %v372_v8 = vrot.slane %v1910_v3, 1  ;;  %v530_v13 = vshrl.u32 %v1911_v7, 16  ;;  %v1918_v26 = vld [vmem:[%s1980_s25 + $0x10] sm:$0xff]  }
  0x30   : > { %1742 = vmatprep.subr.bf16.mxu1 %v1894_v28  ;;  %v501_v35 = vor.u32 %v500_v31, %v497_v30  ;;  %382 = vst.msk [vmem:[#allocation2 + $0x80] sm:$0xff] %vm212_vm4, %v371_v60  ;;  %216 = vst.msk [vmem:[#allocation2 + $0x78] sm:$0xff] %vm212_vm4, %v1908_v62  ;;  %v533_v6 = vshll.u32 %v1911_v7, 16  ;;  %v676_v18 = vrot.slane %v1914_v14, 2  ;;  %v1919_v30 = vld [vmem:[%s1980_s25 + $0x20] sm:$0xff]   ;;  %v842_v31 = vrot.slane %v1918_v26, 3 }
  0x31   : > { %v373_v9 = vsel %vm362_vm0, %v370_v56, %v372_v8  ;;  %217 = vst.msk [vmem:[#allocation2 + $0xa0] sm:$0xff] %vm212_vm4, %v1913_v10  ;;  %v532_v16 = vrot.slane %v530_v13, 1  ;;  %v1915_v19 = vld [vmem:[%s1980_s25 + $0x2c] ss:$0 sps:$4 sm:$0x33]   ;;  %v1921_v36 = vld [vmem:[%s1980_s25 + $0x18] sm:$0xff]  }
  0x32   : > { %787 = vrot.lane.b32.xlu1 %v771_v43, %s1931_s28  ;;  %v510_v40 = vsel %vm493_vm5, %v501_v35, %v509_v37  ;;  %v671_v43 = vsel %vm596_vm3, %v668_v15, %v670_v41  ;;  %383 = vst.msk [vmem:[#allocation2 + $0xa8] sm:$0xff] %vm212_vm4, %v373_v9  ;;  %v535_v17 = vrot.slane %v533_v6, 2  ;;  %v539_v22 = vshrl.u32 %v1915_v19, 16  ;;  %v1920_v33 = vld [vmem:[%s1980_s25 + $0x28] sm:$0xff]   ;;  %v1912_v3 = vld [vmem:[%s2326_s1 + $0x110] sm:$0xff]   ;;  %v1916_v10 = vld [vmem:[%s2326_s1 + $0x118] sm:$0xff]  }
  0x33   : > { %442 = vrot.lane.b32.xlu0 %v433_v48, %s1931_s28  ;;  %1743 = vmatpush3.bf16.msra.mxu1 %v1895_v29  ;;  %552 = vst.msk [vmem:[#allocation2 + $0x10] sm:$0xff] %vm212_vm4, %v510_v40  ;;  %684 = vst.msk [vmem:[#allocation2 + $0x40] sm:$0xff] %vm212_vm4, %v671_v43  ;;  %v512_v48 = vshrl.u32 %v1902_v45, 16  ;;  %v542_v23 = vshll.u32 %v1915_v19, 16  ;;  %v841_v29 = vrot.slane %v1917_v24, 3  ;;  %v846_v35 = vrot.slane %v1919_v30, 3 }
  0x34   : > { %1744 = vmatprep.subr.bf16.mxu1 %v1898_v39  ;;  %v536_v20 = vor.u32 %v535_v17, %v532_v16  ;;  %v541_v27 = vrot.slane %v539_v22, 1  ;;  %v848_v38 = vrot.slane %v1920_v33, 3  ;;  %v1922_v39 = vld [vmem:[%s1980_s25 + $0x30] ss:$0 sps:$4 sm:$0x77]   ;;  %v844_v41 = vrot.slane %v1921_v36, 3 }
  0x35   : > { %v544_v28 = vrot.slane %v542_v23, 2  ;;  %v850_v43 = vrot.slane %v1922_v39, 3  ;;  %v1906_v62 = vld [vmem:[%s2326_s1 + $0x108] sm:$0xff]  }
  0x36   : > { %614 = vrot.lane.b32.xlu1 %v605_v53, %s1931_s28  ;;  %v514_v53 = vrot.slane %v512_v48, 1  ;;  %v845_v44 = vsel %vm840_vm6, %v842_v31, %v844_v41  ;;  %v847_v45 = vsel %vm840_vm6, %v844_v41, %v846_v35 }
  0x37   : > { %310 = vrot.lane.b32.xlu0 %v301_v57, %s1931_s28  ;;  %1745 = vmatpush3.bf16.msra.mxu1 %v1900_v42  ;;  %v1907_v57 = vld [vmem:[%s1980_s25 + $0x1c] sm:$0xff]   ;;  %v545_v34 = vor.u32 %v544_v28, %v541_v27  ;;  %v849_v42 = vsel %vm840_vm6, %v846_v35, %v848_v38  ;;  %858 = vst.msk [vmem:[#allocation2 + $0x48] sm:$0xff] %vm212_vm4, %v845_v44  ;;  %859 = vst.msk [vmem:[#allocation2 + $0x70] sm:$0xff] %vm212_vm4, %v847_v45 }
  0x38   : > { %1813 = vmatprep.subr.bf16.mxu1 %v1932_v32  ;;  %v518_v58 = vor.u32 %v517_v54, %v514_v53  ;;  %v524_v63 = vshll.u32 %v1907_v57, 16  ;;  %860 = vst.msk [vmem:[#allocation2 + $0x98] sm:$0xff] %vm212_vm4, %v849_v42  ;;  %v851_v46 = vsel %vm840_vm6, %v848_v38, %v850_v43 }
  0x39   : > { %v546_v40 = vsel %vm493_vm5, %v536_v20, %v545_v34  ;;  %861 = vst.msk [vmem:[#allocation2 + $0xc0] sm:$0xff] %vm212_vm4, %v851_v46  ;;  %v2281_v34 = vld [vmem:[%s2327_s2] ss:$0 sm:$0xff] }
  0x3a   : > { %616 = vrot.lane.b32.xlu1 %v607_v61, %s1931_s28  ;;  %v521_v61 = vshrl.u32 %v1907_v57, 16  ;;  %v519_v1 = vsel %vm493_vm5, %v509_v37, %v518_v58  ;;  %v526_v4 = vrot.slane %v524_v63, 2  ;;  %v843_v37 = vsel %vm840_vm6, %v841_v29, %v842_v31  ;;  %556 = vst.msk [vmem:[#allocation2 + $0xb0] sm:$0xff] %vm212_vm4, %v546_v40 }
  0x3b   : > { %789 = vrot.lane.b32.xlu0 %v780_v0, %s1931_s28  ;;  %v1909_v0 = vld [vmem:[%s1980_s25 + $0x28] sm:$0xff]   ;;  %553 = vst.msk [vmem:[#allocation2 + $0x38] sm:$0xff] %vm212_vm4, %v519_v1  ;;  %857 = vst.msk [vmem:[#allocation2 + $0x20] sm:$0xff] %vm212_vm4, %v843_v37 }
  0x3c   : > { %v523_v2 = vrot.slane %v521_v61, 1  ;;  %v674_v5 = vrot.slane %v1909_v0, 2 }
  0x3e   : > { %v527_v11 = vor.u32 %v526_v4, %v523_v2  ;;  %v675_v12 = vsel %vm596_vm3, %v672_v55, %v674_v5  ;;  %v677_v21 = vsel %vm596_vm3, %v674_v5, %v676_v18  ;;  %v1899_v55 = vld [vmem:[%s2326_s1 + $0x100] sm:$0xff]   ;;  %v871_v29 = vld [vmem:[#allocation2 + $0x48] sm:$0xff]  ;;  %v876_v31 = vld [vmem:[#allocation2 + $0x70] sm:$0xff] }
  0x3f   : > { %686 = vst.msk [vmem:[#allocation2 + $0x90] sm:$0xff] %vm212_vm4, %v675_v12  ;;  %687 = vst.msk [vmem:[#allocation2 + $0xb8] sm:$0xff] %vm212_vm4, %v677_v21  ;;  %v881_v28 = vld [vmem:[#allocation2 + $0x98] sm:$0xff] }
  0x40   : > { %v528_v15 = vsel %vm493_vm5, %v518_v58, %v527_v11  ;;  %v537_v25 = vsel %vm493_vm5, %v527_v11, %v536_v20  ;;  %v886_v30 = vld [vmem:[#allocation2 + $0xc0] sm:$0xff] }
  0x41   : > { %554 = vst.msk [vmem:[#allocation2 + $0x60] sm:$0xff] %vm212_vm4, %v528_v15  ;;  %555 = vst.msk [vmem:[#allocation2 + $0x88] sm:$0xff] %vm212_vm4, %v537_v25 }
  0x42   : > { %v866_v27 = vld [vmem:[#allocation2 + $0x20] sm:$0xff] }
  0x87   : > { %v437_v47 = vpop.permute.xlu1 %436  ;;  %v435_v48 = vpop.permute.xlu0 %434 }
  0x88   : > { %450 = vst.msk [vmem:[#allocation2 + $0x30] sm:$0xff] %vm317_vm7, %v437_v47  ;;  %449 = vst.msk [vmem:[#allocation2 + $0x8] sm:$0xff] %vm317_vm7, %v435_v48 }
  0x8c   : > { %v782_v49 = vpop.permute.xlu1 %781 }
  0x8d   : > { %796 = vst.msk [vmem:[#allocation2 + $0x18] sm:$0xff] %vm317_vm7, %v782_v49  ;;  %v303_v51 = vpop.permute.xlu0 %302 }
  0x8e   : > { %318 = vst.msk [vmem:[#allocation2] sm:$0xff] %vm317_vm7, %v303_v51 }
  0x8f   : > { %v863_v50 = vld [vmem:[#allocation2 + $0x8] sm:$0xff]  ;;  %v868_v57 = vld [vmem:[#allocation2 + $0x30] sm:$0xff] }
  0x90   : > { %1229 = vmatprep.mubr.bf16.mxu0 %v863_v50  ;;  %v609_v52 = vpop.permute.xlu1 %608 }
  0x91   : > { %623 = vst.msk [vmem:[#allocation2 + $0x10] sm:$0xff] %vm317_vm7, %v609_v52  ;;  %v305_v53 = vpop.permute.xlu0 %304 }
  0x92   : > { %319 = vst.msk [vmem:[#allocation2 + $0x28] sm:$0xff] %vm317_vm7, %v305_v53 }
  0x94   : > { %v784_v54 = vpop.permute.xlu1 %783  ;;  %v865_v56 = vld [vmem:[#allocation2 + $0x18] sm:$0xff] }
  0x95   : > { %797 = vst.msk [vmem:[#allocation2 + $0x40] sm:$0xff] %vm317_vm7, %v784_v54  ;;  %1302 = vmatprep.mubr.bf16.mxu1 %v865_v56  ;;  %v862_v58 = vld [vmem:[#allocation2] sm:$0xff]  ;;  %v439_v59 = vpop.permute.xlu0 %438 }
  0x96   : > { %1230 = vmatmul.mubr.bf16.vlgmr.msra.gmra.mrb[0].mxu0 %v862_v58  ;;  %451 = vst.msk [vmem:[#allocation2 + $0x58] sm:$0xff] %vm317_vm7, %v439_v59 }
  0x97   : > { %1786 = vmatpush3.bf16.msra.mxu0 %v1899_v55  ;;  %1237 = vmatprep.mubr.bf16.mxu0 %v868_v57 }
  0x98   : > { %v611_v60 = vpop.permute.xlu1 %610  ;;  %v864_v61 = vld [vmem:[#allocation2 + $0x10] sm:$0xff]  ;;  %1787 = vmatprep.subr.bf16.mxu0 %v1932_v32 }
  0x99   : > { %624 = vst.msk [vmem:[#allocation2 + $0x38] sm:$0xff] %vm317_vm7, %v611_v60  ;;  %1303 = vmatmul.mubr.bf16.vlgmr.msra.gmra.mrb[0].mxu1 %v864_v61  ;;  %v307_v63 = vpop.permute.xlu0 %306  ;;  %v867_v1 = vld [vmem:[#allocation2 + $0x28] sm:$0xff] }
  0x9a   : > { %1817 = vmatpush3.bf16.msra.mxu1 %v1899_v55  ;;  %320 = vst.msk [vmem:[#allocation2 + $0x50] sm:$0xff] %vm317_vm7, %v307_v63 }
  0x9b   : > { %1814 = vmatprep.subr.bf16.mxu1 %v1932_v32  ;;  %1788 = vmatpush3.bf16.msra.mxu0 %v1906_v62 }
  0x9c   : > { %v786_v0 = vpop.permute.xlu1 %785  ;;  %v870_v2 = vld [vmem:[#allocation2 + $0x40] sm:$0xff]  ;;  %1789 = vmatprep.subr.bf16.mxu0 %v1932_v32 }
  0x9d   : > { %798 = vst.msk [vmem:[#allocation2 + $0x68] sm:$0xff] %vm317_vm7, %v786_v0  ;;  %1310 = vmatprep.mubr.bf16.mxu1 %v870_v2  ;;  %v441_v4 = vpop.permute.xlu0 %440  ;;  %v873_v5 = vld [vmem:[#allocation2 + $0x58] sm:$0xff] }
  0x9e   : > { %1818 = vmatpush3.bf16.msra.mxu1 %v1906_v62  ;;  %1238 = vmatmul.mubr.bf16.gmra.mrb[4].mxu0 %v867_v1  ;;  %452 = vst.msk [vmem:[#allocation2 + $0x80] sm:$0xff] %vm317_vm7, %v441_v4 }
  0x9f   : > { %1815 = vmatprep.subr.bf16.mxu1 %v1932_v32  ;;  %1245 = vmatprep.mubr.bf16.mxu0 %v873_v5 }
  0xa0   : > { %v613_v7 = vpop.permute.xlu1 %612  ;;  %v869_v8 = vld [vmem:[#allocation2 + $0x38] sm:$0xff]  ;;  %1790 = vmatpush3.bf16.msra.mxu0 %v1912_v3 }
  0xa1   : > { %625 = vst.msk [vmem:[#allocation2 + $0x60] sm:$0xff] %vm317_vm7, %v613_v7  ;;  %1311 = vmatmul.mubr.bf16.gmra.mrb[4].mxu1 %v869_v8  ;;  %1791 = vmatprep.subr.bf16.mxu0 %v1932_v32  ;;  %v309_v11 = vpop.permute.xlu0 %308  ;;  %v872_v13 = vld [vmem:[#allocation2 + $0x50] sm:$0xff] }
  0xa2   : > { %1819 = vmatpush3.bf16.msra.mxu1 %v1912_v3  ;;  %321 = vst.msk [vmem:[#allocation2 + $0x78] sm:$0xff] %vm317_vm7, %v309_v11 }
  0xa3   : > { %1816 = vmatprep.subr.bf16.mxu1 %v1932_v32 }
  0xa4   : > { %v788_v12 = vpop.permute.xlu1 %787  ;;  %v875_v6 = vld [vmem:[#allocation2 + $0x68] sm:$0xff]  ;;  %1792 = vmatpush3.bf16.msra.mxu0 %v1916_v10 }
  0xa5   : > { %799 = vst.msk [vmem:[#allocation2 + $0x90] sm:$0xff] %vm317_vm7, %v788_v12  ;;  %1318 = vmatprep.mubr.bf16.mxu1 %v875_v6  ;;  %v443_v9 = vpop.permute.xlu0 %442  ;;  %v878_v14 = vld [vmem:[#allocation2 + $0x80] sm:$0xff] }
  0xa6   : > { %1820 = vmatpush3.bf16.msra.mxu1 %v1916_v10  ;;  %1246 = vmatmul.mubr.bf16.gmra.mrb[8].mxu0 %v872_v13  ;;  %453 = vst.msk [vmem:[#allocation2 + $0xa8] sm:$0xff] %vm317_vm7, %v443_v9 }
  0xa7   : > { %1253 = vmatprep.mubr.bf16.mxu0 %v878_v14 }
  0xa8   : > { %v615_v15 = vpop.permute.xlu1 %614  ;;  %v874_v16 = vld [vmem:[#allocation2 + $0x60] sm:$0xff] }
  0xa9   : > { %626 = vst.msk [vmem:[#allocation2 + $0x88] sm:$0xff] %vm317_vm7, %v615_v15  ;;  %1319 = vmatmul.mubr.bf16.gmra.mrb[8].mxu1 %v874_v16  ;;  %v311_v17 = vpop.permute.xlu0 %310  ;;  %v877_v18 = vld [vmem:[#allocation2 + $0x78] sm:$0xff] }
  0xaa   : > { %322 = vst.msk [vmem:[#allocation2 + $0xa0] sm:$0xff] %vm317_vm7, %v311_v17 }
  0xac   : > { %v880_v19 = vld [vmem:[#allocation2 + $0x90] sm:$0xff]  ;;  %v617_v20 = vpop.permute.xlu1 %616 }
  0xad   : > { %1326 = vmatprep.mubr.bf16.mxu1 %v880_v19  ;;  %627 = vst.msk [vmem:[#allocation2 + $0xb0] sm:$0xff] %vm317_vm7, %v617_v20  ;;  %v790_v21 = vpop.permute.xlu0 %789  ;;  %v883_v22 = vld [vmem:[#allocation2 + $0xa8] sm:$0xff] }
  0xae   : > { %1254 = vmatmul.mubr.bf16.gmra.mrb[12].mxu0 %v877_v18  ;;  %800 = vst.msk [vmem:[#allocation2 + $0xb8] sm:$0xff] %vm317_vm7, %v790_v21 }
  0xaf   : > { %1261 = vmatprep.mubr.bf16.mxu0 %v883_v22 }
  0xb0   : > { %v879_v23 = vld [vmem:[#allocation2 + $0x88] sm:$0xff] }
  0xb1   : > { %1327 = vmatmul.mubr.bf16.gmra.mrb[12].mxu1 %v879_v23  ;;  %v882_v24 = vld [vmem:[#allocation2 + $0xa0] sm:$0xff] }
  0xb4   : > { %v884_v26 = vld [vmem:[#allocation2 + $0xb0] sm:$0xff] }
  0xb5   : > { %v885_v25 = vld [vmem:[#allocation2 + $0xb8] sm:$0xff] }
  0xb6   : > { %1262 = vmatmul.mubr.bf16.gmra.mrb[16].mxu0 %v882_v24  ;;  %1334 = vmatprep.mubr.bf16.mxu1 %v885_v25 }
  0xb7   : > { %1793 = vmatprep.mubr.msk.bf16.mxu0 %vm1933_vm8, %v1932_v32 }
  0xb9   : > { %1335 = vmatmul.mubr.bf16.gmra.mrb[16].mxu1 %v884_v26 }
  0xba   : > { %1805 = vmatprep.mubr.msk.bf16.mxu1 %vm1933_vm8, %v1932_v32 }
  0xbe   : > { %1794 = vmatmul.mubr.msk.bf16.vlgmr.msra.gmra.mrb[20].mxu0 %vm212_vm4, %v866_v27 }
  0xbf   : > { %1797 = vmatprep.mubr.msk.bf16.mxu0 %vm1933_vm8, %v1932_v32 }
  0xc1   : > { %1806 = vmatmul.mubr.msk.bf16.vlgmr.msra.gmra.mrb[20].mxu1 %vm212_vm4, %v881_v28 }
  0xc2   : > { %1809 = vmatprep.mubr.msk.bf16.mxu1 %vm1933_vm8, %v1932_v32 }
  0xc6   : > { %1798 = vmatmul.mubr.msk.bf16.gmra.mrb[24].mxu0 %vm212_vm4, %v871_v29 }
  0xc7   : > { %1801 = vmatprep.mubr.msk.bf16.mxu0 %vm1933_vm8, %v1932_v32 }
  0xc9   : > { %1810 = vmatmul.mubr.msk.bf16.gmra.mrb[24].mxu1 %vm212_vm4, %v886_v30 }
  0xce   : > { %1802 = vmatmul.mubr.msk.bf16.gmra.mrb[28].mxu0 %vm212_vm4, %v876_v31 }
 0x169   : > { %v1700_v33 = vpop.f32.mrb[0].mxu0 }
 0x16a   : > { %v1701_v35 = vpop.f32.mrb[1].mxu0 }
 0x16b   : > { %v1702_v36 = vadd.f32 %v1701_v35, %v1700_v33  ;;  %v1703_v37 = vpop.f32.mrb[2].mxu0 }
 0x16c   : > { %v1746_v38 = vpop.f32.mrb[0].mxu1  ;;  %v1704_v39 = vpop.f32.mrb[3].mxu0 }
 0x16d   : > { %v1747_v40 = vpop.f32.mrb[1].mxu1  ;;  %v1232_v41 = vadd.f32 %v1702_v36, %v2281_v34  ;;  %v1705_v32 = vadd.f32 %v1704_v39, %v1703_v37 }
 0x16e   : > { %v1748_v42 = vadd.f32 %v1747_v40, %v1746_v38  ;;  %v1749_v43 = vpop.f32.mrb[2].mxu1 }
 0x16f   : > { %v1750_v44 = vpop.f32.mrb[3].mxu1  ;;  %v1235_v45 = vadd.f32 %v1705_v32, %v2281_v34 }
 0x170   : > { %v1751_v46 = vadd.f32 %v1750_v44, %v1749_v43  ;;  %v2285_v47 = vadd.f32 %v1748_v42, %v1232_v41 }
 0x171   : > { %v1706_v48 = vpop.f32.mrb[4].mxu0 }
 0x172   : > { %v2287_v49 = vadd.f32 %v1751_v46, %v1235_v45  ;;  %v1707_v50 = vpop.f32.mrb[5].mxu0 }
 0x173   : > { %v1708_v51 = vadd.f32 %v1707_v50, %v1706_v48  ;;  %v1709_v52 = vpop.f32.mrb[6].mxu0 }
 0x174   : > { %v1752_v53 = vpop.f32.mrb[4].mxu1  ;;  %v1710_v54 = vpop.f32.mrb[7].mxu0 }
 0x175   : > { %v1753_v55 = vpop.f32.mrb[5].mxu1  ;;  %v1240_v56 = vadd.f32 %v1708_v51, %v2281_v34  ;;  %v1711_v57 = vadd.f32 %v1710_v54, %v1709_v52 }
 0x176   : > { %v1754_v58 = vadd.f32 %v1753_v55, %v1752_v53  ;;  %v1755_v59 = vpop.f32.mrb[6].mxu1 }
 0x177   : > { %v1756_v60 = vpop.f32.mrb[7].mxu1  ;;  %v1243_v61 = vadd.f32 %v1711_v57, %v2281_v34 }
 0x178   : > { %v1757_v62 = vadd.f32 %v1756_v60, %v1755_v59  ;;  %v2291_v63 = vadd.f32 %v1754_v58, %v1240_v56 }
 0x179   : > { %v1712_v0 = vpop.f32.mrb[8].mxu0 }
 0x17a   : > { %v2293_v1 = vadd.f32 %v1757_v62, %v1243_v61  ;;  %v1713_v2 = vpop.f32.mrb[9].mxu0 }
 0x17b   : > { %v1714_v3 = vadd.f32 %v1713_v2, %v1712_v0  ;;  %v1715_v4 = vpop.f32.mrb[10].mxu0 }
 0x17c   : > { %v1758_v5 = vpop.f32.mrb[8].mxu1  ;;  %v1716_v7 = vpop.f32.mrb[11].mxu0 }
 0x17d   : > { %v1759_v8 = vpop.f32.mrb[9].mxu1  ;;  %v1248_v10 = vadd.f32 %v1714_v3, %v2281_v34  ;;  %v1717_v11 = vadd.f32 %v1716_v7, %v1715_v4 }
 0x17e   : > { %v1760_v12 = vadd.f32 %v1759_v8, %v1758_v5  ;;  %v1761_v13 = vpop.f32.mrb[10].mxu1 }
 0x17f   : > { %v1762_v6 = vpop.f32.mrb[11].mxu1  ;;  %v1251_v9 = vadd.f32 %v1717_v11, %v2281_v34 }
 0x180   : > { %v1763_v14 = vadd.f32 %v1762_v6, %v1761_v13  ;;  %v2297_v15 = vadd.f32 %v1760_v12, %v1248_v10 }
 0x181   : > { %v1718_v16 = vpop.f32.mrb[12].mxu0 }
 0x182   : > { %v2299_v17 = vadd.f32 %v1763_v14, %v1251_v9  ;;  %v1719_v18 = vpop.f32.mrb[13].mxu0 }
 0x183   : > { %v1720_v19 = vadd.f32 %v1719_v18, %v1718_v16  ;;  %v1721_v20 = vpop.f32.mrb[14].mxu0 }
 0x184   : > { %v1764_v21 = vpop.f32.mrb[12].mxu1  ;;  %v1722_v22 = vpop.f32.mrb[15].mxu0 }
 0x185   : > { %v1765_v23 = vpop.f32.mrb[13].mxu1  ;;  %v1256_v24 = vadd.f32 %v1720_v19, %v2281_v34  ;;  %v1723_v25 = vadd.f32 %v1722_v22, %v1721_v20 }
 0x186   : > { %v1766_v26 = vadd.f32 %v1765_v23, %v1764_v21  ;;  %v1767_v27 = vpop.f32.mrb[14].mxu1 }
 0x187   : > { %v1768_v28 = vpop.f32.mrb[15].mxu1  ;;  %v1259_v29 = vadd.f32 %v1723_v25, %v2281_v34 }
 0x188   : > { %v1769_v30 = vadd.f32 %v1768_v28, %v1767_v27  ;;  %v1329_v31 = vadd.f32 %v1766_v26, %v1256_v24 }
 0x189   : > { %v1724_v33 = vpop.f32.mrb[16].mxu0 }
 0x18a   : > { %v1332_v35 = vadd.f32 %v1769_v30, %v1259_v29  ;;  %v1725_v36 = vpop.f32.mrb[17].mxu0 }
 0x18b   : > { %v1726_v37 = vadd.f32 %v1725_v36, %v1724_v33  ;;  %v1727_v38 = vpop.f32.mrb[18].mxu0 }
 0x18c   : > { %v1770_v39 = vpop.f32.mrb[16].mxu1  ;;  %v1728_v40 = vpop.f32.mrb[19].mxu0 }
 0x18d   : > { %v1771_v41 = vpop.f32.mrb[17].mxu1  ;;  %v1264_v32 = vadd.f32 %v1726_v37, %v2281_v34  ;;  %v1729_v42 = vadd.f32 %v1728_v40, %v1727_v38 }
 0x18e   : > { %v1772_v43 = vadd.f32 %v1771_v41, %v1770_v39  ;;  %v1773_v44 = vpop.f32.mrb[18].mxu1 }
 0x18f   : > { %v1774_v45 = vpop.f32.mrb[19].mxu1  ;;  %v1267_v46 = vadd.f32 %v1729_v42, %v2281_v34 }
 0x190   : > { %v1775_v48 = vadd.f32 %v1774_v45, %v1773_v44  ;;  %v1337_v50 = vadd.f32 %v1772_v43, %v1264_v32 }
 0x191   : > { %v1377_v51 = vpop.f32.mrb[20].mxu0 }
 0x192   : > { %v1340_v52 = vadd.f32 %v1775_v48, %v1267_v46  ;;  %v1378_v53 = vadd.f32 %v1377_v51, %v2285_v47  ;;  %v1795_v54 = vpop.f32.mrb[21].mxu0 }
 0x193   : > { %v1380_v55 = vpop.f32.mrb[22].mxu0 }
 0x194   : > { %v1401_v56 = vpop.f32.mrb[20].mxu1  ;;  %v1381_v57 = vadd.f32 %v1380_v55, %v2287_v49  ;;  %v1796_v58 = vpop.f32.mrb[23].mxu0  ;;  %v1416_v62 = vmax.f32 %v1378_v53, 0.0 }
 0x195   : > { %v1402_v59 = vadd.f32 %v1401_v56, %v1329_v31  ;;  %v1807_v60 = vpop.f32.mrb[21].mxu1 }
 0x196   : > { %v1404_v61 = vpop.f32.mrb[22].mxu1  ;;  %v1417_v0 = vmax.f32 %v1381_v57, 0.0 }
 0x197   : > { %v1405_v2 = vadd.f32 %v1404_v61, %v1332_v35  ;;  %v1808_v34 = vpop.f32.mrb[23].mxu1  ;;  %v1422_v3 = vmax.f32 %v1402_v59, 0.0 }
 0x198   : > { %v1658_v47 = vpack.c.bf16 %v1417_v0, %v1416_v62 }
 0x199   : > { %v1423_v4 = vmax.f32 %v1405_v2, 0.0  ;;  %v1385_v5 = vpop.f32.mrb[24].mxu0 }
 0x19a   : > { %1659 = vst [vmem:[%s2311_s22] sm:$0xff] %v1658_v47   ;;  %v1386_v7 = vadd.f32 %v1385_v5, %v2291_v63  ;;  %v1799_v8 = vpop.f32.mrb[25].mxu0 }
 0x19b   : > { %v1673_v49 = vpack.c.bf16 %v1423_v4, %v1422_v3  ;;  %v1388_v10 = vpop.f32.mrb[26].mxu0 }
 0x19c   : > { %v1409_v11 = vpop.f32.mrb[24].mxu1  ;;  %v1389_v12 = vadd.f32 %v1388_v10, %v2293_v1  ;;  %v1800_v13 = vpop.f32.mrb[27].mxu0  ;;  %v1418_v16 = vmax.f32 %v1386_v7, 0.0 }
 0x19d   : > { %1682 = vst [vmem:[%s2311_s22 + $0x18] sm:$0xff] %v1673_v49   ;;  %v1410_v6 = vadd.f32 %v1409_v11, %v1337_v50  ;;  %v1811_v9 = vpop.f32.mrb[25].mxu1 }
 0x19e   : > { %v1412_v14 = vpop.f32.mrb[26].mxu1  ;;  %v1419_v18 = vmax.f32 %v1389_v12, 0.0 }
 0x19f   : > { %v1413_v19 = vadd.f32 %v1412_v14, %v1340_v52  ;;  %v1812_v20 = vpop.f32.mrb[27].mxu1  ;;  %v1424_v22 = vmax.f32 %v1410_v6, 0.0 }
 0x1a0   : > { %v1663_v21 = vpack.c.bf16 %v1419_v18, %v1418_v16 }
 0x1a1   : > { %v1425_v63 = vmax.f32 %v1413_v19, 0.0  ;;  %v1393_v23 = vpop.f32.mrb[28].mxu0 }
 0x1a2   : > { %1680 = vst [vmem:[%s2311_s22 + $0x8] sm:$0xff] %v1663_v21   ;;  %v1394_v25 = vadd.f32 %v1393_v23, %v2297_v15  ;;  %v1803_v26 = vpop.f32.mrb[29].mxu0 }
 0x1a3   : > { %v1678_v24 = vpack.c.bf16 %v1425_v63, %v1424_v22  ;;  %v1396_v1 = vpop.f32.mrb[30].mxu0 }
 0x1a4   : > { %v1397_v27 = vadd.f32 %v1396_v1, %v2299_v17  ;;  %v1804_v28 = vpop.f32.mrb[31].mxu0  ;;  %v1420_v29 = vmax.f32 %v1394_v25, 0.0 }
 0x1a5   : > { %1683 = vst [vmem:[%s2311_s22 + $0x20] sm:$0xff] %v1678_v24  }
 0x1a6   : > { %v1421_v30 = vmax.f32 %v1397_v27, 0.0 }
 0x1a8   : > { %v1668_v31 = vpack.c.bf16 %v1421_v30, %v1420_v29 }
 0x1aa   : > { %1681 = vst [vmem:[%s2311_s22 + $0x10] sm:$0xff] %v1668_v31  }
 0x1ab PF: > { %s13_s12 = sadd.s32 1, %s1929_s12  }
 0x1ac   : > { %p10_p4 = scmp.ge.s32.totalorder %s13_s12, 6  }
 0x1ae   :  { %12 = sbr.rel (!%p10_p4) target bundleno = 1 (0x1), region = 62 }

// kernel: combined_loss.14
= control target key start
LH: loop header
LB: loop body
LE: loop exit
PB: predicated region body
PF: predicated region fallthrough
CT: control target
= control target key end

     0   :  { %s2528_s12 = smov 0   ;;  %s2963_s0 = inlined_call_operand.vmem [shape: bf16[4,110,128], index: 0, kind: input, shape index: {}]   ;;  %s2964_s1 = inlined_call_operand.vmem [shape: bf16[1152,128], index: 1, kind: input, shape index: {}]   ;;  %s2965_s2 = inlined_call_operand.vmem [shape: f32[1,128], index: 2, kind: input, shape index: {}]   ;;  %s2966_s3 = inlined_call_operand.vmem [shape: bf16[4,80,128], index: 3, kind: output, shape index: {}]  }
   0x1 LB: > { %s1928_s13 = sadd.s32 4294967295, %s2504_s12   ;;  %p1932_p0 = scmp.ge.s32.totalorder %s2504_s12, 1  ;;  %s2504_s12 = sphi %s2528_s12, %s13_s12  }
   0x2   : > { %p137_p1 = scmp.lt.s32.totalorder %s2504_s12, 5 }
   0x4   : > { %p138_p2 = pnand %p1932_p0, %p137_p1 }
   0x5   : > { %v2373_v0 = vld [vmem:[%s2964_s1 + $0x40] sm:$0xff] (!%p138_p2)   ;;  %v2377_v4 = vld [vmem:[%s2964_s1 + $0x48] sm:$0xff] (!%p138_p2)   ;;  %v2381_v8 = vld [vmem:[%s2964_s1 + $0x50] sm:$0xff] (!%p138_p2)   ;;  %p161_p3 = scmp.lt.s32.totalorder (!%p138_p2), %s1928_s13, 3  ;;  %vm350_vm0 = vcmask (!%p138_p2), 1046528   ;;  %vm574_vm2 = vcmask (!%p138_p2), 1045504  }
   0x6   : > { %141 = sbr.rel (%p138_p2) target bundleno = 356 (0x164), region = 32  ;;  %v2374_v1 = vld [vmem:[%s2964_s1 + $0xc0] sm:$0xff] (!%p138_p2)   ;;  %2112 = vmatprep.subr.bf16.mxu0 (!%p138_p2), %v2373_v0  ;;  %v2378_v5 = vld [vmem:[%s2964_s1 + $0xc8] sm:$0xff] (!%p138_p2)   ;;  %v2382_v9 = vld [vmem:[%s2964_s1 + $0xd0] sm:$0xff] (!%p138_p2)   ;;  %vm256_vm1 = vsmask.f32 (!%p138_p2), 7424 }
   0x7   : > { %v2375_v2 = vld [vmem:[%s2964_s1] sm:$0xff] (!%p138_p2)   ;;  %2158 = vmatprep.subr.bf16.mxu1 (!%p138_p2), %v2374_v1  ;;  %v2379_v6 = vld [vmem:[%s2964_s1 + $0x8] sm:$0xff] (!%p138_p2)   ;;  %v2383_v10 = vld [vmem:[%s2964_s1 + $0x10] sm:$0xff] (!%p138_p2)   ;;  %vm695_vm3 = vsmask.f32 (!%p138_p2), 5376  ;;  %vm2507_vm5 = vmmov (!%p138_p2), 0  }
   0x8   : > { %v2376_v3 = vld [vmem:[%s2964_s1 + $0x80] sm:$0xff] (!%p138_p2)   ;;  %2113 = vmatpush3.bf16.msra.mxu0 (!%p138_p2), %v2375_v2  ;;  %v2380_v7 = vld [vmem:[%s2964_s1 + $0x88] sm:$0xff] (!%p138_p2)   ;;  %v2384_v11 = vld [vmem:[%s2964_s1 + $0x90] sm:$0xff] (!%p138_p2)   ;;  %vm471_vm4 = vsmask.f32 (!%p138_p2), 6400  ;;  %vm798_vm6 = vcmask (!%p138_p2), 1044480  }
   0x9   : > { %2159 = vmatpush3.bf16.msra.mxu1 (!%p138_p2), %v2376_v3  ;;  %2114 = vmatprep.subr.bf16.mxu0 (!%p138_p2), %v2377_v4  ;;  %v2385_v12 = vld [vmem:[%s2964_s1 + $0x58] sm:$0xff] (!%p138_p2)   ;;  %v2389_v16 = vld [vmem:[%s2964_s1 + $0x60] sm:$0xff] (!%p138_p2)   ;;  %v2393_v20 = vld [vmem:[%s2964_s1 + $0x68] sm:$0xff] (!%p138_p2)  }
   0xa   : > { %2160 = vmatprep.subr.bf16.mxu1 (!%p138_p2), %v2378_v5  ;;  %v2386_v13 = vld [vmem:[%s2964_s1 + $0xd8] sm:$0xff] (!%p138_p2)   ;;  %v2390_v17 = vld [vmem:[%s2964_s1 + $0xe0] sm:$0xff] (!%p138_p2)   ;;  %v2394_v21 = vld [vmem:[%s2964_s1 + $0xe8] sm:$0xff] (!%p138_p2)  }
   0xb   : > { %v2387_v14 = vld [vmem:[%s2964_s1 + $0x18] sm:$0xff] (!%p138_p2)   ;;  %v2391_v18 = vld [vmem:[%s2964_s1 + $0x20] sm:$0xff] (!%p138_p2)   ;;  %v2395_v22 = vld [vmem:[%s2964_s1 + $0x28] sm:$0xff] (!%p138_p2)  }
   0xc   : > { %2115 = vmatpush3.bf16.msra.mxu0 (!%p138_p2), %v2379_v6  ;;  %v2388_v15 = vld [vmem:[%s2964_s1 + $0x98] sm:$0xff] (!%p138_p2)   ;;  %v2392_v19 = vld [vmem:[%s2964_s1 + $0xa0] sm:$0xff] (!%p138_p2)   ;;  %v2396_v23 = vld [vmem:[%s2964_s1 + $0xa8] sm:$0xff] (!%p138_p2)  }
   0xd   : > { %2161 = vmatpush3.bf16.msra.mxu1 %v2380_v7  ;;  %2116 = vmatprep.subr.bf16.mxu0 %v2381_v8  ;;  %s2968_s13 = smov (!%p161_p3, %s1928_s13), 3  ;;  %v2397_v24 = vld [vmem:[%s2964_s1 + $0x70] sm:$0xff]   ;;  %v2401_v28 = vld [vmem:[%s2964_s1 + $0x78] sm:$0xff]   ;;  %v2412_v49 = vld [vmem:[%s2964_s1 + $0x140] sm:$0xff]  }
   0xe   : > { %2162 = vmatprep.subr.bf16.mxu1 %v2382_v9  ;;  %v2398_v25 = vld [vmem:[%s2964_s1 + $0xf0] sm:$0xff]   ;;  %s2361_s18 = smul.u32 56, %s2968_s13  ;;  %v2402_v29 = vld [vmem:[%s2964_s1 + $0xf8] sm:$0xff]   ;;  %v2413_v52 = vld [vmem:[%s2964_s1 + $0x100] sm:$0xff]  }
   0xf   : > { %v2399_v26 = vld [vmem:[%s2964_s1 + $0x30] sm:$0xff]   ;;  %v2403_v30 = vld [vmem:[%s2964_s1 + $0x38] sm:$0xff]   ;;  %v2414_v53 = vld [vmem:[%s2964_s1 + $0x148] sm:$0xff]   ;;  %s2362_s16 = smul.u32 40, %s2968_s13 }
  0x10   : > { %2117 = vmatpush3.bf16.msra.mxu0 %v2383_v10  ;;  %v2400_v27 = vld [vmem:[%s2964_s1 + $0xb0] sm:$0xff]   ;;  %s2639_s29 = scalar_lea.vmem %s2963_s0, %s2361_s18  ;;  %v2404_v31 = vld [vmem:[%s2964_s1 + $0xb8] sm:$0xff]   ;;  %v2415_v56 = vld [vmem:[%s2964_s1 + $0x108] sm:$0xff]  }
  0x11   : > { %2163 = vmatpush3.bf16.msra.mxu1 %v2384_v11  ;;  %2118 = vmatprep.subr.bf16.mxu0 %v2385_v12  ;;  %v2405_v32 = vld [vmem:[%s2639_s29] sm:$0xff]   ;;  %v2406_v33 = vld [vmem:[%s2639_s29 + $0x8] sm:$0xff]   ;;  %v2416_v57 = vld [vmem:[%s2639_s29 + $0x10] sm:$0xff]   ;;  %s2949_s19 = scalar_lea.vmem %s2966_s3, %s2362_s16 }
  0x12   : > { %2164 = vmatprep.subr.bf16.mxu1 %v2386_v13  ;;  %v258_v34 = vshrl.u32 %v2405_v32, 16  ;;  %v260_v35 = vshll.u32 %v2405_v32, 16  ;;  %v265_v36 = vshll.u32 %v2406_v33, 16  ;;  %v2408_v37 = vld [vmem:[%s2639_s29 + $0xc] sm:$0xff]   ;;  %v2407_v38 = vld [vmem:[%s2639_s29 + $0x4] sm:$0xfe]  }
  0x13   : > { %v412_v41 = vrot.slane %v2408_v37, 1  ;;  %v2409_v42 = vld [vmem:[%s2639_s29] sm:$0xff]   ;;  %v411_v43 = vrot.slane %v2407_v38, 1  ;;  %v2411_v44 = vld [vmem:[%s2639_s29 + $0x8] sm:$0xff]   ;;  %v269_v54 = vshrl.u32 %v2406_v33, 16  ;;  %v2417_v58 = vld [vmem:[%s2639_s29 + $0x14] sm:$0xff]  }
  0x14   : > { %2119 = vmatpush3.bf16.msra.mxu0 %v2387_v14  ;;  %v262_v39 = vrot.slane %v260_v35, 1  ;;  %v267_v40 = vrot.slane %v265_v36, 1  ;;  %v2410_v46 = vld [vmem:[%s2639_s29] sm:$0xfe]   ;;  %v352_v48 = vrot.slane %v2411_v44, 1  ;;  %v273_v60 = vshll.u32 %v2416_v57, 16 }
  0x15   : > { %2165 = vmatpush3.bf16.msra.mxu1 %v2388_v15  ;;  %2120 = vmatprep.subr.bf16.mxu0 %v2389_v16  ;;  %v413_v47 = vsel %vm350_vm0, %v411_v43, %v412_v41  ;;  %v351_v51 = vrot.slane %v2410_v46, 1  ;;  %v2418_v61 = vld [vmem:[%s2639_s29 + $0x8] sm:$0xff]   ;;  %v414_v62 = vrot.slane %v2417_v58, 1  ;;  %v2419_v63 = vld [vmem:[%s2639_s29 + $0x10] sm:$0xff]   ;;  %v2420_v1 = vld [vmem:[%s2964_s1 + $0x1c0] sm:$0xff]   ;;  %v277_v10 = vshrl.u32 %v2416_v57, 16 }
  0x16   : > { %2166 = vmatprep.subr.bf16.mxu1 %v2390_v17  ;;  %v263_v45 = vor.u32 %v262_v39, %v258_v34  ;;  %1553 = vmatprep.mubr.bf16.mxu1 %v413_v47  ;;  %v271_v59 = vor.u32 %v269_v54, %v267_v40  ;;  %v275_v0 = vrot.slane %v273_v60, 1  ;;  %v354_v3 = vrot.slane %v2419_v63, 1  ;;  %v2421_v4 = vld [vmem:[%s2964_s1 + $0x180] sm:$0xff]   ;;  %v2422_v6 = vld [vmem:[%s2964_s1 + $0x150] sm:$0xff]   ;;  %v2424_v9 = vld [vmem:[%s2964_s1 + $0x1c8] sm:$0xff]  }
  0x17   : > { %v353_v55 = vsel %vm350_vm0, %v351_v51, %v352_v48  ;;  %v415_v2 = vsel %vm350_vm0, %v412_v41, %v414_v62  ;;  %v2423_v8 = vld [vmem:[%s2964_s1 + $0x110] sm:$0xff]   ;;  %v2425_v11 = vld [vmem:[%s2964_s1 + $0x188] sm:$0xff]   ;;  %v2426_v12 = vld [vmem:[%s2639_s29 + $0x18] sm:$0xff]  }
  0x18   : > { %2121 = vmatpush3.bf16.msra.mxu0 %v2391_v18  ;;  %v268_v50 = vsel %vm256_vm1, %v263_v45, %v267_v40  ;;  %v276_v5 = vsel %vm256_vm1, %v271_v59, %v275_v0  ;;  %v355_v7 = vsel %vm350_vm0, %v352_v48, %v354_v3  ;;  %v2427_v13 = vld [vmem:[%s2639_s29 + $0x1c] sm:$0xff]   ;;  %v279_v14 = vor.u32 %v277_v10, %v275_v0  ;;  %v2429_v18 = vld [vmem:[%s2639_s29 + $0x10] sm:$0xff]   ;;  %v2439_v34 = vld [vmem:[%s2639_s29 + $0x24] sm:$0xff]  }
  0x19   : > { %2167 = vmatpush3.bf16.msra.mxu1 %v2392_v19  ;;  %2122 = vmatprep.subr.bf16.mxu0 %v2393_v20  ;;  %v281_v15 = vshll.u32 %v2426_v12, 16  ;;  %v2428_v16 = vld [vmem:[%s2964_s1 + $0x158] sm:$0xff]   ;;  %v416_v17 = vrot.slane %v2427_v13, 1  ;;  %v2438_v33 = vld [vmem:[%s2639_s29 + $0x20] sm:$0xff]   ;;  %v418_v38 = vrot.slane %v2439_v34, 1  ;;  %v2443_v44 = vld [vmem:[%s2964_s1 + $0x168] sm:$0xff]  }
  0x1a   : > { %2168 = vmatprep.subr.bf16.mxu1 %v2394_v21  ;;  %1480 = vmatprep.mubr.bf16.mxu0 %v268_v50  ;;  %v2430_v20 = vld [vmem:[%s2639_s29 + $0x18] sm:$0xff]   ;;  %v289_v36 = vshll.u32 %v2438_v33, 16  ;;  %v2441_v39 = vld [vmem:[%s2639_s29 + $0x20] sm:$0xff]   ;;  %v2445_v48 = vld [vmem:[%s2964_s1 + $0x128] sm:$0xff]   ;;  %v293_v51 = vshrl.u32 %v2438_v33, 16 }
  0x1b   : > { %v283_v19 = vrot.slane %v281_v15, 1  ;;  %v417_v21 = vsel %vm350_vm0, %v414_v62, %v416_v17  ;;  %v2437_v32 = vld [vmem:[%s2964_s1 + $0x198] sm:$0xff]   ;;  %v2442_v41 = vld [vmem:[%s2964_s1 + $0x1e0] sm:$0xff]   ;;  %v358_v43 = vrot.slane %v2441_v39, 1  ;;  %v2447_v50 = vld [vmem:[%s2964_s1 + $0x1a8] sm:$0xff]  }
  0x1c   : > { %2123 = vmatpush3.bf16.msra.mxu0 %v2395_v22  ;;  %v2431_v22 = vld [vmem:[%s2964_s1 + $0x118] sm:$0xff]   ;;  %v291_v40 = vrot.slane %v289_v36, 1  ;;  %v2444_v46 = vld [vmem:[%s2964_s1 + $0x1a0] sm:$0xff]   ;;  %v2451_v54 = vld [vmem:[%s2964_s1 + $0x130] sm:$0xff]  }
  0x1d   : > { %2169 = vmatpush3.bf16.msra.mxu1 %v2396_v23  ;;  %2124 = vmatprep.subr.bf16.mxu0 %v2397_v24  ;;  %v284_v23 = vsel %vm256_vm1, %v279_v14, %v283_v19  ;;  %v356_v24 = vrot.slane %v2430_v20, 1  ;;  %v2440_v37 = vld [vmem:[%s2639_s29 + $0x18] sm:$0xff]   ;;  %v2452_v58 = vld [vmem:[%s2639_s29 + $0x20] sm:$0xff]   ;;  %v2454_v59 = vld [vmem:[%s2964_s1 + $0x1f0] sm:$0xff]  }
  0x1e   : > { %2170 = vmatprep.subr.bf16.mxu1 %v2398_v25  ;;  %v2432_v25 = vld [vmem:[%s2964_s1 + $0x1d0] sm:$0xff]   ;;  %v2453_v63 = vld [vmem:[%s2639_s29 + $0x28] ss:$0 sps:$4 sm:$0x11]   ;;  %v2462_v13 = vld [vmem:[%s2639_s29 + $0x8] sm:$0xfc]  }
  0x1f   : > { %v359_v47 = vsel %vm350_vm0, %v356_v24, %v358_v43  ;;  %v2461_v10 = vld [vmem:[%s2639_s29 + $0xc] sm:$0xff]  }
  0x20   : > { %2125 = vmatpush3.bf16.msra.mxu0 %v2399_v26  ;;  %v2433_v26 = vld [vmem:[%s2964_s1 + $0x190] sm:$0xff]   ;;  %v2466_v36 = vld [vmem:[%s2639_s29 + $0x8] sm:$0xfc]  }
  0x21   : > { %2171 = vmatpush3.bf16.msra.mxu1 %v2400_v27  ;;  %2126 = vmatprep.subr.bf16.mxu0 %v2401_v28  ;;  %v357_v27 = vsel %vm350_vm0, %v354_v3, %v356_v24  ;;  %v2434_v28 = vld [vmem:[%s2964_s1 + $0x160] sm:$0xff]   ;;  %v2456_v3 = vld [vmem:[%s2964_s1 + $0x178] sm:$0xff]   ;;  %v2463_v14 = vld [vmem:[%s2639_s29 + $0x10] sm:$0xff]  }
  0x22   : > { %2172 = vmatprep.subr.bf16.mxu1 %v2402_v29  ;;  %v2435_v29 = vld [vmem:[%s2964_s1 + $0x1d8] sm:$0xff]   ;;  %v2465_v15 = vld [vmem:[%s2639_s29 + $0xc] sm:$0xff]   ;;  %v708_v20 = vshll.u32 %v2463_v14, 16 }
  0x23   : > { %v481_v24 = vshrl.u32 %v2465_v15, 16 }
  0x24   : > { %2127 = vmatpush3.bf16.msra.mxu0 %v2403_v30  ;;  %v2436_v30 = vld [vmem:[%s2964_s1 + $0x120] sm:$0xff]  }
  0x25   : > { %2173 = vmatpush3.bf16.msra.mxu1 %v2404_v31  ;;  %2204 = vmatprep.subr.bf16.mxu0 %v2412_v49  ;;  %v285_v31 = vshrl.u32 %v2426_v12, 16  ;;  %v2446_v49 = vld [vmem:[%s2964_s1 + $0x1e8] sm:$0xff]   ;;  %v576_v12 = vrot.slane %v2461_v10, 2 }
  0x26   : > { %2250 = vmatprep.subr.bf16.mxu1 %v2420_v1 }
  0x27   : > { %1481 = vmatmul.mubr.bf16.vlgmr.msra.gmra.mrb[0].mxu0 %v2409_v42  ;;  %v287_v35 = vor.u32 %v285_v31, %v283_v19  ;;  %v419_v42 = vsel %vm350_vm0, %v416_v17, %v418_v38  ;;  %v697_v17 = vshrl.u32 %v2462_v13, 16  ;;  %v705_v19 = vshrl.u32 %v2463_v14, 16 }
  0x28   : > { %1554 = vmatmul.mubr.bf16.vlgmr.msra.gmra.mrb[0].mxu1 %v353_v55  ;;  %2205 = vmatpush3.bf16.msra.mxu0 %v2413_v52  ;;  %v2448_v52 = vld [vmem:[%s2964_s1 + $0x170] sm:$0xff]   ;;  %v2450_v55 = vld [vmem:[%s2639_s29 + $0x2c] ss:$0 sps:$4 sm:$0x11]   ;;  %v483_v31 = vrot.slane %v481_v24, 1 }
  0x29   : > { %2206 = vmatprep.subr.bf16.mxu0 %v2414_v53  ;;  %1561 = vmatprep.mubr.bf16.mxu1 %v415_v2  ;;  %v292_v45 = vsel %vm256_vm1, %v287_v35, %v291_v40  ;;  %v2449_v53 = vld [vmem:[%s2639_s29 + $0x28] ss:$0 sps:$4 sm:$0x11]   ;;  %v420_v60 = vrot.slane %v2450_v55, 1  ;;  %v360_v2 = vrot.slane %v2453_v63, 1 }
  0x2a   : > { %1488 = vmatprep.mubr.bf16.mxu0 %v276_v5  ;;  %2251 = vmatpush3.bf16.msra.mxu1 %v2421_v4  ;;  %v297_v57 = vshll.u32 %v2449_v53, 16  ;;  %v2457_v4 = vld [vmem:[%s2964_s1 + $0x138] sm:$0xff]  }
  0x2b   : > { %2252 = vmatprep.subr.bf16.mxu1 %v2424_v9  ;;  %v421_v0 = vsel %vm350_vm0, %v418_v38, %v420_v60  ;;  %v361_v5 = vsel %vm350_vm0, %v358_v43, %v360_v2  ;;  %v2460_v9 = vld [vmem:[%s2639_s29 + $0x4] sm:$0xfc]   ;;  %v2473_v53 = vld [vmem:[%s2639_s29 + $0x18] sm:$0xff]  }
  0x2c   : > { %2207 = vmatpush3.bf16.msra.mxu0 %v2415_v56  ;;  %v295_v56 = vor.u32 %v293_v51, %v291_v40  ;;  %v299_v62 = vrot.slane %v297_v57, 1  ;;  %v2474_v57 = vld [vmem:[%s2964_s1 + $0x210] sm:$0xff]   ;;  %v638_v60 = vrot.slane %v2473_v53, 2  ;;  %v2476_v2 = vld [vmem:[%s2639_s29 + $0x20] sm:$0xff]  }
  0x2d   : > { %2208 = vmatprep.subr.bf16.mxu0 %v2422_v6  ;;  %v2458_v6 = vld [vmem:[%s2964_s1 + $0x1f8] sm:$0xff]   ;;  %v726_v10 = vshll.u32 %v2476_v2, 16 }
  0x2e   : > { %2253 = vmatpush3.bf16.msra.mxu1 %v2425_v11  ;;  %v300_v1 = vsel %vm256_vm1, %v295_v56, %v299_v62  ;;  %v575_v11 = vrot.slane %v2460_v9, 2  ;;  %v723_v9 = vshrl.u32 %v2476_v2, 16 }
  0x2f   : > { %1489 = vmatmul.mubr.bf16.gmra.mrb[4].mxu0 %v2418_v61  ;;  %2254 = vmatprep.subr.bf16.mxu1 %v2432_v25  ;;  %v2455_v61 = vld [vmem:[%s2964_s1 + $0x1b0] sm:$0xff]  }
  0x30   : > { %1562 = vmatmul.mubr.bf16.gmra.mrb[4].mxu1 %v355_v7  ;;  %2209 = vmatpush3.bf16.msra.mxu0 %v2423_v8  ;;  %v2459_v7 = vld [vmem:[%s2964_s1 + $0x1b8] sm:$0xff]   ;;  %v2506_v8 = vmov 0.0   ;;  %v2467_v25 = vld [vmem:[%s2639_s29 + $0x10] sm:$0xff]  }
  0x31   : > { %2210 = vmatprep.subr.bf16.mxu0 %v2428_v16  ;;  %1569 = vmatprep.mubr.bf16.mxu1 %v417_v21  ;;  %v577_v16 = vsel %vm574_vm2, %v575_v11, %v576_v12  ;;  %v2464_v21 = vld [vmem:[%s2639_s29 + $0x4] sm:$0xfe]   ;;  %v636_v38 = vrot.slane %v2467_v25, 2 }
  0x32   : > { %1496 = vmatprep.mubr.bf16.mxu0 %v284_v23  ;;  %2255 = vmatpush3.bf16.msra.mxu1 %v2433_v26  ;;  %v707_v26 = vrot.slane %v705_v19, 2  ;;  %v2817_v11 = vld [vmem:[%s2639_s29 + $0x20] sm:$0xff]   ;;  %v2482_v25 = vld [vmem:[%s2639_s29 + $0x28] sm:$0xff]  }
  0x33   : > { %2256 = vmatprep.subr.bf16.mxu1 %v2435_v29  ;;  %v476_v29 = vshll.u32 %v2464_v21, 16 }
  0x34   : > { %2211 = vmatpush3.bf16.msra.mxu0 %v2431_v22  ;;  %v699_v22 = vrot.slane %v697_v17, 2  ;;  %v728_v17 = vrot.slane %v726_v10, 3  ;;  %v2495_v10 = vld [vmem:[%s2639_s29 + $0x28] sm:$0xff]  }
  0x35   : > { %2212 = vmatprep.subr.bf16.mxu0 %v2434_v28  ;;  %v473_v28 = vshrl.u32 %v2464_v21, 16  ;;  %v478_v35 = vrot.slane %v476_v29, 2  ;;  %v2480_v21 = vld [vmem:[%s2964_s1 + $0x220] sm:$0xff]  }
  0x36   : > { %2257 = vmatpush3.bf16.msra.mxu1 %v2437_v32  ;;  %v484_v32 = vshll.u32 %v2465_v15, 16 }
  0x37   : > { %1497 = vmatmul.mubr.bf16.gmra.mrb[8].mxu0 %v2429_v18  ;;  %2258 = vmatprep.subr.bf16.mxu1 %v2442_v41  ;;  %v700_v18 = vshll.u32 %v2462_v13, 16  ;;  %v475_v34 = vrot.slane %v473_v28, 1  ;;  %v635_v41 = vrot.slane %v2466_v36, 2  ;;  %v2483_v28 = vld [vmem:[%s2639_s29 + $0x24] sm:$0xff]  }
  0x38   : > { %1570 = vmatmul.mubr.bf16.gmra.mrb[8].mxu1 %v357_v27  ;;  %2213 = vmatpush3.bf16.msra.mxu0 %v2436_v30  ;;  %v710_v27 = vrot.slane %v708_v20, 3  ;;  %v508_v36 = vshrl.u32 %v2483_v28, 16 }
  0x39   : > { %1577 = vmatprep.mubr.bf16.mxu1 %v419_v42  ;;  %1504 = vmatprep.mubr.bf16.mxu0 %v292_v45  ;;  %v702_v23 = vrot.slane %v700_v18, 3  ;;  %v479_v40 = vor.u32 %v478_v35, %v475_v34  ;;  %v2468_v42 = vld [vmem:[%s2964_s1 + $0x200] sm:$0xff]   ;;  %v2469_v45 = vld [vmem:[%s2964_s1 + $0x208] sm:$0xff]   ;;  %v640_v18 = vrot.slane %v2817_v11, 2 }
  0x3a   : > { %2214 = vmatprep.subr.bf16.mxu0 %v2443_v44  ;;  %2259 = vmatpush3.bf16.msra.mxu1 %v2444_v46  ;;  %v711_v33 = vor.u32 %v710_v27, %v707_v26  ;;  %v637_v44 = vsel %vm574_vm2, %v635_v41, %v636_v38  ;;  %v2470_v46 = vld [vmem:[%s2639_s29 + $0x14] sm:$0xff]   ;;  %v2485_v34 = vld [vmem:[%s2964_s1 + $0x228] sm:$0xff]  }
  0x3b   : > { %2260 = vmatprep.subr.bf16.mxu1 %v2446_v49  ;;  %v703_v30 = vor.u32 %v702_v23, %v699_v22  ;;  %v578_v49 = vrot.slane %v2470_v46, 2  ;;  %v2481_v23 = vld [vmem:[%s2639_s29 + $0x24] sm:$0xff]   ;;  %v2486_v41 = vld [vmem:[%s2639_s29 + $0x2c] ss:$0 sps:$4 sm:$0x33]  }
  0x3c   : > { %2215 = vmatpush3.bf16.msra.mxu0 %v2445_v48  ;;  %v2471_v48 = vld [vmem:[%s2639_s29 + $0x18] sm:$0xff]   ;;  %v582_v27 = vrot.slane %v2481_v23, 2  ;;  %v2487_v46 = vld [vmem:[%s2639_s29 + $0x30] ss:$0 sps:$4 sm:$0x77]  }
  0x3d   : > { %2216 = vmatprep.subr.bf16.mxu0 %v2448_v52  ;;  %v712_v39 = vsel %vm695_vm3, %v703_v30, %v711_v33  ;;  %v714_v51 = vshrl.u32 %v2471_v48, 16  ;;  %v717_v52 = vshll.u32 %v2471_v48, 16  ;;  %v641_v30 = vsel %vm574_vm2, %v638_v60, %v640_v18  ;;  %v2488_v48 = vld [vmem:[%s2964_s1 + $0x230] sm:$0xff]  }
  0x3e   : > { %2261 = vmatpush3.bf16.msra.mxu1 %v2447_v50  ;;  %v2472_v50 = vld [vmem:[%s2639_s29 + $0x14] sm:$0xff]  }
  0x3f   : > { %1505 = vmatmul.mubr.bf16.gmra.mrb[12].mxu0 %v2440_v37  ;;  %2262 = vmatprep.subr.bf16.mxu1 %v2454_v59  ;;  %v486_v37 = vrot.slane %v484_v32, 2  ;;  %v490_v55 = vshrl.u32 %v2472_v50, 16  ;;  %v493_v56 = vshll.u32 %v2472_v50, 16  ;;  %v719_v59 = vrot.slane %v717_v52, 3 }
  0x40   : > { %1578 = vmatmul.mubr.bf16.gmra.mrb[12].mxu1 %v359_v47  ;;  %2217 = vmatpush3.bf16.msra.mxu0 %v2451_v54  ;;  %v579_v54 = vsel %vm574_vm2, %v576_v12, %v578_v49  ;;  %v2479_v12 = vld [vmem:[%s2964_s1 + $0x218] sm:$0xff]   ;;  %v735_v32 = vshll.u32 %v2482_v25, 16  ;;  %v744_v52 = vshll.u32 %v2487_v46, 16 }
  0x41   : > { %1585 = vmatprep.mubr.bf16.mxu1 %v421_v0  ;;  %1512 = vmatprep.mubr.bf16.mxu0 %v300_v1  ;;  %v487_v43 = vor.u32 %v486_v37, %v483_v31  ;;  %v492_v62 = vrot.slane %v490_v55, 1  ;;  %v495_v63 = vrot.slane %v493_v56, 2  ;;  %v732_v31 = vshrl.u32 %v2482_v25, 16  ;;  %v2490_v55 = vld [vmem:[%s2639_s29 + $0x30] ss:$0 sps:$4 sm:$0x33]  }
  0x42   : > { %2263 = vmatpush3.bf16.msra.mxu1 %v2455_v61  ;;  %2218 = vmatprep.subr.bf16.mxu0 %v2456_v3  ;;  %v2475_v61 = vld [vmem:[%s2639_s29 + $0x1c] sm:$0xff]   ;;  %v511_v37 = vshll.u32 %v2483_v28, 16 }
  0x43   : > { %2264 = vmatprep.subr.bf16.mxu1 %v2458_v6  ;;  %v488_v47 = vsel %vm471_vm4, %v479_v40, %v487_v43  ;;  %v580_v1 = vrot.slane %v2475_v61, 2  ;;  %v496_v3 = vor.u32 %v495_v63, %v492_v62  ;;  %v2889_v25 = vld [vmem:[%s2965_s2] ss:$0 sm:$0xff] }
  0x44   : > { %2219 = vmatpush3.bf16.msra.mxu0 %v2457_v4  ;;  %v639_v4 = vsel %vm574_vm2, %v636_v38, %v638_v60  ;;  %v734_v38 = vrot.slane %v732_v31, 2 }
  0x45   : > { %2309 = vmatprep.subr.bf16.mxu0 %v2506_v8  ;;  %v497_v13 = vsel %vm471_vm4, %v487_v43, %v496_v3  ;;  %v583_v35 = vsel %vm574_vm2, %v580_v1, %v582_v27  ;;  %v513_v43 = vrot.slane %v511_v37, 2 }
  0x46   : > { %2265 = vmatpush3.bf16.msra.mxu1 %v2459_v7  ;;  %v581_v7 = vsel %vm574_vm2, %v578_v49, %v580_v1  ;;  %v2489_v49 = vld [vmem:[%s2639_s29 + $0x2c] ss:$0 sps:$4 sm:$0x33]  }
  0x47   : > { %1513 = vmatmul.mubr.bf16.gmra.mrb[16].mxu0 %v2452_v58  ;;  %2345 = vmatprep.subr.bf16.mxu1 %v2506_v8  ;;  %v716_v58 = vrot.slane %v714_v51, 2  ;;  %v741_v51 = vshrl.u32 %v2487_v46, 16  ;;  %v517_v53 = vshrl.u32 %v2489_v49, 16 }
  0x48   : > { %1586 = vmatmul.mubr.bf16.gmra.mrb[16].mxu1 %v361_v5  ;;  %1626 = vmatprep.mubr.bf16.mxu0 %v577_v16  ;;  %v2477_v5 = vld [vmem:[%s2639_s29 + $0x1c] sm:$0xff]   ;;  %v725_v16 = vrot.slane %v723_v9, 2 }
  0x49   : > { %1699 = vmatprep.mubr.bf16.mxu1 %v712_v39  ;;  %v720_v0 = vor.u32 %v719_v59, %v716_v58  ;;  %v499_v14 = vshrl.u32 %v2477_v5, 16  ;;  %v502_v15 = vshll.u32 %v2477_v5, 16  ;;  %v737_v39 = vrot.slane %v735_v32, 3  ;;  %v2494_v9 = vld [vmem:[%s2639_s29 + $0x20] sm:$0xff]  }
  0x4a   : > { %v729_v22 = vor.u32 %v728_v17, %v725_v16  ;;  %v743_v58 = vrot.slane %v741_v51, 2  ;;  %v746_v59 = vrot.slane %v744_v52, 3  ;;  %v519_v61 = vrot.slane %v517_v53, 1  ;;  %v2496_v17 = vld [vmem:[%s2639_s29 + $0x18] sm:$0xff]  }
  0x4b   : > { %v721_v6 = vsel %vm695_vm3, %v711_v33, %v720_v0  ;;  %v501_v19 = vrot.slane %v499_v14, 1  ;;  %v504_v20 = vrot.slane %v502_v15, 2  ;;  %v2484_v33 = vld [vmem:[%s2639_s29 + $0x28] sm:$0xff]   ;;  %v806_v14 = vrot.slane %v2495_v10, 3 }
  0x4c   : > { %v730_v26 = vsel %vm695_vm3, %v720_v0, %v729_v22  ;;  %v642_v40 = vrot.slane %v2484_v33, 2  ;;  %v747_v63 = vor.u32 %v746_v59, %v743_v58  ;;  %v2491_v0 = vld [vmem:[%s2964_s1 + $0x238] sm:$0xff]  }
  0x4d   : > { %v505_v24 = vor.u32 %v504_v20, %v501_v19  ;;  %v802_v19 = vrot.slane %v2496_v17, 3 }
  0x4f   : > { %1627 = vmatmul.mubr.bf16.vlgmr.msra.gmra.mrb[20].mxu0 %v488_v47  ;;  %v506_v29 = vsel %vm471_vm4, %v496_v3, %v505_v24  ;;  %v644_v3 = vrot.slane %v2490_v55, 2 }
  0x50   : > { %1700 = vmatmul.mubr.bf16.vlgmr.msra.gmra.mrb[20].mxu1 %v637_v44  ;;  %2310 = vmatpush3.bf16.msra.mxu0 %v2468_v42  ;;  %v738_v44 = vor.u32 %v737_v39, %v734_v38 }
  0x51   : > { %2353 = vmatpush3.bf16.msra.mxu1 %v2468_v42  ;;  %2311 = vmatprep.subr.bf16.mxu0 %v2506_v8  ;;  %v510_v42 = vrot.slane %v508_v36, 1 }
  0x52   : > { %2346 = vmatprep.subr.bf16.mxu1 %v2506_v8  ;;  %1634 = vmatprep.mubr.bf16.mxu0 %v579_v54  ;;  %v739_v50 = vsel %vm695_vm3, %v729_v22, %v738_v44  ;;  %v520_v54 = vshll.u32 %v2489_v49, 16  ;;  %v748_v1 = vsel %vm695_vm3, %v738_v44, %v747_v63 }
  0x53   : > { %1707 = vmatprep.mubr.bf16.mxu1 %v721_v6  ;;  %v514_v47 = vor.u32 %v513_v43, %v510_v42  ;;  %v645_v6 = vsel %vm574_vm2, %v642_v40, %v644_v3 }
  0x54   : > { %2312 = vmatpush3.bf16.msra.mxu0 %v2469_v45  ;;  %v522_v62 = vrot.slane %v520_v54, 2 }
  0x55   : > { %2354 = vmatpush3.bf16.msra.mxu1 %v2469_v45  ;;  %2313 = vmatprep.subr.bf16.mxu0 %v2506_v8  ;;  %v584_v45 = vrot.slane %v2486_v41, 2  ;;  %v515_v56 = vsel %vm471_vm4, %v505_v24, %v514_v47 }
  0x56   : > { %2347 = vmatprep.subr.bf16.mxu1 %v2506_v8  ;;  %v523_v2 = vor.u32 %v522_v62, %v519_v61 }
  0x57   : > { %1635 = vmatmul.mubr.bf16.gmra.mrb[24].mxu0 %v497_v13  ;;  %v585_v60 = vsel %vm574_vm2, %v582_v27, %v584_v45  ;;  %v804_v13 = vrot.slane %v2494_v9, 3 }
  0x58   : > { %1708 = vmatmul.mubr.bf16.gmra.mrb[24].mxu1 %v639_v4  ;;  %2314 = vmatpush3.bf16.msra.mxu0 %v2474_v57  ;;  %v2493_v4 = vld [vmem:[%s2639_s29 + $0x10] sm:$0xff]   ;;  %v524_v5 = vsel %vm471_vm4, %v514_v47, %v523_v2 }
  0x59   : > { %2355 = vmatpush3.bf16.msra.mxu1 %v2474_v57  ;;  %1642 = vmatprep.mubr.bf16.mxu0 %v581_v7  ;;  %v643_v57 = vsel %vm574_vm2, %v640_v18, %v642_v40  ;;  %v2492_v7 = vld [vmem:[%s2639_s29 + $0x8] sm:$0xf8]   ;;  %v807_v16 = vsel %vm798_vm6, %v804_v13, %v806_v14  ;;  %v2497_v18 = vld [vmem:[%s2639_s29 + $0x30] ss:$0 sps:$4 sm:$0x77]   ;;  %v805_v23 = vsel %vm798_vm6, %v802_v19, %v804_v13 }
  0x5a   : > { %2315 = vmatprep.subr.bf16.mxu0 %v2506_v8  ;;  %2348 = vmatprep.subr.bf16.mxu1 %v2506_v8  ;;  %v799_v11 = vrot.slane %v2492_v7, 3  ;;  %v808_v20 = vrot.slane %v2497_v18, 3 }
  0x5b   : > { %1715 = vmatprep.mubr.bf16.mxu1 %v730_v26 }
  0x5c   : > { %2316 = vmatpush3.bf16.msra.mxu0 %v2479_v12  ;;  %v809_v22 = vsel %vm798_vm6, %v806_v14, %v808_v20 }
  0x5d   : > { %2356 = vmatpush3.bf16.msra.mxu1 %v2479_v12  ;;  %2317 = vmatprep.subr.bf16.mxu0 %v2506_v8  ;;  %v800_v12 = vrot.slane %v2493_v4, 3 }
  0x5e   : > { %2349 = vmatprep.subr.bf16.mxu1 %v2506_v8 }
  0x5f   : > { %1643 = vmatmul.mubr.bf16.gmra.mrb[28].mxu0 %v506_v29  ;;  %v801_v15 = vsel %vm798_vm6, %v799_v11, %v800_v12 }
  0x60   : > { %1716 = vmatmul.mubr.bf16.gmra.mrb[28].mxu1 %v641_v30  ;;  %2318 = vmatpush3.bf16.msra.mxu0 %v2480_v21 }
  0x61   : > { %2357 = vmatpush3.bf16.msra.mxu1 %v2480_v21  ;;  %1650 = vmatprep.mubr.bf16.mxu0 %v583_v35  ;;  %v803_v21 = vsel %vm798_vm6, %v800_v12, %v802_v19 }
  0x62   : > { %2319 = vmatprep.subr.bf16.mxu0 %v2506_v8  ;;  %2350 = vmatprep.subr.bf16.mxu1 %v2506_v8 }
  0x63   : > { %1723 = vmatprep.mubr.bf16.mxu1 %v739_v50 }
  0x64   : > { %2320 = vmatpush3.bf16.msra.mxu0 %v2485_v34 }
  0x65   : > { %2358 = vmatpush3.bf16.msra.mxu1 %v2485_v34  ;;  %2321 = vmatprep.subr.bf16.mxu0 %v2506_v8 }
  0x66   : > { %2351 = vmatprep.subr.bf16.mxu1 %v2506_v8 }
  0x67   : > { %1651 = vmatmul.mubr.bf16.gmra.mrb[32].mxu0 %v515_v56 }
  0x68   : > { %1724 = vmatmul.mubr.bf16.gmra.mrb[32].mxu1 %v643_v57  ;;  %1658 = vmatprep.mubr.bf16.mxu0 %v585_v60 }
  0x69   : > { %2359 = vmatpush3.bf16.msra.mxu1 %v2488_v48  ;;  %2322 = vmatpush3.bf16.msra.mxu0 %v2488_v48 }
  0x6a   : > { %1731 = vmatprep.mubr.bf16.mxu1 %v748_v1  ;;  %2323 = vmatprep.subr.bf16.mxu0 %v2506_v8 }
  0x6b   : > { %2352 = vmatprep.subr.bf16.mxu1 %v2506_v8 }
  0x6d   : > { %2360 = vmatpush3.bf16.msra.mxu1 %v2491_v0  ;;  %2324 = vmatpush3.bf16.msra.mxu0 %v2491_v0 }
  0x6f   : > { %1659 = vmatmul.mubr.bf16.gmra.mrb[36].mxu0 %v524_v5 }
  0x70   : > { %1732 = vmatmul.mubr.bf16.gmra.mrb[36].mxu1 %v645_v6  ;;  %2325 = vmatprep.mubr.msk.bf16.mxu0 %vm2507_vm5, %v2506_v8 }
  0x71   : > { %2337 = vmatprep.mubr.msk.bf16.mxu1 %vm2507_vm5, %v2506_v8 }
  0x77   : > { %2326 = vmatmul.mubr.bf16.vlgmr.msra.gmra.mrb[40].mxu0 %v801_v15 }
  0x78   : > { %2338 = vmatmul.mubr.bf16.vlgmr.msra.gmra.mrb[40].mxu1 %v807_v16  ;;  %2329 = vmatprep.mubr.msk.bf16.mxu0 %vm2507_vm5, %v2506_v8 }
  0x79   : > { %2341 = vmatprep.mubr.msk.bf16.mxu1 %vm2507_vm5, %v2506_v8 }
  0x7f   : > { %2330 = vmatmul.mubr.bf16.gmra.mrb[44].mxu0 %v803_v21 }
  0x80   : > { %2342 = vmatmul.mubr.bf16.gmra.mrb[44].mxu1 %v809_v22  ;;  %2333 = vmatprep.mubr.msk.bf16.mxu0 %vm2507_vm5, %v2506_v8 }
  0x87   : > { %2334 = vmatmul.mubr.bf16.gmra.mrb[48].mxu0 %v805_v23 }
  0xfa   : > { %v2128_v24 = vpop.f32.mrb[0].mxu0 }
  0xfb   : > { %v2129_v26 = vpop.f32.mrb[1].mxu0  ;;  %v2174_v27 = vpop.f32.mrb[0].mxu1 }
  0xfc   : > { %v2130_v28 = vadd.f32 %v2129_v26, %v2128_v24  ;;  %v2131_v29 = vpop.f32.mrb[2].mxu0  ;;  %v2175_v30 = vpop.f32.mrb[1].mxu1 }
  0xfd   : > { %v2132_v31 = vpop.f32.mrb[3].mxu0  ;;  %v2176_v32 = vadd.f32 %v2175_v30, %v2174_v27  ;;  %v2177_v33 = vpop.f32.mrb[2].mxu1 }
  0xfe   : > { %v1483_v34 = vadd.f32 %v2130_v28, %v2889_v25  ;;  %v2133_v8 = vadd.f32 %v2132_v31, %v2131_v29  ;;  %v2178_v35 = vpop.f32.mrb[3].mxu1 }
  0xff   : > { %v2179_v36 = vadd.f32 %v2178_v35, %v2177_v33 }
 0x100   : > { %v1486_v37 = vadd.f32 %v2133_v8, %v2889_v25  ;;  %v2893_v38 = vadd.f32 %v2176_v32, %v1483_v34 }
 0x102   : > { %v2895_v39 = vadd.f32 %v2179_v36, %v1486_v37  ;;  %v2134_v40 = vpop.f32.mrb[4].mxu0 }
 0x103   : > { %v2180_v41 = vpop.f32.mrb[4].mxu1  ;;  %v2135_v42 = vpop.f32.mrb[5].mxu0 }
 0x104   : > { %v2181_v43 = vpop.f32.mrb[5].mxu1  ;;  %v2136_v44 = vadd.f32 %v2135_v42, %v2134_v40  ;;  %v2137_v45 = vpop.f32.mrb[6].mxu0 }
 0x105   : > { %v2182_v46 = vadd.f32 %v2181_v43, %v2180_v41  ;;  %v2183_v47 = vpop.f32.mrb[6].mxu1  ;;  %v2138_v48 = vpop.f32.mrb[7].mxu0 }
 0x106   : > { %v2184_v49 = vpop.f32.mrb[7].mxu1  ;;  %v1491_v50 = vadd.f32 %v2136_v44, %v2889_v25  ;;  %v2139_v51 = vadd.f32 %v2138_v48, %v2137_v45 }
 0x107   : > { %v2185_v52 = vadd.f32 %v2184_v49, %v2183_v47 }
 0x108   : > { %v1494_v53 = vadd.f32 %v2139_v51, %v2889_v25  ;;  %v2899_v54 = vadd.f32 %v2182_v46, %v1491_v50 }
 0x10a   : > { %v2901_v55 = vadd.f32 %v2185_v52, %v1494_v53  ;;  %v2140_v56 = vpop.f32.mrb[8].mxu0 }
 0x10b   : > { %v2141_v57 = vpop.f32.mrb[9].mxu0  ;;  %v2186_v58 = vpop.f32.mrb[8].mxu1 }
 0x10c   : > { %v2142_v59 = vadd.f32 %v2141_v57, %v2140_v56  ;;  %v2143_v60 = vpop.f32.mrb[10].mxu0  ;;  %v2187_v61 = vpop.f32.mrb[9].mxu1 }
 0x10d   : > { %v2144_v62 = vpop.f32.mrb[11].mxu0  ;;  %v2188_v63 = vadd.f32 %v2187_v61, %v2186_v58  ;;  %v2189_v0 = vpop.f32.mrb[10].mxu1 }
 0x10e   : > { %v1499_v1 = vadd.f32 %v2142_v59, %v2889_v25  ;;  %v2145_v2 = vadd.f32 %v2144_v62, %v2143_v60  ;;  %v2190_v3 = vpop.f32.mrb[11].mxu1 }
 0x10f   : > { %v2191_v4 = vadd.f32 %v2190_v3, %v2189_v0 }
 0x110   : > { %v1502_v5 = vadd.f32 %v2145_v2, %v2889_v25  ;;  %v2905_v6 = vadd.f32 %v2188_v63, %v1499_v1 }
 0x112   : > { %v2907_v7 = vadd.f32 %v2191_v4, %v1502_v5  ;;  %v2146_v9 = vpop.f32.mrb[12].mxu0 }
 0x113   : > { %v2192_v10 = vpop.f32.mrb[12].mxu1  ;;  %v2147_v11 = vpop.f32.mrb[13].mxu0 }
 0x114   : > { %v2193_v12 = vpop.f32.mrb[13].mxu1  ;;  %v2148_v13 = vadd.f32 %v2147_v11, %v2146_v9  ;;  %v2149_v14 = vpop.f32.mrb[14].mxu0 }
 0x115   : > { %v2194_v15 = vadd.f32 %v2193_v12, %v2192_v10  ;;  %v2195_v16 = vpop.f32.mrb[14].mxu1  ;;  %v2150_v17 = vpop.f32.mrb[15].mxu0 }
 0x116   : > { %v2196_v18 = vpop.f32.mrb[15].mxu1  ;;  %v1507_v19 = vadd.f32 %v2148_v13, %v2889_v25  ;;  %v2151_v20 = vadd.f32 %v2150_v17, %v2149_v14 }
 0x117   : > { %v2197_v21 = vadd.f32 %v2196_v18, %v2195_v16 }
 0x118   : > { %v1510_v22 = vadd.f32 %v2151_v20, %v2889_v25  ;;  %v2911_v23 = vadd.f32 %v2194_v15, %v1507_v19 }
 0x11a   : > { %v2913_v24 = vadd.f32 %v2197_v21, %v1510_v22  ;;  %v2152_v26 = vpop.f32.mrb[16].mxu0 }
 0x11b   : > { %v2153_v27 = vpop.f32.mrb[17].mxu0  ;;  %v2198_v28 = vpop.f32.mrb[16].mxu1 }
 0x11c   : > { %v2154_v29 = vadd.f32 %v2153_v27, %v2152_v26  ;;  %v2155_v30 = vpop.f32.mrb[18].mxu0  ;;  %v2199_v31 = vpop.f32.mrb[17].mxu1 }
 0x11d   : > { %v2156_v32 = vpop.f32.mrb[19].mxu0  ;;  %v2200_v33 = vadd.f32 %v2199_v31, %v2198_v28  ;;  %v2201_v34 = vpop.f32.mrb[18].mxu1 }
 0x11e   : > { %v1515_v8 = vadd.f32 %v2154_v29, %v2889_v25  ;;  %v2157_v35 = vadd.f32 %v2156_v32, %v2155_v30  ;;  %v2202_v36 = vpop.f32.mrb[19].mxu1 }
 0x11f   : > { %v2203_v37 = vadd.f32 %v2202_v36, %v2201_v34 }
 0x120   : > { %v1518_v40 = vadd.f32 %v2157_v35, %v2889_v25  ;;  %v2917_v41 = vadd.f32 %v2200_v33, %v1515_v8 }
 0x122   : > { %v2919_v42 = vadd.f32 %v2203_v37, %v1518_v40  ;;  %v2220_v44 = vpop.f32.mrb[20].mxu0 }
 0x123   : > { %v2266_v43 = vpop.f32.mrb[20].mxu1  ;;  %v2221_v46 = vpop.f32.mrb[21].mxu0 }
 0x124   : > { %v2267_v45 = vpop.f32.mrb[21].mxu1  ;;  %v2222_v49 = vadd.f32 %v2221_v46, %v2220_v44  ;;  %v2223_v50 = vpop.f32.mrb[22].mxu0 }
 0x125   : > { %v2268_v47 = vadd.f32 %v2267_v45, %v2266_v43  ;;  %v2269_v48 = vpop.f32.mrb[22].mxu1  ;;  %v2224_v52 = vpop.f32.mrb[23].mxu0 }
 0x126   : > { %v2270_v51 = vpop.f32.mrb[23].mxu1  ;;  %v1629_v56 = vadd.f32 %v2222_v49, %v2893_v38  ;;  %v2225_v57 = vadd.f32 %v2224_v52, %v2223_v50 }
 0x127   : > { %v2271_v53 = vadd.f32 %v2270_v51, %v2269_v48 }
 0x128   : > { %v1632_v25 = vadd.f32 %v2225_v57, %v2895_v39  ;;  %v2923_v58 = vadd.f32 %v2268_v47, %v1629_v56 }
 0x12a   : > { %v2925_v59 = vadd.f32 %v2271_v53, %v1632_v25  ;;  %v2226_v60 = vpop.f32.mrb[24].mxu0 }
 0x12b   : > { %v2272_v61 = vpop.f32.mrb[24].mxu1  ;;  %v2227_v62 = vpop.f32.mrb[25].mxu0 }
 0x12c   : > { %v2273_v63 = vpop.f32.mrb[25].mxu1  ;;  %v2228_v0 = vadd.f32 %v2227_v62, %v2226_v60  ;;  %v2229_v1 = vpop.f32.mrb[26].mxu0 }
 0x12d   : > { %v2274_v2 = vadd.f32 %v2273_v63, %v2272_v61  ;;  %v2275_v3 = vpop.f32.mrb[26].mxu1  ;;  %v2230_v4 = vpop.f32.mrb[27].mxu0 }
 0x12e   : > { %v2276_v5 = vpop.f32.mrb[27].mxu1  ;;  %v1637_v9 = vadd.f32 %v2228_v0, %v2899_v54  ;;  %v2231_v38 = vadd.f32 %v2230_v4, %v2229_v1 }
 0x12f   : > { %v2277_v10 = vadd.f32 %v2276_v5, %v2275_v3 }
 0x130   : > { %v1640_v39 = vadd.f32 %v2231_v38, %v2901_v55  ;;  %v2929_v11 = vadd.f32 %v2274_v2, %v1637_v9 }
 0x132   : > { %v2232_v12 = vpop.f32.mrb[28].mxu0  ;;  %v2931_v14 = vadd.f32 %v2277_v10, %v1640_v39 }
 0x133   : > { %v2278_v13 = vpop.f32.mrb[28].mxu1  ;;  %v2233_v15 = vpop.f32.mrb[29].mxu0 }
 0x134   : > { %v2279_v16 = vpop.f32.mrb[29].mxu1  ;;  %v2234_v17 = vadd.f32 %v2233_v15, %v2232_v12  ;;  %v2235_v18 = vpop.f32.mrb[30].mxu0 }
 0x135   : > { %v2280_v19 = vadd.f32 %v2279_v16, %v2278_v13  ;;  %v2281_v20 = vpop.f32.mrb[30].mxu1  ;;  %v2236_v21 = vpop.f32.mrb[31].mxu0 }
 0x136   : > { %v2282_v22 = vpop.f32.mrb[31].mxu1  ;;  %v1645_v54 = vadd.f32 %v2234_v17, %v2905_v6  ;;  %v2237_v26 = vadd.f32 %v2236_v21, %v2235_v18 }
 0x137   : > { %v2283_v27 = vadd.f32 %v2282_v22, %v2281_v20 }
 0x138   : > { %v1648_v55 = vadd.f32 %v2237_v26, %v2907_v7  ;;  %v2935_v28 = vadd.f32 %v2280_v19, %v1645_v54 }
 0x13a   : > { %v2238_v29 = vpop.f32.mrb[32].mxu0  ;;  %v2937_v31 = vadd.f32 %v2283_v27, %v1648_v55 }
 0x13b   : > { %v2284_v30 = vpop.f32.mrb[32].mxu1  ;;  %v2239_v32 = vpop.f32.mrb[33].mxu0 }
 0x13c   : > { %v2285_v33 = vpop.f32.mrb[33].mxu1  ;;  %v2240_v34 = vadd.f32 %v2239_v32, %v2238_v29  ;;  %v2241_v8 = vpop.f32.mrb[34].mxu0 }
 0x13d   : > { %v2286_v35 = vadd.f32 %v2285_v33, %v2284_v30  ;;  %v2287_v36 = vpop.f32.mrb[34].mxu1  ;;  %v2242_v37 = vpop.f32.mrb[35].mxu0 }
 0x13e   : > { %v2288_v40 = vpop.f32.mrb[35].mxu1  ;;  %v1653_v6 = vadd.f32 %v2240_v34, %v2911_v23  ;;  %v2243_v43 = vadd.f32 %v2242_v37, %v2241_v8 }
 0x13f   : > { %v2289_v44 = vadd.f32 %v2288_v40, %v2287_v36 }
 0x140   : > { %v1656_v7 = vadd.f32 %v2243_v43, %v2913_v24  ;;  %v1726_v45 = vadd.f32 %v2286_v35, %v1653_v6 }
 0x142   : > { %v2244_v46 = vpop.f32.mrb[36].mxu0  ;;  %v1729_v48 = vadd.f32 %v2289_v44, %v1656_v7 }
 0x143   : > { %v2290_v47 = vpop.f32.mrb[36].mxu1  ;;  %v2245_v49 = vpop.f32.mrb[37].mxu0 }
 0x144   : > { %v2291_v50 = vpop.f32.mrb[37].mxu1  ;;  %v2246_v51 = vadd.f32 %v2245_v49, %v2244_v46  ;;  %v2247_v52 = vpop.f32.mrb[38].mxu0 }
 0x145   : > { %v2292_v53 = vadd.f32 %v2291_v50, %v2290_v47  ;;  %v2293_v56 = vpop.f32.mrb[38].mxu1  ;;  %v2248_v57 = vpop.f32.mrb[39].mxu0 }
 0x146   : > { %v2294_v25 = vpop.f32.mrb[39].mxu1  ;;  %v1661_v60 = vadd.f32 %v2246_v51, %v2917_v41  ;;  %v2249_v23 = vadd.f32 %v2248_v57, %v2247_v52 }
 0x147   : > { %v2295_v61 = vadd.f32 %v2294_v25, %v2293_v56 }
 0x148   : > { %v1664_v62 = vadd.f32 %v2249_v23, %v2919_v42  ;;  %v1734_v24 = vadd.f32 %v2292_v53, %v1661_v60 }
 0x14a   : > { %v1774_v63 = vpop.f32.mrb[40].mxu0  ;;  %v1737_v1 = vadd.f32 %v2295_v61, %v1664_v62 }
 0x14b   : > { %v1798_v0 = vpop.f32.mrb[40].mxu1  ;;  %v1775_v2 = vadd.f32 %v1774_v63, %v2923_v58  ;;  %v2327_v4 = vpop.f32.mrb[41].mxu0 }
 0x14c   : > { %v1799_v3 = vadd.f32 %v1798_v0, %v1726_v45  ;;  %v2339_v5 = vpop.f32.mrb[41].mxu1  ;;  %v1777_v9 = vpop.f32.mrb[42].mxu0 }
 0x14d   : > { %v1801_v38 = vpop.f32.mrb[42].mxu1  ;;  %v1778_v10 = vadd.f32 %v1777_v9, %v2925_v59  ;;  %v2328_v41 = vpop.f32.mrb[43].mxu0  ;;  %v1813_v13 = vmax.f32 %v1775_v2, 0.0 }
 0x14e   : > { %v1802_v39 = vadd.f32 %v1801_v38, %v1729_v48  ;;  %v2340_v12 = vpop.f32.mrb[43].mxu1  ;;  %v1819_v15 = vmax.f32 %v1799_v3, 0.0 }
 0x14f   : > { %v1814_v42 = vmax.f32 %v1778_v10, 0.0 }
 0x150   : > { %v1820_v16 = vmax.f32 %v1802_v39, 0.0 }
 0x151   : > { %v2086_v58 = vpack.c.bf16 %v1814_v42, %v1813_v13 }
 0x152   : > { %v2101_v17 = vpack.c.bf16 %v1820_v16, %v1819_v15  ;;  %v1782_v18 = vpop.f32.mrb[44].mxu0 }
 0x153   : > { %v1806_v19 = vpop.f32.mrb[44].mxu1  ;;  %2087 = vst [vmem:[%s2949_s19] sm:$0xff] %v2086_v58   ;;  %v1783_v59 = vadd.f32 %v1782_v18, %v2929_v11  ;;  %v2331_v21 = vpop.f32.mrb[45].mxu0 }
 0x154   : > { %2110 = vst [vmem:[%s2949_s19 + $0x18] sm:$0xff] %v2101_v17   ;;  %v1807_v20 = vadd.f32 %v1806_v19, %v1734_v24  ;;  %v2343_v22 = vpop.f32.mrb[45].mxu1  ;;  %v1785_v54 = vpop.f32.mrb[46].mxu0 }
 0x155   : > { %v1809_v26 = vpop.f32.mrb[46].mxu1  ;;  %v1786_v27 = vadd.f32 %v1785_v54, %v2931_v14  ;;  %v2332_v29 = vpop.f32.mrb[47].mxu0  ;;  %v1815_v32 = vmax.f32 %v1783_v59, 0.0 }
 0x156   : > { %v1810_v55 = vadd.f32 %v1809_v26, %v1737_v1  ;;  %v2344_v30 = vpop.f32.mrb[47].mxu1  ;;  %v1821_v33 = vmax.f32 %v1807_v20, 0.0 }
 0x157   : > { %v1816_v34 = vmax.f32 %v1786_v27, 0.0 }
 0x158   : > { %v1822_v8 = vmax.f32 %v1810_v55, 0.0 }
 0x159   : > { %v2091_v35 = vpack.c.bf16 %v1816_v34, %v1815_v32 }
 0x15a   : > { %v2106_v36 = vpack.c.bf16 %v1822_v8, %v1821_v33  ;;  %v1790_v11 = vpop.f32.mrb[48].mxu0 }
 0x15b   : > { %2108 = vst [vmem:[%s2949_s19 + $0x8] sm:$0xff] %v2091_v35   ;;  %v1791_v37 = vadd.f32 %v1790_v11, %v2935_v28  ;;  %v2335_v40 = vpop.f32.mrb[49].mxu0 }
 0x15c   : > { %2111 = vst [vmem:[%s2949_s19 + $0x20] sm:$0xff] %v2106_v36   ;;  %v1793_v6 = vpop.f32.mrb[50].mxu0 }
 0x15d   : > { %v1794_v43 = vadd.f32 %v1793_v6, %v2937_v31  ;;  %v2336_v14 = vpop.f32.mrb[51].mxu0  ;;  %v1817_v44 = vmax.f32 %v1791_v37, 0.0 }
 0x15f   : > { %v1818_v7 = vmax.f32 %v1794_v43, 0.0 }
 0x161   : > { %v2096_v45 = vpack.c.bf16 %v1818_v7, %v1817_v44 }
 0x163   : > { %2109 = vst [vmem:[%s2949_s19 + $0x10] sm:$0xff] %v2096_v45  }
 0x164 PF: > { %s13_s12 = sadd.s32 1, %s2504_s12  }
 0x165   : > { %p10_p4 = scmp.ge.s32.totalorder %s13_s12, 6  }
 0x167   :  { %12 = sbr.rel (!%p10_p4) target bundleno = 1 (0x1), region = 62 }

// kernel: combined_loss.15
= control target key start
LH: loop header
LB: loop body
LE: loop exit
PB: predicated region body
PF: predicated region fallthrough
CT: control target
= control target key end

     0   :  { %s2248_s12 = smov 0   ;;  %s2854_s0 = inlined_call_operand.vmem [shape: bf16[4,42,128], index: 0, kind: input, shape index: {}]   ;;  %s2855_s1 = inlined_call_operand.vmem [shape: bf16[1152,256], index: 1, kind: input, shape index: {}]   ;;  %s2856_s2 = inlined_call_operand.vmem [shape: f32[1,256], index: 2, kind: input, shape index: {}]   ;;  %s2857_s3 = inlined_call_operand.vmem [shape: bf16[4,24,256], index: 3, kind: output, shape index: {}]  }
   0x1 LB: > { %s1739_s13 = sadd.s32 4294967295, %s2225_s12   ;;  %p1743_p0 = scmp.ge.s32.totalorder %s2225_s12, 1  ;;  %s2225_s12 = sphi %s2248_s12, %s13_s12  }
   0x2   : > { %p137_p1 = scmp.lt.s32.totalorder %s2225_s12, 5 }
   0x4   : > { %p138_p2 = pnand %p1743_p0, %p137_p1 }
   0x5   : > { %v1981_v0 = vld [vmem:[%s2855_s1 + $0x4] ss:$8 sps:$4 sm:$0xff] (!%p138_p2)   ;;  %v1985_v2 = vld [vmem:[%s2855_s1] ss:$8 sps:$4 sm:$0xff] (!%p138_p2)   ;;  %v1987_v4 = vld [vmem:[%s2855_s1 + $0x14] ss:$8 sps:$4 sm:$0xff] (!%p138_p2)  }
   0x6   : > { %141 = sbr.rel (%p138_p2) target bundleno = 389 (0x185), region = 32  ;;  %v1983_v1 = vld [vmem:[%s2855_s1 + $0x204] ss:$8 sps:$4 sm:$0xff] (!%p138_p2)   ;;  %1400 = vmatprep.subr.bf16.mxu1 (!%p138_p2), %v1981_v0  ;;  %v1986_v3 = vld [vmem:[%s2855_s1 + $0x200] ss:$8 sps:$4 sm:$0xff] (!%p138_p2)   ;;  %p161_p3 = scmp.lt.s32.totalorder (!%p138_p2), %s1739_s13, 3 }
   0x7   : > { %1502 = vmatprep.subr.bf16.mxu0 (!%p138_p2), %v1983_v1  ;;  %1401 = vmatpush1.bf16.msra.mxu1 (!%p138_p2), %v1985_v2  ;;  %v1989_v5 = vld [vmem:[%s2855_s1 + $0x214] ss:$8 sps:$4 sm:$0xff] (!%p138_p2)   ;;  %v1991_v6 = vld [vmem:[%s2855_s1 + $0x10] ss:$8 sps:$4 sm:$0xff] (!%p138_p2)   ;;  %v1993_v8 = vld [vmem:[%s2855_s1 + $0x24] ss:$8 sps:$4 sm:$0xff] (!%p138_p2)  }
   0x8   : > { %1503 = vmatpush1.bf16.msra.mxu0 (!%p138_p2), %v1986_v3  ;;  %1402 = vmatprep.subr.bf16.mxu1 (!%p138_p2), %v1987_v4  ;;  %v1992_v7 = vld [vmem:[%s2855_s1 + $0x210] ss:$8 sps:$4 sm:$0xff] (!%p138_p2)   ;;  %v1995_v9 = vld [vmem:[%s2855_s1 + $0x224] ss:$8 sps:$4 sm:$0xff] (!%p138_p2)   ;;  %v1997_v10 = vld [vmem:[%s2855_s1 + $0x20] ss:$8 sps:$4 sm:$0xff] (!%p138_p2)  }
   0x9   : > { %1504 = vmatprep.subr.bf16.mxu0 (!%p138_p2), %v1989_v5  ;;  %v1998_v11 = vld [vmem:[%s2855_s1 + $0x220] ss:$8 sps:$4 sm:$0xff] (!%p138_p2)   ;;  %v1999_v12 = vld [vmem:[%s2855_s1 + $0x34] ss:$8 sps:$4 sm:$0xff] (!%p138_p2)   ;;  %v2003_v14 = vld [vmem:[%s2855_s1 + $0x30] ss:$8 sps:$4 sm:$0xff] (!%p138_p2)  }
   0xa   : > { %v2001_v13 = vld [vmem:[%s2855_s1 + $0x234] ss:$8 sps:$4 sm:$0xff] (!%p138_p2)   ;;  %v2004_v15 = vld [vmem:[%s2855_s1 + $0x230] ss:$8 sps:$4 sm:$0xff] (!%p138_p2)   ;;  %v2005_v16 = vld [vmem:[%s2855_s1 + $0x44] ss:$8 sps:$4 sm:$0xff] (!%p138_p2)  }
   0xb   : > { %1403 = vmatpush1.bf16.msra.mxu1 (!%p138_p2), %v1991_v6  ;;  %v2007_v17 = vld [vmem:[%s2855_s1 + $0x244] ss:$8 sps:$4 sm:$0xff] (!%p138_p2)   ;;  %v2009_v18 = vld [vmem:[%s2855_s1 + $0x40] ss:$8 sps:$4 sm:$0xff] (!%p138_p2)   ;;  %v2011_v20 = vld [vmem:[%s2855_s1 + $0x54] ss:$8 sps:$4 sm:$0xff] (!%p138_p2)  }
   0xc   : > { %1505 = vmatpush1.bf16.msra.mxu0 (!%p138_p2), %v1992_v7  ;;  %1404 = vmatprep.subr.bf16.mxu1 (!%p138_p2), %v1993_v8  ;;  %v2010_v19 = vld [vmem:[%s2855_s1 + $0x240] ss:$8 sps:$4 sm:$0xff] (!%p138_p2)   ;;  %v2013_v21 = vld [vmem:[%s2855_s1 + $0x254] ss:$8 sps:$4 sm:$0xff] (!%p138_p2)   ;;  %v2015_v22 = vld [vmem:[%s2855_s1 + $0x50] ss:$8 sps:$4 sm:$0xff] (!%p138_p2)  }
   0xd   : > { %1506 = vmatprep.subr.bf16.mxu0 %v1995_v9  ;;  %v2016_v23 = vld [vmem:[%s2855_s1 + $0x250] ss:$8 sps:$4 sm:$0xff]   ;;  %v2017_v24 = vld [vmem:[%s2855_s1 + $0x64] ss:$8 sps:$4 sm:$0xff]   ;;  %v2021_v26 = vld [vmem:[%s2855_s1 + $0x60] ss:$8 sps:$4 sm:$0xff]  }
   0xe   : > { %v2019_v25 = vld [vmem:[%s2855_s1 + $0x264] ss:$8 sps:$4 sm:$0xff]   ;;  %v2022_v27 = vld [vmem:[%s2855_s1 + $0x260] ss:$8 sps:$4 sm:$0xff]   ;;  %v2023_v28 = vld [vmem:[%s2855_s1 + $0x74] ss:$8 sps:$4 sm:$0xff]  }
   0xf   : > { %1405 = vmatpush1.bf16.msra.mxu1 %v1997_v10  ;;  %v2025_v29 = vld [vmem:[%s2855_s1 + $0x274] ss:$8 sps:$4 sm:$0xff]   ;;  %v2027_v30 = vld [vmem:[%s2855_s1 + $0x70] ss:$8 sps:$4 sm:$0xff]   ;;  %v2029_v32 = vld [vmem:[%s2855_s1 + $0x84] ss:$8 sps:$4 sm:$0xff]  }
  0x10   : > { %1507 = vmatpush1.bf16.msra.mxu0 %v1998_v11  ;;  %1406 = vmatprep.subr.bf16.mxu1 %v1999_v12  ;;  %v2028_v31 = vld [vmem:[%s2855_s1 + $0x270] ss:$8 sps:$4 sm:$0xff]   ;;  %v2031_v33 = vld [vmem:[%s2855_s1 + $0x284] ss:$8 sps:$4 sm:$0xff]   ;;  %v2033_v34 = vld [vmem:[%s2855_s1 + $0x80] ss:$8 sps:$4 sm:$0xff]  }
  0x11   : > { %1508 = vmatprep.subr.bf16.mxu0 %v2001_v13  ;;  %v2034_v35 = vld [vmem:[%s2855_s1 + $0x280] ss:$8 sps:$4 sm:$0xff]   ;;  %v2035_v36 = vld [vmem:[%s2855_s1 + $0x94] ss:$8 sps:$4 sm:$0xff]   ;;  %s2871_s13 = smov (!%p161_p3, %s1739_s13), 3  ;;  %vm233_vm6 = vcmask 1042432  }
  0x12   : > { %v2037_v37 = vld [vmem:[%s2855_s1 + $0x294] ss:$8 sps:$4 sm:$0xff]   ;;  %v2039_v38 = vld [vmem:[%s2855_s1 + $0x90] ss:$8 sps:$4 sm:$0xff]   ;;  %v2041_v40 = vld [vmem:[%s2855_s1 + $0xa4] ss:$8 sps:$4 sm:$0xff]  }
  0x13   : > { %1407 = vmatpush1.bf16.msra.mxu1 %v2003_v14  ;;  %v2040_v39 = vld [vmem:[%s2855_s1 + $0x290] ss:$8 sps:$4 sm:$0xff]   ;;  %s1971_s21 = smul.u32 24, %s2871_s13  ;;  %v2043_v41 = vld [vmem:[%s2855_s1 + $0x2a4] ss:$8 sps:$4 sm:$0xff]   ;;  %vm234_vm7 = vcmask 1046532  }
  0x14   : > { %1509 = vmatpush1.bf16.msra.mxu0 %v2004_v15  ;;  %1408 = vmatprep.subr.bf16.mxu1 %v2005_v16  ;;  %vm182_vm0 = vsmask.f32 3328  ;;  %v2045_v42 = vld [vmem:[%s2855_s1 + $0xa0] ss:$8 sps:$4 sm:$0xff]   ;;  %vm183_vm1 = vsmask.f32 7440  ;;  %vm2599_vm8 = vmor %vm233_vm6, %vm234_vm7 }
  0x15   : > { %1510 = vmatprep.subr.bf16.mxu0 %v2007_v17  ;;  %v2046_v43 = vld [vmem:[%s2855_s1 + $0x2a0] ss:$8 sps:$4 sm:$0xff]   ;;  %v2047_v44 = vld [vmem:[%s2855_s1 + $0xb4] ss:$8 sps:$4 sm:$0xff]   ;;  %s2403_s5 = scalar_lea.vmem %s2854_s0, %s1971_s21  ;;  %vm283_vm2 = vsmask.f32 256  ;;  %vm2448_vm4 = vmor %vm182_vm0, %vm183_vm1  ;;  %s170_s25 = scalar_lea.vmem %s2857_s3, %s1971_s21 }
  0x16   : > { %v2049_v45 = vld [vmem:[%s2855_s1 + $0x2b4] ss:$8 sps:$4 sm:$0xff]   ;;  %vm284_vm3 = vsmask.f32 4368  ;;  %v2051_v46 = vld [vmem:[%s2855_s1 + $0xb0] ss:$8 sps:$4 sm:$0xff]  }
  0x17   : > { %1409 = vmatpush1.bf16.msra.mxu1 %v2009_v18  ;;  %v2052_v47 = vld [vmem:[%s2855_s1 + $0x2b0] ss:$8 sps:$4 sm:$0xff]   ;;  %v172_v48 = vld [vmem:[%s2403_s5] sm:$0xf]  ;;  %v2053_v49 = vld [vmem:[%s2855_s1 + $0xc4] ss:$8 sps:$4 sm:$0xff]  }
  0x18   : > { %1511 = vmatpush1.bf16.msra.mxu0 %v2010_v19  ;;  %1410 = vmatprep.subr.bf16.mxu1 %v2011_v20  ;;  %v173_v50 = vld [vmem:[%s2403_s5 + $0x4] sm:$0xf]  ;;  %175 = vst [vmem:[#allocation2] sm:$0xf] %v172_v48  ;;  %v178_v51 = vld [vmem:[%s2403_s5] sm:$0xf]  ;;  %vm2458_vm5 = vmor %vm283_vm2, %vm284_vm3 }
  0x19   : > { %1512 = vmatprep.subr.bf16.mxu0 %v2013_v21  ;;  %v179_v52 = vld [vmem:[%s2403_s5 + $0x4] sm:$0xf]  ;;  %176 = vst [vmem:[#allocation2 + $0x24] sm:$0xf] %v173_v50  ;;  %v2422_v53 = vld [vmem:[%s2403_s5 + $0x8] sm:$0xf] }
  0x1a   : > { %v186_v54 = vshrl.u32 %v178_v51, 16  ;;  %v189_v55 = vshll.u32 %v178_v51, 16  ;;  %v195_v56 = vshll.u32 %v179_v52, 16  ;;  %v199_v57 = vshrl.u32 %v179_v52, 16  ;;  %v2055_v58 = vld [vmem:[%s2855_s1 + $0x2c4] ss:$8 sps:$4 sm:$0xff]  }
  0x1b   : > { %1411 = vmatpush1.bf16.msra.mxu1 %v2015_v22  ;;  %v205_v59 = vshll.u32 %v2422_v53, 16  ;;  %v2057_v60 = vld [vmem:[%s2855_s1 + $0xc0] ss:$8 sps:$4 sm:$0xff]   ;;  %v2059_v2 = vld [vmem:[%s2855_s1 + $0xd4] ss:$8 sps:$4 sm:$0xff]   ;;  %vm260_vm9 = vcmask 1040384  }
  0x1c   : > { %1513 = vmatpush1.bf16.msra.mxu0 %v2016_v23  ;;  %1412 = vmatprep.subr.bf16.mxu1 %v2017_v24  ;;  %v2058_v61 = vld [vmem:[%s2855_s1 + $0x2c0] ss:$8 sps:$4 sm:$0xff]   ;;  %v188_v62 = vrot.slane %v186_v54, 4  ;;  %v191_v63 = vrot.slane %v189_v55, 5  ;;  %v197_v0 = vrot.slane %v195_v56, 5  ;;  %v201_v1 = vrot.slane %v199_v57, 4 }
  0x1d   : > { %1514 = vmatprep.subr.bf16.mxu0 %v2019_v25  ;;  %v2061_v3 = vld [vmem:[%s2855_s1 + $0x2d4] ss:$8 sps:$4 sm:$0xff]   ;;  %v2440_v4 = vrot.slane %v205_v59, 5  ;;  %v279_v5 = vld [vmem:[%s2403_s5] sm:$0x8]  ;;  %vm261_vm10 = vcmask 1044484  }
  0x1e   : > { %v280_v6 = vld [vmem:[%s2403_s5 + $0x4] sm:$0xf]  ;;  %v192_v7 = vor.u32 %v191_v63, %v188_v62  ;;  %v202_v8 = vor.u32 %v201_v1, %v197_v0  ;;  %v281_v9 = vld [vmem:[%s2403_s5 + $0x8] sm:$0xf]  ;;  %v287_v10 = vshrl.u32 %v279_v5, 16  ;;  %vm337_vm11 = vcmask 1041408   ;;  %vm2641_vm13 = vmor %vm260_vm9, %vm261_vm10 }
  0x1f   : > { %1413 = vmatpush1.bf16.msra.mxu1 %v2021_v26  ;;  %v292_v11 = vshrl.u32 %v280_v6, 16  ;;  %v323_v12 = vld [vmem:[%s2403_s5 + $0x4] sm:$0xf]  ;;  %v295_v14 = vshll.u32 %v280_v6, 16  ;;  %v301_v15 = vshrl.u32 %v281_v9, 16  ;;  %v304_v16 = vshll.u32 %v281_v9, 16 }
  0x20   : > { %1515 = vmatpush1.bf16.msra.mxu0 %v2022_v27  ;;  %1414 = vmatprep.subr.bf16.mxu1 %v2023_v28  ;;  %v324_v17 = vld [vmem:[%s2403_s5 + $0x8] sm:$0xf]  ;;  %326 = vst [vmem:[#allocation2 + $0x14] sm:$0xf] %v323_v12  ;;  %v193_v18 = vrot.slane %v192_v7, 4  ;;  %v203_v19 = vrot.slane %v202_v8, 4 }
  0x21   : > { %1516 = vmatprep.subr.bf16.mxu0 %v2025_v29  ;;  %v1748_v20 = vrot.slane %v287_v10, 11  ;;  %v294_v21 = vrot.slane %v292_v11, 7  ;;  %327 = vst [vmem:[#allocation2 + $0x38] sm:$0xf] %v324_v17  ;;  %v2063_v22 = vld [vmem:[%s2855_s1 + $0xd0] ss:$8 sps:$4 sm:$0xff]  }
  0x22   : > { %v2462_v24 = vrot.slane %v301_v15, 7  ;;  %v2064_v25 = vld [vmem:[%s2855_s1 + $0x2d0] ss:$8 sps:$4 sm:$0xff]   ;;  %v2065_v26 = vld [vmem:[%s2855_s1 + $0xe4] ss:$8 sps:$4 sm:$0xff]   ;;  %v198_v27 = vsel %vm2448_vm4, %v193_v18, %v197_v0  ;;  %v208_v28 = vsel %vm2448_vm4, %v203_v19, %v2440_v4  ;;  %vm338_vm12 = vcmask 1045508  }
  0x23   : > { %1415 = vmatpush1.bf16.msra.mxu1 %v2027_v30  ;;  %v297_v29 = vor.u32 %v295_v14, %v294_v21  ;;  %v299_v30 = vrot.slane %v294_v21, 4  ;;  %222 = vst [vmem:[#allocation2 + $0x4] sm:$0xf] %v198_v27  ;;  %223 = vst [vmem:[#allocation2 + $0x28] sm:$0xf] %v208_v28 }
  0x24   : > { %1517 = vmatpush1.bf16.msra.mxu0 %v2028_v31  ;;  %1416 = vmatprep.subr.bf16.mxu1 %v2029_v32  ;;  %v2067_v31 = vld [vmem:[%s2855_s1 + $0x2e4] ss:$8 sps:$4 sm:$0xff]   ;;  %v306_v32 = vor.u32 %v304_v16, %v2462_v24  ;;  %v2086_v48 = vld [vmem:[%s2855_s1 + $0x300] ss:$8 sps:$4 sm:$0xff]   ;;  %v2094_v50 = vld [vmem:[%s2855_s1 + $0x314] ss:$8 sps:$4 sm:$0xff]  }
  0x25   : > { %1518 = vmatprep.subr.bf16.mxu0 %v2031_v33  ;;  %v298_v33 = vsel %vm2458_vm5, %v1748_v20, %v297_v29  ;;  %v2089_v51 = vld [vmem:[%s2855_s1 + $0x110] ss:$8 sps:$4 sm:$0xff]   ;;  %v2097_v54 = vld [vmem:[%s2855_s1 + $0x124] ss:$8 sps:$4 sm:$0xff]   ;;  %v2095_v56 = vld [vmem:[%s2855_s1 + $0x120] ss:$8 sps:$4 sm:$0xff]  }
  0x26   : > { %320 = vst [vmem:[#allocation2 + $0x10] sm:$0xf] %v298_v33  ;;  %v2092_v52 = vld [vmem:[%s2855_s1 + $0x310] ss:$8 sps:$4 sm:$0xff]   ;;  %v2100_v55 = vld [vmem:[%s2855_s1 + $0x324] ss:$8 sps:$4 sm:$0xff]   ;;  %vm2667_vm0 = vmor %vm337_vm11, %vm338_vm12 }
  0x27   : > { %1417 = vmatpush1.bf16.msra.mxu1 %v2033_v34  ;;  %v2069_v34 = vld [vmem:[%s2855_s1 + $0xe0] ss:$8 sps:$4 sm:$0xff]   ;;  %v2106_v59 = vld [vmem:[%s2855_s1 + $0x334] ss:$8 sps:$4 sm:$0xff]   ;;  %v2104_v62 = vld [vmem:[%s2855_s1 + $0x330] ss:$8 sps:$4 sm:$0xff]  }
  0x28   : > { %1519 = vmatpush1.bf16.msra.mxu0 %v2034_v35  ;;  %1418 = vmatprep.subr.bf16.mxu1 %v2035_v36  ;;  %v307_v35 = vsel %vm2458_vm5, %v299_v30, %v306_v32  ;;  %v2070_v36 = vld [vmem:[%s2855_s1 + $0x2e0] ss:$8 sps:$4 sm:$0xff]   ;;  %v2109_v63 = vld [vmem:[%s2855_s1 + $0x144] ss:$8 sps:$4 sm:$0xff]   ;;  %v2118_v5 = vld [vmem:[%s2855_s1 + $0x354] ss:$8 sps:$4 sm:$0xff]  }
  0x29   : > { %1520 = vmatprep.subr.bf16.mxu0 %v2037_v37  ;;  %v2071_v37 = vld [vmem:[%s2855_s1 + $0xf4] ss:$8 sps:$4 sm:$0xff]   ;;  %321 = vst [vmem:[#allocation2 + $0x34] sm:$0xf] %v307_v35  ;;  %v2098_v57 = vld [vmem:[%s2855_s1 + $0x320] ss:$8 sps:$4 sm:$0xff]  }
  0x2a   : > { %v2112_v0 = vld [vmem:[%s2855_s1 + $0x344] ss:$8 sps:$4 sm:$0xff]   ;;  %v2113_v6 = vld [vmem:[%s2855_s1 + $0x150] ss:$8 sps:$4 sm:$0xff]   ;;  %v2122_v11 = vld [vmem:[%s2855_s1 + $0x360] ss:$8 sps:$4 sm:$0xff]  }
  0x2b   : > { %1419 = vmatpush1.bf16.msra.mxu1 %v2039_v38  ;;  %v2073_v38 = vld [vmem:[%s2855_s1 + $0x2f4] ss:$8 sps:$4 sm:$0xff]   ;;  %v2116_v8 = vld [vmem:[%s2855_s1 + $0x350] ss:$8 sps:$4 sm:$0xff]   ;;  %v2121_v9 = vld [vmem:[%s2855_s1 + $0x164] ss:$8 sps:$4 sm:$0xff]  }
  0x2c   : > { %1521 = vmatpush1.bf16.msra.mxu0 %v2040_v39  ;;  %1420 = vmatprep.subr.bf16.mxu1 %v2041_v40  ;;  %v2075_v39 = vld [vmem:[%s2855_s1 + $0xf0] ss:$8 sps:$4 sm:$0xff]   ;;  %v2124_v10 = vld [vmem:[%s2855_s1 + $0x364] ss:$8 sps:$4 sm:$0xff]   ;;  %v2127_v14 = vld [vmem:[%s2855_s1 + $0x174] ss:$8 sps:$4 sm:$0xff]  }
  0x2d   : > { %1522 = vmatprep.subr.bf16.mxu0 %v2043_v41  ;;  %v2076_v40 = vld [vmem:[%s2855_s1 + $0x2f0] ss:$8 sps:$4 sm:$0xff]   ;;  %v2082_v41 = vld [vmem:[%s2855_s1 + $0x104] ss:$8 sps:$4 sm:$0xff]   ;;  %v2130_v15 = vld [vmem:[%s2855_s1 + $0x374] ss:$8 sps:$4 sm:$0xff]  }
  0x2e   : > { %v174_v16 = vld [vmem:[%s2403_s5 + $0x8] sm:$0xf]  ;;  %v181_v17 = vld [vmem:[%s2403_s5 + $0xc] sm:$0x1]  ;;  %v2128_v27 = vld [vmem:[%s2855_s1 + $0x370] ss:$8 sps:$4 sm:$0xff]  }
  0x2f   : > { %1421 = vmatpush1.bf16.msra.mxu1 %v2045_v42  ;;  %v2079_v42 = vld [vmem:[#allocation2 + $0x4] ss:$36 sps:$4 sm:$0xff]   ;;  %v282_v18 = vld [vmem:[%s2403_s5 + $0xc] sm:$0xf]  ;;  %177 = vst [vmem:[#allocation2 + $0x48] sm:$0xf] %v174_v16 }
  0x30   : > { %1523 = vmatpush1.bf16.msra.mxu0 %v2046_v43  ;;  %1422 = vmatprep.subr.bf16.mxu1 %v2047_v44  ;;  %v2088_v43 = vld [vmem:[%s2855_s1 + $0x304] ss:$8 sps:$4 sm:$0xff]   ;;  %v215_v19 = vshll.u32 %v181_v17, 16  ;;  %v310_v20 = vshrl.u32 %v282_v18, 16  ;;  %v313_v21 = vshll.u32 %v282_v18, 16  ;;  %v308_v28 = vrot.slane %v2462_v24, 4 }
  0x31   : > { %1524 = vmatprep.subr.bf16.mxu0 %v2049_v45  ;;  %v2077_v44 = vld [vmem:[#allocation2] ss:$36 sps:$4 sm:$0xff]   ;;  %1432 = vmatprep.mubr.bf16.mxu1 %v2079_v42  ;;  %vm360_vm14 = vsmask.f32 1280  ;;  %vm361_vm15 = vsmask.f32 5392 }
  0x32   : > { %v2080_v45 = vld [vmem:[%s2855_s1 + $0x100] ss:$8 sps:$4 sm:$0xff]   ;;  %v2133_v29 = vld [vmem:[%s2855_s1 + $0x184] ss:$8 sps:$4 sm:$0xff]   ;;  %v217_v30 = vrot.slane %v215_v19, 5  ;;  %vm2722_vm1 = vmor %vm360_vm14, %vm361_vm15 }
  0x33   : > { %1423 = vmatpush1.bf16.msra.mxu1 %v2051_v46  ;;  %v2083_v46 = vld [vmem:[#allocation2 + $0x10] ss:$36 sps:$4 sm:$0xff]   ;;  %v2136_v32 = vld [vmem:[%s2855_s1 + $0x384] ss:$8 sps:$4 sm:$0xff]   ;;  %v2131_v24 = vld [vmem:[%s2855_s1 + $0x180] ss:$8 sps:$4 sm:$0xff]  }
  0x34   : > { %1525 = vmatpush1.bf16.msra.mxu0 %v2052_v47  ;;  %1424 = vmatprep.subr.bf16.mxu1 %v2053_v49  ;;  %v2085_v47 = vld [vmem:[#allocation2 + $0x14] ss:$36 sps:$4 sm:$0xff]   ;;  %v2134_v33 = vld [vmem:[%s2855_s1 + $0x380] ss:$8 sps:$4 sm:$0xff]  }
  0x35   : > { %1526 = vmatprep.subr.bf16.mxu0 %v2055_v58  ;;  %v2091_v49 = vld [vmem:[%s2855_s1 + $0x114] ss:$8 sps:$4 sm:$0xff]   ;;  %1534 = vmatprep.mubr.bf16.mxu0 %v2085_v47  ;;  %v225_v13 = vld [vmem:[%s2403_s5] sm:$0xe]  ;;  %v253_v47 = vld [vmem:[%s2403_s5 + $0x4] sm:$0xf] }
  0x36   : > { %v2103_v58 = vld [vmem:[%s2855_s1 + $0x134] ss:$8 sps:$4 sm:$0xff]  }
  0x37   : > { %1425 = vmatpush1.bf16.msra.mxu1 %v2057_v60  ;;  %v2101_v60 = vld [vmem:[%s2855_s1 + $0x130] ss:$8 sps:$4 sm:$0xff]   ;;  %v2194_v23 = vld [vmem:[%s2855_s1 + $0x414] ss:$8 sps:$4 sm:$0xff]  }
  0x38   : > { %1527 = vmatpush1.bf16.msra.mxu0 %v2058_v61  ;;  %1426 = vmatprep.subr.bf16.mxu1 %v2059_v2  ;;  %v209_v61 = vshrl.u32 %v2422_v53, 16  ;;  %v2107_v53 = vld [vmem:[%s2855_s1 + $0x140] ss:$8 sps:$4 sm:$0xff]  }
  0x39   : > { %1528 = vmatprep.subr.bf16.mxu0 %v2061_v3  ;;  %v2110_v2 = vld [vmem:[%s2855_s1 + $0x340] ss:$8 sps:$4 sm:$0xff]   ;;  %v2115_v3 = vld [vmem:[%s2855_s1 + $0x154] ss:$8 sps:$4 sm:$0xff]  }
  0x3a   : > { %v211_v1 = vrot.slane %v209_v61, 4 }
  0x3b   : > { %1427 = vmatpush1.bf16.msra.mxu1 %v2063_v22  ;;  %v325_v22 = vld [vmem:[%s2403_s5 + $0xc] sm:$0xf] }
  0x3c   : > { %1529 = vmatpush1.bf16.msra.mxu0 %v2064_v25  ;;  %1428 = vmatprep.subr.bf16.mxu1 %v2065_v26  ;;  %v212_v7 = vor.u32 %v211_v1, %v2440_v4  ;;  %v2119_v4 = vld [vmem:[%s2855_s1 + $0x160] ss:$8 sps:$4 sm:$0xff]   ;;  %v2125_v26 = vld [vmem:[%s2855_s1 + $0x170] ss:$8 sps:$4 sm:$0xff]   ;;  %328 = vst [vmem:[#allocation2 + $0x5c] sm:$0xf] %v325_v22 }
  0x3d   : > { %1530 = vmatprep.subr.bf16.mxu0 %v2067_v31  ;;  %v312_v31 = vrot.slane %v310_v20, 7  ;;  %v356_v1 = vld [vmem:[%s2403_s5 + $0x4] sm:$0xc] }
  0x3e   : > { %v213_v12 = vrot.slane %v212_v7, 4  ;;  %v364_v7 = vshrl.u32 %v356_v1, 16 }
  0x3f   : > { %1429 = vmatpush1.bf16.msra.mxu1 %v2069_v34  ;;  %v315_v35 = vor.u32 %v313_v21, %v312_v31  ;;  %v2154_v21 = vld [vmem:[%s2855_s1 + $0x3b4] ss:$8 sps:$4 sm:$0xff]   ;;  %v2152_v31 = vld [vmem:[%s2855_s1 + $0x3b0] ss:$8 sps:$4 sm:$0xff]  }
  0x40   : > { %1531 = vmatpush1.bf16.msra.mxu0 %v2070_v36  ;;  %1430 = vmatprep.subr.bf16.mxu1 %v2071_v37  ;;  %v218_v34 = vsel %vm2448_vm4, %v213_v12, %v217_v30  ;;  %v2139_v36 = vld [vmem:[%s2855_s1 + $0x194] ss:$8 sps:$4 sm:$0xff]   ;;  %v366_v18 = vrot.slane %v364_v7, 6  ;;  %v2149_v30 = vld [vmem:[%s2855_s1 + $0x1b0] ss:$8 sps:$4 sm:$0xff]  }
  0x41   : > { %1532 = vmatprep.subr.bf16.mxu0 %v2073_v38  ;;  %v2142_v37 = vld [vmem:[%s2855_s1 + $0x394] ss:$8 sps:$4 sm:$0xff]   ;;  %224 = vst [vmem:[#allocation2 + $0x4c] sm:$0xf] %v218_v34  ;;  %v316_v38 = vsel %vm2458_vm5, %v308_v28, %v315_v35  ;;  %v255_v35 = vld [vmem:[%s2403_s5 + $0xc] sm:$0x7] }
  0x42   : > { %322 = vst [vmem:[#allocation2 + $0x58] sm:$0xf] %v316_v38 }
  0x43   : > { %1431 = vmatpush1.bf16.msra.mxu1 %v2075_v39  ;;  %v226_v39 = vld [vmem:[%s2403_s5 + $0x4] sm:$0xf] }
  0x44   : > { %1533 = vmatpush1.bf16.msra.mxu0 %v2076_v40  ;;  %1451 = vmatprep.subr.bf16.mxu1 %v2082_v41  ;;  %v2635_v40 = vld [vmem:[%s2403_s5 + $0x8] sm:$0xf]  ;;  %v1746_v41 = vrot.slane %v225_v13, 9  ;;  %v238_v42 = vrot.slane %v226_v39, 5 }
  0x45   : > { %1553 = vmatprep.subr.bf16.mxu0 %v2088_v43  ;;  %v241_v43 = vrot.slane %v2635_v40, 5  ;;  %v2160_v40 = vld [vmem:[%s2855_s1 + $0x3c4] ss:$8 sps:$4 sm:$0xff]  }
  0x46   : > { %1433 = vmatmul.mubr.bf16.vlgmr.msra.gmra.mrb[0].mxu1 %v2077_v44  ;;  %v252_v44 = vld [vmem:[%s2403_s5] sm:$0x8] }
  0x47   : > { %1535 = vmatmul.mubr.bf16.vlgmr.msra.gmra.mrb[0].mxu0 %v2083_v46  ;;  %1452 = vmatpush1.bf16.msra.mxu1 %v2080_v45  ;;  %v2137_v45 = vld [vmem:[%s2855_s1 + $0x190] ss:$8 sps:$4 sm:$0xff]   ;;  %v243_v39 = vrot.slane %v241_v43, 4 }
  0x48   : > { %1554 = vmatpush1.bf16.msra.mxu0 %v2086_v48  ;;  %1453 = vmatprep.subr.bf16.mxu1 %v2091_v49  ;;  %v2140_v46 = vld [vmem:[%s2855_s1 + $0x390] ss:$8 sps:$4 sm:$0xff]   ;;  %v2653_v48 = vld [vmem:[%s2403_s5 + $0x8] sm:$0xf]  ;;  %v1747_v49 = vrot.slane %v252_v44, 11 }
  0x49   : > { %1555 = vmatprep.subr.bf16.mxu0 %v2094_v50  ;;  %v2145_v50 = vld [vmem:[%s2855_s1 + $0x1a4] ss:$8 sps:$4 sm:$0xff]   ;;  %v443_v16 = vld [vmem:[#allocation2 + $0x58] sm:$0xff] }
  0x4a   : > { %v1765_v22 = vcombine.high %v443_v16, %v443_v16 }
  0x4b   : > { %1454 = vmatpush1.bf16.msra.mxu1 %v2089_v51  ;;  %v2148_v51 = vld [vmem:[%s2855_s1 + $0x3a4] ss:$8 sps:$4 sm:$0xff]  }
  0x4c   : > { %1556 = vmatpush1.bf16.msra.mxu0 %v2092_v52  ;;  %1455 = vmatprep.subr.bf16.mxu1 %v2097_v54  ;;  %v239_v52 = vsel %vm2599_vm8, %v1746_v41, %v238_v42  ;;  %v240_v54 = vrot.slane %v238_v42, 4  ;;  %v359_v42 = vld [vmem:[%s2403_s5 + $0x10] sm:$0x7] }
  0x4d   : > { %1557 = vmatprep.subr.bf16.mxu0 %v2100_v55  ;;  %v265_v55 = vrot.slane %v253_v47, 7  ;;  %249 = vst [vmem:[#allocation2 + $0x8] sm:$0xf] %v239_v52  ;;  %1544 = vmatprep.mubr.bf16.mxu0 %v1765_v22 }
  0x4f   : > { %1456 = vmatpush1.bf16.msra.mxu1 %v2095_v56  ;;  %v268_v56 = vrot.slane %v2653_v48, 7 }
  0x50   : > { %1558 = vmatpush1.bf16.msra.mxu0 %v2098_v57  ;;  %1457 = vmatprep.subr.bf16.mxu1 %v2103_v58  ;;  %v329_v57 = vld [vmem:[%s2403_s5 + $0x4] sm:$0xc]  ;;  %v2166_v58 = vld [vmem:[%s2855_s1 + $0x3d4] ss:$8 sps:$4 sm:$0xff]  }
  0x51   : > { %1559 = vmatprep.subr.bf16.mxu0 %v2106_v59  ;;  %v330_v59 = vld [vmem:[%s2403_s5 + $0x8] sm:$0xf]  ;;  %v1749_v61 = vrot.slane %v329_v57, 10  ;;  %v270_v47 = vrot.slane %v268_v56, 4 }
  0x52   : > { %v2155_v57 = vld [vmem:[%s2855_s1 + $0x1c0] ss:$8 sps:$4 sm:$0xff]  }
  0x53   : > { %1458 = vmatpush1.bf16.msra.mxu1 %v2101_v60  ;;  %v2673_v60 = vld [vmem:[%s2403_s5 + $0xc] sm:$0xf] }
  0x54   : > { %1560 = vmatpush1.bf16.msra.mxu0 %v2104_v62  ;;  %1459 = vmatprep.subr.bf16.mxu1 %v2109_v63  ;;  %v242_v62 = vsel %vm2599_vm8, %v240_v54, %v241_v43  ;;  %v266_v63 = vsel %vm2641_vm13, %v1747_v49, %v265_v55  ;;  %v271_v49 = vrot.slane %v255_v35, 7 }
  0x55   : > { %1561 = vmatprep.subr.bf16.mxu0 %v2112_v0  ;;  %v267_v0 = vrot.slane %v265_v55, 4  ;;  %250 = vst [vmem:[#allocation2 + $0x2c] sm:$0xf] %v242_v62  ;;  %276 = vst [vmem:[#allocation2 + $0xc] sm:$0xf] %v266_v63  ;;  %v393_v55 = vshrl.u32 %v359_v42, 16 }
  0x56   : > { %v272_v48 = vsel %vm2641_vm13, %v270_v47, %v271_v49  ;;  %v2158_v62 = vld [vmem:[%s2855_s1 + $0x3c0] ss:$8 sps:$4 sm:$0xff]   ;;  %v2202_v47 = vld [vmem:[%s2855_s1 + $0x430] ss:$8 sps:$4 sm:$0xff]   ;;  %v2207_v49 = vld [vmem:[%s2855_s1 + $0x444] ss:$8 sps:$4 sm:$0xff]  }
  0x57   : > { %1460 = vmatpush1.bf16.msra.mxu1 %v2107_v53  ;;  %v342_v53 = vrot.slane %v330_v59, 6  ;;  %278 = vst [vmem:[#allocation2 + $0x54] sm:$0xf] %v272_v48  ;;  %v2216_v48 = vld [vmem:[%s2855_s1 + $0x474] ss:$8 sps:$4 sm:$0xff]  }
  0x58   : > { %1562 = vmatpush1.bf16.msra.mxu0 %v2110_v2  ;;  %1461 = vmatprep.subr.bf16.mxu1 %v2115_v3  ;;  %v357_v2 = vld [vmem:[%s2403_s5 + $0x8] sm:$0xf] }
  0x59   : > { %1563 = vmatprep.subr.bf16.mxu0 %v2118_v5  ;;  %v441_v3 = vld [vmem:[#allocation2 + $0x48] sm:$0xff]  ;;  %v345_v5 = vrot.slane %v2673_v60, 6  ;;  %v344_v17 = vrot.slane %v342_v53, 4  ;;  %v373_v20 = vshrl.u32 %v357_v2, 16 }
  0x5a   : > { %v1760_v12 = vcombine.low %v441_v3, %v441_v3 }
  0x5b   : > { %1462 = vmatpush1.bf16.msra.mxu1 %v2113_v6  ;;  %v358_v6 = vld [vmem:[%s2403_s5 + $0xc] sm:$0xf] }
  0x5c   : > { %1564 = vmatpush1.bf16.msra.mxu0 %v2116_v8  ;;  %1463 = vmatprep.subr.bf16.mxu1 %v2121_v9  ;;  %v367_v8 = vshll.u32 %v356_v1, 16  ;;  %v2143_v9 = vld [vmem:[%s2855_s1 + $0x1a0] ss:$8 sps:$4 sm:$0xff]   ;;  %v383_v28 = vshrl.u32 %v358_v6, 16  ;;  %v386_v34 = vshll.u32 %v358_v6, 16 }
  0x5d   : > { %1565 = vmatprep.subr.bf16.mxu0 %v2124_v10  ;;  %v2146_v10 = vld [vmem:[%s2855_s1 + $0x3a0] ss:$8 sps:$4 sm:$0xff]   ;;  %v2163_v1 = vld [vmem:[%s2855_s1 + $0x1d4] ss:$8 sps:$4 sm:$0xff]   ;;  %v2164_v6 = vld [vmem:[%s2855_s1 + $0x3d0] ss:$8 sps:$4 sm:$0xff]  }
  0x5e   : > { %v369_v19 = vrot.slane %v367_v8, 7  ;;  %v385_v13 = vrot.slane %v383_v28, 6  ;;  %v2172_v8 = vld [vmem:[%s2855_s1 + $0x1e4] ss:$8 sps:$4 sm:$0xff]  }
  0x5f   : > { %1464 = vmatpush1.bf16.msra.mxu1 %v2119_v4  ;;  %v2151_v4 = vld [vmem:[%s2855_s1 + $0x1b4] ss:$8 sps:$4 sm:$0xff]  }
  0x60   : > { %1566 = vmatpush1.bf16.msra.mxu0 %v2122_v11  ;;  %1465 = vmatprep.subr.bf16.mxu1 %v2127_v14  ;;  %v1761_v11 = vcombine.high %v441_v3, %v441_v3  ;;  %v269_v14 = vsel %vm2641_vm13, %v267_v0, %v268_v56  ;;  %v396_v56 = vshll.u32 %v359_v42, 16  ;;  %v395_v0 = vrot.slane %v393_v55, 6  ;;  %v2214_v55 = vld [vmem:[%s2855_s1 + $0x470] ss:$8 sps:$4 sm:$0xff]  }
  0x61   : > { %1567 = vmatprep.subr.bf16.mxu0 %v2130_v15  ;;  %v343_v15 = vsel %vm2667_vm0, %v1749_v61, %v342_v53  ;;  %277 = vst [vmem:[#allocation2 + $0x30] sm:$0xf] %v269_v14  ;;  %v409_v14 = vld [vmem:[%s2403_s5 + $0xc] sm:$0xf] }
  0x62   : > { %353 = vst [vmem:[#allocation2 + $0x18] sm:$0xf] %v343_v15  ;;  %1442 = vmatprep.mubr.bf16.mxu1 %v1761_v11  ;;  %v398_v53 = vrot.slane %v396_v56, 7  ;;  %v407_v11 = vld [vmem:[%s2403_s5 + $0x4] sm:$0x8] }
  0x63   : > { %1466 = vmatpush1.bf16.msra.mxu1 %v2125_v26  ;;  %v1764_v26 = vcombine.low %v443_v16, %v443_v16  ;;  %v1750_v15 = vrot.slane %v407_v11, 11 }
  0x64   : > { %1568 = vmatpush1.bf16.msra.mxu0 %v2128_v27  ;;  %1467 = vmatprep.subr.bf16.mxu1 %v2133_v29  ;;  %v376_v27 = vshll.u32 %v357_v2, 16  ;;  %v228_v29 = vld [vmem:[%s2403_s5 + $0xc] sm:$0x1]  ;;  %v399_v3 = vor.u32 %v398_v53, %v395_v0  ;;  %v590_v53 = vld [vmem:[%s2856_s2] sm:$0x3] }
  0x65   : > { %1569 = vmatprep.subr.bf16.mxu0 %v2136_v32  ;;  %v346_v32 = vsel %vm2667_vm0, %v344_v17, %v345_v5  ;;  %1443 = vmatmul.mubr.bf16.gmra.mrb[4].mxu1 %v1760_v12  ;;  %v244_v41 = vrot.slane %v228_v29, 5  ;;  %v408_v12 = vld [vmem:[%s2403_s5 + $0x8] sm:$0xf]  ;;  %v2179_v17 = vld [vmem:[%s2855_s1 + $0x1f4] ss:$8 sps:$4 sm:$0xff]  }
  0x66   : > { %354 = vst [vmem:[#allocation2 + $0x3c] sm:$0xf] %v346_v32  ;;  %v378_v38 = vrot.slane %v376_v27, 7  ;;  %1545 = vmatmul.mubr.bf16.gmra.mrb[4].mxu0 %v1764_v26  ;;  %v417_v16 = vrot.slane %v408_v12, 7 }
  0x67   : > { %1468 = vmatpush1.bf16.msra.mxu1 %v2131_v24  ;;  %v370_v24 = vor.u32 %v369_v19, %v366_v18  ;;  %v420_v18 = vrot.slane %v409_v14, 7  ;;  %v410_v19 = vld [vmem:[%s2403_s5 + $0x10] sm:$0x7] }
  0x68   : > { %1570 = vmatpush1.bf16.msra.mxu0 %v2134_v33  ;;  %1469 = vmatprep.subr.bf16.mxu1 %v2139_v36  ;;  %v375_v33 = vrot.slane %v373_v20, 6  ;;  %v332_v36 = vld [vmem:[%s2403_s5 + $0x10] sm:$0x3]  ;;  %v2182_v20 = vld [vmem:[%s2855_s1 + $0x3f4] ss:$8 sps:$4 sm:$0xff]   ;;  %v418_v22 = vsel %vm2641_vm13, %v1750_v15, %v417_v16  ;;  %v419_v26 = vrot.slane %v417_v16, 4 }
  0x69   : > { %1571 = vmatprep.subr.bf16.mxu0 %v2142_v37  ;;  %v2157_v37 = vld [vmem:[%s2855_s1 + $0x1c4] ss:$8 sps:$4 sm:$0xff]   ;;  %v348_v52 = vrot.slane %v332_v36, 6  ;;  %428 = vst [vmem:[#allocation2 + $0x20] sm:$0xf] %v418_v22  ;;  %v422_v27 = vrot.slane %v420_v18, 4 }
  0x6a   : > { %v379_v43 = vor.u32 %v378_v38, %v375_v33  ;;  %v2185_v59 = vld [vmem:[#allocation2 + $0xc] ss:$36 sps:$4 sm:$0xff]   ;;  %v423_v28 = vrot.slane %v410_v19, 7  ;;  %v421_v29 = vsel %vm2641_vm13, %v419_v26, %v420_v18 }
  0x6b   : > { %1470 = vmatpush1.bf16.msra.mxu1 %v2137_v45  ;;  %v371_v45 = vrot.slane %v370_v24, 4  ;;  %1483 = vmatprep.mubr.bf16.mxu1 %v2185_v59  ;;  %429 = vst [vmem:[#allocation2 + $0x44] sm:$0xf] %v421_v29  ;;  %v2191_v24 = vld [vmem:[%s2855_s1 + $0x404] ss:$8 sps:$4 sm:$0xff]   ;;  %v592_v59 = vlaneseq }
  0x6c   : > { %1572 = vmatpush1.bf16.msra.mxu0 %v2140_v46  ;;  %1471 = vmatprep.subr.bf16.mxu1 %v2145_v50  ;;  %v388_v46 = vrot.slane %v386_v34, 7  ;;  %v245_v50 = vsel %vm2599_vm8, %v243_v39, %v244_v41  ;;  %v381_v25 = vrot.slane %v379_v43, 4  ;;  %v424_v32 = vsel %vm2641_vm13, %v422_v27, %v423_v28  ;;  %v2183_v33 = vld [vmem:[#allocation2 + $0x8] ss:$36 sps:$4 sm:$0xff]   ;;  %v2192_v39 = vld [vmem:[%s2855_s1 + $0x410] ss:$8 sps:$4 sm:$0xff]  }
  0x6d   : > { %1573 = vmatprep.subr.bf16.mxu0 %v2148_v51  ;;  %v347_v51 = vrot.slane %v345_v5, 4  ;;  %251 = vst [vmem:[#allocation2 + $0x50] sm:$0xf] %v245_v50  ;;  %v380_v60 = vsel %vm2722_vm1, %v371_v45, %v379_v43  ;;  %v2161_v5 = vld [vmem:[%s2855_s1 + $0x1d0] ss:$8 sps:$4 sm:$0xff]  }
  0x6e   : > { %v389_v54 = vor.u32 %v388_v46, %v385_v13  ;;  %404 = vst [vmem:[#allocation2 + $0x1c] sm:$0xf] %v380_v60  ;;  %430 = vst [vmem:[#allocation2 + $0x68] sm:$0xf] %v424_v32  ;;  %v2186_v34 = vld [vmem:[#allocation2 + $0x18] ss:$36 sps:$4 sm:$0xff]  }
  0x6f   : > { %1472 = vmatpush1.bf16.msra.mxu1 %v2143_v9  ;;  %v349_v61 = vsel %vm2667_vm0, %v347_v51, %v348_v52  ;;  %v2176_v9 = vld [vmem:[%s2855_s1 + $0x3e4] ss:$8 sps:$4 sm:$0xff]   ;;  %v2199_v45 = vld [vmem:[%s2855_s1 + $0x420] ss:$8 sps:$4 sm:$0xff]   ;;  %v2204_v46 = vld [vmem:[%s2855_s1 + $0x434] ss:$8 sps:$4 sm:$0xff]  }
  0x70   : > { %1574 = vmatpush1.bf16.msra.mxu0 %v2146_v10  ;;  %1473 = vmatprep.subr.bf16.mxu1 %v2151_v4  ;;  %355 = vst [vmem:[#allocation2 + $0x60] sm:$0xf] %v349_v61  ;;  %v391_v63 = vrot.slane %v389_v54, 4  ;;  %v390_v2 = vsel %vm2722_vm1, %v381_v25, %v389_v54  ;;  %v2170_v10 = vld [vmem:[%s2855_s1 + $0x1e0] ss:$8 sps:$4 sm:$0xff]   ;;  %v593_v60 = vshrl.u32 %v592_v59, 7 }
  0x71   : > { %1575 = vmatprep.subr.bf16.mxu0 %v2154_v21  ;;  %405 = vst [vmem:[#allocation2 + $0x40] sm:$0xf] %v390_v2  ;;  %v2174_v4 = vld [vmem:[%s2855_s1 + $0x3e0] ss:$8 sps:$4 sm:$0xff]   ;;  %v2201_v41 = vld [vmem:[%s2855_s1 + $0x424] ss:$8 sps:$4 sm:$0xff]  }
  0x72   : > { %v400_v7 = vsel %vm2722_vm1, %v391_v63, %v399_v3  ;;  %v2205_v43 = vld [vmem:[%s2855_s1 + $0x440] ss:$8 sps:$4 sm:$0xff]   ;;  %v2210_v50 = vld [vmem:[%s2855_s1 + $0x454] ss:$8 sps:$4 sm:$0xff]   ;;  %v2208_v51 = vld [vmem:[%s2855_s1 + $0x450] ss:$8 sps:$4 sm:$0xff]  }
  0x73   : > { %1474 = vmatpush1.bf16.msra.mxu1 %v2149_v30  ;;  %406 = vst [vmem:[#allocation2 + $0x64] sm:$0xf] %v400_v7  ;;  %v2177_v30 = vld [vmem:[%s2855_s1 + $0x1f0] ss:$8 sps:$4 sm:$0xff]   ;;  %v2213_v52 = vld [vmem:[%s2855_s1 + $0x464] ss:$8 sps:$4 sm:$0xff]  }
  0x74   : > { %1576 = vmatpush1.bf16.msra.mxu0 %v2152_v31  ;;  %1475 = vmatprep.subr.bf16.mxu1 %v2157_v37  ;;  %v2180_v31 = vld [vmem:[%s2855_s1 + $0x3f0] ss:$8 sps:$4 sm:$0xff]   ;;  %v2189_v37 = vld [vmem:[%s2855_s1 + $0x400] ss:$8 sps:$4 sm:$0xff]   ;;  %v594_v63 = vsub.s32 0, %v593_v60 }
  0x75   : > { %1577 = vmatprep.subr.bf16.mxu0 %v2160_v40  ;;  %v442_v35 = vld [vmem:[#allocation2 + $0x50] sm:$0xff]  ;;  %v2227_v40 = vmov 0   ;;  %v2211_v54 = vld [vmem:[%s2855_s1 + $0x460] ss:$8 sps:$4 sm:$0xff]  }
  0x76   : > { %v1763_v38 = vcombine.high %v442_v35, %v442_v35  ;;  %v1762_v42 = vcombine.low %v442_v35, %v442_v35  ;;  %v2217_v56 = vld [vmem:[#allocation2 + $0x20] ss:$36 sps:$4 sm:$0xff]  }
  0x77   : > { %1476 = vmatpush1.bf16.msra.mxu1 %v2155_v57  ;;  %v2218_v57 = vld [vmem:[#allocation2 + $0x68] ss:$0 sps:$4 sm:$0xff]  }
  0x78   : > { %1578 = vmatpush1.bf16.msra.mxu0 %v2158_v62  ;;  %1477 = vmatprep.subr.bf16.mxu1 %v2163_v1  ;;  %v2188_v21 = vld [vmem:[#allocation2 + $0x1c] ss:$36 sps:$4 sm:$0xff]   ;;  %v598_v1 = vsub.s32 1, %v593_v60 }
  0x79   : > { %1579 = vmatprep.subr.bf16.mxu0 %v2166_v58  ;;  %1585 = vmatprep.mubr.bf16.mxu0 %v2188_v21  ;;  %v595_v58 = vrot.slane %v590_v53, %v594_v63 }
  0x7a   : > { %v444_v36 = vld [vmem:[#allocation2 + $0x60] sm:$0xff]  ;;  %v599_v2 = vrot.slane %v590_v53, %v598_v1 }
  0x7b   : > { %1478 = vmatpush1.bf16.msra.mxu1 %v2161_v5  ;;  %v1767_v13 = vcombine.high %v444_v36, %v444_v36  ;;  %v1766_v44 = vcombine.low %v444_v36, %v444_v36 }
  0x7c   : > { %1580 = vmatpush1.bf16.msra.mxu0 %v2164_v6  ;;  %1479 = vmatprep.subr.bf16.mxu1 %v2172_v8 }
  0x7d   : > { %1581 = vmatprep.subr.bf16.mxu0 %v2176_v9 }
  0x7f   : > { %1480 = vmatpush1.bf16.msra.mxu1 %v2170_v10 }
  0x80   : > { %1582 = vmatpush1.bf16.msra.mxu0 %v2174_v4  ;;  %1481 = vmatprep.subr.bf16.mxu1 %v2179_v17 }
  0x81   : > { %1583 = vmatprep.subr.bf16.mxu0 %v2182_v20 }
  0x83   : > { %1482 = vmatpush1.bf16.msra.mxu1 %v2177_v30 }
  0x84   : > { %1584 = vmatpush1.bf16.msra.mxu0 %v2180_v31  ;;  %1921 = vmatprep.subr.bf16.mxu1 %v2191_v24 }
  0x85   : > { %1604 = vmatprep.subr.bf16.mxu0 %v2191_v24 }
  0x86   : > { %1484 = vmatmul.mubr.bf16.vlgmr.msra.gmra.mrb[0].mxu1 %v2183_v33 }
  0x87   : > { %1586 = vmatmul.mubr.bf16.vlgmr.msra.gmra.mrb[0].mxu0 %v2186_v34  ;;  %1929 = vmatpush1.bf16.msra.mxu1 %v2189_v37 }
  0x88   : > { %1605 = vmatpush1.bf16.msra.mxu0 %v2189_v37  ;;  %1922 = vmatprep.subr.bf16.mxu1 %v2194_v23 }
  0x89   : > { %1606 = vmatprep.subr.bf16.mxu0 %v2194_v23  ;;  %1493 = vmatprep.mubr.bf16.mxu1 %v1763_v38 }
  0x8a   : > { %1595 = vmatprep.mubr.bf16.mxu0 %v1767_v13 }
  0x8b   : > { %1930 = vmatpush1.bf16.msra.mxu1 %v2192_v39 }
  0x8c   : > { %1607 = vmatpush1.bf16.msra.mxu0 %v2192_v39  ;;  %1923 = vmatprep.subr.bf16.mxu1 %v2201_v41 }
  0x8d   : > { %1608 = vmatprep.subr.bf16.mxu0 %v2201_v41 }
  0x8e   : > { %1494 = vmatmul.mubr.bf16.gmra.mrb[4].mxu1 %v1762_v42 }
  0x8f   : > { %1596 = vmatmul.mubr.bf16.gmra.mrb[4].mxu0 %v1766_v44  ;;  %1931 = vmatpush1.bf16.msra.mxu1 %v2199_v45 }
  0x90   : > { %1609 = vmatpush1.bf16.msra.mxu0 %v2199_v45  ;;  %1924 = vmatprep.subr.bf16.mxu1 %v2204_v46 }
  0x91   : > { %1610 = vmatprep.subr.bf16.mxu0 %v2204_v46  ;;  %1636 = vmatprep.mubr.bf16.mxu0 %v2227_v40 }
  0x92   : > { %1646 = vmatprep.mubr.bf16.mxu1 %v2227_v40 }
  0x93   : > { %1932 = vmatpush1.bf16.msra.mxu1 %v2202_v47 }
  0x94   : > { %1611 = vmatpush1.bf16.msra.mxu0 %v2202_v47  ;;  %1925 = vmatprep.subr.bf16.mxu1 %v2207_v49 }
  0x95   : > { %1612 = vmatprep.subr.bf16.mxu0 %v2207_v49 }
  0x97   : > { %1933 = vmatpush1.bf16.msra.mxu1 %v2205_v43 }
  0x98   : > { %1613 = vmatpush1.bf16.msra.mxu0 %v2205_v43  ;;  %1926 = vmatprep.subr.bf16.mxu1 %v2210_v50 }
  0x99   : > { %1614 = vmatprep.subr.bf16.mxu0 %v2210_v50 }
  0x9b   : > { %1934 = vmatpush1.bf16.msra.mxu1 %v2208_v51 }
  0x9c   : > { %1615 = vmatpush1.bf16.msra.mxu0 %v2208_v51  ;;  %1927 = vmatprep.subr.bf16.mxu1 %v2213_v52 }
  0x9d   : > { %1616 = vmatprep.subr.bf16.mxu0 %v2213_v52 }
  0x9f   : > { %1935 = vmatpush1.bf16.msra.mxu1 %v2211_v54 }
  0xa0   : > { %1617 = vmatpush1.bf16.msra.mxu0 %v2211_v54  ;;  %1928 = vmatprep.subr.bf16.mxu1 %v2216_v48 }
  0xa1   : > { %1618 = vmatprep.subr.bf16.mxu0 %v2216_v48 }
  0xa3   : > { %1936 = vmatpush1.bf16.msra.mxu1 %v2214_v55 }
  0xa4   : > { %1619 = vmatpush1.bf16.msra.mxu0 %v2214_v55 }
  0xa6   : > { %1647 = vmatmul.mubr.bf16.vlgmr.msra.gmra.mrb[8].mxu1 %v2218_v57 }
  0xa7   : > { %1637 = vmatmul.mubr.bf16.vlgmr.msra.gmra.mrb[0].mxu0 %v2217_v56 }
 0x159   : > { %v1485_v25 = vpop.f32.mrb[0].mxu1 }
 0x15a   : > { %v1487_v61 = vpop.f32.mrb[1].mxu1  ;;  %v1937_v16 = vadd.f32 %v1485_v25, %v595_v58 }
 0x15b   : > { %v1489_v62 = vpop.f32.mrb[2].mxu1  ;;  %v1939_v17 = vadd.f32 %v1487_v61, %v599_v2 }
 0x15c   : > { %v1491_v0 = vpop.f32.mrb[3].mxu1  ;;  %v1941_v20 = vadd.f32 %v1489_v62, %v595_v58 }
 0x15d   : > { %v1943_v28 = vadd.f32 %v1491_v0, %v599_v2 }
 0x161   : > { %v1495_v3 = vpop.f32.mrb[4].mxu1 }
 0x162   : > { %v1597_v5 = vpop.f32.mrb[4].mxu0  ;;  %v1945_v6 = vadd.f32 %v1495_v3, %v595_v58  ;;  %v1497_v7 = vpop.f32.mrb[5].mxu1 }
 0x163   : > { %v1599_v8 = vpop.f32.mrb[5].mxu0  ;;  %v1948_v9 = vadd.f32 %v1497_v7, %v599_v2  ;;  %v1499_v10 = vpop.f32.mrb[6].mxu1 }
 0x164   : > { %v1601_v4 = vpop.f32.mrb[6].mxu0  ;;  %v1946_v11 = vadd.f32 %v1945_v6, %v1597_v5  ;;  %v1500_v12 = vpop.f32.mrb[7].mxu1 }
 0x165   : > { %v1602_v14 = vpop.f32.mrb[7].mxu0  ;;  %v1949_v15 = vadd.f32 %v1948_v9, %v1599_v8 }
 0x179   : > { %v1648_v19 = vpop.f32.mrb[8].mxu1 }
 0x17a   : > { %v1638_v18 = vpop.f32.mrb[0].mxu0  ;;  %v1947_v22 = vadd.f32 %v1946_v11, %v1648_v19  ;;  %v1650_v27 = vpop.f32.mrb[9].mxu1 }
 0x17b   : > { %v1938_v21 = vadd.f32 %v1937_v16, %v1638_v18  ;;  %v1640_v26 = vpop.f32.mrb[1].mxu0  ;;  %v1950_v30 = vadd.f32 %v1949_v15, %v1650_v27  ;;  %v1652_v32 = vpop.f32.mrb[10].mxu1 }
 0x17c   : > { %v1940_v29 = vadd.f32 %v1939_v17, %v1640_v26  ;;  %v1642_v31 = vpop.f32.mrb[2].mxu0  ;;  %v1659_v33 = vmax.f32 %v1947_v22, 0.0  ;;  %v1653_v36 = vpop.f32.mrb[11].mxu1 }
 0x17d   : > { %v1655_v24 = vmax.f32 %v1938_v21, 0.0  ;;  %v1942_v34 = vadd.f32 %v1941_v20, %v1642_v31  ;;  %v1644_v35 = vpop.f32.mrb[3].mxu0  ;;  %v1660_v23 = vmax.f32 %v1950_v30, 0.0 }
 0x17e   : > { %v1656_v37 = vmax.f32 %v1940_v29, 0.0  ;;  %v1944_v38 = vadd.f32 %v1943_v28, %v1644_v35 }
 0x17f   : > { %v1657_v13 = vmax.f32 %v1942_v34, 0.0  ;;  %v1920_v41 = vpack.c.bf16 %v1660_v23, %v1659_v33 }
 0x180   : > { %v1918_v39 = vpack.c.bf16 %v1656_v37, %v1655_v24  ;;  %v1658_v42 = vmax.f32 %v1944_v38, 0.0 }
 0x181   : > { %1683 = vst [vmem:[%s170_s25 + $0x10] sm:$0xff] %v1920_v41 }
 0x182   : > { %1681 = vst [vmem:[%s170_s25] sm:$0xff] %v1918_v39  ;;  %v1919_v44 = vpack.c.bf16 %v1658_v42, %v1657_v13 }
 0x184   : > { %1682 = vst [vmem:[%s170_s25 + $0x8] sm:$0xff] %v1919_v44 }
 0x185 PF: > { %s13_s12 = sadd.s32 1, %s2225_s12  }
 0x186   : > { %p10_p4 = scmp.ge.s32.totalorder %s13_s12, 6  }
 0x188   :  { %12 = sbr.rel (!%p10_p4) target bundleno = 1 (0x1), region = 62 }

// kernel: combined_loss.18
= control target key start
LH: loop header
LB: loop body
LE: loop exit
PB: predicated region body
PF: predicated region fallthrough
CT: control target
= control target key end

     0   :  { %v179_v0 = vmov 0.0   ;;  %s228_s2 = inlined_call_operand.vmem [shape: f32[1,8,128], index: 2, kind: output, shape index: {}]   ;;  %s229_s0 = inlined_call_operand.vmem [shape: bf16[64,128], index: 0, kind: input, shape index: {}]   ;;  %s230_s1 = inlined_call_operand.vmem [shape: bf16[64,128], index: 1, kind: input, shape index: {}]  }
   0x1   :  { %59 = vst [vmem:[%s228_s2] sm:$0xff] %v179_v0  ;;  %v141_v1 = vld [vmem:[%s229_s0] sm:$0xff]   ;;  %v172_v2 = vld [vmem:[%s229_s0 + $0x8] sm:$0xff]   ;;  %v173_v3 = vld [vmem:[%s229_s0 + $0x10] sm:$0xff]  }
   0x2   :  { %v142_v4 = vunpack.c.l.bf16 %v141_v1  ;;  %v143_v5 = vunpack.c.h.bf16 %v141_v1  ;;  %v146_v6 = vunpack.c.l.bf16 %v172_v2  ;;  %v147_v7 = vunpack.c.h.bf16 %v172_v2  ;;  %v157_v8 = vld [vmem:[%s230_s1] sm:$0xff]   ;;  %v175_v9 = vld [vmem:[%s230_s1 + $0x8] sm:$0xff]   ;;  %v176_v11 = vld [vmem:[%s230_s1 + $0x10] sm:$0xff]  }
   0x3   :  { %v150_v10 = vunpack.c.l.bf16 %v173_v3  ;;  %v174_v12 = vld [vmem:[%s229_s0 + $0x18] sm:$0xff]   ;;  %v158_v13 = vunpack.c.l.bf16 %v157_v8  ;;  %v159_v14 = vunpack.c.h.bf16 %v157_v8  ;;  %v162_v15 = vunpack.c.l.bf16 %v175_v9 }
   0x4   :  { %v163_v16 = vunpack.c.h.bf16 %v175_v9  ;;  %v177_v17 = vld [vmem:[%s230_s1 + $0x18] sm:$0xff]   ;;  %v151_v18 = vunpack.c.h.bf16 %v173_v3  ;;  %v166_v19 = vunpack.c.l.bf16 %v176_v11  ;;  %v167_v20 = vunpack.c.h.bf16 %v176_v11 }
   0x5   :  { %v92_v21 = vsub.f32 %v142_v4, %v158_v13  ;;  %v93_v22 = vsub.f32 %v143_v5, %v159_v14  ;;  %v94_v23 = vsub.f32 %v146_v6, %v162_v15  ;;  %v154_v25 = vunpack.c.l.bf16 %v174_v12 }
   0x6   :  { %v95_v24 = vsub.f32 %v147_v7, %v163_v16  ;;  %v170_v26 = vunpack.c.l.bf16 %v177_v17  ;;  %v96_v27 = vsub.f32 %v150_v10, %v166_v19  ;;  %v155_v31 = vunpack.c.h.bf16 %v174_v12 }
   0x7   :  { %v101_v28 = vmul.f32 %v92_v21, %v92_v21  ;;  %v102_v29 = vmul.f32 %v93_v22, %v93_v22  ;;  %v103_v30 = vmul.f32 %v94_v23, %v94_v23  ;;  %v171_v32 = vunpack.c.h.bf16 %v177_v17 }
   0x8   :  { %v97_v33 = vsub.f32 %v151_v18, %v167_v20  ;;  %v104_v34 = vmul.f32 %v95_v24, %v95_v24  ;;  %v98_v36 = vsub.f32 %v154_v25, %v170_v26  ;;  %v105_v37 = vmul.f32 %v96_v27, %v96_v27  ;;  %v100_v53 = vld [vmem:[%s228_s2] sm:$0x1] }
   0x9   :  { %v109_v35 = vadd.f32 %v102_v29, %v101_v28  ;;  %v99_v39 = vsub.f32 %v155_v31, %v171_v32 }
   0xa   :  { %v106_v40 = vmul.f32 %v97_v33, %v97_v33  ;;  %v107_v42 = vmul.f32 %v98_v36, %v98_v36 }
   0xb   :  { %v110_v38 = vadd.f32 %v109_v35, %v103_v30  ;;  %v108_v44 = vmul.f32 %v99_v39, %v99_v39 }
   0xd   :  { %v111_v41 = vadd.f32 %v110_v38, %v104_v34 }
   0xf   :  { %v112_v43 = vadd.f32 %v111_v41, %v105_v37 }
  0x11   :  { %v113_v45 = vadd.f32 %v112_v43, %v106_v40 }
  0x13   :  { %v114_v46 = vadd.f32 %v113_v45, %v107_v42 }
  0x15   :  { %v115_v47 = vadd.f32 %v114_v46, %v108_v44 }
  0x17   :  { %v116_v48 = vrot.slane %v115_v47, 4 }
  0x19   :  { %v117_v49 = vadd.f32 %v116_v48, %v115_v47 }
  0x1b   :  { %v118_v50 = vrot.slane %v117_v49, 2 }
  0x1d   :  { %v119_v51 = vadd.f32 %v118_v50, %v117_v49 }
  0x1f   :  { %v120_v52 = vrot.slane %v119_v51, 1 }
  0x21   :  { %v121_v54 = vadd.f32 %v120_v52, %v119_v51 }
  0x23   :  { %v122_v55 = vadd.f32 %v121_v54, %v100_v53 }
  0x25   :  { %123 = vst [vmem:[%s228_s2] sm:$0x1] %v122_v55 }

// kernel: combined_loss.19
= control target key start
LH: loop header
LB: loop body
LE: loop exit
PB: predicated region body
PF: predicated region fallthrough
CT: control target
= control target key end

     0   :  { %v95_v0 = vmov 0.0   ;;  %s132_s2 = inlined_call_operand.vmem [shape: f32[1,8,128], index: 2, kind: output, shape index: {}]   ;;  %s133_s0 = inlined_call_operand.vmem [shape: f32[16,128], index: 0, kind: input, shape index: {}]   ;;  %s134_s1 = inlined_call_operand.vmem [shape: f32[16,128], index: 1, kind: input, shape index: {}]  }
   0x1   :  { %59 = vst [vmem:[%s132_s2] sm:$0xff] %v95_v0  ;;  %v60_v1 = vld [vmem:[%s133_s0] sm:$0xff]  ;;  %v61_v2 = vld [vmem:[%s133_s0 + $0x8] sm:$0xff] }
   0x2   :  { %v62_v3 = vld [vmem:[%s134_s1] sm:$0xff]  ;;  %v63_v4 = vld [vmem:[%s134_s1 + $0x8] sm:$0xff] }
   0x3   :  { %v64_v5 = vsub.f32 %v60_v1, %v62_v3  ;;  %v65_v6 = vsub.f32 %v61_v2, %v63_v4 }
   0x5   :  { %v67_v7 = vmul.f32 %v64_v5, %v64_v5  ;;  %v68_v8 = vmul.f32 %v65_v6, %v65_v6 }
   0x7   :  { %v69_v9 = vadd.f32 %v68_v8, %v67_v7 }
   0x8   :  { %v66_v15 = vld [vmem:[%s132_s2] sm:$0x1] }
   0x9   :  { %v70_v10 = vrot.slane %v69_v9, 4 }
   0xb   :  { %v71_v11 = vadd.f32 %v70_v10, %v69_v9 }
   0xd   :  { %v72_v12 = vrot.slane %v71_v11, 2 }
   0xf   :  { %v73_v13 = vadd.f32 %v72_v12, %v71_v11 }
  0x11   :  { %v74_v14 = vrot.slane %v73_v13, 1 }
  0x13   :  { %v75_v16 = vadd.f32 %v74_v14, %v73_v13 }
  0x15   :  { %v76_v17 = vadd.f32 %v75_v16, %v66_v15 }
  0x17   :  { %77 = vst [vmem:[%s132_s2] sm:$0x1] %v76_v17 }

// kernel: combined_loss.20
= control target key start
LH: loop header
LB: loop body
LE: loop exit
PB: predicated region body
PF: predicated region fallthrough
CT: control target
= control target key end

     0   :  { %v55_v0 = vmov 0.0   ;;  %s78_s1 = inlined_call_operand.vmem [shape: f32[1,8,128], index: 1, kind: output, shape index: {}]   ;;  %s79_s0 = inlined_call_operand.vmem [shape: f32[8,128], index: 0, kind: input, shape index: {}]  }
   0x1   :  { %29 = vst [vmem:[%s78_s1] sm:$0xff] %v55_v0  ;;  %v31_v1 = vld [vmem:[%s79_s0] sm:$0xff] }
   0x2   :  { %53 = vlog2.f32 %v31_v1 }
   0x8   :  { %v30_v9 = vld [vmem:[%s78_s1] sm:$0x1] }
   0xc   :  { %v54_v2 = vpop.eup %53 }
   0xd   :  { %v33_v3 = vmul.f32 0.6931472, %v54_v2 }
   0xf   :  { %v34_v4 = vrot.slane %v33_v3, 4 }
  0x11   :  { %v35_v5 = vadd.f32 %v34_v4, %v33_v3 }
  0x13   :  { %v36_v6 = vrot.slane %v35_v5, 2 }
  0x15   :  { %v37_v7 = vadd.f32 %v36_v6, %v35_v5 }
  0x17   :  { %v38_v8 = vrot.slane %v37_v7, 1 }
  0x19   :  { %v39_v10 = vadd.f32 %v38_v8, %v37_v7 }
  0x1b   :  { %v40_v11 = vadd.f32 %v39_v10, %v30_v9 }
  0x1d   :  { %41 = vst [vmem:[%s78_s1] sm:$0x1] %v40_v11 }

// kernel: combined_loss.16
= control target key start
LH: loop header
LB: loop body
LE: loop exit
PB: predicated region body
PF: predicated region fallthrough
CT: control target
= control target key end

     0   :  { %s3813_s12 = smov 0   ;;  %s4956_s0 = inlined_call_operand.vmem [shape: bf16[4,42,256], index: 0, kind: input, shape index: {}]   ;;  %s4957_s1 = inlined_call_operand.vmem [shape: bf16[2304,256], index: 1, kind: input, shape index: {}]   ;;  %s4958_s2 = inlined_call_operand.vmem [shape: f32[1,256], index: 2, kind: input, shape index: {}]   ;;  %s4959_s3 = inlined_call_operand.vmem [shape: bf16[4,24,256], index: 3, kind: output, shape index: {}]  }
   0x1 LB: > { %s2893_s13 = sadd.s32 4294967295, %s3791_s12   ;;  %p2897_p0 = scmp.ge.s32.totalorder %s3791_s12, 1  ;;  %s3791_s12 = sphi %s3813_s12, %s13_s12  }
   0x2   : > { %p137_p1 = scmp.lt.s32.totalorder %s3791_s12, 5 }
   0x4   : > { %p138_p2 = pnand %p2897_p0, %p137_p1 }
   0x5   : > { %v3345_v0 = vld [vmem:[%s4957_s1 + $0x4] ss:$8 sps:$4 sm:$0xff] (!%p138_p2)   ;;  %v3349_v2 = vld [vmem:[%s4957_s1] ss:$8 sps:$4 sm:$0xff] (!%p138_p2)   ;;  %v3351_v4 = vld [vmem:[%s4957_s1 + $0x14] ss:$8 sps:$4 sm:$0xff] (!%p138_p2)  }
   0x6   : > { %141 = sbr.rel (%p138_p2) target bundleno = 549 (0x225), region = 32  ;;  %v3347_v1 = vld [vmem:[%s4957_s1 + $0x404] ss:$8 sps:$4 sm:$0xff] (!%p138_p2)   ;;  %2350 = vmatprep.subr.bf16.mxu1 (!%p138_p2), %v3345_v0  ;;  %v3350_v3 = vld [vmem:[%s4957_s1 + $0x400] ss:$8 sps:$4 sm:$0xff] (!%p138_p2)   ;;  %p161_p3 = scmp.lt.s32.totalorder (!%p138_p2), %s2893_s13, 3 }
   0x7   : > { %2554 = vmatprep.subr.bf16.mxu0 (!%p138_p2), %v3347_v1  ;;  %2351 = vmatpush1.bf16.msra.mxu1 (!%p138_p2), %v3349_v2  ;;  %v3353_v5 = vld [vmem:[%s4957_s1 + $0x414] ss:$8 sps:$4 sm:$0xff] (!%p138_p2)   ;;  %v3355_v6 = vld [vmem:[%s4957_s1 + $0x10] ss:$8 sps:$4 sm:$0xff] (!%p138_p2)   ;;  %v3357_v8 = vld [vmem:[%s4957_s1 + $0x24] ss:$8 sps:$4 sm:$0xff] (!%p138_p2)  }
   0x8   : > { %2555 = vmatpush1.bf16.msra.mxu0 (!%p138_p2), %v3350_v3  ;;  %2352 = vmatprep.subr.bf16.mxu1 (!%p138_p2), %v3351_v4  ;;  %v3356_v7 = vld [vmem:[%s4957_s1 + $0x410] ss:$8 sps:$4 sm:$0xff] (!%p138_p2)   ;;  %v3359_v9 = vld [vmem:[%s4957_s1 + $0x424] ss:$8 sps:$4 sm:$0xff] (!%p138_p2)   ;;  %v3361_v10 = vld [vmem:[%s4957_s1 + $0x20] ss:$8 sps:$4 sm:$0xff] (!%p138_p2)  }
   0x9   : > { %2556 = vmatprep.subr.bf16.mxu0 (!%p138_p2), %v3353_v5  ;;  %v3362_v11 = vld [vmem:[%s4957_s1 + $0x420] ss:$8 sps:$4 sm:$0xff] (!%p138_p2)   ;;  %v3363_v12 = vld [vmem:[%s4957_s1 + $0x34] ss:$8 sps:$4 sm:$0xff] (!%p138_p2)   ;;  %v3367_v14 = vld [vmem:[%s4957_s1 + $0x30] ss:$8 sps:$4 sm:$0xff] (!%p138_p2)  }
   0xa   : > { %v3365_v13 = vld [vmem:[%s4957_s1 + $0x434] ss:$8 sps:$4 sm:$0xff] (!%p138_p2)   ;;  %v3368_v15 = vld [vmem:[%s4957_s1 + $0x430] ss:$8 sps:$4 sm:$0xff] (!%p138_p2)   ;;  %v3369_v16 = vld [vmem:[%s4957_s1 + $0x44] ss:$8 sps:$4 sm:$0xff] (!%p138_p2)  }
   0xb   : > { %2353 = vmatpush1.bf16.msra.mxu1 (!%p138_p2), %v3355_v6  ;;  %v3371_v17 = vld [vmem:[%s4957_s1 + $0x444] ss:$8 sps:$4 sm:$0xff] (!%p138_p2)   ;;  %v3373_v18 = vld [vmem:[%s4957_s1 + $0x40] ss:$8 sps:$4 sm:$0xff] (!%p138_p2)   ;;  %v3375_v20 = vld [vmem:[%s4957_s1 + $0x54] ss:$8 sps:$4 sm:$0xff] (!%p138_p2)  }
   0xc   : > { %2557 = vmatpush1.bf16.msra.mxu0 (!%p138_p2), %v3356_v7  ;;  %2354 = vmatprep.subr.bf16.mxu1 (!%p138_p2), %v3357_v8  ;;  %v3374_v19 = vld [vmem:[%s4957_s1 + $0x440] ss:$8 sps:$4 sm:$0xff] (!%p138_p2)   ;;  %v3377_v21 = vld [vmem:[%s4957_s1 + $0x454] ss:$8 sps:$4 sm:$0xff] (!%p138_p2)   ;;  %v3379_v22 = vld [vmem:[%s4957_s1 + $0x50] ss:$8 sps:$4 sm:$0xff] (!%p138_p2)  }
   0xd   : > { %2558 = vmatprep.subr.bf16.mxu0 %v3359_v9  ;;  %v3380_v23 = vld [vmem:[%s4957_s1 + $0x450] ss:$8 sps:$4 sm:$0xff]   ;;  %v3381_v24 = vld [vmem:[%s4957_s1 + $0x64] ss:$8 sps:$4 sm:$0xff]   ;;  %v3385_v26 = vld [vmem:[%s4957_s1 + $0x60] ss:$8 sps:$4 sm:$0xff]  }
   0xe   : > { %v3383_v25 = vld [vmem:[%s4957_s1 + $0x464] ss:$8 sps:$4 sm:$0xff]   ;;  %v3386_v27 = vld [vmem:[%s4957_s1 + $0x460] ss:$8 sps:$4 sm:$0xff]   ;;  %v3387_v28 = vld [vmem:[%s4957_s1 + $0x74] ss:$8 sps:$4 sm:$0xff]  }
   0xf   : > { %2355 = vmatpush1.bf16.msra.mxu1 %v3361_v10  ;;  %v3389_v29 = vld [vmem:[%s4957_s1 + $0x474] ss:$8 sps:$4 sm:$0xff]   ;;  %v3391_v30 = vld [vmem:[%s4957_s1 + $0x70] ss:$8 sps:$4 sm:$0xff]   ;;  %v3393_v32 = vld [vmem:[%s4957_s1 + $0x84] ss:$8 sps:$4 sm:$0xff]  }
  0x10   : > { %2559 = vmatpush1.bf16.msra.mxu0 %v3362_v11  ;;  %2356 = vmatprep.subr.bf16.mxu1 %v3363_v12  ;;  %v3392_v31 = vld [vmem:[%s4957_s1 + $0x470] ss:$8 sps:$4 sm:$0xff]   ;;  %v3395_v33 = vld [vmem:[%s4957_s1 + $0x484] ss:$8 sps:$4 sm:$0xff]   ;;  %v3397_v34 = vld [vmem:[%s4957_s1 + $0x80] ss:$8 sps:$4 sm:$0xff]  }
  0x11   : > { %2560 = vmatprep.subr.bf16.mxu0 %v3365_v13  ;;  %v3398_v35 = vld [vmem:[%s4957_s1 + $0x480] ss:$8 sps:$4 sm:$0xff]   ;;  %v3399_v36 = vld [vmem:[%s4957_s1 + $0x94] ss:$8 sps:$4 sm:$0xff]   ;;  %s4973_s13 = smov (!%p161_p3, %s2893_s13), 3  ;;  %vm232_vm6 = vcmask 1042432  }
  0x12   : > { %v3401_v37 = vld [vmem:[%s4957_s1 + $0x494] ss:$8 sps:$4 sm:$0xff]   ;;  %v3403_v38 = vld [vmem:[%s4957_s1 + $0x90] ss:$8 sps:$4 sm:$0xff]   ;;  %v3405_v40 = vld [vmem:[%s4957_s1 + $0xa4] ss:$8 sps:$4 sm:$0xff]  }
  0x13   : > { %2357 = vmatpush1.bf16.msra.mxu1 %v3367_v14  ;;  %v3404_v39 = vld [vmem:[%s4957_s1 + $0x490] ss:$8 sps:$4 sm:$0xff]   ;;  %s3335_s21 = smul.u32 48, %s4973_s13  ;;  %v3407_v41 = vld [vmem:[%s4957_s1 + $0x4a4] ss:$8 sps:$4 sm:$0xff]   ;;  %vm233_vm7 = vcmask 1046532  }
  0x14   : > { %2561 = vmatpush1.bf16.msra.mxu0 %v3368_v15  ;;  %2358 = vmatprep.subr.bf16.mxu1 %v3369_v16  ;;  %v3409_v42 = vld [vmem:[%s4957_s1 + $0xa0] ss:$8 sps:$4 sm:$0xff]   ;;  %v3411_v44 = vld [vmem:[%s4957_s1 + $0xb4] ss:$8 sps:$4 sm:$0xff]   ;;  %vm282_vm0 = vsmask.f32 256  ;;  %vm4342_vm10 = vmor %vm232_vm6, %vm233_vm7 }
  0x15   : > { %2562 = vmatprep.subr.bf16.mxu0 %v3371_v17  ;;  %v3410_v43 = vld [vmem:[%s4957_s1 + $0x4a0] ss:$8 sps:$4 sm:$0xff]   ;;  %s3966_s5 = scalar_lea.vmem %s4956_s0, %s3335_s21  ;;  %v3413_v45 = vld [vmem:[%s4957_s1 + $0x4b4] ss:$8 sps:$4 sm:$0xff]   ;;  %v3415_v46 = vld [vmem:[%s4957_s1 + $0xb0] ss:$8 sps:$4 sm:$0xff]  }
  0x16   : > { %v3416_v47 = vld [vmem:[%s4957_s1 + $0x4b0] ss:$8 sps:$4 sm:$0xff]   ;;  %v3978_v48 = vld [vmem:[%s3966_s5] sm:$0xff]  ;;  %v3981_v49 = vld [vmem:[%s3966_s5 + $0x8] sm:$0xff]  ;;  %vm283_vm1 = vsmask.f32 4368 }
  0x17   : > { %2359 = vmatpush1.bf16.msra.mxu1 %v3373_v18  ;;  %v3417_v50 = vld [vmem:[%s4957_s1 + $0xc4] ss:$8 sps:$4 sm:$0xff]   ;;  %v2906_v52 = vcombine.high %v3978_v48, %v3981_v49  ;;  %v3993_v54 = vld [vmem:[%s3966_s5 + $0x10] sm:$0xff]  ;;  %v291_v56 = vshrl.u32 %v3981_v49, 16  ;;  %v294_v57 = vshll.u32 %v3981_v49, 16  ;;  %vm4011_vm2 = vmor %vm282_vm0, %vm283_vm1  ;;  %vm336_vm8 = vcmask 1041408  }
  0x18   : > { %2563 = vmatpush1.bf16.msra.mxu0 %v3374_v19  ;;  %2360 = vmatprep.subr.bf16.mxu1 %v3375_v20  ;;  %v3419_v51 = vld [vmem:[%s4957_s1 + $0x4c4] ss:$8 sps:$4 sm:$0xff]   ;;  %v300_v58 = vshrl.u32 %v3993_v54, 16  ;;  %v303_v59 = vshll.u32 %v3993_v54, 16  ;;  %v3421_v60 = vld [vmem:[%s4957_s1 + $0xc0] ss:$8 sps:$4 sm:$0xff]   ;;  %v2915_v63 = vcombine.low %v3981_v49, %v3993_v54 }
  0x19   : > { %2564 = vmatprep.subr.bf16.mxu0 %v3377_v21  ;;  %v278_v53 = vld [vmem:[%s3966_s5] sm:$0x88]  ;;  %2382 = vmatprep.mubr.bf16.mxu1 %v2906_v52  ;;  %v293_v62 = vrot.slane %v291_v56, 7  ;;  %v3423_v3 = vld [vmem:[%s4957_s1 + $0xd4] ss:$8 sps:$4 sm:$0xff]   ;;  %vm337_vm9 = vcmask 1045508  }
  0x1a   : > { %v286_v55 = vshrl.u32 %v278_v53, 16  ;;  %v3422_v0 = vld [vmem:[%s4957_s1 + $0x4c0] ss:$8 sps:$4 sm:$0xff]   ;;  %v4017_v2 = vrot.slane %v300_v58, 7  ;;  %v3425_v4 = vld [vmem:[%s4957_s1 + $0x4d4] ss:$8 sps:$4 sm:$0xff]   ;;  %vm4366_vm11 = vmor %vm336_vm8, %vm337_vm9 }
  0x1b   : > { %2361 = vmatpush1.bf16.msra.mxu1 %v3379_v22  ;;  %v296_v5 = vor.u32 %v294_v57, %v293_v62  ;;  %v298_v6 = vrot.slane %v293_v62, 4  ;;  %v3427_v8 = vld [vmem:[%s4957_s1 + $0xd0] ss:$8 sps:$4 sm:$0xff]   ;;  %v3429_v12 = vld [vmem:[%s4957_s1 + $0xe4] ss:$8 sps:$4 sm:$0xff]   ;;  %vm259_vm12 = vcmask 1040384  }
  0x1c   : > { %2565 = vmatpush1.bf16.msra.mxu0 %v3380_v23  ;;  %2362 = vmatprep.subr.bf16.mxu1 %v3381_v24  ;;  %v2902_v61 = vrot.slane %v286_v55, 11  ;;  %v305_v7 = vor.u32 %v303_v59, %v4017_v2  ;;  %v3428_v10 = vld [vmem:[%s4957_s1 + $0x4d0] ss:$8 sps:$4 sm:$0xff]   ;;  %v3431_v13 = vld [vmem:[%s4957_s1 + $0x4e4] ss:$8 sps:$4 sm:$0xff]   ;;  %v2905_v23 = vcombine.low %v3978_v48, %v3981_v49  ;;  %vm260_vm13 = vcmask 1044484  }
  0x1d   : > { %2566 = vmatprep.subr.bf16.mxu0 %v3383_v25  ;;  %v3433_v15 = vld [vmem:[%s4957_s1 + $0xe0] ss:$8 sps:$4 sm:$0xff]   ;;  %v3435_v17 = vld [vmem:[%s4957_s1 + $0xf4] ss:$8 sps:$4 sm:$0xff]   ;;  %v3439_v19 = vld [vmem:[%s4957_s1 + $0xf0] ss:$8 sps:$4 sm:$0xff]  }
  0x1e   : > { %v297_v9 = vsel %vm4011_vm2, %v2902_v61, %v296_v5  ;;  %v306_v11 = vsel %vm4011_vm2, %v298_v6, %v305_v7  ;;  %v3434_v16 = vld [vmem:[%s4957_s1 + $0x4e0] ss:$8 sps:$4 sm:$0xff]   ;;  %v3437_v18 = vld [vmem:[%s4957_s1 + $0x4f4] ss:$8 sps:$4 sm:$0xff]   ;;  %v3440_v20 = vld [vmem:[%s4957_s1 + $0x4f0] ss:$8 sps:$4 sm:$0xff]  }
  0x1f   : > { %2363 = vmatpush1.bf16.msra.mxu1 %v3385_v26  ;;  %v2914_v14 = vcombine.high %v297_v9, %v306_v11  ;;  %v3445_v21 = vld [vmem:[%s4957_s1 + $0x104] ss:$8 sps:$4 sm:$0xff]   ;;  %v3443_v24 = vld [vmem:[%s4957_s1 + $0x100] ss:$8 sps:$4 sm:$0xff]   ;;  %v2913_v25 = vcombine.low %v297_v9, %v306_v11  ;;  %vm181_vm3 = vsmask.f32 3328  ;;  %vm4582_vm15 = vmor %vm259_vm12, %vm260_vm13 }
  0x20   : > { %2567 = vmatpush1.bf16.msra.mxu0 %v3386_v27  ;;  %2364 = vmatprep.subr.bf16.mxu1 %v3387_v28  ;;  %v3448_v22 = vld [vmem:[%s4957_s1 + $0x504] ss:$8 sps:$4 sm:$0xff]   ;;  %v3446_v26 = vld [vmem:[%s4957_s1 + $0x500] ss:$8 sps:$4 sm:$0xff]   ;;  %v3451_v27 = vld [vmem:[%s4957_s1 + $0x114] ss:$8 sps:$4 sm:$0xff]  }
  0x21   : > { %2568 = vmatprep.subr.bf16.mxu0 %v3389_v29  ;;  %2586 = vmatprep.mubr.bf16.mxu0 %v2914_v14  ;;  %v3454_v28 = vld [vmem:[%s4957_s1 + $0x514] ss:$8 sps:$4 sm:$0xff]   ;;  %v2924_v29 = vcombine.high %v3993_v54, %v3993_v54  ;;  %v3467_v52 = vld [vmem:[%s4957_s1 + $0x140] ss:$8 sps:$4 sm:$0xff]   ;;  %vm182_vm4 = vsmask.f32 7440 }
  0x22   : > { %v3470_v53 = vld [vmem:[%s4957_s1 + $0x540] ss:$8 sps:$4 sm:$0xff]   ;;  %v3473_v62 = vld [vmem:[%s4957_s1 + $0x150] ss:$8 sps:$4 sm:$0xff]   ;;  %vm4162_vm5 = vmor %vm181_vm3, %vm182_vm4  ;;  %vm359_vm14 = vsmask.f32 1280 }
  0x23   : > { %2365 = vmatpush1.bf16.msra.mxu1 %v3391_v30  ;;  %v3449_v30 = vld [vmem:[%s4957_s1 + $0x110] ss:$8 sps:$4 sm:$0xff]   ;;  %v3484_v7 = vld [vmem:[%s4957_s1 + $0x564] ss:$8 sps:$4 sm:$0xff]   ;;  %v3482_v14 = vld [vmem:[%s4957_s1 + $0x560] ss:$8 sps:$4 sm:$0xff]  }
  0x24   : > { %2569 = vmatpush1.bf16.msra.mxu0 %v3392_v31  ;;  %2366 = vmatprep.subr.bf16.mxu1 %v3393_v32  ;;  %v185_v31 = vshrl.u32 %v3978_v48, 16  ;;  %v3452_v32 = vld [vmem:[%s4957_s1 + $0x510] ss:$8 sps:$4 sm:$0xff]   ;;  %v3496_v1 = vld [vmem:[%s4957_s1 + $0x584] ss:$8 sps:$4 sm:$0xff]   ;;  %s3336_s11 = smul.u32 24, %s4973_s13 }
  0x25   : > { %2570 = vmatprep.subr.bf16.mxu0 %v3395_v33  ;;  %v188_v33 = vshll.u32 %v3978_v48, 16  ;;  %v3469_v48 = vld [vmem:[%s4957_s1 + $0x144] ss:$8 sps:$4 sm:$0xff]   ;;  %vm360_vm0 = vsmask.f32 5392 }
  0x26   : > { %vm4621_vm1 = vmor %vm359_vm14, %vm360_vm0  ;;  %s170_s16 = scalar_lea.vmem %s4959_s3, %s3336_s11 }
  0x27   : > { %2367 = vmatpush1.bf16.msra.mxu1 %v3397_v34  ;;  %v3457_v34 = vld [vmem:[%s4957_s1 + $0x124] ss:$8 sps:$4 sm:$0xff]  }
  0x28   : > { %2571 = vmatpush1.bf16.msra.mxu0 %v3398_v35  ;;  %2368 = vmatprep.subr.bf16.mxu1 %v3399_v36  ;;  %v3460_v35 = vld [vmem:[%s4957_s1 + $0x524] ss:$8 sps:$4 sm:$0xff]   ;;  %v3455_v36 = vld [vmem:[%s4957_s1 + $0x120] ss:$8 sps:$4 sm:$0xff]  }
  0x29   : > { %2572 = vmatprep.subr.bf16.mxu0 %v3401_v37  ;;  %v2923_v37 = vcombine.low %v3993_v54, %v3993_v54 }
  0x2b   : > { %2369 = vmatpush1.bf16.msra.mxu1 %v3403_v38  ;;  %v187_v38 = vrot.slane %v185_v31, 4  ;;  %v3508_v31 = vld [vmem:[%s4957_s1 + $0x5a4] ss:$8 sps:$4 sm:$0xff]  }
  0x2c   : > { %2573 = vmatpush1.bf16.msra.mxu0 %v3404_v39  ;;  %2370 = vmatprep.subr.bf16.mxu1 %v3405_v40  ;;  %v3458_v39 = vld [vmem:[%s4957_s1 + $0x520] ss:$8 sps:$4 sm:$0xff]   ;;  %v190_v40 = vrot.slane %v188_v33, 5 }
  0x2d   : > { %2574 = vmatprep.subr.bf16.mxu0 %v3407_v41  ;;  %v196_v41 = vrot.slane %v294_v57, 5  ;;  %v3475_v57 = vld [vmem:[%s4957_s1 + $0x154] ss:$8 sps:$4 sm:$0xff]   ;;  %v3506_v33 = vld [vmem:[%s4957_s1 + $0x5a0] ss:$8 sps:$4 sm:$0xff]  }
  0x2f   : > { %2371 = vmatpush1.bf16.msra.mxu1 %v3409_v42  ;;  %v3463_v42 = vld [vmem:[%s4957_s1 + $0x134] ss:$8 sps:$4 sm:$0xff]  }
  0x30   : > { %2575 = vmatpush1.bf16.msra.mxu0 %v3410_v43  ;;  %2372 = vmatprep.subr.bf16.mxu1 %v3411_v44  ;;  %v3466_v43 = vld [vmem:[%s4957_s1 + $0x534] ss:$8 sps:$4 sm:$0xff]   ;;  %v200_v44 = vrot.slane %v291_v56, 4  ;;  %v4138_v56 = vrot.slane %v303_v59, 5  ;;  %v3476_v59 = vld [vmem:[%s4957_s1 + $0x550] ss:$8 sps:$4 sm:$0xff]  }
  0x31   : > { %2576 = vmatprep.subr.bf16.mxu0 %v3413_v45  ;;  %v3461_v45 = vld [vmem:[%s4957_s1 + $0x130] ss:$8 sps:$4 sm:$0xff]  }
  0x33   : > { %2373 = vmatpush1.bf16.msra.mxu1 %v3415_v46  ;;  %v3464_v46 = vld [vmem:[%s4957_s1 + $0x530] ss:$8 sps:$4 sm:$0xff]  }
  0x34   : > { %2577 = vmatpush1.bf16.msra.mxu0 %v3416_v47  ;;  %2374 = vmatprep.subr.bf16.mxu1 %v3417_v50  ;;  %v191_v47 = vor.u32 %v190_v40, %v187_v38  ;;  %v3472_v50 = vld [vmem:[%s4957_s1 + $0x544] ss:$8 sps:$4 sm:$0xff]   ;;  %v3515_v40 = vld [vmem:[%s4957_s1 + $0x1c0] ss:$8 sps:$4 sm:$0xff]  }
  0x35   : > { %2578 = vmatprep.subr.bf16.mxu0 %v3419_v51  ;;  %v201_v51 = vor.u32 %v200_v44, %v196_v41  ;;  %v3517_v38 = vld [vmem:[%s4957_s1 + $0x1c4] ss:$8 sps:$4 sm:$0xff]   ;;  %v3521_v44 = vld [vmem:[%s4957_s1 + $0x1d0] ss:$8 sps:$4 sm:$0xff]  }
  0x36   : > { %v192_v55 = vrot.slane %v191_v47, 4  ;;  %v3533_v47 = vld [vmem:[%s4957_s1 + $0x5e4] ss:$8 sps:$4 sm:$0xff]  }
  0x37   : > { %2375 = vmatpush1.bf16.msra.mxu1 %v3421_v60  ;;  %v3478_v60 = vld [vmem:[%s4957_s1 + $0x554] ss:$8 sps:$4 sm:$0xff]   ;;  %v202_v61 = vrot.slane %v201_v51, 4  ;;  %v3531_v51 = vld [vmem:[%s4957_s1 + $0x5e0] ss:$8 sps:$4 sm:$0xff]  }
  0x38   : > { %2579 = vmatpush1.bf16.msra.mxu0 %v3422_v0  ;;  %2376 = vmatprep.subr.bf16.mxu1 %v3423_v3  ;;  %v4150_v0 = vld [vmem:[%s3966_s5 + $0x18] sm:$0xff]  ;;  %v3481_v3 = vld [vmem:[%s4957_s1 + $0x164] ss:$8 sps:$4 sm:$0xff]  }
  0x39   : > { %2580 = vmatprep.subr.bf16.mxu0 %v3425_v4  ;;  %v309_v4 = vshrl.u32 %v4150_v0, 16  ;;  %v312_v5 = vshll.u32 %v4150_v0, 16  ;;  %v4176_v9 = vsel %vm4162_vm5, %v202_v61, %v4138_v56  ;;  %v3543_v61 = vld [vmem:[%s4957_s1 + $0x204] ss:$8 sps:$4 sm:$0xff]  }
  0x3b   : > { %2377 = vmatpush1.bf16.msra.mxu1 %v3427_v8  ;;  %v4171_v8 = vsel %vm4162_vm5, %v192_v55, %v196_v41  ;;  %v311_v11 = vrot.slane %v309_v4, 7  ;;  %v3518_v41 = vld [vmem:[%s4957_s1 + $0x5c0] ss:$8 sps:$4 sm:$0xff]   ;;  %v3535_v55 = vld [vmem:[%s4957_s1 + $0x1f0] ss:$8 sps:$4 sm:$0xff]   ;;  %v341_v4 = vrot.slane %v3993_v54, 6 }
  0x3c   : > { %2581 = vmatpush1.bf16.msra.mxu0 %v3428_v10  ;;  %2378 = vmatprep.subr.bf16.mxu1 %v3429_v12  ;;  %v307_v10 = vrot.slane %v4017_v2, 4  ;;  %v2908_v12 = vcombine.high %v4171_v8, %v4176_v9  ;;  %v3490_v2 = vld [vmem:[%s4957_s1 + $0x574] ss:$8 sps:$4 sm:$0xff]  }
  0x3d   : > { %2582 = vmatprep.subr.bf16.mxu0 %v3431_v13  ;;  %v3479_v13 = vld [vmem:[%s4957_s1 + $0x160] ss:$8 sps:$4 sm:$0xff]   ;;  %v343_v6 = vrot.slane %v341_v4, 4 }
  0x3f   : > { %2379 = vmatpush1.bf16.msra.mxu1 %v3433_v15  ;;  %v3487_v15 = vld [vmem:[%s4957_s1 + $0x174] ss:$8 sps:$4 sm:$0xff]  }
  0x40   : > { %2583 = vmatpush1.bf16.msra.mxu0 %v3434_v16  ;;  %2380 = vmatprep.subr.bf16.mxu1 %v3435_v17  ;;  %v314_v16 = vor.u32 %v312_v5, %v311_v11  ;;  %v2907_v5 = vcombine.low %v4171_v8, %v4176_v9  ;;  %v3554_v8 = vld [vmem:[%s4957_s1 + $0x614] ss:$8 sps:$4 sm:$0xff]   ;;  %v3549_v9 = vld [vmem:[%s4957_s1 + $0x210] ss:$8 sps:$4 sm:$0xff]  }
  0x41   : > { %2584 = vmatprep.subr.bf16.mxu0 %v3437_v18  ;;  %v3485_v18 = vld [vmem:[%s4957_s1 + $0x170] ss:$8 sps:$4 sm:$0xff]  }
  0x42   : > { %v315_v17 = vsel %vm4011_vm2, %v307_v10, %v314_v16  ;;  %v3546_v10 = vld [vmem:[%s4957_s1 + $0x600] ss:$8 sps:$4 sm:$0xff]  }
  0x43   : > { %2381 = vmatpush1.bf16.msra.mxu1 %v3439_v19  ;;  %v2932_v19 = vcombine.high %v315_v17, %v315_v17 }
  0x44   : > { %2585 = vmatpush1.bf16.msra.mxu0 %v3440_v20  ;;  %2401 = vmatprep.subr.bf16.mxu1 %v3445_v21  ;;  %v2931_v20 = vcombine.low %v315_v17, %v315_v17  ;;  %v3488_v21 = vld [vmem:[%s4957_s1 + $0x570] ss:$8 sps:$4 sm:$0xff]   ;;  %v224_v17 = vld [vmem:[%s3966_s5] sm:$0xee] }
  0x45   : > { %2605 = vmatprep.subr.bf16.mxu0 %v3448_v22  ;;  %v3493_v22 = vld [vmem:[%s4957_s1 + $0x184] ss:$8 sps:$4 sm:$0xff]  }
  0x46   : > { %2383 = vmatmul.mubr.bf16.vlgmr.msra.gmra.mrb[0].mxu1 %v2905_v23  ;;  %v2916_v23 = vcombine.high %v3981_v49, %v3993_v54 }
  0x47   : > { %2587 = vmatmul.mubr.bf16.vlgmr.msra.gmra.mrb[0].mxu0 %v2913_v25  ;;  %2402 = vmatpush1.bf16.msra.mxu1 %v3443_v24  ;;  %v3491_v24 = vld [vmem:[%s4957_s1 + $0x180] ss:$8 sps:$4 sm:$0xff]  }
  0x48   : > { %2606 = vmatpush1.bf16.msra.mxu0 %v3446_v26  ;;  %2403 = vmatprep.subr.bf16.mxu1 %v3451_v27  ;;  %v3494_v25 = vld [vmem:[%s4957_s1 + $0x580] ss:$8 sps:$4 sm:$0xff]   ;;  %v3499_v26 = vld [vmem:[%s4957_s1 + $0x194] ss:$8 sps:$4 sm:$0xff]  }
  0x49   : > { %2607 = vmatprep.subr.bf16.mxu0 %v3454_v28  ;;  %2392 = vmatprep.mubr.bf16.mxu1 %v2924_v29  ;;  %v3502_v27 = vld [vmem:[%s4957_s1 + $0x594] ss:$8 sps:$4 sm:$0xff]   ;;  %v3497_v28 = vld [vmem:[%s4957_s1 + $0x190] ss:$8 sps:$4 sm:$0xff]  }
  0x4a   : > { %2596 = vmatprep.mubr.bf16.mxu0 %v2932_v19  ;;  %v3500_v29 = vld [vmem:[%s4957_s1 + $0x590] ss:$8 sps:$4 sm:$0xff]  }
  0x4b   : > { %2404 = vmatpush1.bf16.msra.mxu1 %v3449_v30  ;;  %v3505_v30 = vld [vmem:[%s4957_s1 + $0x1a4] ss:$8 sps:$4 sm:$0xff]  }
  0x4c   : > { %2608 = vmatpush1.bf16.msra.mxu0 %v3452_v32  ;;  %2405 = vmatprep.subr.bf16.mxu1 %v3457_v34  ;;  %v3503_v32 = vld [vmem:[%s4957_s1 + $0x1a0] ss:$8 sps:$4 sm:$0xff]   ;;  %v3511_v34 = vld [vmem:[%s4957_s1 + $0x1b4] ss:$8 sps:$4 sm:$0xff]  }
  0x4d   : > { %2609 = vmatprep.subr.bf16.mxu0 %v3460_v35  ;;  %v3514_v35 = vld [vmem:[%s4957_s1 + $0x5b4] ss:$8 sps:$4 sm:$0xff]  }
  0x4e   : > { %2393 = vmatmul.mubr.bf16.gmra.mrb[4].mxu1 %v2923_v37  ;;  %v3512_v37 = vld [vmem:[%s4957_s1 + $0x5b0] ss:$8 sps:$4 sm:$0xff]  }
  0x4f   : > { %2406 = vmatpush1.bf16.msra.mxu1 %v3455_v36  ;;  %2433 = vmatprep.mubr.bf16.mxu1 %v2908_v12  ;;  %v3509_v36 = vld [vmem:[%s4957_s1 + $0x1b0] ss:$8 sps:$4 sm:$0xff]   ;;  %v3551_v12 = vld [vmem:[%s4957_s1 + $0x214] ss:$8 sps:$4 sm:$0xff]  }
  0x50   : > { %2610 = vmatpush1.bf16.msra.mxu0 %v3458_v39  ;;  %2407 = vmatprep.subr.bf16.mxu1 %v3463_v42  ;;  %v3520_v39 = vld [vmem:[%s4957_s1 + $0x5c4] ss:$8 sps:$4 sm:$0xff]   ;;  %v3523_v42 = vld [vmem:[%s4957_s1 + $0x1d4] ss:$8 sps:$4 sm:$0xff]  }
  0x51   : > { %2611 = vmatprep.subr.bf16.mxu0 %v3466_v43  ;;  %2597 = vmatmul.mubr.bf16.gmra.mrb[4].mxu0 %v2931_v20  ;;  %v3526_v43 = vld [vmem:[%s4957_s1 + $0x5d4] ss:$8 sps:$4 sm:$0xff]   ;;  %v2900_v20 = vrot.slane %v224_v17, 9  ;;  %v3618_v17 = vld [vmem:[%s4957_s1 + $0x6c0] ss:$8 sps:$4 sm:$0xff]  }
  0x52   : > { %2637 = vmatprep.mubr.bf16.mxu0 %v2916_v23 }
  0x53   : > { %2408 = vmatpush1.bf16.msra.mxu1 %v3461_v45  ;;  %v3524_v45 = vld [vmem:[%s4957_s1 + $0x5d0] ss:$8 sps:$4 sm:$0xff]  }
  0x54   : > { %2612 = vmatpush1.bf16.msra.mxu0 %v3464_v46  ;;  %2409 = vmatprep.subr.bf16.mxu1 %v3469_v48  ;;  %v3530_v46 = vld [vmem:[%s4957_s1 + $0x1e4] ss:$8 sps:$4 sm:$0xff]   ;;  %v210_v48 = vrot.slane %v300_v58, 4  ;;  %v3540_v58 = vld [vmem:[%s4957_s1 + $0x5f4] ss:$8 sps:$4 sm:$0xff]  }
  0x55   : > { %2613 = vmatprep.subr.bf16.mxu0 %v3472_v50  ;;  %v3528_v50 = vld [vmem:[%s4957_s1 + $0x1e0] ss:$8 sps:$4 sm:$0xff]  }
  0x57   : > { %2410 = vmatpush1.bf16.msra.mxu1 %v3467_v52  ;;  %v3537_v52 = vld [vmem:[%s4957_s1 + $0x1f4] ss:$8 sps:$4 sm:$0xff]  }
  0x58   : > { %2614 = vmatpush1.bf16.msra.mxu0 %v3470_v53  ;;  %2411 = vmatprep.subr.bf16.mxu1 %v3475_v57  ;;  %v211_v53 = vor.u32 %v210_v48, %v4138_v56  ;;  %v3538_v57 = vld [vmem:[%s4957_s1 + $0x5f0] ss:$8 sps:$4 sm:$0xff]   ;;  %v3548_v56 = vld [vmem:[%s4957_s1 + $0x604] ss:$8 sps:$4 sm:$0xff]  }
  0x59   : > { %2615 = vmatprep.subr.bf16.mxu0 %v3478_v60  ;;  %v237_v60 = vrot.slane %v3981_v49, 5  ;;  %v3560_v49 = vld [vmem:[%s4957_s1 + $0x624] ss:$8 sps:$4 sm:$0xff]  }
  0x5a   : > { %v3584_v48 = vld [vmem:[%s4957_s1 + $0x664] ss:$8 sps:$4 sm:$0xff]  }
  0x5b   : > { %2412 = vmatpush1.bf16.msra.mxu1 %v3473_v62  ;;  %v180_v62 = vld [vmem:[%s3966_s5 + $0x18] sm:$0x11]  ;;  %v239_v11 = vrot.slane %v237_v60, 4  ;;  %v4362_v23 = vsel %vm4342_vm10, %v2900_v20, %v237_v60  ;;  %v3596_v60 = vld [vmem:[%s4957_s1 + $0x684] ss:$8 sps:$4 sm:$0xff]  }
  0x5c   : > { %2616 = vmatpush1.bf16.msra.mxu0 %v3476_v59  ;;  %2413 = vmatprep.subr.bf16.mxu1 %v3481_v3  ;;  %v212_v59 = vrot.slane %v211_v53, 4  ;;  %v214_v3 = vshll.u32 %v180_v62, 16  ;;  %v3585_v53 = vld [vmem:[%s4957_s1 + $0x270] ss:$8 sps:$4 sm:$0xff]   ;;  %v3599_v62 = vld [vmem:[%s4957_s1 + $0x294] ss:$8 sps:$4 sm:$0xff]  }
  0x5d   : > { %2617 = vmatprep.subr.bf16.mxu0 %v3484_v7  ;;  %v3541_v7 = vld [vmem:[%s4957_s1 + $0x200] ss:$8 sps:$4 sm:$0xff]   ;;  %v3626_v20 = vld [vmem:[%s4957_s1 + $0x6d4] ss:$8 sps:$4 sm:$0xff]  }
  0x5f   : > { %2414 = vmatpush1.bf16.msra.mxu1 %v3479_v13  ;;  %v216_v13 = vrot.slane %v214_v3, 5  ;;  %v3597_v3 = vld [vmem:[%s4957_s1 + $0x290] ss:$8 sps:$4 sm:$0xff]  }
  0x60   : > { %2618 = vmatpush1.bf16.msra.mxu0 %v3482_v14  ;;  %2415 = vmatprep.subr.bf16.mxu1 %v3487_v15  ;;  %v240_v14 = vrot.slane %v3993_v54, 5  ;;  %v3552_v15 = vld [vmem:[%s4957_s1 + $0x610] ss:$8 sps:$4 sm:$0xff]   ;;  %v3637_v54 = vld [vmem:[%s4957_s1 + $0x2f4] ss:$8 sps:$4 sm:$0xff]  }
  0x61   : > { %2619 = vmatprep.subr.bf16.mxu0 %v3490_v2  ;;  %v217_v16 = vsel %vm4162_vm5, %v212_v59, %v216_v13  ;;  %v2934_v2 = vcombine.high %v4150_v0, %v4150_v0  ;;  %v3602_v59 = vld [vmem:[%s4957_s1 + $0x694] ss:$8 sps:$4 sm:$0xff]  }
  0x62   : > { %v3614_v13 = vld [vmem:[%s4957_s1 + $0x6b4] ss:$8 sps:$4 sm:$0xff]  }
  0x63   : > { %2416 = vmatpush1.bf16.msra.mxu1 %v3485_v18  ;;  %v2926_v18 = vcombine.high %v217_v16, %v217_v16 }
  0x64   : > { %2620 = vmatpush1.bf16.msra.mxu0 %v3488_v21  ;;  %2417 = vmatprep.subr.bf16.mxu1 %v3493_v22  ;;  %v344_v21 = vrot.slane %v4150_v0, 6  ;;  %v3557_v22 = vld [vmem:[%s4957_s1 + $0x224] ss:$8 sps:$4 sm:$0xff]  }
  0x65   : > { %2621 = vmatprep.subr.bf16.mxu0 %v3496_v1  ;;  %v328_v1 = vld [vmem:[%s3966_s5 + $0x8] sm:$0xcc] }
  0x67   : > { %2418 = vmatpush1.bf16.msra.mxu1 %v3491_v24 }
  0x68   : > { %2622 = vmatpush1.bf16.msra.mxu0 %v3494_v25  ;;  %2419 = vmatprep.subr.bf16.mxu1 %v3499_v26  ;;  %v2903_v25 = vrot.slane %v328_v1, 10  ;;  %v355_v1 = vld [vmem:[%s3966_s5 + $0x8] sm:$0xcc] }
  0x69   : > { %2623 = vmatprep.subr.bf16.mxu0 %v3502_v27 }
  0x6b   : > { %2420 = vmatpush1.bf16.msra.mxu1 %v3497_v28  ;;  %v3555_v28 = vld [vmem:[%s4957_s1 + $0x220] ss:$8 sps:$4 sm:$0xff]  }
  0x6c   : > { %2624 = vmatpush1.bf16.msra.mxu0 %v3500_v29  ;;  %2421 = vmatprep.subr.bf16.mxu1 %v3505_v30  ;;  %v3558_v29 = vld [vmem:[%s4957_s1 + $0x620] ss:$8 sps:$4 sm:$0xff]   ;;  %v2925_v30 = vcombine.low %v217_v16, %v217_v16  ;;  %v3620_v16 = vld [vmem:[%s4957_s1 + $0x6c4] ss:$8 sps:$4 sm:$0xff]  }
  0x6d   : > { %2625 = vmatprep.subr.bf16.mxu0 %v3508_v31  ;;  %v2933_v31 = vcombine.low %v4150_v0, %v4150_v0  ;;  %v3640_v0 = vld [vmem:[%s4957_s1 + $0x6f4] ss:$8 sps:$4 sm:$0xff]  }
  0x6f   : > { %2422 = vmatpush1.bf16.msra.mxu1 %v3503_v32  ;;  %v4384_v32 = vsel %vm4366_vm11, %v2903_v25, %v341_v4  ;;  %v3600_v4 = vld [vmem:[%s4957_s1 + $0x690] ss:$8 sps:$4 sm:$0xff]  }
  0x70   : > { %2626 = vmatpush1.bf16.msra.mxu0 %v3506_v33  ;;  %2423 = vmatprep.subr.bf16.mxu1 %v3511_v34  ;;  %v4390_v33 = vsel %vm4366_vm11, %v343_v6, %v344_v21  ;;  %v3563_v34 = vld [vmem:[%s4957_s1 + $0x234] ss:$8 sps:$4 sm:$0xff]   ;;  %v3621_v6 = vld [vmem:[%s4957_s1 + $0x2d0] ss:$8 sps:$4 sm:$0xff]  }
  0x71   : > { %2627 = vmatprep.subr.bf16.mxu0 %v3514_v35  ;;  %v3566_v35 = vld [vmem:[%s4957_s1 + $0x634] ss:$8 sps:$4 sm:$0xff]  }
  0x72   : > { %v253_v25 = vld [vmem:[%s3966_s5 + $0x10] sm:$0xff] }
  0x73   : > { %2424 = vmatpush1.bf16.msra.mxu1 %v3509_v36  ;;  %v2918_v36 = vcombine.high %v4384_v32, %v4390_v33 }
  0x74   : > { %2628 = vmatpush1.bf16.msra.mxu0 %v3512_v37  ;;  %2425 = vmatprep.subr.bf16.mxu1 %v3517_v38  ;;  %v3561_v37 = vld [vmem:[%s4957_s1 + $0x230] ss:$8 sps:$4 sm:$0xff]  }
  0x75   : > { %2629 = vmatprep.subr.bf16.mxu0 %v3520_v39  ;;  %v3564_v38 = vld [vmem:[%s4957_s1 + $0x630] ss:$8 sps:$4 sm:$0xff]   ;;  %v3569_v39 = vld [vmem:[%s4957_s1 + $0x244] ss:$8 sps:$4 sm:$0xff]  }
  0x77   : > { %2426 = vmatpush1.bf16.msra.mxu1 %v3515_v40  ;;  %v3572_v40 = vld [vmem:[%s4957_s1 + $0x644] ss:$8 sps:$4 sm:$0xff]  }
  0x78   : > { %2630 = vmatpush1.bf16.msra.mxu0 %v3518_v41  ;;  %2427 = vmatprep.subr.bf16.mxu1 %v3523_v42  ;;  %v3567_v41 = vld [vmem:[%s4957_s1 + $0x240] ss:$8 sps:$4 sm:$0xff]  }
  0x79   : > { %2631 = vmatprep.subr.bf16.mxu0 %v3526_v43  ;;  %v3570_v42 = vld [vmem:[%s4957_s1 + $0x640] ss:$8 sps:$4 sm:$0xff]   ;;  %v3575_v43 = vld [vmem:[%s4957_s1 + $0x254] ss:$8 sps:$4 sm:$0xff]  }
  0x7b   : > { %2428 = vmatpush1.bf16.msra.mxu1 %v3521_v44  ;;  %v3578_v44 = vld [vmem:[%s4957_s1 + $0x654] ss:$8 sps:$4 sm:$0xff]  }
  0x7c   : > { %2632 = vmatpush1.bf16.msra.mxu0 %v3524_v45  ;;  %2429 = vmatprep.subr.bf16.mxu1 %v3530_v46  ;;  %v3573_v45 = vld [vmem:[%s4957_s1 + $0x250] ss:$8 sps:$4 sm:$0xff]  }
  0x7d   : > { %2633 = vmatprep.subr.bf16.mxu0 %v3533_v47  ;;  %v3576_v46 = vld [vmem:[%s4957_s1 + $0x650] ss:$8 sps:$4 sm:$0xff]   ;;  %v3581_v47 = vld [vmem:[%s4957_s1 + $0x264] ss:$8 sps:$4 sm:$0xff]  }
  0x7f   : > { %2430 = vmatpush1.bf16.msra.mxu1 %v3528_v50  ;;  %v3579_v50 = vld [vmem:[%s4957_s1 + $0x260] ss:$8 sps:$4 sm:$0xff]  }
  0x80   : > { %2634 = vmatpush1.bf16.msra.mxu0 %v3531_v51  ;;  %2431 = vmatprep.subr.bf16.mxu1 %v3537_v52  ;;  %v3582_v51 = vld [vmem:[%s4957_s1 + $0x660] ss:$8 sps:$4 sm:$0xff]   ;;  %v3587_v52 = vld [vmem:[%s4957_s1 + $0x274] ss:$8 sps:$4 sm:$0xff]  }
  0x81   : > { %2635 = vmatprep.subr.bf16.mxu0 %v3540_v58  ;;  %v3590_v58 = vld [vmem:[%s4957_s1 + $0x674] ss:$8 sps:$4 sm:$0xff]  }
  0x83   : > { %2432 = vmatpush1.bf16.msra.mxu1 %v3535_v55  ;;  %v3588_v55 = vld [vmem:[%s4957_s1 + $0x670] ss:$8 sps:$4 sm:$0xff]  }
  0x84   : > { %2636 = vmatpush1.bf16.msra.mxu0 %v3538_v57  ;;  %2452 = vmatprep.subr.bf16.mxu1 %v3543_v61  ;;  %v3593_v57 = vld [vmem:[%s4957_s1 + $0x284] ss:$8 sps:$4 sm:$0xff]   ;;  %v3591_v61 = vld [vmem:[%s4957_s1 + $0x280] ss:$8 sps:$4 sm:$0xff]  }
  0x85   : > { %2656 = vmatprep.subr.bf16.mxu0 %v3548_v56  ;;  %v3594_v56 = vld [vmem:[%s4957_s1 + $0x680] ss:$8 sps:$4 sm:$0xff]  }
  0x86   : > { %2434 = vmatmul.mubr.bf16.vlgmr.msra.gmra.mrb[0].mxu1 %v2907_v5  ;;  %v3605_v5 = vld [vmem:[%s4957_s1 + $0x2a4] ss:$8 sps:$4 sm:$0xff]  }
  0x87   : > { %2638 = vmatmul.mubr.bf16.vlgmr.msra.gmra.mrb[0].mxu0 %v2915_v63  ;;  %2453 = vmatpush1.bf16.msra.mxu1 %v3541_v7  ;;  %v4357_v63 = vsel %vm4342_vm10, %v239_v11, %v240_v14  ;;  %v3608_v7 = vld [vmem:[%s4957_s1 + $0x6a4] ss:$8 sps:$4 sm:$0xff]   ;;  %v3606_v11 = vld [vmem:[%s4957_s1 + $0x6a0] ss:$8 sps:$4 sm:$0xff]  }
  0x88   : > { %2657 = vmatpush1.bf16.msra.mxu0 %v3546_v10  ;;  %2454 = vmatprep.subr.bf16.mxu1 %v3551_v12  ;;  %v2909_v26 = vcombine.low %v4362_v23, %v4357_v63  ;;  %v2910_v27 = vcombine.high %v4362_v23, %v4357_v63  ;;  %v3603_v10 = vld [vmem:[%s4957_s1 + $0x2a0] ss:$8 sps:$4 sm:$0xff]   ;;  %v3611_v12 = vld [vmem:[%s4957_s1 + $0x2b4] ss:$8 sps:$4 sm:$0xff]   ;;  %v3658_v23 = vld [vmem:[%s4957_s1 + $0x724] ss:$8 sps:$4 sm:$0xff]  }
  0x89   : > { %2658 = vmatprep.subr.bf16.mxu0 %v3554_v8  ;;  %2443 = vmatprep.mubr.bf16.mxu1 %v2926_v18  ;;  %v3609_v8 = vld [vmem:[%s4957_s1 + $0x2b0] ss:$8 sps:$4 sm:$0xff]   ;;  %v3623_v18 = vld [vmem:[%s4957_s1 + $0x2d4] ss:$8 sps:$4 sm:$0xff]  }
  0x8a   : > { %2647 = vmatprep.mubr.bf16.mxu0 %v2934_v2  ;;  %v3615_v2 = vld [vmem:[%s4957_s1 + $0x2c0] ss:$8 sps:$4 sm:$0xff]  }
  0x8b   : > { %2455 = vmatpush1.bf16.msra.mxu1 %v3549_v9  ;;  %v3612_v9 = vld [vmem:[%s4957_s1 + $0x6b0] ss:$8 sps:$4 sm:$0xff]  }
  0x8c   : > { %2659 = vmatpush1.bf16.msra.mxu0 %v3552_v15  ;;  %2456 = vmatprep.subr.bf16.mxu1 %v3557_v22  ;;  %v3617_v15 = vld [vmem:[%s4957_s1 + $0x2c4] ss:$8 sps:$4 sm:$0xff]   ;;  %v3624_v22 = vld [vmem:[%s4957_s1 + $0x6d0] ss:$8 sps:$4 sm:$0xff]  }
  0x8d   : > { %2660 = vmatprep.subr.bf16.mxu0 %v3560_v49  ;;  %v3629_v49 = vld [vmem:[%s4957_s1 + $0x2e4] ss:$8 sps:$4 sm:$0xff]  }
  0x8e   : > { %2444 = vmatmul.mubr.bf16.gmra.mrb[4].mxu1 %v2925_v30  ;;  %v242_v30 = vrot.slane %v240_v14, 4 }
  0x8f   : > { %2648 = vmatmul.mubr.bf16.gmra.mrb[4].mxu0 %v2933_v31  ;;  %2457 = vmatpush1.bf16.msra.mxu1 %v3555_v28  ;;  %v227_v28 = vld [vmem:[%s3966_s5 + $0x18] sm:$0x11]  ;;  %v331_v31 = vld [vmem:[%s3966_s5 + $0x20] sm:$0x33] }
  0x90   : > { %2661 = vmatpush1.bf16.msra.mxu0 %v3558_v29  ;;  %2458 = vmatprep.subr.bf16.mxu1 %v3563_v34  ;;  %v3627_v29 = vld [vmem:[%s4957_s1 + $0x2e0] ss:$8 sps:$4 sm:$0xff]   ;;  %v363_v34 = vshrl.u32 %v355_v1, 16  ;;  %v243_v14 = vrot.slane %v227_v28, 5  ;;  %v3661_v28 = vld [vmem:[%s4957_s1 + $0x334] ss:$8 sps:$4 sm:$0xff]  }
  0x91   : > { %2662 = vmatprep.subr.bf16.mxu0 %v3566_v35  ;;  %2484 = vmatprep.mubr.bf16.mxu1 %v2910_v27  ;;  %v3633_v27 = vld [vmem:[%s4957_s1 + $0x6e4] ss:$8 sps:$4 sm:$0xff]   ;;  %v346_v35 = vrot.slane %v344_v21, 4  ;;  %v3635_v21 = vld [vmem:[%s4957_s1 + $0x2f0] ss:$8 sps:$4 sm:$0xff]  }
  0x92   : > { %2688 = vmatprep.mubr.bf16.mxu0 %v2918_v36  ;;  %v4544_v36 = vld [vmem:[%s3966_s5 + $0x18] sm:$0xff] }
  0x93   : > { %2459 = vmatpush1.bf16.msra.mxu1 %v3561_v37  ;;  %v366_v37 = vshll.u32 %v355_v1, 16 }
  0x94   : > { %2663 = vmatpush1.bf16.msra.mxu0 %v3564_v38  ;;  %2460 = vmatprep.subr.bf16.mxu1 %v3569_v39  ;;  %v372_v38 = vshrl.u32 %v253_v25, 16  ;;  %v375_v39 = vshll.u32 %v253_v25, 16 }
  0x95   : > { %2664 = vmatprep.subr.bf16.mxu0 %v3572_v40  ;;  %v3631_v40 = vld [vmem:[%s4957_s1 + $0x6e0] ss:$8 sps:$4 sm:$0xff]  }
  0x97   : > { %2461 = vmatpush1.bf16.msra.mxu1 %v3567_v41  ;;  %v347_v41 = vrot.slane %v331_v31, 6  ;;  %v406_v31 = vld [vmem:[%s3966_s5 + $0x8] sm:$0x88] }
  0x98   : > { %2665 = vmatpush1.bf16.msra.mxu0 %v3570_v42  ;;  %2462 = vmatprep.subr.bf16.mxu1 %v3575_v43  ;;  %v4558_v42 = vrot.slane %v253_v25, 7  ;;  %v365_v43 = vrot.slane %v363_v34, 6  ;;  %v409_v34 = vld [vmem:[%s3966_s5 + $0x20] sm:$0x77] }
  0x99   : > { %2666 = vmatprep.subr.bf16.mxu0 %v3578_v44  ;;  %v382_v44 = vshrl.u32 %v4544_v36, 16 }
  0x9b   : > { %2463 = vmatpush1.bf16.msra.mxu1 %v3573_v45  ;;  %v252_v45 = vld [vmem:[%s3966_s5 + $0x8] sm:$0xff] }
  0x9c   : > { %2667 = vmatpush1.bf16.msra.mxu0 %v3576_v46  ;;  %2464 = vmatprep.subr.bf16.mxu1 %v3581_v47  ;;  %v368_v46 = vrot.slane %v366_v37, 7  ;;  %v374_v47 = vrot.slane %v372_v38, 6  ;;  %v2904_v37 = vrot.slane %v406_v31, 11  ;;  %v422_v38 = vrot.slane %v409_v34, 7  ;;  %v3722_v31 = vld [vmem:[%s4957_s1 + $0x7d0] ss:$8 sps:$4 sm:$0xff]  }
  0x9d   : > { %2668 = vmatprep.subr.bf16.mxu0 %v3584_v48  ;;  %v377_v48 = vrot.slane %v375_v39, 7  ;;  %v3659_v39 = vld [vmem:[%s4957_s1 + $0x330] ss:$8 sps:$4 sm:$0xff]   ;;  %v3727_v34 = vld [vmem:[%s4957_s1 + $0x3e4] ss:$8 sps:$4 sm:$0xff]  }
  0x9f   : > { %2465 = vmatpush1.bf16.msra.mxu1 %v3579_v50  ;;  %v385_v50 = vshll.u32 %v4544_v36, 16 }
  0xa0   : > { %2669 = vmatpush1.bf16.msra.mxu0 %v3582_v51  ;;  %2466 = vmatprep.subr.bf16.mxu1 %v3587_v52  ;;  %v3638_v51 = vld [vmem:[%s4957_s1 + $0x6f0] ss:$8 sps:$4 sm:$0xff]   ;;  %v3643_v52 = vld [vmem:[%s4957_s1 + $0x304] ss:$8 sps:$4 sm:$0xff]  }
  0xa1   : > { %2670 = vmatprep.subr.bf16.mxu0 %v3590_v58  ;;  %v2917_v58 = vcombine.low %v4384_v32, %v4390_v33  ;;  %v264_v32 = vrot.slane %v252_v45, 7  ;;  %v384_v33 = vrot.slane %v382_v44, 6  ;;  %v387_v19 = vrot.slane %v385_v50, 7  ;;  %v3665_v44 = vld [vmem:[%s4957_s1 + $0x340] ss:$8 sps:$4 sm:$0xff]  }
  0xa2   : > { %v3668_v45 = vld [vmem:[%s4957_s1 + $0x740] ss:$8 sps:$4 sm:$0xff]   ;;  %v3674_v50 = vld [vmem:[%s4957_s1 + $0x750] ss:$8 sps:$4 sm:$0xff]  }
  0xa3   : > { %2467 = vmatpush1.bf16.msra.mxu1 %v3585_v53  ;;  %v3646_v53 = vld [vmem:[%s4957_s1 + $0x704] ss:$8 sps:$4 sm:$0xff]  }
  0xa4   : > { %2671 = vmatpush1.bf16.msra.mxu0 %v3588_v55  ;;  %2468 = vmatprep.subr.bf16.mxu1 %v3593_v57  ;;  %v269_v55 = vrot.slane %v4558_v42, 4  ;;  %v419_v57 = vrot.slane %v4544_v36, 7 }
  0xa5   : > { %2672 = vmatprep.subr.bf16.mxu0 %v3596_v60  ;;  %v244_v60 = vsel %vm4342_vm10, %v242_v30, %v243_v14  ;;  %v3664_v30 = vld [vmem:[%s4957_s1 + $0x734] ss:$8 sps:$4 sm:$0xff]   ;;  %v3667_v14 = vld [vmem:[%s4957_s1 + $0x344] ss:$8 sps:$4 sm:$0xff]  }
  0xa6   : > { %v4594_v24 = vsel %vm4582_vm15, %v269_v55, %v419_v57 }
  0xa7   : > { %2469 = vmatpush1.bf16.msra.mxu1 %v3591_v61  ;;  %v348_v61 = vsel %vm4366_vm11, %v346_v35, %v347_v41 }
  0xa8   : > { %2673 = vmatpush1.bf16.msra.mxu0 %v3594_v56  ;;  %2470 = vmatprep.subr.bf16.mxu1 %v3599_v62  ;;  %v3641_v62 = vld [vmem:[%s4957_s1 + $0x300] ss:$8 sps:$4 sm:$0xff]   ;;  %v3745_v56 = vld [vmem:[%s4957_s1 + $0x824] ss:$8 sps:$4 sm:$0xff]  }
  0xa9   : > { %2674 = vmatprep.subr.bf16.mxu0 %v3602_v59  ;;  %v251_v59 = vld [vmem:[%s3966_s5] sm:$0x88] }
  0xab   : > { %2471 = vmatpush1.bf16.msra.mxu1 %v3597_v3  ;;  %v369_v3 = vor.u32 %v368_v46, %v365_v43  ;;  %v3673_v46 = vld [vmem:[%s4957_s1 + $0x354] ss:$8 sps:$4 sm:$0xff]  }
  0xac   : > { %2675 = vmatpush1.bf16.msra.mxu0 %v3600_v4  ;;  %2472 = vmatprep.subr.bf16.mxu1 %v3605_v5  ;;  %v378_v4 = vor.u32 %v377_v48, %v374_v47  ;;  %v3644_v5 = vld [vmem:[%s4957_s1 + $0x700] ss:$8 sps:$4 sm:$0xff]   ;;  %v3676_v47 = vld [vmem:[%s4957_s1 + $0x754] ss:$8 sps:$4 sm:$0xff]   ;;  %v3671_v48 = vld [vmem:[%s4957_s1 + $0x350] ss:$8 sps:$4 sm:$0xff]  }
  0xad   : > { %2676 = vmatprep.subr.bf16.mxu0 %v3608_v7  ;;  %v3649_v7 = vld [vmem:[%s4957_s1 + $0x314] ss:$8 sps:$4 sm:$0xff]  }
  0xaf   : > { %2473 = vmatpush1.bf16.msra.mxu1 %v3603_v10  ;;  %v3652_v10 = vld [vmem:[%s4957_s1 + $0x714] ss:$8 sps:$4 sm:$0xff]  }
  0xb0   : > { %2677 = vmatpush1.bf16.msra.mxu0 %v3606_v11  ;;  %2474 = vmatprep.subr.bf16.mxu1 %v3611_v12  ;;  %v3647_v11 = vld [vmem:[%s4957_s1 + $0x310] ss:$8 sps:$4 sm:$0xff]   ;;  %v2928_v12 = vcombine.high %v244_v60, %v244_v60 }
  0xb1   : > { %2678 = vmatprep.subr.bf16.mxu0 %v3614_v13  ;;  %v2936_v13 = vcombine.high %v348_v61, %v348_v61 }
  0xb3   : > { %2475 = vmatpush1.bf16.msra.mxu1 %v3609_v8  ;;  %v2901_v8 = vrot.slane %v251_v59, 11  ;;  %v3689_v59 = vld [vmem:[%s4957_s1 + $0x380] ss:$8 sps:$4 sm:$0xff]  }
  0xb4   : > { %2679 = vmatpush1.bf16.msra.mxu0 %v3612_v9  ;;  %2476 = vmatprep.subr.bf16.mxu1 %v3617_v15  ;;  %v3650_v9 = vld [vmem:[%s4957_s1 + $0x710] ss:$8 sps:$4 sm:$0xff]   ;;  %v266_v15 = vrot.slane %v264_v32, 4 }
  0xb5   : > { %2680 = vmatprep.subr.bf16.mxu0 %v3620_v16  ;;  %v370_v16 = vrot.slane %v369_v3, 4  ;;  %v3692_v3 = vld [vmem:[%s4957_s1 + $0x780] ss:$8 sps:$4 sm:$0xff]  }
  0xb7   : > { %2477 = vmatpush1.bf16.msra.mxu1 %v3615_v2  ;;  %v380_v2 = vrot.slane %v378_v4, 4  ;;  %v4642_v1 = vsel %vm4621_vm1, %v370_v16, %v378_v4  ;;  %v3697_v4 = vld [vmem:[%s4957_s1 + $0x394] ss:$8 sps:$4 sm:$0xff]   ;;  %v3710_v16 = vld [vmem:[%s4957_s1 + $0x7b0] ss:$8 sps:$4 sm:$0xff]  }
  0xb8   : > { %2681 = vmatpush1.bf16.msra.mxu0 %v3618_v17  ;;  %2478 = vmatprep.subr.bf16.mxu1 %v3623_v18  ;;  %v4614_v17 = vor.u32 %v387_v19, %v384_v33  ;;  %v3655_v18 = vld [vmem:[%s4957_s1 + $0x324] ss:$8 sps:$4 sm:$0xff]   ;;  %v3700_v19 = vld [vmem:[%s4957_s1 + $0x794] ss:$8 sps:$4 sm:$0xff]  }
  0xb9   : > { %2682 = vmatprep.subr.bf16.mxu0 %v3626_v20  ;;  %v2935_v20 = vcombine.low %v348_v61, %v348_v61  ;;  %v3683_v61 = vld [vmem:[%s4957_s1 + $0x370] ss:$8 sps:$4 sm:$0xff]   ;;  %v3691_v33 = vld [vmem:[%s4957_s1 + $0x384] ss:$8 sps:$4 sm:$0xff]  }
  0xba   : > { %v4647_v25 = vsel %vm4621_vm1, %v380_v2, %v4614_v17  ;;  %v3715_v2 = vld [vmem:[%s4957_s1 + $0x3c4] ss:$8 sps:$4 sm:$0xff]  }
  0xbb   : > { %2479 = vmatpush1.bf16.msra.mxu1 %v3621_v6  ;;  %v3653_v6 = vld [vmem:[%s4957_s1 + $0x320] ss:$8 sps:$4 sm:$0xff]   ;;  %v2920_v36 = vcombine.high %v4642_v1, %v4647_v25 }
  0xbc   : > { %2683 = vmatpush1.bf16.msra.mxu0 %v3624_v22  ;;  %2480 = vmatprep.subr.bf16.mxu1 %v3629_v49  ;;  %v4633_v22 = vsel %vm4582_vm15, %v2901_v8, %v264_v32  ;;  %v4638_v49 = vsel %vm4582_vm15, %v266_v15, %v4558_v42  ;;  %v3686_v32 = vld [vmem:[%s4957_s1 + $0x770] ss:$8 sps:$4 sm:$0xff]   ;;  %v3709_v8 = vld [vmem:[%s4957_s1 + $0x3b4] ss:$8 sps:$4 sm:$0xff]  }
  0xbd   : > { %2684 = vmatprep.subr.bf16.mxu0 %v3633_v27  ;;  %v3656_v27 = vld [vmem:[%s4957_s1 + $0x720] ss:$8 sps:$4 sm:$0xff]   ;;  %v2912_v35 = vcombine.high %v4633_v22, %v4638_v49  ;;  %v3707_v15 = vld [vmem:[%s4957_s1 + $0x3b0] ss:$8 sps:$4 sm:$0xff]  }
  0xbf   : > { %2481 = vmatpush1.bf16.msra.mxu1 %v3627_v29  ;;  %v421_v29 = vrot.slane %v419_v57, 4  ;;  %v3685_v57 = vld [vmem:[%s4957_s1 + $0x374] ss:$8 sps:$4 sm:$0xff]  }
  0xc0   : > { %2685 = vmatpush1.bf16.msra.mxu0 %v3631_v40  ;;  %2482 = vmatprep.subr.bf16.mxu1 %v3637_v54  ;;  %v3662_v40 = vld [vmem:[%s4957_s1 + $0x730] ss:$8 sps:$4 sm:$0xff]   ;;  %v4673_v54 = vsel %vm4582_vm15, %v2904_v37, %v4558_v42 }
  0xc1   : > { %2686 = vmatprep.subr.bf16.mxu0 %v3640_v0  ;;  %v4677_v0 = vsel %vm4582_vm15, %v421_v29, %v422_v38  ;;  %v2921_v41 = vcombine.low %v4673_v54, %v4594_v24  ;;  %v2922_v43 = vcombine.high %v4673_v54, %v4594_v24  ;;  %v3725_v38 = vld [vmem:[%s4957_s1 + $0x3e0] ss:$8 sps:$4 sm:$0xff]  }
  0xc3   : > { %2483 = vmatpush1.bf16.msra.mxu1 %v3635_v21  ;;  %v3670_v21 = vld [vmem:[%s4957_s1 + $0x744] ss:$8 sps:$4 sm:$0xff]  }
  0xc4   : > { %2687 = vmatpush1.bf16.msra.mxu0 %v3638_v51  ;;  %2503 = vmatprep.subr.bf16.mxu1 %v3643_v52  ;;  %v3679_v51 = vld [vmem:[%s4957_s1 + $0x364] ss:$8 sps:$4 sm:$0xff]  }
  0xc5   : > { %2707 = vmatprep.subr.bf16.mxu0 %v3646_v53  ;;  %v3682_v52 = vld [vmem:[%s4957_s1 + $0x764] ss:$8 sps:$4 sm:$0xff]   ;;  %v3680_v53 = vld [vmem:[%s4957_s1 + $0x760] ss:$8 sps:$4 sm:$0xff]  }
  0xc6   : > { %2485 = vmatmul.mubr.bf16.vlgmr.msra.gmra.mrb[0].mxu1 %v2909_v26  ;;  %v2927_v26 = vcombine.low %v244_v60, %v244_v60  ;;  %v3688_v60 = vld [vmem:[%s4957_s1 + $0x774] ss:$8 sps:$4 sm:$0xff]  }
  0xc7   : > { %2689 = vmatmul.mubr.bf16.vlgmr.msra.gmra.mrb[0].mxu0 %v2917_v58  ;;  %2504 = vmatpush1.bf16.msra.mxu1 %v3641_v62  ;;  %v3677_v58 = vld [vmem:[%s4957_s1 + $0x360] ss:$8 sps:$4 sm:$0xff]   ;;  %v3694_v62 = vld [vmem:[%s4957_s1 + $0x784] ss:$8 sps:$4 sm:$0xff]  }
  0xc8   : > { %2708 = vmatpush1.bf16.msra.mxu0 %v3644_v5  ;;  %2505 = vmatprep.subr.bf16.mxu1 %v3649_v7  ;;  %v3695_v5 = vld [vmem:[%s4957_s1 + $0x390] ss:$8 sps:$4 sm:$0xff]  }
  0xc9   : > { %2709 = vmatprep.subr.bf16.mxu0 %v3652_v10  ;;  %2494 = vmatprep.mubr.bf16.mxu1 %v2928_v12  ;;  %v3698_v7 = vld [vmem:[%s4957_s1 + $0x790] ss:$8 sps:$4 sm:$0xff]   ;;  %v3703_v10 = vld [vmem:[%s4957_s1 + $0x3a4] ss:$8 sps:$4 sm:$0xff]   ;;  %v3701_v12 = vld [vmem:[%s4957_s1 + $0x3a0] ss:$8 sps:$4 sm:$0xff]  }
  0xca   : > { %2698 = vmatprep.mubr.bf16.mxu0 %v2936_v13  ;;  %v3704_v13 = vld [vmem:[%s4957_s1 + $0x7a0] ss:$8 sps:$4 sm:$0xff]  }
  0xcb   : > { %2506 = vmatpush1.bf16.msra.mxu1 %v3647_v11  ;;  %v3706_v11 = vld [vmem:[%s4957_s1 + $0x7a4] ss:$8 sps:$4 sm:$0xff]  }
  0xcc   : > { %2710 = vmatpush1.bf16.msra.mxu0 %v3650_v9  ;;  %2507 = vmatprep.subr.bf16.mxu1 %v3655_v18  ;;  %v3712_v9 = vld [vmem:[%s4957_s1 + $0x7b4] ss:$8 sps:$4 sm:$0xff]   ;;  %v3718_v18 = vld [vmem:[%s4957_s1 + $0x7c4] ss:$8 sps:$4 sm:$0xff]  }
  0xcd   : > { %2711 = vmatprep.subr.bf16.mxu0 %v3658_v23  ;;  %v3713_v23 = vld [vmem:[%s4957_s1 + $0x3c0] ss:$8 sps:$4 sm:$0xff]  }
  0xce   : > { %2495 = vmatmul.mubr.bf16.gmra.mrb[4].mxu1 %v2927_v26  ;;  %v3716_v26 = vld [vmem:[%s4957_s1 + $0x7c0] ss:$8 sps:$4 sm:$0xff]  }
  0xcf   : > { %2699 = vmatmul.mubr.bf16.gmra.mrb[4].mxu0 %v2935_v20  ;;  %2508 = vmatpush1.bf16.msra.mxu1 %v3653_v6  ;;  %v358_v20 = vld [vmem:[%s3966_s5 + $0x20] sm:$0x77]  ;;  %v3721_v6 = vld [vmem:[%s4957_s1 + $0x3d4] ss:$8 sps:$4 sm:$0xff]  }
  0xd0   : > { %2712 = vmatpush1.bf16.msra.mxu0 %v3656_v27  ;;  %2509 = vmatprep.subr.bf16.mxu1 %v3661_v28  ;;  %v3724_v27 = vld [vmem:[%s4957_s1 + $0x7d4] ss:$8 sps:$4 sm:$0xff]   ;;  %v392_v28 = vshrl.u32 %v358_v20, 16  ;;  %v395_v29 = vshll.u32 %v358_v20, 16 }
  0xd1   : > { %2713 = vmatprep.subr.bf16.mxu0 %v3664_v30  ;;  %2535 = vmatprep.mubr.bf16.mxu1 %v2912_v35  ;;  %v3719_v30 = vld [vmem:[%s4957_s1 + $0x3d0] ss:$8 sps:$4 sm:$0xff]   ;;  %v3730_v35 = vld [vmem:[%s4957_s1 + $0x7e4] ss:$8 sps:$4 sm:$0xff]   ;;  %v3784_v20 = vld [vmem:[%s4957_s1 + $0x8f4] ss:$8 sps:$4 sm:$0xff]  }
  0xd2   : > { %2739 = vmatprep.mubr.bf16.mxu0 %v2920_v36  ;;  %v394_v36 = vrot.slane %v392_v28, 6  ;;  %v397_v37 = vrot.slane %v395_v29, 7  ;;  %v747_v28 = vlaneseq }
  0xd3   : > { %2510 = vmatpush1.bf16.msra.mxu1 %v3659_v39  ;;  %v3728_v39 = vld [vmem:[%s4957_s1 + $0x7e0] ss:$8 sps:$4 sm:$0xff]  }
  0xd4   : > { %2714 = vmatpush1.bf16.msra.mxu0 %v3662_v40  ;;  %2511 = vmatprep.subr.bf16.mxu1 %v3667_v14  ;;  %v254_v40 = vld [vmem:[%s3966_s5 + $0x18] sm:$0x77]  ;;  %v748_v29 = vshrl.u32 %v747_v28, 7 }
  0xd5   : > { %2715 = vmatprep.subr.bf16.mxu0 %v3670_v21  ;;  %v3733_v14 = vld [vmem:[%s4957_s1 + $0x3f4] ss:$8 sps:$4 sm:$0xff]  }
  0xd6   : > { %v3736_v21 = vld [vmem:[%s4957_s1 + $0x7f4] ss:$8 sps:$4 sm:$0xff]  }
  0xd7   : > { %2512 = vmatpush1.bf16.msra.mxu1 %v3665_v44  ;;  %v270_v44 = vrot.slane %v254_v40, 7 }
  0xd8   : > { %2716 = vmatpush1.bf16.msra.mxu0 %v3668_v45  ;;  %2513 = vmatprep.subr.bf16.mxu1 %v3673_v46  ;;  %v390_v45 = vrot.slane %v4614_v17, 4  ;;  %v398_v46 = vor.u32 %v397_v37, %v394_v36  ;;  %v2911_v17 = vcombine.low %v4633_v22, %v4638_v49  ;;  %v3742_v22 = vld [vmem:[%s4957_s1 + $0x814] ss:$8 sps:$4 sm:$0xff]   ;;  %v745_v37 = vld [vmem:[%s4958_s2] sm:$0x3] }
  0xd9   : > { %2717 = vmatprep.subr.bf16.mxu0 %v3676_v47  ;;  %v3731_v47 = vld [vmem:[%s4957_s1 + $0x3f0] ss:$8 sps:$4 sm:$0xff]  }
  0xdb   : > { %2514 = vmatpush1.bf16.msra.mxu1 %v3671_v48  ;;  %v3734_v48 = vld [vmem:[%s4957_s1 + $0x7f0] ss:$8 sps:$4 sm:$0xff]  }
  0xdc   : > { %2718 = vmatpush1.bf16.msra.mxu0 %v3674_v50  ;;  %2515 = vmatprep.subr.bf16.mxu1 %v3679_v51  ;;  %v3739_v50 = vld [vmem:[%s4957_s1 + $0x804] ss:$8 sps:$4 sm:$0xff]   ;;  %v2919_v51 = vcombine.low %v4642_v1, %v4647_v25  ;;  %v3743_v25 = vld [vmem:[%s4957_s1 + $0x820] ss:$8 sps:$4 sm:$0xff]  }
  0xdd   : > { %2719 = vmatprep.subr.bf16.mxu0 %v3682_v52  ;;  %v271_v52 = vsel %vm4582_vm15, %v269_v55, %v270_v44  ;;  %v3740_v55 = vld [vmem:[%s4957_s1 + $0x810] ss:$8 sps:$4 sm:$0xff]  }
  0xde   : > { %v2930_v49 = vcombine.high %v271_v52, %v271_v52  ;;  %v2929_v63 = vcombine.low %v271_v52, %v271_v52 }
  0xdf   : > { %2516 = vmatpush1.bf16.msra.mxu1 %v3677_v58  ;;  %v399_v58 = vsel %vm4621_vm1, %v390_v45, %v398_v46 }
  0xe0   : > { %2720 = vmatpush1.bf16.msra.mxu0 %v3680_v53  ;;  %2517 = vmatprep.subr.bf16.mxu1 %v3685_v57  ;;  %v3737_v53 = vld [vmem:[%s4957_s1 + $0x800] ss:$8 sps:$4 sm:$0xff]   ;;  %v2938_v42 = vcombine.high %v399_v58, %v399_v58  ;;  %v2937_v1 = vcombine.low %v399_v58, %v399_v58  ;;  %v3748_v57 = vld [vmem:[%s4957_s1 + $0x834] ss:$8 sps:$4 sm:$0xff]  }
  0xe1   : > { %2721 = vmatprep.subr.bf16.mxu0 %v3688_v60  ;;  %v2940_v60 = vcombine.high %v4677_v0, %v4677_v0 }
  0xe3   : > { %2518 = vmatpush1.bf16.msra.mxu1 %v3683_v61  ;;  %v3746_v61 = vld [vmem:[%s4957_s1 + $0x830] ss:$8 sps:$4 sm:$0xff]  }
  0xe4   : > { %2722 = vmatpush1.bf16.msra.mxu0 %v3686_v32  ;;  %2519 = vmatprep.subr.bf16.mxu1 %v3691_v33  ;;  %v3751_v32 = vld [vmem:[%s4957_s1 + $0x844] ss:$8 sps:$4 sm:$0xff]   ;;  %v3749_v33 = vld [vmem:[%s4957_s1 + $0x840] ss:$8 sps:$4 sm:$0xff]  }
  0xe5   : > { %2723 = vmatprep.subr.bf16.mxu0 %v3694_v62  ;;  %v3754_v62 = vld [vmem:[%s4957_s1 + $0x854] ss:$8 sps:$4 sm:$0xff]  }
  0xe7   : > { %2520 = vmatpush1.bf16.msra.mxu1 %v3689_v59  ;;  %v3752_v59 = vld [vmem:[%s4957_s1 + $0x850] ss:$8 sps:$4 sm:$0xff]  }
  0xe8   : > { %2724 = vmatpush1.bf16.msra.mxu0 %v3692_v3  ;;  %2521 = vmatprep.subr.bf16.mxu1 %v3697_v4  ;;  %v3755_v3 = vld [vmem:[%s4957_s1 + $0x860] ss:$8 sps:$4 sm:$0xff]   ;;  %v3760_v4 = vld [vmem:[%s4957_s1 + $0x874] ss:$8 sps:$4 sm:$0xff]  }
  0xe9   : > { %2725 = vmatprep.subr.bf16.mxu0 %v3700_v19  ;;  %v3758_v19 = vld [vmem:[%s4957_s1 + $0x870] ss:$8 sps:$4 sm:$0xff]  }
  0xeb   : > { %2522 = vmatpush1.bf16.msra.mxu1 %v3695_v5  ;;  %v3763_v5 = vld [vmem:[%s4957_s1 + $0x884] ss:$8 sps:$4 sm:$0xff]  }
  0xec   : > { %2726 = vmatpush1.bf16.msra.mxu0 %v3698_v7  ;;  %2523 = vmatprep.subr.bf16.mxu1 %v3703_v10  ;;  %v3761_v7 = vld [vmem:[%s4957_s1 + $0x880] ss:$8 sps:$4 sm:$0xff]   ;;  %v3766_v10 = vld [vmem:[%s4957_s1 + $0x894] ss:$8 sps:$4 sm:$0xff]  }
  0xed   : > { %2727 = vmatprep.subr.bf16.mxu0 %v3706_v11  ;;  %v3764_v11 = vld [vmem:[%s4957_s1 + $0x890] ss:$8 sps:$4 sm:$0xff]  }
  0xef   : > { %2524 = vmatpush1.bf16.msra.mxu1 %v3701_v12  ;;  %v3769_v12 = vld [vmem:[%s4957_s1 + $0x8a4] ss:$8 sps:$4 sm:$0xff]  }
  0xf0   : > { %2728 = vmatpush1.bf16.msra.mxu0 %v3704_v13  ;;  %2525 = vmatprep.subr.bf16.mxu1 %v3709_v8  ;;  %v3767_v13 = vld [vmem:[%s4957_s1 + $0x8a0] ss:$8 sps:$4 sm:$0xff]   ;;  %v3772_v8 = vld [vmem:[%s4957_s1 + $0x8b4] ss:$8 sps:$4 sm:$0xff]  }
  0xf1   : > { %2729 = vmatprep.subr.bf16.mxu0 %v3712_v9  ;;  %v3770_v9 = vld [vmem:[%s4957_s1 + $0x8b0] ss:$8 sps:$4 sm:$0xff]  }
  0xf3   : > { %2526 = vmatpush1.bf16.msra.mxu1 %v3707_v15  ;;  %v3775_v15 = vld [vmem:[%s4957_s1 + $0x8c4] ss:$8 sps:$4 sm:$0xff]  }
  0xf4   : > { %2730 = vmatpush1.bf16.msra.mxu0 %v3710_v16  ;;  %2527 = vmatprep.subr.bf16.mxu1 %v3715_v2  ;;  %v3773_v16 = vld [vmem:[%s4957_s1 + $0x8c0] ss:$8 sps:$4 sm:$0xff]   ;;  %v3778_v2 = vld [vmem:[%s4957_s1 + $0x8d4] ss:$8 sps:$4 sm:$0xff]  }
  0xf5   : > { %2731 = vmatprep.subr.bf16.mxu0 %v3718_v18  ;;  %v3776_v18 = vld [vmem:[%s4957_s1 + $0x8d0] ss:$8 sps:$4 sm:$0xff]  }
  0xf7   : > { %2528 = vmatpush1.bf16.msra.mxu1 %v3713_v23  ;;  %v3781_v23 = vld [vmem:[%s4957_s1 + $0x8e4] ss:$8 sps:$4 sm:$0xff]  }
  0xf8   : > { %2732 = vmatpush1.bf16.msra.mxu0 %v3716_v26  ;;  %2529 = vmatprep.subr.bf16.mxu1 %v3721_v6  ;;  %v3779_v26 = vld [vmem:[%s4957_s1 + $0x8e0] ss:$8 sps:$4 sm:$0xff]   ;;  %v3782_v6 = vld [vmem:[%s4957_s1 + $0x8f0] ss:$8 sps:$4 sm:$0xff]  }
  0xf9   : > { %2733 = vmatprep.subr.bf16.mxu0 %v3724_v27  ;;  %v2939_v27 = vcombine.low %v4677_v0, %v4677_v0 }
  0xfb   : > { %2530 = vmatpush1.bf16.msra.mxu1 %v3719_v30 }
  0xfc   : > { %2734 = vmatpush1.bf16.msra.mxu0 %v3722_v31  ;;  %2531 = vmatprep.subr.bf16.mxu1 %v3727_v34 }
  0xfd   : > { %2735 = vmatprep.subr.bf16.mxu0 %v3730_v35  ;;  %v749_v35 = vsub.s32 0, %v748_v29 }
  0xff   : > { %2532 = vmatpush1.bf16.msra.mxu1 %v3725_v38  ;;  %v753_v38 = vsub.s32 1, %v748_v29  ;;  %v750_v0 = vrot.slane %v745_v37, %v749_v35 }
 0x100   : > { %2736 = vmatpush1.bf16.msra.mxu0 %v3728_v39  ;;  %2533 = vmatprep.subr.bf16.mxu1 %v3733_v14 }
 0x101   : > { %2737 = vmatprep.subr.bf16.mxu0 %v3736_v21  ;;  %v754_v39 = vrot.slane %v745_v37, %v753_v38 }
 0x103   : > { %2534 = vmatpush1.bf16.msra.mxu1 %v3731_v47 }
 0x104   : > { %2738 = vmatpush1.bf16.msra.mxu0 %v3734_v48  ;;  %3237 = vmatprep.subr.bf16.mxu1 %v3739_v50 }
 0x105   : > { %2758 = vmatprep.subr.bf16.mxu0 %v3739_v50 }
 0x106   : > { %2536 = vmatmul.mubr.bf16.vlgmr.msra.gmra.mrb[0].mxu1 %v2911_v17 }
 0x107   : > { %2740 = vmatmul.mubr.bf16.vlgmr.msra.gmra.mrb[0].mxu0 %v2919_v51  ;;  %3253 = vmatpush1.bf16.msra.mxu1 %v3737_v53 }
 0x108   : > { %2759 = vmatpush1.bf16.msra.mxu0 %v3737_v53  ;;  %3238 = vmatprep.subr.bf16.mxu1 %v3742_v22 }
 0x109   : > { %2760 = vmatprep.subr.bf16.mxu0 %v3742_v22  ;;  %2545 = vmatprep.mubr.bf16.mxu1 %v2930_v49 }
 0x10a   : > { %2749 = vmatprep.mubr.bf16.mxu0 %v2938_v42 }
 0x10b   : > { %3254 = vmatpush1.bf16.msra.mxu1 %v3740_v55 }
 0x10c   : > { %2761 = vmatpush1.bf16.msra.mxu0 %v3740_v55  ;;  %3239 = vmatprep.subr.bf16.mxu1 %v3745_v56 }
 0x10d   : > { %2762 = vmatprep.subr.bf16.mxu0 %v3745_v56 }
 0x10e   : > { %2546 = vmatmul.mubr.bf16.gmra.mrb[4].mxu1 %v2929_v63 }
 0x10f   : > { %2750 = vmatmul.mubr.bf16.gmra.mrb[4].mxu0 %v2937_v1  ;;  %3255 = vmatpush1.bf16.msra.mxu1 %v3743_v25 }
 0x110   : > { %2763 = vmatpush1.bf16.msra.mxu0 %v3743_v25  ;;  %3240 = vmatprep.subr.bf16.mxu1 %v3748_v57 }
 0x111   : > { %2764 = vmatprep.subr.bf16.mxu0 %v3748_v57  ;;  %2790 = vmatprep.mubr.bf16.mxu0 %v2922_v43  ;;  %v3757_v43 = vld [vmem:[%s4957_s1 + $0x864] ss:$8 sps:$4 sm:$0xff]  }
 0x112   : > { %2800 = vmatprep.mubr.bf16.mxu1 %v2940_v60 }
 0x113   : > { %3256 = vmatpush1.bf16.msra.mxu1 %v3746_v61 }
 0x114   : > { %2765 = vmatpush1.bf16.msra.mxu0 %v3746_v61  ;;  %3241 = vmatprep.subr.bf16.mxu1 %v3751_v32 }
 0x115   : > { %2766 = vmatprep.subr.bf16.mxu0 %v3751_v32 }
 0x117   : > { %3257 = vmatpush1.bf16.msra.mxu1 %v3749_v33 }
 0x118   : > { %2767 = vmatpush1.bf16.msra.mxu0 %v3749_v33  ;;  %3242 = vmatprep.subr.bf16.mxu1 %v3754_v62 }
 0x119   : > { %2768 = vmatprep.subr.bf16.mxu0 %v3754_v62 }
 0x11b   : > { %3258 = vmatpush1.bf16.msra.mxu1 %v3752_v59 }
 0x11c   : > { %2769 = vmatpush1.bf16.msra.mxu0 %v3752_v59  ;;  %3243 = vmatprep.subr.bf16.mxu1 %v3757_v43 }
 0x11d   : > { %2770 = vmatprep.subr.bf16.mxu0 %v3757_v43 }
 0x11f   : > { %3259 = vmatpush1.bf16.msra.mxu1 %v3755_v3 }
 0x120   : > { %2771 = vmatpush1.bf16.msra.mxu0 %v3755_v3  ;;  %3244 = vmatprep.subr.bf16.mxu1 %v3760_v4 }
 0x121   : > { %2772 = vmatprep.subr.bf16.mxu0 %v3760_v4 }
 0x123   : > { %3260 = vmatpush1.bf16.msra.mxu1 %v3758_v19 }
 0x124   : > { %2773 = vmatpush1.bf16.msra.mxu0 %v3758_v19  ;;  %3245 = vmatprep.subr.bf16.mxu1 %v3763_v5 }
 0x125   : > { %2774 = vmatprep.subr.bf16.mxu0 %v3763_v5 }
 0x127   : > { %3261 = vmatpush1.bf16.msra.mxu1 %v3761_v7 }
 0x128   : > { %2775 = vmatpush1.bf16.msra.mxu0 %v3761_v7  ;;  %3246 = vmatprep.subr.bf16.mxu1 %v3766_v10 }
 0x129   : > { %2776 = vmatprep.subr.bf16.mxu0 %v3766_v10 }
 0x12b   : > { %3262 = vmatpush1.bf16.msra.mxu1 %v3764_v11 }
 0x12c   : > { %2777 = vmatpush1.bf16.msra.mxu0 %v3764_v11  ;;  %3247 = vmatprep.subr.bf16.mxu1 %v3769_v12 }
 0x12d   : > { %2778 = vmatprep.subr.bf16.mxu0 %v3769_v12 }
 0x12f   : > { %3263 = vmatpush1.bf16.msra.mxu1 %v3767_v13 }
 0x130   : > { %2779 = vmatpush1.bf16.msra.mxu0 %v3767_v13  ;;  %3248 = vmatprep.subr.bf16.mxu1 %v3772_v8 }
 0x131   : > { %2780 = vmatprep.subr.bf16.mxu0 %v3772_v8 }
 0x133   : > { %3264 = vmatpush1.bf16.msra.mxu1 %v3770_v9 }
 0x134   : > { %2781 = vmatpush1.bf16.msra.mxu0 %v3770_v9  ;;  %3249 = vmatprep.subr.bf16.mxu1 %v3775_v15 }
 0x135   : > { %2782 = vmatprep.subr.bf16.mxu0 %v3775_v15 }
 0x137   : > { %3265 = vmatpush1.bf16.msra.mxu1 %v3773_v16 }
 0x138   : > { %2783 = vmatpush1.bf16.msra.mxu0 %v3773_v16  ;;  %3250 = vmatprep.subr.bf16.mxu1 %v3778_v2 }
 0x139   : > { %2784 = vmatprep.subr.bf16.mxu0 %v3778_v2 }
 0x13b   : > { %3266 = vmatpush1.bf16.msra.mxu1 %v3776_v18 }
 0x13c   : > { %2785 = vmatpush1.bf16.msra.mxu0 %v3776_v18  ;;  %3251 = vmatprep.subr.bf16.mxu1 %v3781_v23 }
 0x13d   : > { %2786 = vmatprep.subr.bf16.mxu0 %v3781_v23 }
 0x13f   : > { %3267 = vmatpush1.bf16.msra.mxu1 %v3779_v26 }
 0x140   : > { %2787 = vmatpush1.bf16.msra.mxu0 %v3779_v26  ;;  %3252 = vmatprep.subr.bf16.mxu1 %v3784_v20 }
 0x141   : > { %2788 = vmatprep.subr.bf16.mxu0 %v3784_v20 }
 0x143   : > { %3268 = vmatpush1.bf16.msra.mxu1 %v3782_v6 }
 0x144   : > { %2789 = vmatpush1.bf16.msra.mxu0 %v3782_v6 }
 0x146   : > { %2801 = vmatmul.mubr.bf16.vlgmr.msra.gmra.mrb[8].mxu1 %v2939_v27 }
 0x147   : > { %2791 = vmatmul.mubr.bf16.vlgmr.msra.gmra.mrb[0].mxu0 %v2921_v41 }
 0x1d9   : > { %v2537_v30 = vpop.f32.mrb[0].mxu1 }
 0x1da   : > { %v2539_v31 = vpop.f32.mrb[1].mxu1  ;;  %v3269_v17 = vadd.f32 %v2537_v30, %v750_v0 }
 0x1db   : > { %v2541_v34 = vpop.f32.mrb[2].mxu1  ;;  %v3271_v51 = vadd.f32 %v2539_v31, %v754_v39 }
 0x1dc   : > { %v2543_v36 = vpop.f32.mrb[3].mxu1  ;;  %v3273_v53 = vadd.f32 %v2541_v34, %v750_v0 }
 0x1dd   : > { %v3275_v56 = vadd.f32 %v2543_v36, %v754_v39 }
 0x1e1   : > { %v2547_v40 = vpop.f32.mrb[4].mxu1 }
 0x1e2   : > { %v2751_v14 = vpop.f32.mrb[4].mxu0  ;;  %v3277_v21 = vadd.f32 %v2547_v40, %v750_v0  ;;  %v2549_v24 = vpop.f32.mrb[5].mxu1 }
 0x1e3   : > { %v2753_v54 = vpop.f32.mrb[5].mxu0  ;;  %v3280_v41 = vadd.f32 %v2549_v24, %v754_v39  ;;  %v2551_v44 = vpop.f32.mrb[6].mxu1 }
 0x1e4   : > { %v2755_v45 = vpop.f32.mrb[6].mxu0  ;;  %v3278_v46 = vadd.f32 %v3277_v21, %v2751_v14  ;;  %v2552_v47 = vpop.f32.mrb[7].mxu1 }
 0x1e5   : > { %v2756_v48 = vpop.f32.mrb[7].mxu0  ;;  %v3281_v50 = vadd.f32 %v3280_v41, %v2753_v54 }
 0x219   : > { %v2802_v58 = vpop.f32.mrb[8].mxu1 }
 0x21a   : > { %v2792_v52 = vpop.f32.mrb[0].mxu0  ;;  %v3279_v49 = vadd.f32 %v3278_v46, %v2802_v58  ;;  %v2804_v55 = vpop.f32.mrb[9].mxu1 }
 0x21b   : > { %v3270_v22 = vadd.f32 %v3269_v17, %v2792_v52  ;;  %v2794_v42 = vpop.f32.mrb[1].mxu0  ;;  %v3282_v1 = vadd.f32 %v3281_v50, %v2804_v55  ;;  %v2806_v57 = vpop.f32.mrb[10].mxu1 }
 0x21c   : > { %v3272_v63 = vadd.f32 %v3271_v51, %v2794_v42  ;;  %v2796_v25 = vpop.f32.mrb[2].mxu0  ;;  %v2813_v61 = vmax.f32 %v3279_v49, 0.0  ;;  %v2807_v62 = vpop.f32.mrb[11].mxu1 }
 0x21d   : > { %v2809_v60 = vmax.f32 %v3270_v22, 0.0  ;;  %v3274_v32 = vadd.f32 %v3273_v53, %v2796_v25  ;;  %v2798_v33 = vpop.f32.mrb[3].mxu0  ;;  %v2814_v43 = vmax.f32 %v3282_v1, 0.0 }
 0x21e   : > { %v2810_v59 = vmax.f32 %v3272_v63, 0.0  ;;  %v3276_v3 = vadd.f32 %v3275_v56, %v2798_v33 }
 0x21f   : > { %v2811_v4 = vmax.f32 %v3274_v32, 0.0  ;;  %v3236_v5 = vpack.c.bf16 %v2814_v43, %v2813_v61 }
 0x220   : > { %v3234_v19 = vpack.c.bf16 %v2810_v59, %v2809_v60  ;;  %v2812_v7 = vmax.f32 %v3276_v3, 0.0 }
 0x221   : > { %2837 = vst [vmem:[%s170_s16 + $0x10] sm:$0xff] %v3236_v5 }
 0x222   : > { %2835 = vst [vmem:[%s170_s16] sm:$0xff] %v3234_v19  ;;  %v3235_v10 = vpack.c.bf16 %v2812_v7, %v2811_v4 }
 0x224   : > { %2836 = vst [vmem:[%s170_s16 + $0x8] sm:$0xff] %v3235_v10 }
 0x225 PF: > { %s13_s12 = sadd.s32 1, %s3791_s12  }
 0x226   : > { %p10_p4 = scmp.ge.s32.totalorder %s13_s12, 6  }
 0x228   :  { %12 = sbr.rel (!%p10_p4) target bundleno = 1 (0x1), region = 62 }

</bundles_post_ra>
